<compile_context>
chip_gen: v7x
topology: tpu7x:2x2x1
jax: 0.10.0
libtpu: 0.0.40
codegen_flags: <defaults>
</compile_context>

<pallas_src>
import functools

import numpy as np

import jax
import jax.numpy as jnp
from jax.experimental import pallas as pl
from jax.experimental.pallas import tpu as pltpu


def _rup(x, m):
    return ((x + m - 1) // m) * m


# ----------------------------------------------------------------------------
# Pallas kernels
# ----------------------------------------------------------------------------
def _conv_tap_kernel(*refs, offsets, relu, has_bias, want_stats):
    """Fused tap-accumulated conv matmul for one batch sample.

    refs = (x, w, [bias], [mask], y, [sum, sumsq])
      x    : (1, Lp, Cin)  bf16  -- flattened padded image (VMEM, one sample)
      w    : (T, Cin, Cout) bf16 -- one (Cin, Cout) weight slab per tap
      bias : (1, Cout) f32
      mask : (Lo, 1) f32         -- 1.0 for valid (non-junk) output positions
      y    : (1, Lo, Cout) bf16
      sum/sumsq : (1, 1, Cout) f32 (per-sample BN partial statistics)
    """
    it = iter(refs)
    x_ref = next(it)
    w_ref = next(it)
    b_ref = next(it) if has_bias else None
    m_ref = next(it) if want_stats else None
    y_ref = next(it)
    s_ref = next(it) if want_stats else None
    q_ref = next(it) if want_stats else None

    lo = y_ref.shape[1]
    acc = None
    for t, off in enumerate(offsets):            # static unroll over taps
        xt = x_ref[0, off:off + lo, :]           # shifted view, stays in VMEM
        d = jnp.dot(xt, w_ref[t], preferred_element_type=jnp.float32)
        acc = d if acc is None else acc + d
    if has_bias:
        acc = acc + b_ref[...]
    if relu:
        acc = jnp.maximum(acc, 0.0)
    y_ref[0] = acc.astype(y_ref.dtype)
    if want_stats:
        masked = acc * m_ref[...]
        s_ref[0] = jnp.sum(masked, axis=0, keepdims=True)
        q_ref[0] = jnp.sum(masked * masked, axis=0, keepdims=True)


def _affine_kernel(*refs, relu, has_res, res_affine):
    """out = act(x * sx + bx [+ (r * sr + br)]) with per-channel affines."""
    it = iter(refs)
    x_ref = next(it)
    s_ref = next(it)
    b_ref = next(it)
    r_ref = next(it) if has_res else None
    rs_ref = next(it) if (has_res and res_affine) else None
    rb_ref = next(it) if (has_res and res_affine) else None
    o_ref = next(it)

    v = x_ref[...].astype(jnp.float32) * s_ref[...] + b_ref[...]
    if has_res:
        rv = r_ref[...].astype(jnp.float32)
        if res_affine:
            rv = rv * rs_ref[...] + rb_ref[...]
        v = v + rv
    if relu:
        v = jnp.maximum(v, 0.0)
    o_ref[...] = v.astype(o_ref.dtype)


# ----------------------------------------------------------------------------
# Conv wrappers (no im2col in HBM: taps are accumulated inside the kernel)
# ----------------------------------------------------------------------------
def conv2d_s1(xpad, w_taps, bias, *, KH, KW, out_h, out_w, relu=False,
              want_stats=False):
    """Stride-1 KHxKW conv over a pre-padded NHWC input.

    xpad   : (N, Hp, P, Cin) with P == out_w + KW - 1 and
             Hp * P >= out_h * P + (KH - 1) * P + (KW - 1).
    w_taps : (KH*KW, Cin, Cout).  bias: (Cout,) or None.
    Returns y (N, out_h, out_w, Cout) bf16 and, if want_stats, per-output-channel
    (sum, sum_sq, count) over the valid output positions of act(conv + bias).
    """
    N, Hp, P, Cin = xpad.shape
    T, Cin2, Cout = w_taps.shape
    assert T == KH * KW and Cin2 == Cin and P == out_w + KW - 1
    Lp = Hp * P
    Lo = out_h * P
    assert Lp >= (KH - 1) * P + (KW - 1) + Lo, "insufficient spatial padding"

    xf = xpad.reshape(N, Lp, Cin).astype(jnp.bfloat16)
    wt = w_taps.astype(jnp.bfloat16)
    offsets = tuple(kh * P + kw for kh in range(KH) for kw in range(KW))
    has_bias = bias is not None

    inputs = [xf, wt]
    in_specs = [
        pl.BlockSpec((1, Lp, Cin), lambda n: (n, 0, 0)),       # whole image/sample
        pl.BlockSpec((T, Cin, Cout), lambda n: (0, 0, 0)),     # whole weight, DMA'd once
    ]
    if has_bias:
        inputs.append(bias.reshape(1, Cout).astype(jnp.float32))
        in_specs.append(pl.BlockSpec((1, Cout), lambda n: (0, 0)))
    if want_stats:
        mask = jnp.asarray(((np.arange(Lo) % P) < out_w)
                           .astype(np.float32).reshape(Lo, 1))
        inputs.append(mask)
        in_specs.append(pl.BlockSpec((Lo, 1), lambda n: (0, 0)))

    kern = functools.partial(_conv_tap_kernel, offsets=offsets, relu=relu,
                             has_bias=has_bias, want_stats=want_stats)
    if want_stats:
        out_shape = [
            jax.ShapeDtypeStruct((N, Lo, Cout), jnp.bfloat16),
            jax.ShapeDtypeStruct((N, 1, Cout), jnp.float32),
            jax.ShapeDtypeStruct((N, 1, Cout), jnp.float32),
        ]
        out_specs = [
            pl.BlockSpec((1, Lo, Cout), lambda n: (n, 0, 0)),
            pl.BlockSpec((1, 1, Cout), lambda n: (n, 0, 0)),
            pl.BlockSpec((1, 1, Cout), lambda n: (n, 0, 0)),
        ]
    else:
        out_shape = jax.ShapeDtypeStruct((N, Lo, Cout), jnp.bfloat16)
        out_specs = pl.BlockSpec((1, Lo, Cout), lambda n: (n, 0, 0))

    res = pl.pallas_call(
        kern,
        out_shape=out_shape,
        grid_spec=pltpu.PrefetchScalarGridSpec(
            num_scalar_prefetch=0,
            grid=(N,),
            in_specs=in_specs,
            out_specs=out_specs),
        compiler_params=pltpu.CompilerParams(dimension_semantics=("parallel",)),
    )(*inputs)

    if want_stats:
        yflat, ssum, ssq = res
    else:
        yflat = res
    y = yflat.reshape(N, out_h, P, Cout)[:, :, :out_w, :]  # drop junk width cols
    if want_stats:
        ssum = jnp.sum(ssum.reshape(N, Cout), axis=0)
        ssq = jnp.sum(ssq.reshape(N, Cout), axis=0)
        count = N * out_h * out_w
        return y, (ssum, ssq, count)
    return y


def conv3x3(x, w, *, stride=1, want_stats=True):
    """3x3 conv, padding=1, bias=False (resnet style). w: (Cout, Cin, 3, 3)."""
    N, H, W, Cin = x.shape
    Cout = w.shape[0]
    if stride == 1:
        xp = jnp.pad(x, ((0, 0), (1, 2), (1, 1), (0, 0)))     # extra bottom halo row
        wt = jnp.transpose(w, (2, 3, 1, 0)).reshape(9, Cin, Cout)
        return conv2d_s1(xp, wt, None, KH=3, KW=3, out_h=H, out_w=W,
                         relu=False, want_stats=want_stats)
    assert stride == 2 and H % 2 == 0 and W % 2 == 0
    # space-to-depth: 3x3/s2 conv == 2x2/s1 conv over the 4-phase input
    xp = jnp.pad(x, ((0, 0), (1, 3), (1, 1), (0, 0)))          # (N, H+4, W+2, Cin)
    xs = xp.reshape(N, (H + 4) // 2, 2, (W + 2) // 2, 2, Cin)
    xs = jnp.transpose(xs, (0, 1, 3, 2, 4, 5)).reshape(
        N, (H + 4) // 2, (W + 2) // 2, 4 * Cin)
    wp = jnp.pad(w, ((0, 0), (0, 0), (0, 1), (0, 1)))          # (Cout, Cin, 4, 4)
    wt = wp.reshape(Cout, Cin, 2, 2, 2, 2)                     # [co, c, a, ph, b, pw]
    wt = jnp.transpose(wt, (2, 4, 3, 5, 1, 0)).reshape(4, 4 * Cin, Cout)
    return conv2d_s1(xs, wt, None, KH=2, KW=2, out_h=H // 2, out_w=W // 2,
                     relu=False, want_stats=want_stats)


def conv7x7_s2(x, w, *, want_stats=True):
    """7x7 conv, stride 2, padding 3, bias=False. w: (Cout, Cin, 7, 7)."""
    N, H, W, Cin = x.shape
    Cout = w.shape[0]
    assert H % 2 == 0 and W % 2 == 0
    xp = jnp.pad(x, ((0, 0), (3, 5), (3, 3), (0, 0)))          # (N, H+8, W+6, Cin)
    xs = xp.reshape(N, (H + 8) // 2, 2, (W + 6) // 2, 2, Cin)
    xs = jnp.transpose(xs, (0, 1, 3, 2, 4, 5)).reshape(
        N, (H + 8) // 2, (W + 6) // 2, 4 * Cin)
    wp = jnp.pad(w, ((0, 0), (0, 0), (0, 1), (0, 1)))          # (Cout, Cin, 8, 8)
    wt = wp.reshape(Cout, Cin, 4, 2, 4, 2)                     # [co, c, a, ph, b, pw]
    wt = jnp.transpose(wt, (2, 4, 3, 5, 1, 0)).reshape(16, 4 * Cin, Cout)
    return conv2d_s1(xs, wt, None, KH=4, KW=4, out_h=H // 2, out_w=W // 2,
                     relu=False, want_stats=want_stats)


def conv1x1(x, w, b=None, *, relu=False, want_stats=False):
    """1x1 conv. w: (Cout, Cin, 1, 1)."""
    N, H, W, Cin = x.shape
    Cout = w.shape[0]
    wt = jnp.transpose(w[:, :, 0, 0], (1, 0)).reshape(1, Cin, Cout)
    return conv2d_s1(x, wt, b, KH=1, KW=1, out_h=H, out_w=W,
                     relu=relu, want_stats=want_stats)


def deconv2x2(x, w, b, *, relu=False, want_stats=False):
    """ConvTranspose2d(kernel=2, stride=2). w: (Cin, Cout, 2, 2) torch layout."""
    N, H, W, Cin = x.shape
    Cout = w.shape[1]
    wt = jnp.transpose(w, (0, 2, 3, 1)).reshape(1, Cin, 4 * Cout)   # cols=(di,dj,co)
    bias4 = jnp.tile(b, 4)
    res = conv2d_s1(x, wt, bias4, KH=1, KW=1, out_h=H, out_w=W,
                    relu=relu, want_stats=want_stats)
    if want_stats:
        y, (s, q, cnt) = res
    else:
        y = res
    y = y.reshape(N, H, W, 2, 2, Cout).transpose(0, 1, 3, 2, 4, 5)
    y = y.reshape(N, 2 * H, 2 * W, Cout)
    if want_stats:
        s = s.reshape(4, Cout).sum(axis=0)
        q = q.reshape(4, Cout).sum(axis=0)
        return y, (s, q, cnt * 4)
    return y


# ----------------------------------------------------------------------------
# Fused BatchNorm affine (+ residual + ReLU) application
# ----------------------------------------------------------------------------
def bn_scale_shift(stats, gamma, beta, eps=1e-5):
    """Training-mode BN (batch stats, biased variance) from fused kernel stats."""
    ssum, ssq, count = stats
    mean = ssum / count
    var = jnp.maximum(ssq / count - mean * mean, 0.0)
    scale = gamma / jnp.sqrt(var + eps)
    shift = beta - mean * scale
    return scale, shift


def affine_apply(x, scale, shift, *, residual=None, res_scale=None,
                 res_shift=None, relu=False, out_dtype=jnp.bfloat16):
    """out = act(x*scale + shift [+ (residual*res_scale + res_shift | residual)])."""
    orig_shape = x.shape
    C = orig_shape[-1]
    xf = x.reshape(-1, C).astype(jnp.bfloat16)
    M = xf.shape[0]
    has_res = residual is not None
    res_affine = res_scale is not None
    rf = residual.reshape(-1, C).astype(jnp.bfloat16) if has_res else None

    # Large row tiles (whole extent at these sizes) -> no pad copies, few steps.
    if M <= 4096:
        tm, mp = M, M
    else:
        tm = next((t for t in (4096, 2048, 1024, 512, 256, 128, 8) if M % t == 0), 0)
        mp = M
        if tm == 0:
            tm = 1024
            mp = _rup(M, tm)
            xf = jnp.pad(xf, ((0, mp - M), (0, 0)))
            if has_res:
                rf = jnp.pad(rf, ((0, mp - M), (0, 0)))

    inputs = [xf,
              scale.reshape(1, C).astype(jnp.float32),
              shift.reshape(1, C).astype(jnp.float32)]
    in_specs = [pl.BlockSpec((tm, C), lambda i: (i, 0)),
                pl.BlockSpec((1, C), lambda i: (0, 0)),
                pl.BlockSpec((1, C), lambda i: (0, 0))]
    if has_res:
        inputs.append(rf)
        in_specs.append(pl.BlockSpec((tm, C), lambda i: (i, 0)))
        if res_affine:
            inputs += [res_scale.reshape(1, C).astype(jnp.float32),
                       res_shift.reshape(1, C).astype(jnp.float32)]
            in_specs += [pl.BlockSpec((1, C), lambda i: (0, 0)),
                         pl.BlockSpec((1, C), lambda i: (0, 0))]

    out = pl.pallas_call(
        functools.partial(_affine_kernel, relu=relu, has_res=has_res,
                          res_affine=res_affine),
        out_shape=jax.ShapeDtypeStruct((mp, C), out_dtype),
        grid_spec=pltpu.PrefetchScalarGridSpec(
            num_scalar_prefetch=0,
            grid=(mp // tm,),
            in_specs=in_specs,
            out_specs=pl.BlockSpec((tm, C), lambda i: (i, 0))),
        compiler_params=pltpu.CompilerParams(dimension_semantics=("parallel",)),
    )(*inputs)
    return out[:M].reshape(orig_shape)


# ----------------------------------------------------------------------------
# Non-matmul glue (small tensors, plain JAX)
# ----------------------------------------------------------------------------
def max_pool_3x3_s2(x):
    """MaxPool2d(3, stride=2, padding=1); input is post-ReLU so zero-pad is safe."""
    N, H, W, C = x.shape
    Ho, Wo = H // 2, W // 2
    xp = jnp.pad(x, ((0, 0), (1, 1), (1, 1), (0, 0)))
    out = None
    for dh in range(3):
        for dw in range(3):
            v = xp[:, dh::2, dw::2, :][:, :Ho, :Wo, :]
            out = v if out is None else jnp.maximum(out, v)
    return out


def upsample2x_bilinear_align_corners(x):
    """nn.Upsample(scale_factor=2, mode='bilinear', align_corners=True)."""
    N, H, W, C = x.shape
    Ho, Wo = 2 * H, 2 * W

    def grid(inp, out):
        if inp == 1:
            src = np.zeros((out,), np.float32)
        else:
            src = np.arange(out, dtype=np.float32) * (inp - 1) / (out - 1)
        i0 = np.clip(np.floor(src).astype(np.int32), 0, inp - 1)
        i1 = np.clip(i0 + 1, 0, inp - 1)
        w = (src - i0).astype(np.float32)
        return jnp.asarray(i0), jnp.asarray(i1), jnp.asarray(w)

    h0, h1, wh = grid(H, Ho)
    w0, w1, ww = grid(W, Wo)
    xf = x.astype(jnp.float32)
    rows = (xf[:, h0, :, :] * (1.0 - wh)[None, :, None, None]
            + xf[:, h1, :, :] * wh[None, :, None, None])
    out = (rows[:, :, w0, :] * (1.0 - ww)[None, None, :, None]
           + rows[:, :, w1, :] * ww[None, None, :, None])
    return out.astype(x.dtype)


# ----------------------------------------------------------------------------
# Network blocks
# ----------------------------------------------------------------------------
def basic_block(x, p, *, stride=1):
    """resnet BasicBlock: conv-bn-relu-conv-bn (+ downsample) + residual, relu."""
    y1, st1 = conv3x3(x, p['w1'], stride=stride, want_stats=True)
    s1, b1 = bn_scale_shift(st1, p['g1'], p['b1'])
    y1 = affine_apply(y1, s1, b1, relu=True)

    y2, st2 = conv3x3(y1, p['w2'], stride=1, want_stats=True)
    s2, b2 = bn_scale_shift(st2, p['g2'], p['b2'])

    if 'wd' in p:
        xd = x[:, ::stride, ::stride, :] if stride > 1 else x
        yd, std = conv1x1(xd, p['wd'], None, want_stats=True)
        sd, bd = bn_scale_shift(std, p['gd'], p['bd'])
        return affine_apply(y2, s2, b2, residual=yd, res_scale=sd,
                            res_shift=bd, relu=True)
    return affine_apply(y2, s2, b2, residual=x, relu=True)


def unet_block(up_p, x_p, p):
    """fastai-style UnetBlock: BN(ReLU(cat([tr_conv(up_p), x_conv(x_p)])))."""
    up, st_u = deconv2x2(up_p, p['tw'], p['tb'], relu=True, want_stats=True)
    xc, st_x = conv1x1(x_p, p['xw'], p['xb'], relu=True, want_stats=True)
    cat = jnp.concatenate([up, xc], axis=-1)
    ssum = jnp.concatenate([st_u[0], st_x[0]])
    ssq = jnp.concatenate([st_u[1], st_x[1]])
    scale, shift = bn_scale_shift((ssum, ssq, st_u[2]), p['g'], p['b'])
    return affine_apply(cat, scale, shift, relu=False)


# ----------------------------------------------------------------------------
# Forward pass
# ----------------------------------------------------------------------------
def _forward(params, x_nchw):
    x = jnp.transpose(x_nchw, (0, 2, 3, 1)).astype(jnp.bfloat16)   # NCHW -> NHWC

    # --- resnet34 encoder, children()[:6] ---
    y, st = conv7x7_s2(x, params['conv1_w'], want_stats=True)
    s, b = bn_scale_shift(st, params['bn1_g'], params['bn1_b'])
    feat_relu = affine_apply(y, s, b, relu=True)          # SaveFeatures[0]: (N,H/2,W/2,64)

    h = max_pool_3x3_s2(feat_relu)                        # (N, H/4, W/4, 64)
    for blk in params['layer1']:
        h = basic_block(h, blk, stride=1)
    feat_layer1 = h                                       # SaveFeatures[1]: (N,H/4,W/4,64)

    h = basic_block(h, params['layer2'][0], stride=2)     # (N, H/8, W/8, 128)
    for blk in params['layer2'][1:]:
        h = basic_block(h, blk, stride=1)
    # F.relu(self.rn(x)) is a no-op: the last BasicBlock already ends with ReLU.

    # --- decoder ---
    h = unet_block(h, feat_layer1, params['up2'])         # (N, H/4, W/4, 256)
    h = unet_block(h, feat_relu, params['up3'])           # (N, H/2, W/2, 128)
    h = upsample2x_bilinear_align_corners(h)              # (N, H,   W,   128)
    out = conv1x1(h, params['out_w'], params['out_b'])    # (N, H, W, num_classes)

    num_classes = params['out_w'].shape[0]
    out = out[..., :num_classes]
    return jnp.transpose(out, (0, 3, 1, 2)).astype(jnp.float32)


resunet_forward = jax.jit(_forward)


# ----------------------------------------------------------------------------
# Deterministic synthetic parameters (pretrained weights cannot be loaded here)
# ----------------------------------------------------------------------------
def _kaiming(key, shape, fan_in):
    return jax.random.normal(key, shape, jnp.float32) * (2.0 / fan_in) ** 0.5


def init_resunet_params(key, num_classes=2):
    keys = iter(jax.random.split(key, 40))
    nxt = lambda: next(keys)
    ones = lambda c: jnp.ones((c,), jnp.float32)
    zeros = lambda c: jnp.zeros((c,), jnp.float32)

    p = {'conv1_w': _kaiming(nxt(), (64, 3, 7, 7), 3 * 49),
         'bn1_g': ones(64), 'bn1_b': zeros(64)}

    def basic(cin, cout, downsample):
        d = {'w1': _kaiming(nxt(), (cout, cin, 3, 3), cin * 9),
             'g1': ones(cout), 'b1': zeros(cout),
             'w2': _kaiming(nxt(), (cout, cout, 3, 3), cout * 9),
             'g2': ones(cout), 'b2': zeros(cout)}
        if downsample:
            d['wd'] = _kaiming(nxt(), (cout, cin, 1, 1), cin)
            d['gd'] = ones(cout)
            d['bd'] = zeros(cout)
        return d

    p['layer1'] = [basic(64, 64, False) for _ in range(3)]
    p['layer2'] = [basic(64, 128, True)] + [basic(128, 128, False) for _ in range(3)]

    def unet(up_in, x_in, n_out):
        half = n_out // 2
        return {'tw': _kaiming(nxt(), (up_in, half, 2, 2), up_in * 4),
                'tb': jax.random.uniform(nxt(), (half,), jnp.float32, -0.1, 0.1),
                'xw': _kaiming(nxt(), (half, x_in, 1, 1), x_in),
                'xb': jax.random.uniform(nxt(), (half,), jnp.float32, -0.1, 0.1),
                'g': ones(n_out), 'b': zeros(n_out)}

    p['up2'] = unet(128, 64, 256)
    p['up3'] = unet(256, 64, 128)
    p['out_w'] = _kaiming(nxt(), (num_classes, 128, 1, 1), 128)
    p['out_b'] = jax.random.uniform(nxt(), (num_classes,), jnp.float32, -0.1, 0.1)
    return p


if __name__ == "__main__":
    key = jax.random.PRNGKey(0)
    kp, kx = jax.random.split(key)
    params = init_resunet_params(kp, num_classes=2)

    x = jax.random.normal(kx, (2, 3, 16, 16), jnp.float32)

    out = resunet_forward(params, x)
    out = jax.block_until_ready(out)

    assert out.shape == (2, 2, 16, 16), out.shape
    assert bool(jnp.all(jnp.isfinite(out)))
    print("KERNEL_OK")
</pallas_src>

<mosaic_0001>
module attributes {stable_mosaic.version = 11 : i64} {
  func.func @_conv_tap_kernel(%arg0: i32, %arg1: memref<1x132x12xbf16, #tpu.memory_space<vmem>>, %arg2: memref<16x12x64xbf16, #tpu.memory_space<vmem>>, %arg3: memref<88x1xf32, #tpu.memory_space<vmem>>, %arg4: memref<1x88x64xbf16, #tpu.memory_space<vmem>>, %arg5: memref<1x1x64xf32, #tpu.memory_space<vmem>>, %arg6: memref<1x1x64xf32, #tpu.memory_space<vmem>>) attributes {dimension_semantics = [#tpu.dimension_semantics<parallel>], iteration_bounds = array<i64: 2>, scalar_prefetch = 0 : i64, scratch_operands = 0 : i64, tpu.core_type = #tpu.core_type<tc>, window_params = [{transform_indices = @transform_0, window_bounds = array<i64: 1, 132, 12>}, {pipeline_mode = #tpu.pipeline_mode<synchronous>, transform_indices = @transform_1, window_bounds = array<i64: 16, 12, 64>}, {pipeline_mode = #tpu.pipeline_mode<synchronous>, transform_indices = @transform_2, window_bounds = array<i64: 88, 1>}, {transform_indices = @transform_3, window_bounds = array<i64: 1, 88, 64>}, {transform_indices = @transform_4, window_bounds = array<i64: 1, 1, 64>}, {transform_indices = @transform_5, window_bounds = array<i64: 1, 1, 64>}]} {
    %c0 = arith.constant 0 : index
    %c0_0 = arith.constant 0 : index
    %c0_1 = arith.constant 0 : index
    %0 = vector.load %arg1[%c0, %c0_0, %c0_1] : memref<1x132x12xbf16, #tpu.memory_space<vmem>>, vector<1x88x12xbf16>
    %1 = vector.shape_cast %0 : vector<1x88x12xbf16> to vector<88x12xbf16>
    %c0_2 = arith.constant 0 : index
    %c0_3 = arith.constant 0 : index
    %c0_4 = arith.constant 0 : index
    %2 = vector.load %arg2[%c0_2, %c0_3, %c0_4] : memref<16x12x64xbf16, #tpu.memory_space<vmem>>, vector<1x12x64xbf16>
    %3 = vector.shape_cast %2 : vector<1x12x64xbf16> to vector<12x64xbf16>
    %cst = arith.constant dense<0.000000e+00> : vector<88x64xf32>
    %4 = tpu.matmul %1, %3, %cst {dimension_numbers = #tpu.dot_dimension_numbers<[1], [0], [0], [1], [0, 0, 1, 1], [], []>} : vector<88x12xbf16>, vector<12x64xbf16>, vector<88x64xf32> -> vector<88x64xf32>
    %c0_5 = arith.constant 0 : index
    %c1 = arith.constant 1 : index
    %c0_6 = arith.constant 0 : index
    %5 = vector.load %arg1[%c0_5, %c1, %c0_6] : memref<1x132x12xbf16, #tpu.memory_space<vmem>>, vector<1x88x12xbf16>
    %6 = vector.shape_cast %5 : vector<1x88x12xbf16> to vector<88x12xbf16>
    %c1_7 = arith.constant 1 : index
    %c0_8 = arith.constant 0 : index
    %c0_9 = arith.constant 0 : index
    %7 = vector.load %arg2[%c1_7, %c0_8, %c0_9] : memref<16x12x64xbf16, #tpu.memory_space<vmem>>, vector<1x12x64xbf16>
    %8 = vector.shape_cast %7 : vector<1x12x64xbf16> to vector<12x64xbf16>
    %cst_10 = arith.constant dense<0.000000e+00> : vector<88x64xf32>
    %9 = tpu.matmul %6, %8, %cst_10 {dimension_numbers = #tpu.dot_dimension_numbers<[1], [0], [0], [1], [0, 0, 1, 1], [], []>} : vector<88x12xbf16>, vector<12x64xbf16>, vector<88x64xf32> -> vector<88x64xf32>
    %10 = arith.addf %4, %9 : vector<88x64xf32>
    %c0_11 = arith.constant 0 : index
    %c2 = arith.constant 2 : index
    %c0_12 = arith.constant 0 : index
    %11 = vector.load %arg1[%c0_11, %c2, %c0_12] : memref<1x132x12xbf16, #tpu.memory_space<vmem>>, vector<1x88x12xbf16>
    %12 = vector.shape_cast %11 : vector<1x88x12xbf16> to vector<88x12xbf16>
    %c2_13 = arith.constant 2 : index
    %c0_14 = arith.constant 0 : index
    %c0_15 = arith.constant 0 : index
    %13 = vector.load %arg2[%c2_13, %c0_14, %c0_15] : memref<16x12x64xbf16, #tpu.memory_space<vmem>>, vector<1x12x64xbf16>
    %14 = vector.shape_cast %13 : vector<1x12x64xbf16> to vector<12x64xbf16>
    %cst_16 = arith.constant dense<0.000000e+00> : vector<88x64xf32>
    %15 = tpu.matmul %12, %14, %cst_16 {dimension_numbers = #tpu.dot_dimension_numbers<[1], [0], [0], [1], [0, 0, 1, 1], [], []>} : vector<88x12xbf16>, vector<12x64xbf16>, vector<88x64xf32> -> vector<88x64xf32>
    %16 = arith.addf %10, %15 : vector<88x64xf32>
    %c0_17 = arith.constant 0 : index
    %c3 = arith.constant 3 : index
    %c0_18 = arith.constant 0 : index
    %17 = vector.load %arg1[%c0_17, %c3, %c0_18] : memref<1x132x12xbf16, #tpu.memory_space<vmem>>, vector<1x88x12xbf16>
    %18 = vector.shape_cast %17 : vector<1x88x12xbf16> to vector<88x12xbf16>
    %c3_19 = arith.constant 3 : index
    %c0_20 = arith.constant 0 : index
    %c0_21 = arith.constant 0 : index
    %19 = vector.load %arg2[%c3_19, %c0_20, %c0_21] : memref<16x12x64xbf16, #tpu.memory_space<vmem>>, vector<1x12x64xbf16>
    %20 = vector.shape_cast %19 : vector<1x12x64xbf16> to vector<12x64xbf16>
    %cst_22 = arith.constant dense<0.000000e+00> : vector<88x64xf32>
    %21 = tpu.matmul %18, %20, %cst_22 {dimension_numbers = #tpu.dot_dimension_numbers<[1], [0], [0], [1], [0, 0, 1, 1], [], []>} : vector<88x12xbf16>, vector<12x64xbf16>, vector<88x64xf32> -> vector<88x64xf32>
    %22 = arith.addf %16, %21 : vector<88x64xf32>
    %c0_23 = arith.constant 0 : index
    %c11 = arith.constant 11 : index
    %c0_24 = arith.constant 0 : index
    %23 = vector.load %arg1[%c0_23, %c11, %c0_24] : memref<1x132x12xbf16, #tpu.memory_space<vmem>>, vector<1x88x12xbf16>
    %24 = vector.shape_cast %23 : vector<1x88x12xbf16> to vector<88x12xbf16>
    %c4 = arith.constant 4 : index
    %c0_25 = arith.constant 0 : index
    %c0_26 = arith.constant 0 : index
    %25 = vector.load %arg2[%c4, %c0_25, %c0_26] : memref<16x12x64xbf16, #tpu.memory_space<vmem>>, vector<1x12x64xbf16>
    %26 = vector.shape_cast %25 : vector<1x12x64xbf16> to vector<12x64xbf16>
    %cst_27 = arith.constant dense<0.000000e+00> : vector<88x64xf32>
    %27 = tpu.matmul %24, %26, %cst_27 {dimension_numbers = #tpu.dot_dimension_numbers<[1], [0], [0], [1], [0, 0, 1, 1], [], []>} : vector<88x12xbf16>, vector<12x64xbf16>, vector<88x64xf32> -> vector<88x64xf32>
    %28 = arith.addf %22, %27 : vector<88x64xf32>
    %c0_28 = arith.constant 0 : index
    %c12 = arith.constant 12 : index
    %c0_29 = arith.constant 0 : index
    %29 = vector.load %arg1[%c0_28, %c12, %c0_29] : memref<1x132x12xbf16, #tpu.memory_space<vmem>>, vector<1x88x12xbf16>
    %30 = vector.shape_cast %29 : vector<1x88x12xbf16> to vector<88x12xbf16>
    %c5 = arith.constant 5 : index
    %c0_30 = arith.constant 0 : index
    %c0_31 = arith.constant 0 : index
    %31 = vector.load %arg2[%c5, %c0_30, %c0_31] : memref<16x12x64xbf16, #tpu.memory_space<vmem>>, vector<1x12x64xbf16>
    %32 = vector.shape_cast %31 : vector<1x12x64xbf16> to vector<12x64xbf16>
    %cst_32 = arith.constant dense<0.000000e+00> : vector<88x64xf32>
    %33 = tpu.matmul %30, %32, %cst_32 {dimension_numbers = #tpu.dot_dimension_numbers<[1], [0], [0], [1], [0, 0, 1, 1], [], []>} : vector<88x12xbf16>, vector<12x64xbf16>, vector<88x64xf32> -> vector<88x64xf32>
    %34 = arith.addf %28, %33 : vector<88x64xf32>
    %c0_33 = arith.constant 0 : index
    %c13 = arith.constant 13 : index
    %c0_34 = arith.constant 0 : index
    %35 = vector.load %arg1[%c0_33, %c13, %c0_34] : memref<1x132x12xbf16, #tpu.memory_space<vmem>>, vector<1x88x12xbf16>
    %36 = vector.shape_cast %35 : vector<1x88x12xbf16> to vector<88x12xbf16>
    %c6 = arith.constant 6 : index
    %c0_35 = arith.constant 0 : index
    %c0_36 = arith.constant 0 : index
    %37 = vector.load %arg2[%c6, %c0_35, %c0_36] : memref<16x12x64xbf16, #tpu.memory_space<vmem>>, vector<1x12x64xbf16>
    %38 = vector.shape_cast %37 : vector<1x12x64xbf16> to vector<12x64xbf16>
    %cst_37 = arith.constant dense<0.000000e+00> : vector<88x64xf32>
    %39 = tpu.matmul %36, %38, %cst_37 {dimension_numbers = #tpu.dot_dimension_numbers<[1], [0], [0], [1], [0, 0, 1, 1], [], []>} : vector<88x12xbf16>, vector<12x64xbf16>, vector<88x64xf32> -> vector<88x64xf32>
    %40 = arith.addf %34, %39 : vector<88x64xf32>
    %c0_38 = arith.constant 0 : index
    %c14 = arith.constant 14 : index
    %c0_39 = arith.constant 0 : index
    %41 = vector.load %arg1[%c0_38, %c14, %c0_39] : memref<1x132x12xbf16, #tpu.memory_space<vmem>>, vector<1x88x12xbf16>
    %42 = vector.shape_cast %41 : vector<1x88x12xbf16> to vector<88x12xbf16>
    %c7 = arith.constant 7 : index
    %c0_40 = arith.constant 0 : index
    %c0_41 = arith.constant 0 : index
    %43 = vector.load %arg2[%c7, %c0_40, %c0_41] : memref<16x12x64xbf16, #tpu.memory_space<vmem>>, vector<1x12x64xbf16>
    %44 = vector.shape_cast %43 : vector<1x12x64xbf16> to vector<12x64xbf16>
    %cst_42 = arith.constant dense<0.000000e+00> : vector<88x64xf32>
    %45 = tpu.matmul %42, %44, %cst_42 {dimension_numbers = #tpu.dot_dimension_numbers<[1], [0], [0], [1], [0, 0, 1, 1], [], []>} : vector<88x12xbf16>, vector<12x64xbf16>, vector<88x64xf32> -> vector<88x64xf32>
    %46 = arith.addf %40, %45 : vector<88x64xf32>
    %c0_43 = arith.constant 0 : index
    %c22 = arith.constant 22 : index
    %c0_44 = arith.constant 0 : index
    %47 = vector.load %arg1[%c0_43, %c22, %c0_44] : memref<1x132x12xbf16, #tpu.memory_space<vmem>>, vector<1x88x12xbf16>
    %48 = vector.shape_cast %47 : vector<1x88x12xbf16> to vector<88x12xbf16>
    %c8 = arith.constant 8 : index
    %c0_45 = arith.constant 0 : index
    %c0_46 = arith.constant 0 : index
    %49 = vector.load %arg2[%c8, %c0_45, %c0_46] : memref<16x12x64xbf16, #tpu.memory_space<vmem>>, vector<1x12x64xbf16>
    %50 = vector.shape_cast %49 : vector<1x12x64xbf16> to vector<12x64xbf16>
    %cst_47 = arith.constant dense<0.000000e+00> : vector<88x64xf32>
    %51 = tpu.matmul %48, %50, %cst_47 {dimension_numbers = #tpu.dot_dimension_numbers<[1], [0], [0], [1], [0, 0, 1, 1], [], []>} : vector<88x12xbf16>, vector<12x64xbf16>, vector<88x64xf32> -> vector<88x64xf32>
    %52 = arith.addf %46, %51 : vector<88x64xf32>
    %c0_48 = arith.constant 0 : index
    %c23 = arith.constant 23 : index
    %c0_49 = arith.constant 0 : index
    %53 = vector.load %arg1[%c0_48, %c23, %c0_49] : memref<1x132x12xbf16, #tpu.memory_space<vmem>>, vector<1x88x12xbf16>
    %54 = vector.shape_cast %53 : vector<1x88x12xbf16> to vector<88x12xbf16>
    %c9 = arith.constant 9 : index
    %c0_50 = arith.constant 0 : index
    %c0_51 = arith.constant 0 : index
    %55 = vector.load %arg2[%c9, %c0_50, %c0_51] : memref<16x12x64xbf16, #tpu.memory_space<vmem>>, vector<1x12x64xbf16>
    %56 = vector.shape_cast %55 : vector<1x12x64xbf16> to vector<12x64xbf16>
    %cst_52 = arith.constant dense<0.000000e+00> : vector<88x64xf32>
    %57 = tpu.matmul %54, %56, %cst_52 {dimension_numbers = #tpu.dot_dimension_numbers<[1], [0], [0], [1], [0, 0, 1, 1], [], []>} : vector<88x12xbf16>, vector<12x64xbf16>, vector<88x64xf32> -> vector<88x64xf32>
    %58 = arith.addf %52, %57 : vector<88x64xf32>
    %c0_53 = arith.constant 0 : index
    %c24 = arith.constant 24 : index
    %c0_54 = arith.constant 0 : index
    %59 = vector.load %arg1[%c0_53, %c24, %c0_54] : memref<1x132x12xbf16, #tpu.memory_space<vmem>>, vector<1x88x12xbf16>
    %60 = vector.shape_cast %59 : vector<1x88x12xbf16> to vector<88x12xbf16>
    %c10 = arith.constant 10 : index
    %c0_55 = arith.constant 0 : index
    %c0_56 = arith.constant 0 : index
    %61 = vector.load %arg2[%c10, %c0_55, %c0_56] : memref<16x12x64xbf16, #tpu.memory_space<vmem>>, vector<1x12x64xbf16>
    %62 = vector.shape_cast %61 : vector<1x12x64xbf16> to vector<12x64xbf16>
    %cst_57 = arith.constant dense<0.000000e+00> : vector<88x64xf32>
    %63 = tpu.matmul %60, %62, %cst_57 {dimension_numbers = #tpu.dot_dimension_numbers<[1], [0], [0], [1], [0, 0, 1, 1], [], []>} : vector<88x12xbf16>, vector<12x64xbf16>, vector<88x64xf32> -> vector<88x64xf32>
    %64 = arith.addf %58, %63 : vector<88x64xf32>
    %c0_58 = arith.constant 0 : index
    %c25 = arith.constant 25 : index
    %c0_59 = arith.constant 0 : index
    %65 = vector.load %arg1[%c0_58, %c25, %c0_59] : memref<1x132x12xbf16, #tpu.memory_space<vmem>>, vector<1x88x12xbf16>
    %66 = vector.shape_cast %65 : vector<1x88x12xbf16> to vector<88x12xbf16>
    %c11_60 = arith.constant 11 : index
    %c0_61 = arith.constant 0 : index
    %c0_62 = arith.constant 0 : index
    %67 = vector.load %arg2[%c11_60, %c0_61, %c0_62] : memref<16x12x64xbf16, #tpu.memory_space<vmem>>, vector<1x12x64xbf16>
    %68 = vector.shape_cast %67 : vector<1x12x64xbf16> to vector<12x64xbf16>
    %cst_63 = arith.constant dense<0.000000e+00> : vector<88x64xf32>
    %69 = tpu.matmul %66, %68, %cst_63 {dimension_numbers = #tpu.dot_dimension_numbers<[1], [0], [0], [1], [0, 0, 1, 1], [], []>} : vector<88x12xbf16>, vector<12x64xbf16>, vector<88x64xf32> -> vector<88x64xf32>
    %70 = arith.addf %64, %69 : vector<88x64xf32>
    %c0_64 = arith.constant 0 : index
    %c33 = arith.constant 33 : index
    %c0_65 = arith.constant 0 : index
    %71 = vector.load %arg1[%c0_64, %c33, %c0_65] : memref<1x132x12xbf16, #tpu.memory_space<vmem>>, vector<1x88x12xbf16>
    %72 = vector.shape_cast %71 : vector<1x88x12xbf16> to vector<88x12xbf16>
    %c12_66 = arith.constant 12 : index
    %c0_67 = arith.constant 0 : index
    %c0_68 = arith.constant 0 : index
    %73 = vector.load %arg2[%c12_66, %c0_67, %c0_68] : memref<16x12x64xbf16, #tpu.memory_space<vmem>>, vector<1x12x64xbf16>
    %74 = vector.shape_cast %73 : vector<1x12x64xbf16> to vector<12x64xbf16>
    %cst_69 = arith.constant dense<0.000000e+00> : vector<88x64xf32>
    %75 = tpu.matmul %72, %74, %cst_69 {dimension_numbers = #tpu.dot_dimension_numbers<[1], [0], [0], [1], [0, 0, 1, 1], [], []>} : vector<88x12xbf16>, vector<12x64xbf16>, vector<88x64xf32> -> vector<88x64xf32>
    %76 = arith.addf %70, %75 : vector<88x64xf32>
    %c0_70 = arith.constant 0 : index
    %c34 = arith.constant 34 : index
    %c0_71 = arith.constant 0 : index
    %77 = vector.load %arg1[%c0_70, %c34, %c0_71] : memref<1x132x12xbf16, #tpu.memory_space<vmem>>, vector<1x88x12xbf16>
    %78 = vector.shape_cast %77 : vector<1x88x12xbf16> to vector<88x12xbf16>
    %c13_72 = arith.constant 13 : index
    %c0_73 = arith.constant 0 : index
    %c0_74 = arith.constant 0 : index
    %79 = vector.load %arg2[%c13_72, %c0_73, %c0_74] : memref<16x12x64xbf16, #tpu.memory_space<vmem>>, vector<1x12x64xbf16>
    %80 = vector.shape_cast %79 : vector<1x12x64xbf16> to vector<12x64xbf16>
    %cst_75 = arith.constant dense<0.000000e+00> : vector<88x64xf32>
    %81 = tpu.matmul %78, %80, %cst_75 {dimension_numbers = #tpu.dot_dimension_numbers<[1], [0], [0], [1], [0, 0, 1, 1], [], []>} : vector<88x12xbf16>, vector<12x64xbf16>, vector<88x64xf32> -> vector<88x64xf32>
    %82 = arith.addf %76, %81 : vector<88x64xf32>
    %c0_76 = arith.constant 0 : index
    %c35 = arith.constant 35 : index
    %c0_77 = arith.constant 0 : index
    %83 = vector.load %arg1[%c0_76, %c35, %c0_77] : memref<1x132x12xbf16, #tpu.memory_space<vmem>>, vector<1x88x12xbf16>
    %84 = vector.shape_cast %83 : vector<1x88x12xbf16> to vector<88x12xbf16>
    %c14_78 = arith.constant 14 : index
    %c0_79 = arith.constant 0 : index
    %c0_80 = arith.constant 0 : index
    %85 = vector.load %arg2[%c14_78, %c0_79, %c0_80] : memref<16x12x64xbf16, #tpu.memory_space<vmem>>, vector<1x12x64xbf16>
    %86 = vector.shape_cast %85 : vector<1x12x64xbf16> to vector<12x64xbf16>
    %cst_81 = arith.constant dense<0.000000e+00> : vector<88x64xf32>
    %87 = tpu.matmul %84, %86, %cst_81 {dimension_numbers = #tpu.dot_dimension_numbers<[1], [0], [0], [1], [0, 0, 1, 1], [], []>} : vector<88x12xbf16>, vector<12x64xbf16>, vector<88x64xf32> -> vector<88x64xf32>
    %88 = arith.addf %82, %87 : vector<88x64xf32>
    %c0_82 = arith.constant 0 : index
    %c36 = arith.constant 36 : index
    %c0_83 = arith.constant 0 : index
    %89 = vector.load %arg1[%c0_82, %c36, %c0_83] : memref<1x132x12xbf16, #tpu.memory_space<vmem>>, vector<1x88x12xbf16>
    %90 = vector.shape_cast %89 : vector<1x88x12xbf16> to vector<88x12xbf16>
    %c15 = arith.constant 15 : index
    %c0_84 = arith.constant 0 : index
    %c0_85 = arith.constant 0 : index
    %91 = vector.load %arg2[%c15, %c0_84, %c0_85] : memref<16x12x64xbf16, #tpu.memory_space<vmem>>, vector<1x12x64xbf16>
    %92 = vector.shape_cast %91 : vector<1x12x64xbf16> to vector<12x64xbf16>
    %cst_86 = arith.constant dense<0.000000e+00> : vector<88x64xf32>
    %93 = tpu.matmul %90, %92, %cst_86 {dimension_numbers = #tpu.dot_dimension_numbers<[1], [0], [0], [1], [0, 0, 1, 1], [], []>} : vector<88x12xbf16>, vector<12x64xbf16>, vector<88x64xf32> -> vector<88x64xf32>
    %94 = arith.addf %88, %93 : vector<88x64xf32>
    %95 = arith.truncf %94 : vector<88x64xf32> to vector<88x64xbf16>
    %c0_87 = arith.constant 0 : index
    %c0_88 = arith.constant 0 : index
    %c0_89 = arith.constant 0 : index
    %96 = vector.load %arg4[%c0_87, %c0_88, %c0_89] : memref<1x88x64xbf16, #tpu.memory_space<vmem>>, vector<1x88x64xbf16>
    %97 = vector.shape_cast %96 : vector<1x88x64xbf16> to vector<88x64xbf16>
    %98 = vector.shape_cast %95 : vector<88x64xbf16> to vector<1x88x64xbf16>
    tpu.vector_store %arg4[%c0_87, %c0_88, %c0_89], %98 {strides = array<i32>} : memref<1x88x64xbf16, #tpu.memory_space<vmem>>, vector<1x88x64xbf16>,
    %c0_90 = arith.constant 0 : index
    %c0_91 = arith.constant 0 : index
    %99 = vector.load %arg3[%c0_90, %c0_91] : memref<88x1xf32, #tpu.memory_space<vmem>>, vector<88x1xf32>
    %100 = vector.broadcast %99 : vector<88x1xf32> to vector<88x64xf32>
    %101 = arith.mulf %94, %100 : vector<88x64xf32>
    %cst_92 = arith.constant dense<0.000000e+00> : vector<64xf32>
    %102 = vector.multi_reduction <add>, %101, %cst_92 [0] : vector<88x64xf32> to vector<64xf32>
    %103 = vector.shape_cast %102 : vector<64xf32> to vector<1x64xf32>
    %c0_93 = arith.constant 0 : index
    %c0_94 = arith.constant 0 : index
    %c0_95 = arith.constant 0 : index
    %104 = vector.load %arg5[%c0_93, %c0_94, %c0_95] : memref<1x1x64xf32, #tpu.memory_space<vmem>>, vector<1x1x64xf32>
    %105 = vector.shape_cast %104 : vector<1x1x64xf32> to vector<1x64xf32>
    %106 = vector.shape_cast %103 : vector<1x64xf32> to vector<1x1x64xf32>
    tpu.vector_store %arg5[%c0_93, %c0_94, %c0_95], %106 {strides = array<i32>} : memref<1x1x64xf32, #tpu.memory_space<vmem>>, vector<1x1x64xf32>,
    %107 = arith.mulf %101, %101 : vector<88x64xf32>
    %cst_96 = arith.constant dense<0.000000e+00> : vector<64xf32>
    %108 = vector.multi_reduction <add>, %107, %cst_96 [0] : vector<88x64xf32> to vector<64xf32>
    %109 = vector.shape_cast %108 : vector<64xf32> to vector<1x64xf32>
    %c0_97 = arith.constant 0 : index
    %c0_98 = arith.constant 0 : index
    %c0_99 = arith.constant 0 : index
    %110 = vector.load %arg6[%c0_97, %c0_98, %c0_99] : memref<1x1x64xf32, #tpu.memory_space<vmem>>, vector<1x1x64xf32>
    %111 = vector.shape_cast %110 : vector<1x1x64xf32> to vector<1x64xf32>
    %112 = vector.shape_cast %109 : vector<1x64xf32> to vector<1x1x64xf32>
    tpu.vector_store %arg6[%c0_97, %c0_98, %c0_99], %112 {strides = array<i32>} : memref<1x1x64xf32, #tpu.memory_space<vmem>>, vector<1x1x64xf32>,
    return
  }
  func.func @transform_0(%arg0: i32) -> (i32, i32, i32) {
    %c0_i32 = arith.constant 0 : i32
    %c0_i32_0 = arith.constant 0 : i32
    %c0_i32_1 = arith.constant 0 : i32
    return %arg0, %c0_i32, %c0_i32_0 : i32, i32, i32
  }
  func.func @transform_1(%arg0: i32) -> (i32, i32, i32) {
    %c0_i32 = arith.constant 0 : i32
    %c0_i32_0 = arith.constant 0 : i32
    %c0_i32_1 = arith.constant 0 : i32
    %c0_i32_2 = arith.constant 0 : i32
    return %c0_i32, %c0_i32_0, %c0_i32_1 : i32, i32, i32
  }
  func.func @transform_2(%arg0: i32) -> (i32, i32) {
    %c0_i32 = arith.constant 0 : i32
    %c0_i32_0 = arith.constant 0 : i32
    %c0_i32_1 = arith.constant 0 : i32
    return %c0_i32, %c0_i32_0 : i32, i32
  }
  func.func @transform_3(%arg0: i32) -> (i32, i32, i32) {
    %c0_i32 = arith.constant 0 : i32
    %c0_i32_0 = arith.constant 0 : i32
    %c0_i32_1 = arith.constant 0 : i32
    return %arg0, %c0_i32, %c0_i32_0 : i32, i32, i32
  }
  func.func @transform_4(%arg0: i32) -> (i32, i32, i32) {
    %c0_i32 = arith.constant 0 : i32
    %c0_i32_0 = arith.constant 0 : i32
    %c0_i32_1 = arith.constant 0 : i32
    return %arg0, %c0_i32, %c0_i32_0 : i32, i32, i32
  }
  func.func @transform_5(%arg0: i32) -> (i32, i32, i32) {
    %c0_i32 = arith.constant 0 : i32
    %c0_i32_0 = arith.constant 0 : i32
    %c0_i32_1 = arith.constant 0 : i32
    return %arg0, %c0_i32, %c0_i32_0 : i32, i32, i32
  }
}

module attributes {stable_mosaic.version = 11 : i64} {
  func.func @_affine_kernel(%arg0: i32, %arg1: memref<128x64xbf16, #tpu.memory_space<vmem>>, %arg2: memref<1x64xf32, #tpu.memory_space<vmem>>, %arg3: memref<1x64xf32, #tpu.memory_space<vmem>>, %arg4: memref<128x64xbf16, #tpu.memory_space<vmem>>) attributes {dimension_semantics = [#tpu.dimension_semantics<parallel>], iteration_bounds = array<i64: 1>, scalar_prefetch = 0 : i64, scratch_operands = 0 : i64, tpu.core_type = #tpu.core_type<tc>, window_params = [{transform_indices = @transform_0, window_bounds = array<i64: 128, 64>}, {pipeline_mode = #tpu.pipeline_mode<synchronous>, transform_indices = @transform_1, window_bounds = array<i64: 1, 64>}, {pipeline_mode = #tpu.pipeline_mode<synchronous>, transform_indices = @transform_2, window_bounds = array<i64: 1, 64>}, {transform_indices = @transform_3, window_bounds = array<i64: 128, 64>}]} {
    %c0 = arith.constant 0 : index
    %c0_0 = arith.constant 0 : index
    %0 = vector.load %arg1[%c0, %c0_0] : memref<128x64xbf16, #tpu.memory_space<vmem>>, vector<128x64xbf16>
    %1 = arith.extf %0 : vector<128x64xbf16> to vector<128x64xf32>
    %c0_1 = arith.constant 0 : index
    %c0_2 = arith.constant 0 : index
    %2 = vector.load %arg2[%c0_1, %c0_2] : memref<1x64xf32, #tpu.memory_space<vmem>>, vector<1x64xf32>
    %3 = vector.broadcast %2 : vector<1x64xf32> to vector<128x64xf32>
    %4 = arith.mulf %1, %3 : vector<128x64xf32>
    %c0_3 = arith.constant 0 : index
    %c0_4 = arith.constant 0 : index
    %5 = vector.load %arg3[%c0_3, %c0_4] : memref<1x64xf32, #tpu.memory_space<vmem>>, vector<1x64xf32>
    %6 = vector.broadcast %5 : vector<1x64xf32> to vector<128x64xf32>
    %7 = arith.addf %4, %6 : vector<128x64xf32>
    %cst = arith.constant 0.000000e+00 : f32
    %8 = vector.broadcast %cst : f32 to vector<128x64xf32>
    %9 = arith.maximumf %7, %8 : vector<128x64xf32>
    %10 = arith.truncf %9 : vector<128x64xf32> to vector<128x64xbf16>
    %c0_5 = arith.constant 0 : index
    %c0_6 = arith.constant 0 : index
    %11 = vector.load %arg4[%c0_5, %c0_6] : memref<128x64xbf16, #tpu.memory_space<vmem>>, vector<128x64xbf16>
    tpu.vector_store %arg4[%c0_5, %c0_6], %10 {strides = array<i32>} : memref<128x64xbf16, #tpu.memory_space<vmem>>, vector<128x64xbf16>,
    return
  }
  func.func @transform_0(%arg0: i32) -> (i32, i32) {
    %c0_i32 = arith.constant 0 : i32
    %c0_i32_0 = arith.constant 0 : i32
    return %arg0, %c0_i32 : i32, i32
  }
  func.func @transform_1(%arg0: i32) -> (i32, i32) {
    %c0_i32 = arith.constant 0 : i32
    %c0_i32_0 = arith.constant 0 : i32
    %c0_i32_1 = arith.constant 0 : i32
    return %c0_i32, %c0_i32_0 : i32, i32
  }
  func.func @transform_2(%arg0: i32) -> (i32, i32) {
    %c0_i32 = arith.constant 0 : i32
    %c0_i32_0 = arith.constant 0 : i32
    %c0_i32_1 = arith.constant 0 : i32
    return %c0_i32, %c0_i32_0 : i32, i32
  }
  func.func @transform_3(%arg0: i32) -> (i32, i32) {
    %c0_i32 = arith.constant 0 : i32
    %c0_i32_0 = arith.constant 0 : i32
    return %arg0, %c0_i32 : i32, i32
  }
}

module attributes {stable_mosaic.version = 11 : i64} {
  func.func @_affine_kernel(%arg0: i32, %arg1: memref<32x64xbf16, #tpu.memory_space<vmem>>, %arg2: memref<1x64xf32, #tpu.memory_space<vmem>>, %arg3: memref<1x64xf32, #tpu.memory_space<vmem>>, %arg4: memref<32x64xbf16, #tpu.memory_space<vmem>>, %arg5: memref<32x64xbf16, #tpu.memory_space<vmem>>) attributes {dimension_semantics = [#tpu.dimension_semantics<parallel>], iteration_bounds = array<i64: 1>, scalar_prefetch = 0 : i64, scratch_operands = 0 : i64, tpu.core_type = #tpu.core_type<tc>, window_params = [{transform_indices = @transform_0, window_bounds = array<i64: 32, 64>}, {pipeline_mode = #tpu.pipeline_mode<synchronous>, transform_indices = @transform_1, window_bounds = array<i64: 1, 64>}, {pipeline_mode = #tpu.pipeline_mode<synchronous>, transform_indices = @transform_2, window_bounds = array<i64: 1, 64>}, {transform_indices = @transform_3, window_bounds = array<i64: 32, 64>}, {transform_indices = @transform_4, window_bounds = array<i64: 32, 64>}]} {
    %c0 = arith.constant 0 : index
    %c0_0 = arith.constant 0 : index
    %0 = vector.load %arg1[%c0, %c0_0] : memref<32x64xbf16, #tpu.memory_space<vmem>>, vector<32x64xbf16>
    %1 = arith.extf %0 : vector<32x64xbf16> to vector<32x64xf32>
    %c0_1 = arith.constant 0 : index
    %c0_2 = arith.constant 0 : index
    %2 = vector.load %arg2[%c0_1, %c0_2] : memref<1x64xf32, #tpu.memory_space<vmem>>, vector<1x64xf32>
    %3 = vector.broadcast %2 : vector<1x64xf32> to vector<32x64xf32>
    %4 = arith.mulf %1, %3 : vector<32x64xf32>
    %c0_3 = arith.constant 0 : index
    %c0_4 = arith.constant 0 : index
    %5 = vector.load %arg3[%c0_3, %c0_4] : memref<1x64xf32, #tpu.memory_space<vmem>>, vector<1x64xf32>
    %6 = vector.broadcast %5 : vector<1x64xf32> to vector<32x64xf32>
    %7 = arith.addf %4, %6 : vector<32x64xf32>
    %c0_5 = arith.constant 0 : index
    %c0_6 = arith.constant 0 : index
    %8 = vector.load %arg4[%c0_5, %c0_6] : memref<32x64xbf16, #tpu.memory_space<vmem>>, vector<32x64xbf16>
    %9 = arith.extf %8 : vector<32x64xbf16> to vector<32x64xf32>
    %10 = arith.addf %7, %9 : vector<32x64xf32>
    %cst = arith.constant 0.000000e+00 : f32
    %11 = vector.broadcast %cst : f32 to vector<32x64xf32>
    %12 = arith.maximumf %10, %11 : vector<32x64xf32>
    %13 = arith.truncf %12 : vector<32x64xf32> to vector<32x64xbf16>
    %c0_7 = arith.constant 0 : index
    %c0_8 = arith.constant 0 : index
    %14 = vector.load %arg5[%c0_7, %c0_8] : memref<32x64xbf16, #tpu.memory_space<vmem>>, vector<32x64xbf16>
    tpu.vector_store %arg5[%c0_7, %c0_8], %13 {strides = array<i32>} : memref<32x64xbf16, #tpu.memory_space<vmem>>, vector<32x64xbf16>,
    return
  }
  func.func @transform_0(%arg0: i32) -> (i32, i32) {
    %c0_i32 = arith.constant 0 : i32
    %c0_i32_0 = arith.constant 0 : i32
    return %arg0, %c0_i32 : i32, i32
  }
  func.func @transform_1(%arg0: i32) -> (i32, i32) {
    %c0_i32 = arith.constant 0 : i32
    %c0_i32_0 = arith.constant 0 : i32
    %c0_i32_1 = arith.constant 0 : i32
    return %c0_i32, %c0_i32_0 : i32, i32
  }
  func.func @transform_2(%arg0: i32) -> (i32, i32) {
    %c0_i32 = arith.constant 0 : i32
    %c0_i32_0 = arith.constant 0 : i32
    %c0_i32_1 = arith.constant 0 : i32
    return %c0_i32, %c0_i32_0 : i32, i32
  }
  func.func @transform_3(%arg0: i32) -> (i32, i32) {
    %c0_i32 = arith.constant 0 : i32
    %c0_i32_0 = arith.constant 0 : i32
    return %arg0, %c0_i32 : i32, i32
  }
  func.func @transform_4(%arg0: i32) -> (i32, i32) {
    %c0_i32 = arith.constant 0 : i32
    %c0_i32_0 = arith.constant 0 : i32
    return %arg0, %c0_i32 : i32, i32
  }
}

module attributes {stable_mosaic.version = 11 : i64} {
  func.func @_conv_tap_kernel(%arg0: i32, %arg1: memref<1x42x64xbf16, #tpu.memory_space<vmem>>, %arg2: memref<9x64x64xbf16, #tpu.memory_space<vmem>>, %arg3: memref<24x1xf32, #tpu.memory_space<vmem>>, %arg4: memref<1x24x64xbf16, #tpu.memory_space<vmem>>, %arg5: memref<1x1x64xf32, #tpu.memory_space<vmem>>, %arg6: memref<1x1x64xf32, #tpu.memory_space<vmem>>) attributes {dimension_semantics = [#tpu.dimension_semantics<parallel>], iteration_bounds = array<i64: 2>, scalar_prefetch = 0 : i64, scratch_operands = 0 : i64, tpu.core_type = #tpu.core_type<tc>, window_params = [{transform_indices = @transform_0, window_bounds = array<i64: 1, 42, 64>}, {pipeline_mode = #tpu.pipeline_mode<synchronous>, transform_indices = @transform_1, window_bounds = array<i64: 9, 64, 64>}, {pipeline_mode = #tpu.pipeline_mode<synchronous>, transform_indices = @transform_2, window_bounds = array<i64: 24, 1>}, {transform_indices = @transform_3, window_bounds = array<i64: 1, 24, 64>}, {transform_indices = @transform_4, window_bounds = array<i64: 1, 1, 64>}, {transform_indices = @transform_5, window_bounds = array<i64: 1, 1, 64>}]} {
    %c0 = arith.constant 0 : index
    %c0_0 = arith.constant 0 : index
    %c0_1 = arith.constant 0 : index
    %0 = vector.load %arg1[%c0, %c0_0, %c0_1] : memref<1x42x64xbf16, #tpu.memory_space<vmem>>, vector<1x24x64xbf16>
    %1 = vector.shape_cast %0 : vector<1x24x64xbf16> to vector<24x64xbf16>
    %c0_2 = arith.constant 0 : index
    %c0_3 = arith.constant 0 : index
    %c0_4 = arith.constant 0 : index
    %2 = vector.load %arg2[%c0_2, %c0_3, %c0_4] : memref<9x64x64xbf16, #tpu.memory_space<vmem>>, vector<1x64x64xbf16>
    %3 = vector.shape_cast %2 : vector<1x64x64xbf16> to vector<64x64xbf16>
    %cst = arith.constant dense<0.000000e+00> : vector<24x64xf32>
    %4 = tpu.matmul %1, %3, %cst {dimension_numbers = #tpu.dot_dimension_numbers<[1], [0], [0], [1], [0, 0, 1, 1], [], []>} : vector<24x64xbf16>, vector<64x64xbf16>, vector<24x64xf32> -> vector<24x64xf32>
    %c0_5 = arith.constant 0 : index
    %c1 = arith.constant 1 : index
    %c0_6 = arith.constant 0 : index
    %5 = vector.load %arg1[%c0_5, %c1, %c0_6] : memref<1x42x64xbf16, #tpu.memory_space<vmem>>, vector<1x24x64xbf16>
    %6 = vector.shape_cast %5 : vector<1x24x64xbf16> to vector<24x64xbf16>
    %c1_7 = arith.constant 1 : index
    %c0_8 = arith.constant 0 : index
    %c0_9 = arith.constant 0 : index
    %7 = vector.load %arg2[%c1_7, %c0_8, %c0_9] : memref<9x64x64xbf16, #tpu.memory_space<vmem>>, vector<1x64x64xbf16>
    %8 = vector.shape_cast %7 : vector<1x64x64xbf16> to vector<64x64xbf16>
    %cst_10 = arith.constant dense<0.000000e+00> : vector<24x64xf32>
    %9 = tpu.matmul %6, %8, %cst_10 {dimension_numbers = #tpu.dot_dimension_numbers<[1], [0], [0], [1], [0, 0, 1, 1], [], []>} : vector<24x64xbf16>, vector<64x64xbf16>, vector<24x64xf32> -> vector<24x64xf32>
    %10 = arith.addf %4, %9 : vector<24x64xf32>
    %c0_11 = arith.constant 0 : index
    %c2 = arith.constant 2 : index
    %c0_12 = arith.constant 0 : index
    %11 = vector.load %arg1[%c0_11, %c2, %c0_12] : memref<1x42x64xbf16, #tpu.memory_space<vmem>>, vector<1x24x64xbf16>
    %12 = vector.shape_cast %11 : vector<1x24x64xbf16> to vector<24x64xbf16>
    %c2_13 = arith.constant 2 : index
    %c0_14 = arith.constant 0 : index
    %c0_15 = arith.constant 0 : index
    %13 = vector.load %arg2[%c2_13, %c0_14, %c0_15] : memref<9x64x64xbf16, #tpu.memory_space<vmem>>, vector<1x64x64xbf16>
    %14 = vector.shape_cast %13 : vector<1x64x64xbf16> to vector<64x64xbf16>
    %cst_16 = arith.constant dense<0.000000e+00> : vector<24x64xf32>
    %15 = tpu.matmul %12, %14, %cst_16 {dimension_numbers = #tpu.dot_dimension_numbers<[1], [0], [0], [1], [0, 0, 1, 1], [], []>} : vector<24x64xbf16>, vector<64x64xbf16>, vector<24x64xf32> -> vector<24x64xf32>
    %16 = arith.addf %10, %15 : vector<24x64xf32>
    %c0_17 = arith.constant 0 : index
    %c6 = arith.constant 6 : index
    %c0_18 = arith.constant 0 : index
    %17 = vector.load %arg1[%c0_17, %c6, %c0_18] : memref<1x42x64xbf16, #tpu.memory_space<vmem>>, vector<1x24x64xbf16>
    %18 = vector.shape_cast %17 : vector<1x24x64xbf16> to vector<24x64xbf16>
    %c3 = arith.constant 3 : index
    %c0_19 = arith.constant 0 : index
    %c0_20 = arith.constant 0 : index
    %19 = vector.load %arg2[%c3, %c0_19, %c0_20] : memref<9x64x64xbf16, #tpu.memory_space<vmem>>, vector<1x64x64xbf16>
    %20 = vector.shape_cast %19 : vector<1x64x64xbf16> to vector<64x64xbf16>
    %cst_21 = arith.constant dense<0.000000e+00> : vector<24x64xf32>
    %21 = tpu.matmul %18, %20, %cst_21 {dimension_numbers = #tpu.dot_dimension_numbers<[1], [0], [0], [1], [0, 0, 1, 1], [], []>} : vector<24x64xbf16>, vector<64x64xbf16>, vector<24x64xf32> -> vector<24x64xf32>
    %22 = arith.addf %16, %21 : vector<24x64xf32>
    %c0_22 = arith.constant 0 : index
    %c7 = arith.constant 7 : index
    %c0_23 = arith.constant 0 : index
    %23 = vector.load %arg1[%c0_22, %c7, %c0_23] : memref<1x42x64xbf16, #tpu.memory_space<vmem>>, vector<1x24x64xbf16>
    %24 = vector.shape_cast %23 : vector<1x24x64xbf16> to vector<24x64xbf16>
    %c4 = arith.constant 4 : index
    %c0_24 = arith.constant 0 : index
    %c0_25 = arith.constant 0 : index
    %25 = vector.load %arg2[%c4, %c0_24, %c0_25] : memref<9x64x64xbf16, #tpu.memory_space<vmem>>, vector<1x64x64xbf16>
    %26 = vector.shape_cast %25 : vector<1x64x64xbf16> to vector<64x64xbf16>
    %cst_26 = arith.constant dense<0.000000e+00> : vector<24x64xf32>
    %27 = tpu.matmul %24, %26, %cst_26 {dimension_numbers = #tpu.dot_dimension_numbers<[1], [0], [0], [1], [0, 0, 1, 1], [], []>} : vector<24x64xbf16>, vector<64x64xbf16>, vector<24x64xf32> -> vector<24x64xf32>
    %28 = arith.addf %22, %27 : vector<24x64xf32>
    %c0_27 = arith.constant 0 : index
    %c8 = arith.constant 8 : index
    %c0_28 = arith.constant 0 : index
    %29 = vector.load %arg1[%c0_27, %c8, %c0_28] : memref<1x42x64xbf16, #tpu.memory_space<vmem>>, vector<1x24x64xbf16>
    %30 = vector.shape_cast %29 : vector<1x24x64xbf16> to vector<24x64xbf16>
    %c5 = arith.constant 5 : index
    %c0_29 = arith.constant 0 : index
    %c0_30 = arith.constant 0 : index
    %31 = vector.load %arg2[%c5, %c0_29, %c0_30] : memref<9x64x64xbf16, #tpu.memory_space<vmem>>, vector<1x64x64xbf16>
    %32 = vector.shape_cast %31 : vector<1x64x64xbf16> to vector<64x64xbf16>
    %cst_31 = arith.constant dense<0.000000e+00> : vector<24x64xf32>
    %33 = tpu.matmul %30, %32, %cst_31 {dimension_numbers = #tpu.dot_dimension_numbers<[1], [0], [0], [1], [0, 0, 1, 1], [], []>} : vector<24x64xbf16>, vector<64x64xbf16>, vector<24x64xf32> -> vector<24x64xf32>
    %34 = arith.addf %28, %33 : vector<24x64xf32>
    %c0_32 = arith.constant 0 : index
    %c12 = arith.constant 12 : index
    %c0_33 = arith.constant 0 : index
    %35 = vector.load %arg1[%c0_32, %c12, %c0_33] : memref<1x42x64xbf16, #tpu.memory_space<vmem>>, vector<1x24x64xbf16>
    %36 = vector.shape_cast %35 : vector<1x24x64xbf16> to vector<24x64xbf16>
    %c6_34 = arith.constant 6 : index
    %c0_35 = arith.constant 0 : index
    %c0_36 = arith.constant 0 : index
    %37 = vector.load %arg2[%c6_34, %c0_35, %c0_36] : memref<9x64x64xbf16, #tpu.memory_space<vmem>>, vector<1x64x64xbf16>
    %38 = vector.shape_cast %37 : vector<1x64x64xbf16> to vector<64x64xbf16>
    %cst_37 = arith.constant dense<0.000000e+00> : vector<24x64xf32>
    %39 = tpu.matmul %36, %38, %cst_37 {dimension_numbers = #tpu.dot_dimension_numbers<[1], [0], [0], [1], [0, 0, 1, 1], [], []>} : vector<24x64xbf16>, vector<64x64xbf16>, vector<24x64xf32> -> vector<24x64xf32>
    %40 = arith.addf %34, %39 : vector<24x64xf32>
    %c0_38 = arith.constant 0 : index
    %c13 = arith.constant 13 : index
    %c0_39 = arith.constant 0 : index
    %41 = vector.load %arg1[%c0_38, %c13, %c0_39] : memref<1x42x64xbf16, #tpu.memory_space<vmem>>, vector<1x24x64xbf16>
    %42 = vector.shape_cast %41 : vector<1x24x64xbf16> to vector<24x64xbf16>
    %c7_40 = arith.constant 7 : index
    %c0_41 = arith.constant 0 : index
    %c0_42 = arith.constant 0 : index
    %43 = vector.load %arg2[%c7_40, %c0_41, %c0_42] : memref<9x64x64xbf16, #tpu.memory_space<vmem>>, vector<1x64x64xbf16>
    %44 = vector.shape_cast %43 : vector<1x64x64xbf16> to vector<64x64xbf16>
    %cst_43 = arith.constant dense<0.000000e+00> : vector<24x64xf32>
    %45 = tpu.matmul %42, %44, %cst_43 {dimension_numbers = #tpu.dot_dimension_numbers<[1], [0], [0], [1], [0, 0, 1, 1], [], []>} : vector<24x64xbf16>, vector<64x64xbf16>, vector<24x64xf32> -> vector<24x64xf32>
    %46 = arith.addf %40, %45 : vector<24x64xf32>
    %c0_44 = arith.constant 0 : index
    %c14 = arith.constant 14 : index
    %c0_45 = arith.constant 0 : index
    %47 = vector.load %arg1[%c0_44, %c14, %c0_45] : memref<1x42x64xbf16, #tpu.memory_space<vmem>>, vector<1x24x64xbf16>
    %48 = vector.shape_cast %47 : vector<1x24x64xbf16> to vector<24x64xbf16>
    %c8_46 = arith.constant 8 : index
    %c0_47 = arith.constant 0 : index
    %c0_48 = arith.constant 0 : index
    %49 = vector.load %arg2[%c8_46, %c0_47, %c0_48] : memref<9x64x64xbf16, #tpu.memory_space<vmem>>, vector<1x64x64xbf16>
    %50 = vector.shape_cast %49 : vector<1x64x64xbf16> to vector<64x64xbf16>
    %cst_49 = arith.constant dense<0.000000e+00> : vector<24x64xf32>
    %51 = tpu.matmul %48, %50, %cst_49 {dimension_numbers = #tpu.dot_dimension_numbers<[1], [0], [0], [1], [0, 0, 1, 1], [], []>} : vector<24x64xbf16>, vector<64x64xbf16>, vector<24x64xf32> -> vector<24x64xf32>
    %52 = arith.addf %46, %51 : vector<24x64xf32>
    %53 = arith.truncf %52 : vector<24x64xf32> to vector<24x64xbf16>
    %c0_50 = arith.constant 0 : index
    %c0_51 = arith.constant 0 : index
    %c0_52 = arith.constant 0 : index
    %54 = vector.load %arg4[%c0_50, %c0_51, %c0_52] : memref<1x24x64xbf16, #tpu.memory_space<vmem>>, vector<1x24x64xbf16>
    %55 = vector.shape_cast %54 : vector<1x24x64xbf16> to vector<24x64xbf16>
    %56 = vector.shape_cast %53 : vector<24x64xbf16> to vector<1x24x64xbf16>
    tpu.vector_store %arg4[%c0_50, %c0_51, %c0_52], %56 {strides = array<i32>} : memref<1x24x64xbf16, #tpu.memory_space<vmem>>, vector<1x24x64xbf16>,
    %c0_53 = arith.constant 0 : index
    %c0_54 = arith.constant 0 : index
    %57 = vector.load %arg3[%c0_53, %c0_54] : memref<24x1xf32, #tpu.memory_space<vmem>>, vector<24x1xf32>
    %58 = vector.broadcast %57 : vector<24x1xf32> to vector<24x64xf32>
    %59 = arith.mulf %52, %58 : vector<24x64xf32>
    %cst_55 = arith.constant dense<0.000000e+00> : vector<64xf32>
    %60 = vector.multi_reduction <add>, %59, %cst_55 [0] : vector<24x64xf32> to vector<64xf32>
    %61 = vector.shape_cast %60 : vector<64xf32> to vector<1x64xf32>
    %c0_56 = arith.constant 0 : index
    %c0_57 = arith.constant 0 : index
    %c0_58 = arith.constant 0 : index
    %62 = vector.load %arg5[%c0_56, %c0_57, %c0_58] : memref<1x1x64xf32, #tpu.memory_space<vmem>>, vector<1x1x64xf32>
    %63 = vector.shape_cast %62 : vector<1x1x64xf32> to vector<1x64xf32>
    %64 = vector.shape_cast %61 : vector<1x64xf32> to vector<1x1x64xf32>
    tpu.vector_store %arg5[%c0_56, %c0_57, %c0_58], %64 {strides = array<i32>} : memref<1x1x64xf32, #tpu.memory_space<vmem>>, vector<1x1x64xf32>,
    %65 = arith.mulf %59, %59 : vector<24x64xf32>
    %cst_59 = arith.constant dense<0.000000e+00> : vector<64xf32>
    %66 = vector.multi_reduction <add>, %65, %cst_59 [0] : vector<24x64xf32> to vector<64xf32>
    %67 = vector.shape_cast %66 : vector<64xf32> to vector<1x64xf32>
    %c0_60 = arith.constant 0 : index
    %c0_61 = arith.constant 0 : index
    %c0_62 = arith.constant 0 : index
    %68 = vector.load %arg6[%c0_60, %c0_61, %c0_62] : memref<1x1x64xf32, #tpu.memory_space<vmem>>, vector<1x1x64xf32>
    %69 = vector.shape_cast %68 : vector<1x1x64xf32> to vector<1x64xf32>
    %70 = vector.shape_cast %67 : vector<1x64xf32> to vector<1x1x64xf32>
    tpu.vector_store %arg6[%c0_60, %c0_61, %c0_62], %70 {strides = array<i32>} : memref<1x1x64xf32, #tpu.memory_space<vmem>>, vector<1x1x64xf32>,
    return
  }
  func.func @transform_0(%arg0: i32) -> (i32, i32, i32) {
    %c0_i32 = arith.constant 0 : i32
    %c0_i32_0 = arith.constant 0 : i32
    %c0_i32_1 = arith.constant 0 : i32
    return %arg0, %c0_i32, %c0_i32_0 : i32, i32, i32
  }
  func.func @transform_1(%arg0: i32) -> (i32, i32, i32) {
    %c0_i32 = arith.constant 0 : i32
    %c0_i32_0 = arith.constant 0 : i32
    %c0_i32_1 = arith.constant 0 : i32
    %c0_i32_2 = arith.constant 0 : i32
    return %c0_i32, %c0_i32_0, %c0_i32_1 : i32, i32, i32
  }
  func.func @transform_2(%arg0: i32) -> (i32, i32) {
    %c0_i32 = arith.constant 0 : i32
    %c0_i32_0 = arith.constant 0 : i32
    %c0_i32_1 = arith.constant 0 : i32
    return %c0_i32, %c0_i32_0 : i32, i32
  }
  func.func @transform_3(%arg0: i32) -> (i32, i32, i32) {
    %c0_i32 = arith.constant 0 : i32
    %c0_i32_0 = arith.constant 0 : i32
    %c0_i32_1 = arith.constant 0 : i32
    return %arg0, %c0_i32, %c0_i32_0 : i32, i32, i32
  }
  func.func @transform_4(%arg0: i32) -> (i32, i32, i32) {
    %c0_i32 = arith.constant 0 : i32
    %c0_i32_0 = arith.constant 0 : i32
    %c0_i32_1 = arith.constant 0 : i32
    return %arg0, %c0_i32, %c0_i32_0 : i32, i32, i32
  }
  func.func @transform_5(%arg0: i32) -> (i32, i32, i32) {
    %c0_i32 = arith.constant 0 : i32
    %c0_i32_0 = arith.constant 0 : i32
    %c0_i32_1 = arith.constant 0 : i32
    return %arg0, %c0_i32, %c0_i32_0 : i32, i32, i32
  }
}

module attributes {stable_mosaic.version = 11 : i64} {
  func.func @_affine_kernel(%arg0: i32, %arg1: memref<32x64xbf16, #tpu.memory_space<vmem>>, %arg2: memref<1x64xf32, #tpu.memory_space<vmem>>, %arg3: memref<1x64xf32, #tpu.memory_space<vmem>>, %arg4: memref<32x64xbf16, #tpu.memory_space<vmem>>) attributes {dimension_semantics = [#tpu.dimension_semantics<parallel>], iteration_bounds = array<i64: 1>, scalar_prefetch = 0 : i64, scratch_operands = 0 : i64, tpu.core_type = #tpu.core_type<tc>, window_params = [{transform_indices = @transform_0, window_bounds = array<i64: 32, 64>}, {pipeline_mode = #tpu.pipeline_mode<synchronous>, transform_indices = @transform_1, window_bounds = array<i64: 1, 64>}, {pipeline_mode = #tpu.pipeline_mode<synchronous>, transform_indices = @transform_2, window_bounds = array<i64: 1, 64>}, {transform_indices = @transform_3, window_bounds = array<i64: 32, 64>}]} {
    %c0 = arith.constant 0 : index
    %c0_0 = arith.constant 0 : index
    %0 = vector.load %arg1[%c0, %c0_0] : memref<32x64xbf16, #tpu.memory_space<vmem>>, vector<32x64xbf16>
    %1 = arith.extf %0 : vector<32x64xbf16> to vector<32x64xf32>
    %c0_1 = arith.constant 0 : index
    %c0_2 = arith.constant 0 : index
    %2 = vector.load %arg2[%c0_1, %c0_2] : memref<1x64xf32, #tpu.memory_space<vmem>>, vector<1x64xf32>
    %3 = vector.broadcast %2 : vector<1x64xf32> to vector<32x64xf32>
    %4 = arith.mulf %1, %3 : vector<32x64xf32>
    %c0_3 = arith.constant 0 : index
    %c0_4 = arith.constant 0 : index
    %5 = vector.load %arg3[%c0_3, %c0_4] : memref<1x64xf32, #tpu.memory_space<vmem>>, vector<1x64xf32>
    %6 = vector.broadcast %5 : vector<1x64xf32> to vector<32x64xf32>
    %7 = arith.addf %4, %6 : vector<32x64xf32>
    %cst = arith.constant 0.000000e+00 : f32
    %8 = vector.broadcast %cst : f32 to vector<32x64xf32>
    %9 = arith.maximumf %7, %8 : vector<32x64xf32>
    %10 = arith.truncf %9 : vector<32x64xf32> to vector<32x64xbf16>
    %c0_5 = arith.constant 0 : index
    %c0_6 = arith.constant 0 : index
    %11 = vector.load %arg4[%c0_5, %c0_6] : memref<32x64xbf16, #tpu.memory_space<vmem>>, vector<32x64xbf16>
    tpu.vector_store %arg4[%c0_5, %c0_6], %10 {strides = array<i32>} : memref<32x64xbf16, #tpu.memory_space<vmem>>, vector<32x64xbf16>,
    return
  }
  func.func @transform_0(%arg0: i32) -> (i32, i32) {
    %c0_i32 = arith.constant 0 : i32
    %c0_i32_0 = arith.constant 0 : i32
    return %arg0, %c0_i32 : i32, i32
  }
  func.func @transform_1(%arg0: i32) -> (i32, i32) {
    %c0_i32 = arith.constant 0 : i32
    %c0_i32_0 = arith.constant 0 : i32
    %c0_i32_1 = arith.constant 0 : i32
    return %c0_i32, %c0_i32_0 : i32, i32
  }
  func.func @transform_2(%arg0: i32) -> (i32, i32) {
    %c0_i32 = arith.constant 0 : i32
    %c0_i32_0 = arith.constant 0 : i32
    %c0_i32_1 = arith.constant 0 : i32
    return %c0_i32, %c0_i32_0 : i32, i32
  }
  func.func @transform_3(%arg0: i32) -> (i32, i32) {
    %c0_i32 = arith.constant 0 : i32
    %c0_i32_0 = arith.constant 0 : i32
    return %arg0, %c0_i32 : i32, i32
  }
}

module attributes {stable_mosaic.version = 11 : i64} {
  func.func @_conv_tap_kernel(%arg0: i32, %arg1: memref<1x12x256xbf16, #tpu.memory_space<vmem>>, %arg2: memref<4x256x128xbf16, #tpu.memory_space<vmem>>, %arg3: memref<6x1xf32, #tpu.memory_space<vmem>>, %arg4: memref<1x6x128xbf16, #tpu.memory_space<vmem>>, %arg5: memref<1x1x128xf32, #tpu.memory_space<vmem>>, %arg6: memref<1x1x128xf32, #tpu.memory_space<vmem>>) attributes {dimension_semantics = [#tpu.dimension_semantics<parallel>], iteration_bounds = array<i64: 2>, scalar_prefetch = 0 : i64, scratch_operands = 0 : i64, tpu.core_type = #tpu.core_type<tc>, window_params = [{transform_indices = @transform_0, window_bounds = array<i64: 1, 12, 256>}, {pipeline_mode = #tpu.pipeline_mode<synchronous>, transform_indices = @transform_1, window_bounds = array<i64: 4, 256, 128>}, {pipeline_mode = #tpu.pipeline_mode<synchronous>, transform_indices = @transform_2, window_bounds = array<i64: 6, 1>}, {transform_indices = @transform_3, window_bounds = array<i64: 1, 6, 128>}, {transform_indices = @transform_4, window_bounds = array<i64: 1, 1, 128>}, {transform_indices = @transform_5, window_bounds = array<i64: 1, 1, 128>}]} {
    %c0 = arith.constant 0 : index
    %c0_0 = arith.constant 0 : index
    %c0_1 = arith.constant 0 : index
    %0 = vector.load %arg1[%c0, %c0_0, %c0_1] : memref<1x12x256xbf16, #tpu.memory_space<vmem>>, vector<1x6x256xbf16>
    %1 = vector.shape_cast %0 : vector<1x6x256xbf16> to vector<6x256xbf16>
    %c0_2 = arith.constant 0 : index
    %c0_3 = arith.constant 0 : index
    %c0_4 = arith.constant 0 : index
    %2 = vector.load %arg2[%c0_2, %c0_3, %c0_4] : memref<4x256x128xbf16, #tpu.memory_space<vmem>>, vector<1x256x128xbf16>
    %3 = vector.shape_cast %2 : vector<1x256x128xbf16> to vector<256x128xbf16>
    %cst = arith.constant dense<0.000000e+00> : vector<6x128xf32>
    %4 = tpu.matmul %1, %3, %cst {dimension_numbers = #tpu.dot_dimension_numbers<[1], [0], [0], [1], [0, 0, 1, 1], [], []>} : vector<6x256xbf16>, vector<256x128xbf16>, vector<6x128xf32> -> vector<6x128xf32>
    %c0_5 = arith.constant 0 : index
    %c1 = arith.constant 1 : index
    %c0_6 = arith.constant 0 : index
    %5 = vector.load %arg1[%c0_5, %c1, %c0_6] : memref<1x12x256xbf16, #tpu.memory_space<vmem>>, vector<1x6x256xbf16>
    %6 = vector.shape_cast %5 : vector<1x6x256xbf16> to vector<6x256xbf16>
    %c1_7 = arith.constant 1 : index
    %c0_8 = arith.constant 0 : index
    %c0_9 = arith.constant 0 : index
    %7 = vector.load %arg2[%c1_7, %c0_8, %c0_9] : memref<4x256x128xbf16, #tpu.memory_space<vmem>>, vector<1x256x128xbf16>
    %8 = vector.shape_cast %7 : vector<1x256x128xbf16> to vector<256x128xbf16>
    %cst_10 = arith.constant dense<0.000000e+00> : vector<6x128xf32>
    %9 = tpu.matmul %6, %8, %cst_10 {dimension_numbers = #tpu.dot_dimension_numbers<[1], [0], [0], [1], [0, 0, 1, 1], [], []>} : vector<6x256xbf16>, vector<256x128xbf16>, vector<6x128xf32> -> vector<6x128xf32>
    %10 = arith.addf %4, %9 : vector<6x128xf32>
    %c0_11 = arith.constant 0 : index
    %c3 = arith.constant 3 : index
    %c0_12 = arith.constant 0 : index
    %11 = vector.load %arg1[%c0_11, %c3, %c0_12] : memref<1x12x256xbf16, #tpu.memory_space<vmem>>, vector<1x6x256xbf16>
    %12 = vector.shape_cast %11 : vector<1x6x256xbf16> to vector<6x256xbf16>
    %c2 = arith.constant 2 : index
    %c0_13 = arith.constant 0 : index
    %c0_14 = arith.constant 0 : index
    %13 = vector.load %arg2[%c2, %c0_13, %c0_14] : memref<4x256x128xbf16, #tpu.memory_space<vmem>>, vector<1x256x128xbf16>
    %14 = vector.shape_cast %13 : vector<1x256x128xbf16> to vector<256x128xbf16>
    %cst_15 = arith.constant dense<0.000000e+00> : vector<6x128xf32>
    %15 = tpu.matmul %12, %14, %cst_15 {dimension_numbers = #tpu.dot_dimension_numbers<[1], [0], [0], [1], [0, 0, 1, 1], [], []>} : vector<6x256xbf16>, vector<256x128xbf16>, vector<6x128xf32> -> vector<6x128xf32>
    %16 = arith.addf %10, %15 : vector<6x128xf32>
    %c0_16 = arith.constant 0 : index
    %c4 = arith.constant 4 : index
    %c0_17 = arith.constant 0 : index
    %17 = vector.load %arg1[%c0_16, %c4, %c0_17] : memref<1x12x256xbf16, #tpu.memory_space<vmem>>, vector<1x6x256xbf16>
    %18 = vector.shape_cast %17 : vector<1x6x256xbf16> to vector<6x256xbf16>
    %c3_18 = arith.constant 3 : index
    %c0_19 = arith.constant 0 : index
    %c0_20 = arith.constant 0 : index
    %19 = vector.load %arg2[%c3_18, %c0_19, %c0_20] : memref<4x256x128xbf16, #tpu.memory_space<vmem>>, vector<1x256x128xbf16>
    %20 = vector.shape_cast %19 : vector<1x256x128xbf16> to vector<256x128xbf16>
    %cst_21 = arith.constant dense<0.000000e+00> : vector<6x128xf32>
    %21 = tpu.matmul %18, %20, %cst_21 {dimension_numbers = #tpu.dot_dimension_numbers<[1], [0], [0], [1], [0, 0, 1, 1], [], []>} : vector<6x256xbf16>, vector<256x128xbf16>, vector<6x128xf32> -> vector<6x128xf32>
    %22 = arith.addf %16, %21 : vector<6x128xf32>
    %23 = arith.truncf %22 : vector<6x128xf32> to vector<6x128xbf16>
    %c0_22 = arith.constant 0 : index
    %c0_23 = arith.constant 0 : index
    %c0_24 = arith.constant 0 : index
    %24 = vector.load %arg4[%c0_22, %c0_23, %c0_24] : memref<1x6x128xbf16, #tpu.memory_space<vmem>>, vector<1x6x128xbf16>
    %25 = vector.shape_cast %24 : vector<1x6x128xbf16> to vector<6x128xbf16>
    %26 = vector.shape_cast %23 : vector<6x128xbf16> to vector<1x6x128xbf16>
    tpu.vector_store %arg4[%c0_22, %c0_23, %c0_24], %26 {strides = array<i32>} : memref<1x6x128xbf16, #tpu.memory_space<vmem>>, vector<1x6x128xbf16>,
    %c0_25 = arith.constant 0 : index
    %c0_26 = arith.constant 0 : index
    %27 = vector.load %arg3[%c0_25, %c0_26] : memref<6x1xf32, #tpu.memory_space<vmem>>, vector<6x1xf32>
    %28 = vector.broadcast %27 : vector<6x1xf32> to vector<6x128xf32>
    %29 = arith.mulf %22, %28 : vector<6x128xf32>
    %cst_27 = arith.constant dense<0.000000e+00> : vector<128xf32>
    %30 = vector.multi_reduction <add>, %29, %cst_27 [0] : vector<6x128xf32> to vector<128xf32>
    %31 = vector.shape_cast %30 : vector<128xf32> to vector<1x128xf32>
    %c0_28 = arith.constant 0 : index
    %c0_29 = arith.constant 0 : index
    %c0_30 = arith.constant 0 : index
    %32 = vector.load %arg5[%c0_28, %c0_29, %c0_30] : memref<1x1x128xf32, #tpu.memory_space<vmem>>, vector<1x1x128xf32>
    %33 = vector.shape_cast %32 : vector<1x1x128xf32> to vector<1x128xf32>
    %34 = vector.shape_cast %31 : vector<1x128xf32> to vector<1x1x128xf32>
    tpu.vector_store %arg5[%c0_28, %c0_29, %c0_30], %34 {strides = array<i32>} : memref<1x1x128xf32, #tpu.memory_space<vmem>>, vector<1x1x128xf32>,
    %35 = arith.mulf %29, %29 : vector<6x128xf32>
    %cst_31 = arith.constant dense<0.000000e+00> : vector<128xf32>
    %36 = vector.multi_reduction <add>, %35, %cst_31 [0] : vector<6x128xf32> to vector<128xf32>
    %37 = vector.shape_cast %36 : vector<128xf32> to vector<1x128xf32>
    %c0_32 = arith.constant 0 : index
    %c0_33 = arith.constant 0 : index
    %c0_34 = arith.constant 0 : index
    %38 = vector.load %arg6[%c0_32, %c0_33, %c0_34] : memref<1x1x128xf32, #tpu.memory_space<vmem>>, vector<1x1x128xf32>
    %39 = vector.shape_cast %38 : vector<1x1x128xf32> to vector<1x128xf32>
    %40 = vector.shape_cast %37 : vector<1x128xf32> to vector<1x1x128xf32>
    tpu.vector_store %arg6[%c0_32, %c0_33, %c0_34], %40 {strides = array<i32>} : memref<1x1x128xf32, #tpu.memory_space<vmem>>, vector<1x1x128xf32>,
    return
  }
  func.func @transform_0(%arg0: i32) -> (i32, i32, i32) {
    %c0_i32 = arith.constant 0 : i32
    %c0_i32_0 = arith.constant 0 : i32
    %c0_i32_1 = arith.constant 0 : i32
    return %arg0, %c0_i32, %c0_i32_0 : i32, i32, i32
  }
  func.func @transform_1(%arg0: i32) -> (i32, i32, i32) {
    %c0_i32 = arith.constant 0 : i32
    %c0_i32_0 = arith.constant 0 : i32
    %c0_i32_1 = arith.constant 0 : i32
    %c0_i32_2 = arith.constant 0 : i32
    return %c0_i32, %c0_i32_0, %c0_i32_1 : i32, i32, i32
  }
  func.func @transform_2(%arg0: i32) -> (i32, i32) {
    %c0_i32 = arith.constant 0 : i32
    %c0_i32_0 = arith.constant 0 : i32
    %c0_i32_1 = arith.constant 0 : i32
    return %c0_i32, %c0_i32_0 : i32, i32
  }
  func.func @transform_3(%arg0: i32) -> (i32, i32, i32) {
    %c0_i32 = arith.constant 0 : i32
    %c0_i32_0 = arith.constant 0 : i32
    %c0_i32_1 = arith.constant 0 : i32
    return %arg0, %c0_i32, %c0_i32_0 : i32, i32, i32
  }
  func.func @transform_4(%arg0: i32) -> (i32, i32, i32) {
    %c0_i32 = arith.constant 0 : i32
    %c0_i32_0 = arith.constant 0 : i32
    %c0_i32_1 = arith.constant 0 : i32
    return %arg0, %c0_i32, %c0_i32_0 : i32, i32, i32
  }
  func.func @transform_5(%arg0: i32) -> (i32, i32, i32) {
    %c0_i32 = arith.constant 0 : i32
    %c0_i32_0 = arith.constant 0 : i32
    %c0_i32_1 = arith.constant 0 : i32
    return %arg0, %c0_i32, %c0_i32_0 : i32, i32, i32
  }
}

module attributes {stable_mosaic.version = 11 : i64} {
  func.func @_conv_tap_kernel(%arg0: i32, %arg1: memref<1x20x128xbf16, #tpu.memory_space<vmem>>, %arg2: memref<9x128x128xbf16, #tpu.memory_space<vmem>>, %arg3: memref<8x1xf32, #tpu.memory_space<vmem>>, %arg4: memref<1x8x128xbf16, #tpu.memory_space<vmem>>, %arg5: memref<1x1x128xf32, #tpu.memory_space<vmem>>, %arg6: memref<1x1x128xf32, #tpu.memory_space<vmem>>) attributes {dimension_semantics = [#tpu.dimension_semantics<parallel>], iteration_bounds = array<i64: 2>, scalar_prefetch = 0 : i64, scratch_operands = 0 : i64, tpu.core_type = #tpu.core_type<tc>, window_params = [{transform_indices = @transform_0, window_bounds = array<i64: 1, 20, 128>}, {pipeline_mode = #tpu.pipeline_mode<synchronous>, transform_indices = @transform_1, window_bounds = array<i64: 9, 128, 128>}, {pipeline_mode = #tpu.pipeline_mode<synchronous>, transform_indices = @transform_2, window_bounds = array<i64: 8, 1>}, {transform_indices = @transform_3, window_bounds = array<i64: 1, 8, 128>}, {transform_indices = @transform_4, window_bounds = array<i64: 1, 1, 128>}, {transform_indices = @transform_5, window_bounds = array<i64: 1, 1, 128>}]} {
    %c0 = arith.constant 0 : index
    %c0_0 = arith.constant 0 : index
    %c0_1 = arith.constant 0 : index
    %0 = vector.load %arg1[%c0, %c0_0, %c0_1] : memref<1x20x128xbf16, #tpu.memory_space<vmem>>, vector<1x8x128xbf16>
    %1 = vector.shape_cast %0 : vector<1x8x128xbf16> to vector<8x128xbf16>
    %c0_2 = arith.constant 0 : index
    %c0_3 = arith.constant 0 : index
    %c0_4 = arith.constant 0 : index
    %2 = vector.load %arg2[%c0_2, %c0_3, %c0_4] : memref<9x128x128xbf16, #tpu.memory_space<vmem>>, vector<1x128x128xbf16>
    %3 = vector.shape_cast %2 : vector<1x128x128xbf16> to vector<128x128xbf16>
    %cst = arith.constant dense<0.000000e+00> : vector<8x128xf32>
    %4 = tpu.matmul %1, %3, %cst {dimension_numbers = #tpu.dot_dimension_numbers<[1], [0], [0], [1], [0, 0, 1, 1], [], []>} : vector<8x128xbf16>, vector<128x128xbf16>, vector<8x128xf32> -> vector<8x128xf32>
    %c0_5 = arith.constant 0 : index
    %c1 = arith.constant 1 : index
    %c0_6 = arith.constant 0 : index
    %5 = vector.load %arg1[%c0_5, %c1, %c0_6] : memref<1x20x128xbf16, #tpu.memory_space<vmem>>, vector<1x8x128xbf16>
    %6 = vector.shape_cast %5 : vector<1x8x128xbf16> to vector<8x128xbf16>
    %c1_7 = arith.constant 1 : index
    %c0_8 = arith.constant 0 : index
    %c0_9 = arith.constant 0 : index
    %7 = vector.load %arg2[%c1_7, %c0_8, %c0_9] : memref<9x128x128xbf16, #tpu.memory_space<vmem>>, vector<1x128x128xbf16>
    %8 = vector.shape_cast %7 : vector<1x128x128xbf16> to vector<128x128xbf16>
    %cst_10 = arith.constant dense<0.000000e+00> : vector<8x128xf32>
    %9 = tpu.matmul %6, %8, %cst_10 {dimension_numbers = #tpu.dot_dimension_numbers<[1], [0], [0], [1], [0, 0, 1, 1], [], []>} : vector<8x128xbf16>, vector<128x128xbf16>, vector<8x128xf32> -> vector<8x128xf32>
    %10 = arith.addf %4, %9 : vector<8x128xf32>
    %c0_11 = arith.constant 0 : index
    %c2 = arith.constant 2 : index
    %c0_12 = arith.constant 0 : index
    %11 = vector.load %arg1[%c0_11, %c2, %c0_12] : memref<1x20x128xbf16, #tpu.memory_space<vmem>>, vector<1x8x128xbf16>
    %12 = vector.shape_cast %11 : vector<1x8x128xbf16> to vector<8x128xbf16>
    %c2_13 = arith.constant 2 : index
    %c0_14 = arith.constant 0 : index
    %c0_15 = arith.constant 0 : index
    %13 = vector.load %arg2[%c2_13, %c0_14, %c0_15] : memref<9x128x128xbf16, #tpu.memory_space<vmem>>, vector<1x128x128xbf16>
    %14 = vector.shape_cast %13 : vector<1x128x128xbf16> to vector<128x128xbf16>
    %cst_16 = arith.constant dense<0.000000e+00> : vector<8x128xf32>
    %15 = tpu.matmul %12, %14, %cst_16 {dimension_numbers = #tpu.dot_dimension_numbers<[1], [0], [0], [1], [0, 0, 1, 1], [], []>} : vector<8x128xbf16>, vector<128x128xbf16>, vector<8x128xf32> -> vector<8x128xf32>
    %16 = arith.addf %10, %15 : vector<8x128xf32>
    %c0_17 = arith.constant 0 : index
    %c4 = arith.constant 4 : index
    %c0_18 = arith.constant 0 : index
    %17 = vector.load %arg1[%c0_17, %c4, %c0_18] : memref<1x20x128xbf16, #tpu.memory_space<vmem>>, vector<1x8x128xbf16>
    %18 = vector.shape_cast %17 : vector<1x8x128xbf16> to vector<8x128xbf16>
    %c3 = arith.constant 3 : index
    %c0_19 = arith.constant 0 : index
    %c0_20 = arith.constant 0 : index
    %19 = vector.load %arg2[%c3, %c0_19, %c0_20] : memref<9x128x128xbf16, #tpu.memory_space<vmem>>, vector<1x128x128xbf16>
    %20 = vector.shape_cast %19 : vector<1x128x128xbf16> to vector<128x128xbf16>
    %cst_21 = arith.constant dense<0.000000e+00> : vector<8x128xf32>
    %21 = tpu.matmul %18, %20, %cst_21 {dimension_numbers = #tpu.dot_dimension_numbers<[1], [0], [0], [1], [0, 0, 1, 1], [], []>} : vector<8x128xbf16>, vector<128x128xbf16>, vector<8x128xf32> -> vector<8x128xf32>
    %22 = arith.addf %16, %21 : vector<8x128xf32>
    %c0_22 = arith.constant 0 : index
    %c5 = arith.constant 5 : index
    %c0_23 = arith.constant 0 : index
    %23 = vector.load %arg1[%c0_22, %c5, %c0_23] : memref<1x20x128xbf16, #tpu.memory_space<vmem>>, vector<1x8x128xbf16>
    %24 = vector.shape_cast %23 : vector<1x8x128xbf16> to vector<8x128xbf16>
    %c4_24 = arith.constant 4 : index
    %c0_25 = arith.constant 0 : index
    %c0_26 = arith.constant 0 : index
    %25 = vector.load %arg2[%c4_24, %c0_25, %c0_26] : memref<9x128x128xbf16, #tpu.memory_space<vmem>>, vector<1x128x128xbf16>
    %26 = vector.shape_cast %25 : vector<1x128x128xbf16> to vector<128x128xbf16>
    %cst_27 = arith.constant dense<0.000000e+00> : vector<8x128xf32>
    %27 = tpu.matmul %24, %26, %cst_27 {dimension_numbers = #tpu.dot_dimension_numbers<[1], [0], [0], [1], [0, 0, 1, 1], [], []>} : vector<8x128xbf16>, vector<128x128xbf16>, vector<8x128xf32> -> vector<8x128xf32>
    %28 = arith.addf %22, %27 : vector<8x128xf32>
    %c0_28 = arith.constant 0 : index
    %c6 = arith.constant 6 : index
    %c0_29 = arith.constant 0 : index
    %29 = vector.load %arg1[%c0_28, %c6, %c0_29] : memref<1x20x128xbf16, #tpu.memory_space<vmem>>, vector<1x8x128xbf16>
    %30 = vector.shape_cast %29 : vector<1x8x128xbf16> to vector<8x128xbf16>
    %c5_30 = arith.constant 5 : index
    %c0_31 = arith.constant 0 : index
    %c0_32 = arith.constant 0 : index
    %31 = vector.load %arg2[%c5_30, %c0_31, %c0_32] : memref<9x128x128xbf16, #tpu.memory_space<vmem>>, vector<1x128x128xbf16>
    %32 = vector.shape_cast %31 : vector<1x128x128xbf16> to vector<128x128xbf16>
    %cst_33 = arith.constant dense<0.000000e+00> : vector<8x128xf32>
    %33 = tpu.matmul %30, %32, %cst_33 {dimension_numbers = #tpu.dot_dimension_numbers<[1], [0], [0], [1], [0, 0, 1, 1], [], []>} : vector<8x128xbf16>, vector<128x128xbf16>, vector<8x128xf32> -> vector<8x128xf32>
    %34 = arith.addf %28, %33 : vector<8x128xf32>
    %c0_34 = arith.constant 0 : index
    %c8 = arith.constant 8 : index
    %c0_35 = arith.constant 0 : index
    %35 = vector.load %arg1[%c0_34, %c8, %c0_35] : memref<1x20x128xbf16, #tpu.memory_space<vmem>>, vector<1x8x128xbf16>
    %36 = vector.shape_cast %35 : vector<1x8x128xbf16> to vector<8x128xbf16>
    %c6_36 = arith.constant 6 : index
    %c0_37 = arith.constant 0 : index
    %c0_38 = arith.constant 0 : index
    %37 = vector.load %arg2[%c6_36, %c0_37, %c0_38] : memref<9x128x128xbf16, #tpu.memory_space<vmem>>, vector<1x128x128xbf16>
    %38 = vector.shape_cast %37 : vector<1x128x128xbf16> to vector<128x128xbf16>
    %cst_39 = arith.constant dense<0.000000e+00> : vector<8x128xf32>
    %39 = tpu.matmul %36, %38, %cst_39 {dimension_numbers = #tpu.dot_dimension_numbers<[1], [0], [0], [1], [0, 0, 1, 1], [], []>} : vector<8x128xbf16>, vector<128x128xbf16>, vector<8x128xf32> -> vector<8x128xf32>
    %40 = arith.addf %34, %39 : vector<8x128xf32>
    %c0_40 = arith.constant 0 : index
    %c9 = arith.constant 9 : index
    %c0_41 = arith.constant 0 : index
    %41 = vector.load %arg1[%c0_40, %c9, %c0_41] : memref<1x20x128xbf16, #tpu.memory_space<vmem>>, vector<1x8x128xbf16>
    %42 = vector.shape_cast %41 : vector<1x8x128xbf16> to vector<8x128xbf16>
    %c7 = arith.constant 7 : index
    %c0_42 = arith.constant 0 : index
    %c0_43 = arith.constant 0 : index
    %43 = vector.load %arg2[%c7, %c0_42, %c0_43] : memref<9x128x128xbf16, #tpu.memory_space<vmem>>, vector<1x128x128xbf16>
    %44 = vector.shape_cast %43 : vector<1x128x128xbf16> to vector<128x128xbf16>
    %cst_44 = arith.constant dense<0.000000e+00> : vector<8x128xf32>
    %45 = tpu.matmul %42, %44, %cst_44 {dimension_numbers = #tpu.dot_dimension_numbers<[1], [0], [0], [1], [0, 0, 1, 1], [], []>} : vector<8x128xbf16>, vector<128x128xbf16>, vector<8x128xf32> -> vector<8x128xf32>
    %46 = arith.addf %40, %45 : vector<8x128xf32>
    %c0_45 = arith.constant 0 : index
    %c10 = arith.constant 10 : index
    %c0_46 = arith.constant 0 : index
    %47 = vector.load %arg1[%c0_45, %c10, %c0_46] : memref<1x20x128xbf16, #tpu.memory_space<vmem>>, vector<1x8x128xbf16>
    %48 = vector.shape_cast %47 : vector<1x8x128xbf16> to vector<8x128xbf16>
    %c8_47 = arith.constant 8 : index
    %c0_48 = arith.constant 0 : index
    %c0_49 = arith.constant 0 : index
    %49 = vector.load %arg2[%c8_47, %c0_48, %c0_49] : memref<9x128x128xbf16, #tpu.memory_space<vmem>>, vector<1x128x128xbf16>
    %50 = vector.shape_cast %49 : vector<1x128x128xbf16> to vector<128x128xbf16>
    %cst_50 = arith.constant dense<0.000000e+00> : vector<8x128xf32>
    %51 = tpu.matmul %48, %50, %cst_50 {dimension_numbers = #tpu.dot_dimension_numbers<[1], [0], [0], [1], [0, 0, 1, 1], [], []>} : vector<8x128xbf16>, vector<128x128xbf16>, vector<8x128xf32> -> vector<8x128xf32>
    %52 = arith.addf %46, %51 : vector<8x128xf32>
    %53 = arith.truncf %52 : vector<8x128xf32> to vector<8x128xbf16>
    %c0_51 = arith.constant 0 : index
    %c0_52 = arith.constant 0 : index
    %c0_53 = arith.constant 0 : index
    %54 = vector.load %arg4[%c0_51, %c0_52, %c0_53] : memref<1x8x128xbf16, #tpu.memory_space<vmem>>, vector<1x8x128xbf16>
    %55 = vector.shape_cast %54 : vector<1x8x128xbf16> to vector<8x128xbf16>
    %56 = vector.shape_cast %53 : vector<8x128xbf16> to vector<1x8x128xbf16>
    tpu.vector_store %arg4[%c0_51, %c0_52, %c0_53], %56 {strides = array<i32>} : memref<1x8x128xbf16, #tpu.memory_space<vmem>>, vector<1x8x128xbf16>,
    %c0_54 = arith.constant 0 : index
    %c0_55 = arith.constant 0 : index
    %57 = vector.load %arg3[%c0_54, %c0_55] : memref<8x1xf32, #tpu.memory_space<vmem>>, vector<8x1xf32>
    %58 = vector.broadcast %57 : vector<8x1xf32> to vector<8x128xf32>
    %59 = arith.mulf %52, %58 : vector<8x128xf32>
    %cst_56 = arith.constant dense<0.000000e+00> : vector<128xf32>
    %60 = vector.multi_reduction <add>, %59, %cst_56 [0] : vector<8x128xf32> to vector<128xf32>
    %61 = vector.shape_cast %60 : vector<128xf32> to vector<1x128xf32>
    %c0_57 = arith.constant 0 : index
    %c0_58 = arith.constant 0 : index
    %c0_59 = arith.constant 0 : index
    %62 = vector.load %arg5[%c0_57, %c0_58, %c0_59] : memref<1x1x128xf32, #tpu.memory_space<vmem>>, vector<1x1x128xf32>
    %63 = vector.shape_cast %62 : vector<1x1x128xf32> to vector<1x128xf32>
    %64 = vector.shape_cast %61 : vector<1x128xf32> to vector<1x1x128xf32>
    tpu.vector_store %arg5[%c0_57, %c0_58, %c0_59], %64 {strides = array<i32>} : memref<1x1x128xf32, #tpu.memory_space<vmem>>, vector<1x1x128xf32>,
    %65 = arith.mulf %59, %59 : vector<8x128xf32>
    %cst_60 = arith.constant dense<0.000000e+00> : vector<128xf32>
    %66 = vector.multi_reduction <add>, %65, %cst_60 [0] : vector<8x128xf32> to vector<128xf32>
    %67 = vector.shape_cast %66 : vector<128xf32> to vector<1x128xf32>
    %c0_61 = arith.constant 0 : index
    %c0_62 = arith.constant 0 : index
    %c0_63 = arith.constant 0 : index
    %68 = vector.load %arg6[%c0_61, %c0_62, %c0_63] : memref<1x1x128xf32, #tpu.memory_space<vmem>>, vector<1x1x128xf32>
    %69 = vector.shape_cast %68 : vector<1x1x128xf32> to vector<1x128xf32>
    %70 = vector.shape_cast %67 : vector<1x128xf32> to vector<1x1x128xf32>
    tpu.vector_store %arg6[%c0_61, %c0_62, %c0_63], %70 {strides = array<i32>} : memref<1x1x128xf32, #tpu.memory_space<vmem>>, vector<1x1x128xf32>,
    return
  }
  func.func @transform_0(%arg0: i32) -> (i32, i32, i32) {
    %c0_i32 = arith.constant 0 : i32
    %c0_i32_0 = arith.constant 0 : i32
    %c0_i32_1 = arith.constant 0 : i32
    return %arg0, %c0_i32, %c0_i32_0 : i32, i32, i32
  }
  func.func @transform_1(%arg0: i32) -> (i32, i32, i32) {
    %c0_i32 = arith.constant 0 : i32
    %c0_i32_0 = arith.constant 0 : i32
    %c0_i32_1 = arith.constant 0 : i32
    %c0_i32_2 = arith.constant 0 : i32
    return %c0_i32, %c0_i32_0, %c0_i32_1 : i32, i32, i32
  }
  func.func @transform_2(%arg0: i32) -> (i32, i32) {
    %c0_i32 = arith.constant 0 : i32
    %c0_i32_0 = arith.constant 0 : i32
    %c0_i32_1 = arith.constant 0 : i32
    return %c0_i32, %c0_i32_0 : i32, i32
  }
  func.func @transform_3(%arg0: i32) -> (i32, i32, i32) {
    %c0_i32 = arith.constant 0 : i32
    %c0_i32_0 = arith.constant 0 : i32
    %c0_i32_1 = arith.constant 0 : i32
    return %arg0, %c0_i32, %c0_i32_0 : i32, i32, i32
  }
  func.func @transform_4(%arg0: i32) -> (i32, i32, i32) {
    %c0_i32 = arith.constant 0 : i32
    %c0_i32_0 = arith.constant 0 : i32
    %c0_i32_1 = arith.constant 0 : i32
    return %arg0, %c0_i32, %c0_i32_0 : i32, i32, i32
  }
  func.func @transform_5(%arg0: i32) -> (i32, i32, i32) {
    %c0_i32 = arith.constant 0 : i32
    %c0_i32_0 = arith.constant 0 : i32
    %c0_i32_1 = arith.constant 0 : i32
    return %arg0, %c0_i32, %c0_i32_0 : i32, i32, i32
  }
}

module attributes {stable_mosaic.version = 11 : i64} {
  func.func @_affine_kernel(%arg0: i32, %arg1: memref<8x128xbf16, #tpu.memory_space<vmem>>, %arg2: memref<1x128xf32, #tpu.memory_space<vmem>>, %arg3: memref<1x128xf32, #tpu.memory_space<vmem>>, %arg4: memref<8x128xbf16, #tpu.memory_space<vmem>>) attributes {dimension_semantics = [#tpu.dimension_semantics<parallel>], iteration_bounds = array<i64: 1>, scalar_prefetch = 0 : i64, scratch_operands = 0 : i64, tpu.core_type = #tpu.core_type<tc>, window_params = [{transform_indices = @transform_0, window_bounds = array<i64: 8, 128>}, {pipeline_mode = #tpu.pipeline_mode<synchronous>, transform_indices = @transform_1, window_bounds = array<i64: 1, 128>}, {pipeline_mode = #tpu.pipeline_mode<synchronous>, transform_indices = @transform_2, window_bounds = array<i64: 1, 128>}, {transform_indices = @transform_3, window_bounds = array<i64: 8, 128>}]} {
    %c0 = arith.constant 0 : index
    %c0_0 = arith.constant 0 : index
    %0 = vector.load %arg1[%c0, %c0_0] : memref<8x128xbf16, #tpu.memory_space<vmem>>, vector<8x128xbf16>
    %1 = arith.extf %0 : vector<8x128xbf16> to vector<8x128xf32>
    %c0_1 = arith.constant 0 : index
    %c0_2 = arith.constant 0 : index
    %2 = vector.load %arg2[%c0_1, %c0_2] : memref<1x128xf32, #tpu.memory_space<vmem>>, vector<1x128xf32>
    %3 = vector.broadcast %2 : vector<1x128xf32> to vector<8x128xf32>
    %4 = arith.mulf %1, %3 : vector<8x128xf32>
    %c0_3 = arith.constant 0 : index
    %c0_4 = arith.constant 0 : index
    %5 = vector.load %arg3[%c0_3, %c0_4] : memref<1x128xf32, #tpu.memory_space<vmem>>, vector<1x128xf32>
    %6 = vector.broadcast %5 : vector<1x128xf32> to vector<8x128xf32>
    %7 = arith.addf %4, %6 : vector<8x128xf32>
    %cst = arith.constant 0.000000e+00 : f32
    %8 = vector.broadcast %cst : f32 to vector<8x128xf32>
    %9 = arith.maximumf %7, %8 : vector<8x128xf32>
    %10 = arith.truncf %9 : vector<8x128xf32> to vector<8x128xbf16>
    %c0_5 = arith.constant 0 : index
    %c0_6 = arith.constant 0 : index
    %11 = vector.load %arg4[%c0_5, %c0_6] : memref<8x128xbf16, #tpu.memory_space<vmem>>, vector<8x128xbf16>
    tpu.vector_store %arg4[%c0_5, %c0_6], %10 {strides = array<i32>} : memref<8x128xbf16, #tpu.memory_space<vmem>>, vector<8x128xbf16>,
    return
  }
  func.func @transform_0(%arg0: i32) -> (i32, i32) {
    %c0_i32 = arith.constant 0 : i32
    %c0_i32_0 = arith.constant 0 : i32
    return %arg0, %c0_i32 : i32, i32
  }
  func.func @transform_1(%arg0: i32) -> (i32, i32) {
    %c0_i32 = arith.constant 0 : i32
    %c0_i32_0 = arith.constant 0 : i32
    %c0_i32_1 = arith.constant 0 : i32
    return %c0_i32, %c0_i32_0 : i32, i32
  }
  func.func @transform_2(%arg0: i32) -> (i32, i32) {
    %c0_i32 = arith.constant 0 : i32
    %c0_i32_0 = arith.constant 0 : i32
    %c0_i32_1 = arith.constant 0 : i32
    return %c0_i32, %c0_i32_0 : i32, i32
  }
  func.func @transform_3(%arg0: i32) -> (i32, i32) {
    %c0_i32 = arith.constant 0 : i32
    %c0_i32_0 = arith.constant 0 : i32
    return %arg0, %c0_i32 : i32, i32
  }
}

module attributes {stable_mosaic.version = 11 : i64} {
  func.func @_conv_tap_kernel(%arg0: i32, %arg1: memref<1x4x64xbf16, #tpu.memory_space<vmem>>, %arg2: memref<1x64x128xbf16, #tpu.memory_space<vmem>>, %arg3: memref<4x1xf32, #tpu.memory_space<vmem>>, %arg4: memref<1x4x128xbf16, #tpu.memory_space<vmem>>, %arg5: memref<1x1x128xf32, #tpu.memory_space<vmem>>, %arg6: memref<1x1x128xf32, #tpu.memory_space<vmem>>) attributes {dimension_semantics = [#tpu.dimension_semantics<parallel>], iteration_bounds = array<i64: 2>, scalar_prefetch = 0 : i64, scratch_operands = 0 : i64, tpu.core_type = #tpu.core_type<tc>, window_params = [{transform_indices = @transform_0, window_bounds = array<i64: 1, 4, 64>}, {pipeline_mode = #tpu.pipeline_mode<synchronous>, transform_indices = @transform_1, window_bounds = array<i64: 1, 64, 128>}, {pipeline_mode = #tpu.pipeline_mode<synchronous>, transform_indices = @transform_2, window_bounds = array<i64: 4, 1>}, {transform_indices = @transform_3, window_bounds = array<i64: 1, 4, 128>}, {transform_indices = @transform_4, window_bounds = array<i64: 1, 1, 128>}, {transform_indices = @transform_5, window_bounds = array<i64: 1, 1, 128>}]} {
    %c0 = arith.constant 0 : index
    %c0_0 = arith.constant 0 : index
    %c0_1 = arith.constant 0 : index
    %0 = vector.load %arg1[%c0, %c0_0, %c0_1] : memref<1x4x64xbf16, #tpu.memory_space<vmem>>, vector<1x4x64xbf16>
    %1 = vector.shape_cast %0 : vector<1x4x64xbf16> to vector<4x64xbf16>
    %c0_2 = arith.constant 0 : index
    %c0_3 = arith.constant 0 : index
    %c0_4 = arith.constant 0 : index
    %2 = vector.load %arg2[%c0_2, %c0_3, %c0_4] : memref<1x64x128xbf16, #tpu.memory_space<vmem>>, vector<1x64x128xbf16>
    %3 = vector.shape_cast %2 : vector<1x64x128xbf16> to vector<64x128xbf16>
    %cst = arith.constant dense<0.000000e+00> : vector<4x128xf32>
    %4 = tpu.matmul %1, %3, %cst {dimension_numbers = #tpu.dot_dimension_numbers<[1], [0], [0], [1], [0, 0, 1, 1], [], []>} : vector<4x64xbf16>, vector<64x128xbf16>, vector<4x128xf32> -> vector<4x128xf32>
    %5 = arith.truncf %4 : vector<4x128xf32> to vector<4x128xbf16>
    %c0_5 = arith.constant 0 : index
    %c0_6 = arith.constant 0 : index
    %c0_7 = arith.constant 0 : index
    %6 = vector.load %arg4[%c0_5, %c0_6, %c0_7] : memref<1x4x128xbf16, #tpu.memory_space<vmem>>, vector<1x4x128xbf16>
    %7 = vector.shape_cast %6 : vector<1x4x128xbf16> to vector<4x128xbf16>
    %8 = vector.shape_cast %5 : vector<4x128xbf16> to vector<1x4x128xbf16>
    tpu.vector_store %arg4[%c0_5, %c0_6, %c0_7], %8 {strides = array<i32>} : memref<1x4x128xbf16, #tpu.memory_space<vmem>>, vector<1x4x128xbf16>,
    %c0_8 = arith.constant 0 : index
    %c0_9 = arith.constant 0 : index
    %9 = vector.load %arg3[%c0_8, %c0_9] : memref<4x1xf32, #tpu.memory_space<vmem>>, vector<4x1xf32>
    %10 = vector.broadcast %9 : vector<4x1xf32> to vector<4x128xf32>
    %11 = arith.mulf %4, %10 : vector<4x128xf32>
    %cst_10 = arith.constant dense<0.000000e+00> : vector<128xf32>
    %12 = vector.multi_reduction <add>, %11, %cst_10 [0] : vector<4x128xf32> to vector<128xf32>
    %13 = vector.shape_cast %12 : vector<128xf32> to vector<1x128xf32>
    %c0_11 = arith.constant 0 : index
    %c0_12 = arith.constant 0 : index
    %c0_13 = arith.constant 0 : index
    %14 = vector.load %arg5[%c0_11, %c0_12, %c0_13] : memref<1x1x128xf32, #tpu.memory_space<vmem>>, vector<1x1x128xf32>
    %15 = vector.shape_cast %14 : vector<1x1x128xf32> to vector<1x128xf32>
    %16 = vector.shape_cast %13 : vector<1x128xf32> to vector<1x1x128xf32>
    tpu.vector_store %arg5[%c0_11, %c0_12, %c0_13], %16 {strides = array<i32>} : memref<1x1x128xf32, #tpu.memory_space<vmem>>, vector<1x1x128xf32>,
    %17 = arith.mulf %11, %11 : vector<4x128xf32>
    %cst_14 = arith.constant dense<0.000000e+00> : vector<128xf32>
    %18 = vector.multi_reduction <add>, %17, %cst_14 [0] : vector<4x128xf32> to vector<128xf32>
    %19 = vector.shape_cast %18 : vector<128xf32> to vector<1x128xf32>
    %c0_15 = arith.constant 0 : index
    %c0_16 = arith.constant 0 : index
    %c0_17 = arith.constant 0 : index
    %20 = vector.load %arg6[%c0_15, %c0_16, %c0_17] : memref<1x1x128xf32, #tpu.memory_space<vmem>>, vector<1x1x128xf32>
    %21 = vector.shape_cast %20 : vector<1x1x128xf32> to vector<1x128xf32>
    %22 = vector.shape_cast %19 : vector<1x128xf32> to vector<1x1x128xf32>
    tpu.vector_store %arg6[%c0_15, %c0_16, %c0_17], %22 {strides = array<i32>} : memref<1x1x128xf32, #tpu.memory_space<vmem>>, vector<1x1x128xf32>,
    return
  }
  func.func @transform_0(%arg0: i32) -> (i32, i32, i32) {
    %c0_i32 = arith.constant 0 : i32
    %c0_i32_0 = arith.constant 0 : i32
    %c0_i32_1 = arith.constant 0 : i32
    return %arg0, %c0_i32, %c0_i32_0 : i32, i32, i32
  }
  func.func @transform_1(%arg0: i32) -> (i32, i32, i32) {
    %c0_i32 = arith.constant 0 : i32
    %c0_i32_0 = arith.constant 0 : i32
    %c0_i32_1 = arith.constant 0 : i32
    %c0_i32_2 = arith.constant 0 : i32
    return %c0_i32, %c0_i32_0, %c0_i32_1 : i32, i32, i32
  }
  func.func @transform_2(%arg0: i32) -> (i32, i32) {
    %c0_i32 = arith.constant 0 : i32
    %c0_i32_0 = arith.constant 0 : i32
    %c0_i32_1 = arith.constant 0 : i32
    return %c0_i32, %c0_i32_0 : i32, i32
  }
  func.func @transform_3(%arg0: i32) -> (i32, i32, i32) {
    %c0_i32 = arith.constant 0 : i32
    %c0_i32_0 = arith.constant 0 : i32
    %c0_i32_1 = arith.constant 0 : i32
    return %arg0, %c0_i32, %c0_i32_0 : i32, i32, i32
  }
  func.func @transform_4(%arg0: i32) -> (i32, i32, i32) {
    %c0_i32 = arith.constant 0 : i32
    %c0_i32_0 = arith.constant 0 : i32
    %c0_i32_1 = arith.constant 0 : i32
    return %arg0, %c0_i32, %c0_i32_0 : i32, i32, i32
  }
  func.func @transform_5(%arg0: i32) -> (i32, i32, i32) {
    %c0_i32 = arith.constant 0 : i32
    %c0_i32_0 = arith.constant 0 : i32
    %c0_i32_1 = arith.constant 0 : i32
    return %arg0, %c0_i32, %c0_i32_0 : i32, i32, i32
  }
}

module attributes {stable_mosaic.version = 11 : i64} {
  func.func @_affine_kernel(%arg0: i32, %arg1: memref<8x128xbf16, #tpu.memory_space<vmem>>, %arg2: memref<1x128xf32, #tpu.memory_space<vmem>>, %arg3: memref<1x128xf32, #tpu.memory_space<vmem>>, %arg4: memref<8x128xbf16, #tpu.memory_space<vmem>>, %arg5: memref<8x128xbf16, #tpu.memory_space<vmem>>) attributes {dimension_semantics = [#tpu.dimension_semantics<parallel>], iteration_bounds = array<i64: 1>, scalar_prefetch = 0 : i64, scratch_operands = 0 : i64, tpu.core_type = #tpu.core_type<tc>, window_params = [{transform_indices = @transform_0, window_bounds = array<i64: 8, 128>}, {pipeline_mode = #tpu.pipeline_mode<synchronous>, transform_indices = @transform_1, window_bounds = array<i64: 1, 128>}, {pipeline_mode = #tpu.pipeline_mode<synchronous>, transform_indices = @transform_2, window_bounds = array<i64: 1, 128>}, {transform_indices = @transform_3, window_bounds = array<i64: 8, 128>}, {transform_indices = @transform_4, window_bounds = array<i64: 8, 128>}]} {
    %c0 = arith.constant 0 : index
    %c0_0 = arith.constant 0 : index
    %0 = vector.load %arg1[%c0, %c0_0] : memref<8x128xbf16, #tpu.memory_space<vmem>>, vector<8x128xbf16>
    %1 = arith.extf %0 : vector<8x128xbf16> to vector<8x128xf32>
    %c0_1 = arith.constant 0 : index
    %c0_2 = arith.constant 0 : index
    %2 = vector.load %arg2[%c0_1, %c0_2] : memref<1x128xf32, #tpu.memory_space<vmem>>, vector<1x128xf32>
    %3 = vector.broadcast %2 : vector<1x128xf32> to vector<8x128xf32>
    %4 = arith.mulf %1, %3 : vector<8x128xf32>
    %c0_3 = arith.constant 0 : index
    %c0_4 = arith.constant 0 : index
    %5 = vector.load %arg3[%c0_3, %c0_4] : memref<1x128xf32, #tpu.memory_space<vmem>>, vector<1x128xf32>
    %6 = vector.broadcast %5 : vector<1x128xf32> to vector<8x128xf32>
    %7 = arith.addf %4, %6 : vector<8x128xf32>
    %c0_5 = arith.constant 0 : index
    %c0_6 = arith.constant 0 : index
    %8 = vector.load %arg4[%c0_5, %c0_6] : memref<8x128xbf16, #tpu.memory_space<vmem>>, vector<8x128xbf16>
    %9 = arith.extf %8 : vector<8x128xbf16> to vector<8x128xf32>
    %10 = arith.addf %7, %9 : vector<8x128xf32>
    %cst = arith.constant 0.000000e+00 : f32
    %11 = vector.broadcast %cst : f32 to vector<8x128xf32>
    %12 = arith.maximumf %10, %11 : vector<8x128xf32>
    %13 = arith.truncf %12 : vector<8x128xf32> to vector<8x128xbf16>
    %c0_7 = arith.constant 0 : index
    %c0_8 = arith.constant 0 : index
    %14 = vector.load %arg5[%c0_7, %c0_8] : memref<8x128xbf16, #tpu.memory_space<vmem>>, vector<8x128xbf16>
    tpu.vector_store %arg5[%c0_7, %c0_8], %13 {strides = array<i32>} : memref<8x128xbf16, #tpu.memory_space<vmem>>, vector<8x128xbf16>,
    return
  }
  func.func @transform_0(%arg0: i32) -> (i32, i32) {
    %c0_i32 = arith.constant 0 : i32
    %c0_i32_0 = arith.constant 0 : i32
    return %arg0, %c0_i32 : i32, i32
  }
  func.func @transform_1(%arg0: i32) -> (i32, i32) {
    %c0_i32 = arith.constant 0 : i32
    %c0_i32_0 = arith.constant 0 : i32
    %c0_i32_1 = arith.constant 0 : i32
    return %c0_i32, %c0_i32_0 : i32, i32
  }
  func.func @transform_2(%arg0: i32) -> (i32, i32) {
    %c0_i32 = arith.constant 0 : i32
    %c0_i32_0 = arith.constant 0 : i32
    %c0_i32_1 = arith.constant 0 : i32
    return %c0_i32, %c0_i32_0 : i32, i32
  }
  func.func @transform_3(%arg0: i32) -> (i32, i32) {
    %c0_i32 = arith.constant 0 : i32
    %c0_i32_0 = arith.constant 0 : i32
    return %arg0, %c0_i32 : i32, i32
  }
  func.func @transform_4(%arg0: i32) -> (i32, i32) {
    %c0_i32 = arith.constant 0 : i32
    %c0_i32_0 = arith.constant 0 : i32
    return %arg0, %c0_i32 : i32, i32
  }
}

module attributes {stable_mosaic.version = 11 : i64} {
  func.func @_affine_kernel(%arg0: i32, %arg1: memref<8x128xbf16, #tpu.memory_space<vmem>>, %arg2: memref<1x128xf32, #tpu.memory_space<vmem>>, %arg3: memref<1x128xf32, #tpu.memory_space<vmem>>, %arg4: memref<8x128xbf16, #tpu.memory_space<vmem>>, %arg5: memref<1x128xf32, #tpu.memory_space<vmem>>, %arg6: memref<1x128xf32, #tpu.memory_space<vmem>>, %arg7: memref<8x128xbf16, #tpu.memory_space<vmem>>) attributes {dimension_semantics = [#tpu.dimension_semantics<parallel>], iteration_bounds = array<i64: 1>, scalar_prefetch = 0 : i64, scratch_operands = 0 : i64, tpu.core_type = #tpu.core_type<tc>, window_params = [{transform_indices = @transform_0, window_bounds = array<i64: 8, 128>}, {pipeline_mode = #tpu.pipeline_mode<synchronous>, transform_indices = @transform_1, window_bounds = array<i64: 1, 128>}, {pipeline_mode = #tpu.pipeline_mode<synchronous>, transform_indices = @transform_2, window_bounds = array<i64: 1, 128>}, {transform_indices = @transform_3, window_bounds = array<i64: 8, 128>}, {pipeline_mode = #tpu.pipeline_mode<synchronous>, transform_indices = @transform_4, window_bounds = array<i64: 1, 128>}, {pipeline_mode = #tpu.pipeline_mode<synchronous>, transform_indices = @transform_5, window_bounds = array<i64: 1, 128>}, {transform_indices = @transform_6, window_bounds = array<i64: 8, 128>}]} {
    %c0 = arith.constant 0 : index
    %c0_0 = arith.constant 0 : index
    %0 = vector.load %arg1[%c0, %c0_0] : memref<8x128xbf16, #tpu.memory_space<vmem>>, vector<8x128xbf16>
    %1 = arith.extf %0 : vector<8x128xbf16> to vector<8x128xf32>
    %c0_1 = arith.constant 0 : index
    %c0_2 = arith.constant 0 : index
    %2 = vector.load %arg2[%c0_1, %c0_2] : memref<1x128xf32, #tpu.memory_space<vmem>>, vector<1x128xf32>
    %3 = vector.broadcast %2 : vector<1x128xf32> to vector<8x128xf32>
    %4 = arith.mulf %1, %3 : vector<8x128xf32>
    %c0_3 = arith.constant 0 : index
    %c0_4 = arith.constant 0 : index
    %5 = vector.load %arg3[%c0_3, %c0_4] : memref<1x128xf32, #tpu.memory_space<vmem>>, vector<1x128xf32>
    %6 = vector.broadcast %5 : vector<1x128xf32> to vector<8x128xf32>
    %7 = arith.addf %4, %6 : vector<8x128xf32>
    %c0_5 = arith.constant 0 : index
    %c0_6 = arith.constant 0 : index
    %8 = vector.load %arg4[%c0_5, %c0_6] : memref<8x128xbf16, #tpu.memory_space<vmem>>, vector<8x128xbf16>
    %9 = arith.extf %8 : vector<8x128xbf16> to vector<8x128xf32>
    %c0_7 = arith.constant 0 : index
    %c0_8 = arith.constant 0 : index
    %10 = vector.load %arg5[%c0_7, %c0_8] : memref<1x128xf32, #tpu.memory_space<vmem>>, vector<1x128xf32>
    %11 = vector.broadcast %10 : vector<1x128xf32> to vector<8x128xf32>
    %12 = arith.mulf %9, %11 : vector<8x128xf32>
    %c0_9 = arith.constant 0 : index
    %c0_10 = arith.constant 0 : index
    %13 = vector.load %arg6[%c0_9, %c0_10] : memref<1x128xf32, #tpu.memory_space<vmem>>, vector<1x128xf32>
    %14 = vector.broadcast %13 : vector<1x128xf32> to vector<8x128xf32>
    %15 = arith.addf %12, %14 : vector<8x128xf32>
    %16 = arith.addf %7, %15 : vector<8x128xf32>
    %cst = arith.constant 0.000000e+00 : f32
    %17 = vector.broadcast %cst : f32 to vector<8x128xf32>
    %18 = arith.maximumf %16, %17 : vector<8x128xf32>
    %19 = arith.truncf %18 : vector<8x128xf32> to vector<8x128xbf16>
    %c0_11 = arith.constant 0 : index
    %c0_12 = arith.constant 0 : index
    %20 = vector.load %arg7[%c0_11, %c0_12] : memref<8x128xbf16, #tpu.memory_space<vmem>>, vector<8x128xbf16>
    tpu.vector_store %arg7[%c0_11, %c0_12], %19 {strides = array<i32>} : memref<8x128xbf16, #tpu.memory_space<vmem>>, vector<8x128xbf16>,
    return
  }
  func.func @transform_0(%arg0: i32) -> (i32, i32) {
    %c0_i32 = arith.constant 0 : i32
    %c0_i32_0 = arith.constant 0 : i32
    return %arg0, %c0_i32 : i32, i32
  }
  func.func @transform_1(%arg0: i32) -> (i32, i32) {
    %c0_i32 = arith.constant 0 : i32
    %c0_i32_0 = arith.constant 0 : i32
    %c0_i32_1 = arith.constant 0 : i32
    return %c0_i32, %c0_i32_0 : i32, i32
  }
  func.func @transform_2(%arg0: i32) -> (i32, i32) {
    %c0_i32 = arith.constant 0 : i32
    %c0_i32_0 = arith.constant 0 : i32
    %c0_i32_1 = arith.constant 0 : i32
    return %c0_i32, %c0_i32_0 : i32, i32
  }
  func.func @transform_3(%arg0: i32) -> (i32, i32) {
    %c0_i32 = arith.constant 0 : i32
    %c0_i32_0 = arith.constant 0 : i32
    return %arg0, %c0_i32 : i32, i32
  }
  func.func @transform_4(%arg0: i32) -> (i32, i32) {
    %c0_i32 = arith.constant 0 : i32
    %c0_i32_0 = arith.constant 0 : i32
    %c0_i32_1 = arith.constant 0 : i32
    return %c0_i32, %c0_i32_0 : i32, i32
  }
  func.func @transform_5(%arg0: i32) -> (i32, i32) {
    %c0_i32 = arith.constant 0 : i32
    %c0_i32_0 = arith.constant 0 : i32
    %c0_i32_1 = arith.constant 0 : i32
    return %c0_i32, %c0_i32_0 : i32, i32
  }
  func.func @transform_6(%arg0: i32) -> (i32, i32) {
    %c0_i32 = arith.constant 0 : i32
    %c0_i32_0 = arith.constant 0 : i32
    return %arg0, %c0_i32 : i32, i32
  }
}

module attributes {stable_mosaic.version = 11 : i64} {
  func.func @_conv_tap_kernel(%arg0: i32, %arg1: memref<1x4x128xbf16, #tpu.memory_space<vmem>>, %arg2: memref<1x128x512xbf16, #tpu.memory_space<vmem>>, %arg3: memref<1x512xf32, #tpu.memory_space<vmem>>, %arg4: memref<4x1xf32, #tpu.memory_space<vmem>>, %arg5: memref<1x4x512xbf16, #tpu.memory_space<vmem>>, %arg6: memref<1x1x512xf32, #tpu.memory_space<vmem>>, %arg7: memref<1x1x512xf32, #tpu.memory_space<vmem>>) attributes {dimension_semantics = [#tpu.dimension_semantics<parallel>], iteration_bounds = array<i64: 2>, scalar_prefetch = 0 : i64, scratch_operands = 0 : i64, tpu.core_type = #tpu.core_type<tc>, window_params = [{transform_indices = @transform_0, window_bounds = array<i64: 1, 4, 128>}, {pipeline_mode = #tpu.pipeline_mode<synchronous>, transform_indices = @transform_1, window_bounds = array<i64: 1, 128, 512>}, {pipeline_mode = #tpu.pipeline_mode<synchronous>, transform_indices = @transform_2, window_bounds = array<i64: 1, 512>}, {pipeline_mode = #tpu.pipeline_mode<synchronous>, transform_indices = @transform_3, window_bounds = array<i64: 4, 1>}, {transform_indices = @transform_4, window_bounds = array<i64: 1, 4, 512>}, {transform_indices = @transform_5, window_bounds = array<i64: 1, 1, 512>}, {transform_indices = @transform_6, window_bounds = array<i64: 1, 1, 512>}]} {
    %c0 = arith.constant 0 : index
    %c0_0 = arith.constant 0 : index
    %c0_1 = arith.constant 0 : index
    %0 = vector.load %arg1[%c0, %c0_0, %c0_1] : memref<1x4x128xbf16, #tpu.memory_space<vmem>>, vector<1x4x128xbf16>
    %1 = vector.shape_cast %0 : vector<1x4x128xbf16> to vector<4x128xbf16>
    %c0_2 = arith.constant 0 : index
    %c0_3 = arith.constant 0 : index
    %c0_4 = arith.constant 0 : index
    %2 = vector.load %arg2[%c0_2, %c0_3, %c0_4] : memref<1x128x512xbf16, #tpu.memory_space<vmem>>, vector<1x128x512xbf16>
    %3 = vector.shape_cast %2 : vector<1x128x512xbf16> to vector<128x512xbf16>
    %cst = arith.constant dense<0.000000e+00> : vector<4x512xf32>
    %4 = tpu.matmul %1, %3, %cst {dimension_numbers = #tpu.dot_dimension_numbers<[1], [0], [0], [1], [0, 0, 1, 1], [], []>} : vector<4x128xbf16>, vector<128x512xbf16>, vector<4x512xf32> -> vector<4x512xf32>
    %c0_5 = arith.constant 0 : index
    %c0_6 = arith.constant 0 : index
    %5 = vector.load %arg3[%c0_5, %c0_6] : memref<1x512xf32, #tpu.memory_space<vmem>>, vector<1x512xf32>
    %6 = vector.broadcast %5 : vector<1x512xf32> to vector<4x512xf32>
    %7 = arith.addf %4, %6 : vector<4x512xf32>
    %cst_7 = arith.constant 0.000000e+00 : f32
    %8 = vector.broadcast %cst_7 : f32 to vector<4x512xf32>
    %9 = arith.maximumf %7, %8 : vector<4x512xf32>
    %10 = arith.truncf %9 : vector<4x512xf32> to vector<4x512xbf16>
    %c0_8 = arith.constant 0 : index
    %c0_9 = arith.constant 0 : index
    %c0_10 = arith.constant 0 : index
    %11 = vector.load %arg5[%c0_8, %c0_9, %c0_10] : memref<1x4x512xbf16, #tpu.memory_space<vmem>>, vector<1x4x512xbf16>
    %12 = vector.shape_cast %11 : vector<1x4x512xbf16> to vector<4x512xbf16>
    %13 = vector.shape_cast %10 : vector<4x512xbf16> to vector<1x4x512xbf16>
    tpu.vector_store %arg5[%c0_8, %c0_9, %c0_10], %13 {strides = array<i32>} : memref<1x4x512xbf16, #tpu.memory_space<vmem>>, vector<1x4x512xbf16>,
    %c0_11 = arith.constant 0 : index
    %c0_12 = arith.constant 0 : index
    %14 = vector.load %arg4[%c0_11, %c0_12] : memref<4x1xf32, #tpu.memory_space<vmem>>, vector<4x1xf32>
    %15 = vector.broadcast %14 : vector<4x1xf32> to vector<4x512xf32>
    %16 = arith.mulf %9, %15 : vector<4x512xf32>
    %cst_13 = arith.constant dense<0.000000e+00> : vector<512xf32>
    %17 = vector.multi_reduction <add>, %16, %cst_13 [0] : vector<4x512xf32> to vector<512xf32>
    %18 = vector.shape_cast %17 : vector<512xf32> to vector<1x512xf32>
    %c0_14 = arith.constant 0 : index
    %c0_15 = arith.constant 0 : index
    %c0_16 = arith.constant 0 : index
    %19 = vector.load %arg6[%c0_14, %c0_15, %c0_16] : memref<1x1x512xf32, #tpu.memory_space<vmem>>, vector<1x1x512xf32>
    %20 = vector.shape_cast %19 : vector<1x1x512xf32> to vector<1x512xf32>
    %21 = vector.shape_cast %18 : vector<1x512xf32> to vector<1x1x512xf32>
    tpu.vector_store %arg6[%c0_14, %c0_15, %c0_16], %21 {strides = array<i32>} : memref<1x1x512xf32, #tpu.memory_space<vmem>>, vector<1x1x512xf32>,
    %22 = arith.mulf %16, %16 : vector<4x512xf32>
    %cst_17 = arith.constant dense<0.000000e+00> : vector<512xf32>
    %23 = vector.multi_reduction <add>, %22, %cst_17 [0] : vector<4x512xf32> to vector<512xf32>
    %24 = vector.shape_cast %23 : vector<512xf32> to vector<1x512xf32>
    %c0_18 = arith.constant 0 : index
    %c0_19 = arith.constant 0 : index
    %c0_20 = arith.constant 0 : index
    %25 = vector.load %arg7[%c0_18, %c0_19, %c0_20] : memref<1x1x512xf32, #tpu.memory_space<vmem>>, vector<1x1x512xf32>
    %26 = vector.shape_cast %25 : vector<1x1x512xf32> to vector<1x512xf32>
    %27 = vector.shape_cast %24 : vector<1x512xf32> to vector<1x1x512xf32>
    tpu.vector_store %arg7[%c0_18, %c0_19, %c0_20], %27 {strides = array<i32>} : memref<1x1x512xf32, #tpu.memory_space<vmem>>, vector<1x1x512xf32>,
    return
  }
  func.func @transform_0(%arg0: i32) -> (i32, i32, i32) {
    %c0_i32 = arith.constant 0 : i32
    %c0_i32_0 = arith.constant 0 : i32
    %c0_i32_1 = arith.constant 0 : i32
    return %arg0, %c0_i32, %c0_i32_0 : i32, i32, i32
  }
  func.func @transform_1(%arg0: i32) -> (i32, i32, i32) {
    %c0_i32 = arith.constant 0 : i32
    %c0_i32_0 = arith.constant 0 : i32
    %c0_i32_1 = arith.constant 0 : i32
    %c0_i32_2 = arith.constant 0 : i32
    return %c0_i32, %c0_i32_0, %c0_i32_1 : i32, i32, i32
  }
  func.func @transform_2(%arg0: i32) -> (i32, i32) {
    %c0_i32 = arith.constant 0 : i32
    %c0_i32_0 = arith.constant 0 : i32
    %c0_i32_1 = arith.constant 0 : i32
    return %c0_i32, %c0_i32_0 : i32, i32
  }
  func.func @transform_3(%arg0: i32) -> (i32, i32) {
    %c0_i32 = arith.constant 0 : i32
    %c0_i32_0 = arith.constant 0 : i32
    %c0_i32_1 = arith.constant 0 : i32
    return %c0_i32, %c0_i32_0 : i32, i32
  }
  func.func @transform_4(%arg0: i32) -> (i32, i32, i32) {
    %c0_i32 = arith.constant 0 : i32
    %c0_i32_0 = arith.constant 0 : i32
    %c0_i32_1 = arith.constant 0 : i32
    return %arg0, %c0_i32, %c0_i32_0 : i32, i32, i32
  }
  func.func @transform_5(%arg0: i32) -> (i32, i32, i32) {
    %c0_i32 = arith.constant 0 : i32
    %c0_i32_0 = arith.constant 0 : i32
    %c0_i32_1 = arith.constant 0 : i32
    return %arg0, %c0_i32, %c0_i32_0 : i32, i32, i32
  }
  func.func @transform_6(%arg0: i32) -> (i32, i32, i32) {
    %c0_i32 = arith.constant 0 : i32
    %c0_i32_0 = arith.constant 0 : i32
    %c0_i32_1 = arith.constant 0 : i32
    return %arg0, %c0_i32, %c0_i32_0 : i32, i32, i32
  }
}

module attributes {stable_mosaic.version = 11 : i64} {
  func.func @_conv_tap_kernel(%arg0: i32, %arg1: memref<1x16x64xbf16, #tpu.memory_space<vmem>>, %arg2: memref<1x64x128xbf16, #tpu.memory_space<vmem>>, %arg3: memref<1x128xf32, #tpu.memory_space<vmem>>, %arg4: memref<16x1xf32, #tpu.memory_space<vmem>>, %arg5: memref<1x16x128xbf16, #tpu.memory_space<vmem>>, %arg6: memref<1x1x128xf32, #tpu.memory_space<vmem>>, %arg7: memref<1x1x128xf32, #tpu.memory_space<vmem>>) attributes {dimension_semantics = [#tpu.dimension_semantics<parallel>], iteration_bounds = array<i64: 2>, scalar_prefetch = 0 : i64, scratch_operands = 0 : i64, tpu.core_type = #tpu.core_type<tc>, window_params = [{transform_indices = @transform_0, window_bounds = array<i64: 1, 16, 64>}, {pipeline_mode = #tpu.pipeline_mode<synchronous>, transform_indices = @transform_1, window_bounds = array<i64: 1, 64, 128>}, {pipeline_mode = #tpu.pipeline_mode<synchronous>, transform_indices = @transform_2, window_bounds = array<i64: 1, 128>}, {pipeline_mode = #tpu.pipeline_mode<synchronous>, transform_indices = @transform_3, window_bounds = array<i64: 16, 1>}, {transform_indices = @transform_4, window_bounds = array<i64: 1, 16, 128>}, {transform_indices = @transform_5, window_bounds = array<i64: 1, 1, 128>}, {transform_indices = @transform_6, window_bounds = array<i64: 1, 1, 128>}]} {
    %c0 = arith.constant 0 : index
    %c0_0 = arith.constant 0 : index
    %c0_1 = arith.constant 0 : index
    %0 = vector.load %arg1[%c0, %c0_0, %c0_1] : memref<1x16x64xbf16, #tpu.memory_space<vmem>>, vector<1x16x64xbf16>
    %1 = vector.shape_cast %0 : vector<1x16x64xbf16> to vector<16x64xbf16>
    %c0_2 = arith.constant 0 : index
    %c0_3 = arith.constant 0 : index
    %c0_4 = arith.constant 0 : index
    %2 = vector.load %arg2[%c0_2, %c0_3, %c0_4] : memref<1x64x128xbf16, #tpu.memory_space<vmem>>, vector<1x64x128xbf16>
    %3 = vector.shape_cast %2 : vector<1x64x128xbf16> to vector<64x128xbf16>
    %cst = arith.constant dense<0.000000e+00> : vector<16x128xf32>
    %4 = tpu.matmul %1, %3, %cst {dimension_numbers = #tpu.dot_dimension_numbers<[1], [0], [0], [1], [0, 0, 1, 1], [], []>} : vector<16x64xbf16>, vector<64x128xbf16>, vector<16x128xf32> -> vector<16x128xf32>
    %c0_5 = arith.constant 0 : index
    %c0_6 = arith.constant 0 : index
    %5 = vector.load %arg3[%c0_5, %c0_6] : memref<1x128xf32, #tpu.memory_space<vmem>>, vector<1x128xf32>
    %6 = vector.broadcast %5 : vector<1x128xf32> to vector<16x128xf32>
    %7 = arith.addf %4, %6 : vector<16x128xf32>
    %cst_7 = arith.constant 0.000000e+00 : f32
    %8 = vector.broadcast %cst_7 : f32 to vector<16x128xf32>
    %9 = arith.maximumf %7, %8 : vector<16x128xf32>
    %10 = arith.truncf %9 : vector<16x128xf32> to vector<16x128xbf16>
    %c0_8 = arith.constant 0 : index
    %c0_9 = arith.constant 0 : index
    %c0_10 = arith.constant 0 : index
    %11 = vector.load %arg5[%c0_8, %c0_9, %c0_10] : memref<1x16x128xbf16, #tpu.memory_space<vmem>>, vector<1x16x128xbf16>
    %12 = vector.shape_cast %11 : vector<1x16x128xbf16> to vector<16x128xbf16>
    %13 = vector.shape_cast %10 : vector<16x128xbf16> to vector<1x16x128xbf16>
    tpu.vector_store %arg5[%c0_8, %c0_9, %c0_10], %13 {strides = array<i32>} : memref<1x16x128xbf16, #tpu.memory_space<vmem>>, vector<1x16x128xbf16>,
    %c0_11 = arith.constant 0 : index
    %c0_12 = arith.constant 0 : index
    %14 = vector.load %arg4[%c0_11, %c0_12] : memref<16x1xf32, #tpu.memory_space<vmem>>, vector<16x1xf32>
    %15 = vector.broadcast %14 : vector<16x1xf32> to vector<16x128xf32>
    %16 = arith.mulf %9, %15 : vector<16x128xf32>
    %cst_13 = arith.constant dense<0.000000e+00> : vector<128xf32>
    %17 = vector.multi_reduction <add>, %16, %cst_13 [0] : vector<16x128xf32> to vector<128xf32>
    %18 = vector.shape_cast %17 : vector<128xf32> to vector<1x128xf32>
    %c0_14 = arith.constant 0 : index
    %c0_15 = arith.constant 0 : index
    %c0_16 = arith.constant 0 : index
    %19 = vector.load %arg6[%c0_14, %c0_15, %c0_16] : memref<1x1x128xf32, #tpu.memory_space<vmem>>, vector<1x1x128xf32>
    %20 = vector.shape_cast %19 : vector<1x1x128xf32> to vector<1x128xf32>
    %21 = vector.shape_cast %18 : vector<1x128xf32> to vector<1x1x128xf32>
    tpu.vector_store %arg6[%c0_14, %c0_15, %c0_16], %21 {strides = array<i32>} : memref<1x1x128xf32, #tpu.memory_space<vmem>>, vector<1x1x128xf32>,
    %22 = arith.mulf %16, %16 : vector<16x128xf32>
    %cst_17 = arith.constant dense<0.000000e+00> : vector<128xf32>
    %23 = vector.multi_reduction <add>, %22, %cst_17 [0] : vector<16x128xf32> to vector<128xf32>
    %24 = vector.shape_cast %23 : vector<128xf32> to vector<1x128xf32>
    %c0_18 = arith.constant 0 : index
    %c0_19 = arith.constant 0 : index
    %c0_20 = arith.constant 0 : index
    %25 = vector.load %arg7[%c0_18, %c0_19, %c0_20] : memref<1x1x128xf32, #tpu.memory_space<vmem>>, vector<1x1x128xf32>
    %26 = vector.shape_cast %25 : vector<1x1x128xf32> to vector<1x128xf32>
    %27 = vector.shape_cast %24 : vector<1x128xf32> to vector<1x1x128xf32>
    tpu.vector_store %arg7[%c0_18, %c0_19, %c0_20], %27 {strides = array<i32>} : memref<1x1x128xf32, #tpu.memory_space<vmem>>, vector<1x1x128xf32>,
    return
  }
  func.func @transform_0(%arg0: i32) -> (i32, i32, i32) {
    %c0_i32 = arith.constant 0 : i32
    %c0_i32_0 = arith.constant 0 : i32
    %c0_i32_1 = arith.constant 0 : i32
    return %arg0, %c0_i32, %c0_i32_0 : i32, i32, i32
  }
  func.func @transform_1(%arg0: i32) -> (i32, i32, i32) {
    %c0_i32 = arith.constant 0 : i32
    %c0_i32_0 = arith.constant 0 : i32
    %c0_i32_1 = arith.constant 0 : i32
    %c0_i32_2 = arith.constant 0 : i32
    return %c0_i32, %c0_i32_0, %c0_i32_1 : i32, i32, i32
  }
  func.func @transform_2(%arg0: i32) -> (i32, i32) {
    %c0_i32 = arith.constant 0 : i32
    %c0_i32_0 = arith.constant 0 : i32
    %c0_i32_1 = arith.constant 0 : i32
    return %c0_i32, %c0_i32_0 : i32, i32
  }
  func.func @transform_3(%arg0: i32) -> (i32, i32) {
    %c0_i32 = arith.constant 0 : i32
    %c0_i32_0 = arith.constant 0 : i32
    %c0_i32_1 = arith.constant 0 : i32
    return %c0_i32, %c0_i32_0 : i32, i32
  }
  func.func @transform_4(%arg0: i32) -> (i32, i32, i32) {
    %c0_i32 = arith.constant 0 : i32
    %c0_i32_0 = arith.constant 0 : i32
    %c0_i32_1 = arith.constant 0 : i32
    return %arg0, %c0_i32, %c0_i32_0 : i32, i32, i32
  }
  func.func @transform_5(%arg0: i32) -> (i32, i32, i32) {
    %c0_i32 = arith.constant 0 : i32
    %c0_i32_0 = arith.constant 0 : i32
    %c0_i32_1 = arith.constant 0 : i32
    return %arg0, %c0_i32, %c0_i32_0 : i32, i32, i32
  }
  func.func @transform_6(%arg0: i32) -> (i32, i32, i32) {
    %c0_i32 = arith.constant 0 : i32
    %c0_i32_0 = arith.constant 0 : i32
    %c0_i32_1 = arith.constant 0 : i32
    return %arg0, %c0_i32, %c0_i32_0 : i32, i32, i32
  }
}

module attributes {stable_mosaic.version = 11 : i64} {
  func.func @_affine_kernel(%arg0: i32, %arg1: memref<32x256xbf16, #tpu.memory_space<vmem>>, %arg2: memref<1x256xf32, #tpu.memory_space<vmem>>, %arg3: memref<1x256xf32, #tpu.memory_space<vmem>>, %arg4: memref<32x256xbf16, #tpu.memory_space<vmem>>) attributes {dimension_semantics = [#tpu.dimension_semantics<parallel>], iteration_bounds = array<i64: 1>, scalar_prefetch = 0 : i64, scratch_operands = 0 : i64, tpu.core_type = #tpu.core_type<tc>, window_params = [{transform_indices = @transform_0, window_bounds = array<i64: 32, 256>}, {pipeline_mode = #tpu.pipeline_mode<synchronous>, transform_indices = @transform_1, window_bounds = array<i64: 1, 256>}, {pipeline_mode = #tpu.pipeline_mode<synchronous>, transform_indices = @transform_2, window_bounds = array<i64: 1, 256>}, {transform_indices = @transform_3, window_bounds = array<i64: 32, 256>}]} {
    %c0 = arith.constant 0 : index
    %c0_0 = arith.constant 0 : index
    %0 = vector.load %arg1[%c0, %c0_0] : memref<32x256xbf16, #tpu.memory_space<vmem>>, vector<32x256xbf16>
    %1 = arith.extf %0 : vector<32x256xbf16> to vector<32x256xf32>
    %c0_1 = arith.constant 0 : index
    %c0_2 = arith.constant 0 : index
    %2 = vector.load %arg2[%c0_1, %c0_2] : memref<1x256xf32, #tpu.memory_space<vmem>>, vector<1x256xf32>
    %3 = vector.broadcast %2 : vector<1x256xf32> to vector<32x256xf32>
    %4 = arith.mulf %1, %3 : vector<32x256xf32>
    %c0_3 = arith.constant 0 : index
    %c0_4 = arith.constant 0 : index
    %5 = vector.load %arg3[%c0_3, %c0_4] : memref<1x256xf32, #tpu.memory_space<vmem>>, vector<1x256xf32>
    %6 = vector.broadcast %5 : vector<1x256xf32> to vector<32x256xf32>
    %7 = arith.addf %4, %6 : vector<32x256xf32>
    %8 = arith.truncf %7 : vector<32x256xf32> to vector<32x256xbf16>
    %c0_5 = arith.constant 0 : index
    %c0_6 = arith.constant 0 : index
    %9 = vector.load %arg4[%c0_5, %c0_6] : memref<32x256xbf16, #tpu.memory_space<vmem>>, vector<32x256xbf16>
    tpu.vector_store %arg4[%c0_5, %c0_6], %8 {strides = array<i32>} : memref<32x256xbf16, #tpu.memory_space<vmem>>, vector<32x256xbf16>,
    return
  }
  func.func @transform_0(%arg0: i32) -> (i32, i32) {
    %c0_i32 = arith.constant 0 : i32
    %c0_i32_0 = arith.constant 0 : i32
    return %arg0, %c0_i32 : i32, i32
  }
  func.func @transform_1(%arg0: i32) -> (i32, i32) {
    %c0_i32 = arith.constant 0 : i32
    %c0_i32_0 = arith.constant 0 : i32
    %c0_i32_1 = arith.constant 0 : i32
    return %c0_i32, %c0_i32_0 : i32, i32
  }
  func.func @transform_2(%arg0: i32) -> (i32, i32) {
    %c0_i32 = arith.constant 0 : i32
    %c0_i32_0 = arith.constant 0 : i32
    %c0_i32_1 = arith.constant 0 : i32
    return %c0_i32, %c0_i32_0 : i32, i32
  }
  func.func @transform_3(%arg0: i32) -> (i32, i32) {
    %c0_i32 = arith.constant 0 : i32
    %c0_i32_0 = arith.constant 0 : i32
    return %arg0, %c0_i32 : i32, i32
  }
}

module attributes {stable_mosaic.version = 11 : i64} {
  func.func @_conv_tap_kernel(%arg0: i32, %arg1: memref<1x16x256xbf16, #tpu.memory_space<vmem>>, %arg2: memref<1x256x256xbf16, #tpu.memory_space<vmem>>, %arg3: memref<1x256xf32, #tpu.memory_space<vmem>>, %arg4: memref<16x1xf32, #tpu.memory_space<vmem>>, %arg5: memref<1x16x256xbf16, #tpu.memory_space<vmem>>, %arg6: memref<1x1x256xf32, #tpu.memory_space<vmem>>, %arg7: memref<1x1x256xf32, #tpu.memory_space<vmem>>) attributes {dimension_semantics = [#tpu.dimension_semantics<parallel>], iteration_bounds = array<i64: 2>, scalar_prefetch = 0 : i64, scratch_operands = 0 : i64, tpu.core_type = #tpu.core_type<tc>, window_params = [{transform_indices = @transform_0, window_bounds = array<i64: 1, 16, 256>}, {pipeline_mode = #tpu.pipeline_mode<synchronous>, transform_indices = @transform_1, window_bounds = array<i64: 1, 256, 256>}, {pipeline_mode = #tpu.pipeline_mode<synchronous>, transform_indices = @transform_2, window_bounds = array<i64: 1, 256>}, {pipeline_mode = #tpu.pipeline_mode<synchronous>, transform_indices = @transform_3, window_bounds = array<i64: 16, 1>}, {transform_indices = @transform_4, window_bounds = array<i64: 1, 16, 256>}, {transform_indices = @transform_5, window_bounds = array<i64: 1, 1, 256>}, {transform_indices = @transform_6, window_bounds = array<i64: 1, 1, 256>}]} {
    %c0 = arith.constant 0 : index
    %c0_0 = arith.constant 0 : index
    %c0_1 = arith.constant 0 : index
    %0 = vector.load %arg1[%c0, %c0_0, %c0_1] : memref<1x16x256xbf16, #tpu.memory_space<vmem>>, vector<1x16x256xbf16>
    %1 = vector.shape_cast %0 : vector<1x16x256xbf16> to vector<16x256xbf16>
    %c0_2 = arith.constant 0 : index
    %c0_3 = arith.constant 0 : index
    %c0_4 = arith.constant 0 : index
    %2 = vector.load %arg2[%c0_2, %c0_3, %c0_4] : memref<1x256x256xbf16, #tpu.memory_space<vmem>>, vector<1x256x256xbf16>
    %3 = vector.shape_cast %2 : vector<1x256x256xbf16> to vector<256x256xbf16>
    %cst = arith.constant dense<0.000000e+00> : vector<16x256xf32>
    %4 = tpu.matmul %1, %3, %cst {dimension_numbers = #tpu.dot_dimension_numbers<[1], [0], [0], [1], [0, 0, 1, 1], [], []>} : vector<16x256xbf16>, vector<256x256xbf16>, vector<16x256xf32> -> vector<16x256xf32>
    %c0_5 = arith.constant 0 : index
    %c0_6 = arith.constant 0 : index
    %5 = vector.load %arg3[%c0_5, %c0_6] : memref<1x256xf32, #tpu.memory_space<vmem>>, vector<1x256xf32>
    %6 = vector.broadcast %5 : vector<1x256xf32> to vector<16x256xf32>
    %7 = arith.addf %4, %6 : vector<16x256xf32>
    %cst_7 = arith.constant 0.000000e+00 : f32
    %8 = vector.broadcast %cst_7 : f32 to vector<16x256xf32>
    %9 = arith.maximumf %7, %8 : vector<16x256xf32>
    %10 = arith.truncf %9 : vector<16x256xf32> to vector<16x256xbf16>
    %c0_8 = arith.constant 0 : index
    %c0_9 = arith.constant 0 : index
    %c0_10 = arith.constant 0 : index
    %11 = vector.load %arg5[%c0_8, %c0_9, %c0_10] : memref<1x16x256xbf16, #tpu.memory_space<vmem>>, vector<1x16x256xbf16>
    %12 = vector.shape_cast %11 : vector<1x16x256xbf16> to vector<16x256xbf16>
    %13 = vector.shape_cast %10 : vector<16x256xbf16> to vector<1x16x256xbf16>
    tpu.vector_store %arg5[%c0_8, %c0_9, %c0_10], %13 {strides = array<i32>} : memref<1x16x256xbf16, #tpu.memory_space<vmem>>, vector<1x16x256xbf16>,
    %c0_11 = arith.constant 0 : index
    %c0_12 = arith.constant 0 : index
    %14 = vector.load %arg4[%c0_11, %c0_12] : memref<16x1xf32, #tpu.memory_space<vmem>>, vector<16x1xf32>
    %15 = vector.broadcast %14 : vector<16x1xf32> to vector<16x256xf32>
    %16 = arith.mulf %9, %15 : vector<16x256xf32>
    %cst_13 = arith.constant dense<0.000000e+00> : vector<256xf32>
    %17 = vector.multi_reduction <add>, %16, %cst_13 [0] : vector<16x256xf32> to vector<256xf32>
    %18 = vector.shape_cast %17 : vector<256xf32> to vector<1x256xf32>
    %c0_14 = arith.constant 0 : index
    %c0_15 = arith.constant 0 : index
    %c0_16 = arith.constant 0 : index
    %19 = vector.load %arg6[%c0_14, %c0_15, %c0_16] : memref<1x1x256xf32, #tpu.memory_space<vmem>>, vector<1x1x256xf32>
    %20 = vector.shape_cast %19 : vector<1x1x256xf32> to vector<1x256xf32>
    %21 = vector.shape_cast %18 : vector<1x256xf32> to vector<1x1x256xf32>
    tpu.vector_store %arg6[%c0_14, %c0_15, %c0_16], %21 {strides = array<i32>} : memref<1x1x256xf32, #tpu.memory_space<vmem>>, vector<1x1x256xf32>,
    %22 = arith.mulf %16, %16 : vector<16x256xf32>
    %cst_17 = arith.constant dense<0.000000e+00> : vector<256xf32>
    %23 = vector.multi_reduction <add>, %22, %cst_17 [0] : vector<16x256xf32> to vector<256xf32>
    %24 = vector.shape_cast %23 : vector<256xf32> to vector<1x256xf32>
    %c0_18 = arith.constant 0 : index
    %c0_19 = arith.constant 0 : index
    %c0_20 = arith.constant 0 : index
    %25 = vector.load %arg7[%c0_18, %c0_19, %c0_20] : memref<1x1x256xf32, #tpu.memory_space<vmem>>, vector<1x1x256xf32>
    %26 = vector.shape_cast %25 : vector<1x1x256xf32> to vector<1x256xf32>
    %27 = vector.shape_cast %24 : vector<1x256xf32> to vector<1x1x256xf32>
    tpu.vector_store %arg7[%c0_18, %c0_19, %c0_20], %27 {strides = array<i32>} : memref<1x1x256xf32, #tpu.memory_space<vmem>>, vector<1x1x256xf32>,
    return
  }
  func.func @transform_0(%arg0: i32) -> (i32, i32, i32) {
    %c0_i32 = arith.constant 0 : i32
    %c0_i32_0 = arith.constant 0 : i32
    %c0_i32_1 = arith.constant 0 : i32
    return %arg0, %c0_i32, %c0_i32_0 : i32, i32, i32
  }
  func.func @transform_1(%arg0: i32) -> (i32, i32, i32) {
    %c0_i32 = arith.constant 0 : i32
    %c0_i32_0 = arith.constant 0 : i32
    %c0_i32_1 = arith.constant 0 : i32
    %c0_i32_2 = arith.constant 0 : i32
    return %c0_i32, %c0_i32_0, %c0_i32_1 : i32, i32, i32
  }
  func.func @transform_2(%arg0: i32) -> (i32, i32) {
    %c0_i32 = arith.constant 0 : i32
    %c0_i32_0 = arith.constant 0 : i32
    %c0_i32_1 = arith.constant 0 : i32
    return %c0_i32, %c0_i32_0 : i32, i32
  }
  func.func @transform_3(%arg0: i32) -> (i32, i32) {
    %c0_i32 = arith.constant 0 : i32
    %c0_i32_0 = arith.constant 0 : i32
    %c0_i32_1 = arith.constant 0 : i32
    return %c0_i32, %c0_i32_0 : i32, i32
  }
  func.func @transform_4(%arg0: i32) -> (i32, i32, i32) {
    %c0_i32 = arith.constant 0 : i32
    %c0_i32_0 = arith.constant 0 : i32
    %c0_i32_1 = arith.constant 0 : i32
    return %arg0, %c0_i32, %c0_i32_0 : i32, i32, i32
  }
  func.func @transform_5(%arg0: i32) -> (i32, i32, i32) {
    %c0_i32 = arith.constant 0 : i32
    %c0_i32_0 = arith.constant 0 : i32
    %c0_i32_1 = arith.constant 0 : i32
    return %arg0, %c0_i32, %c0_i32_0 : i32, i32, i32
  }
  func.func @transform_6(%arg0: i32) -> (i32, i32, i32) {
    %c0_i32 = arith.constant 0 : i32
    %c0_i32_0 = arith.constant 0 : i32
    %c0_i32_1 = arith.constant 0 : i32
    return %arg0, %c0_i32, %c0_i32_0 : i32, i32, i32
  }
}

module attributes {stable_mosaic.version = 11 : i64} {
  func.func @_conv_tap_kernel(%arg0: i32, %arg1: memref<1x64x64xbf16, #tpu.memory_space<vmem>>, %arg2: memref<1x64x64xbf16, #tpu.memory_space<vmem>>, %arg3: memref<1x64xf32, #tpu.memory_space<vmem>>, %arg4: memref<64x1xf32, #tpu.memory_space<vmem>>, %arg5: memref<1x64x64xbf16, #tpu.memory_space<vmem>>, %arg6: memref<1x1x64xf32, #tpu.memory_space<vmem>>, %arg7: memref<1x1x64xf32, #tpu.memory_space<vmem>>) attributes {dimension_semantics = [#tpu.dimension_semantics<parallel>], iteration_bounds = array<i64: 2>, scalar_prefetch = 0 : i64, scratch_operands = 0 : i64, tpu.core_type = #tpu.core_type<tc>, window_params = [{transform_indices = @transform_0, window_bounds = array<i64: 1, 64, 64>}, {pipeline_mode = #tpu.pipeline_mode<synchronous>, transform_indices = @transform_1, window_bounds = array<i64: 1, 64, 64>}, {pipeline_mode = #tpu.pipeline_mode<synchronous>, transform_indices = @transform_2, window_bounds = array<i64: 1, 64>}, {pipeline_mode = #tpu.pipeline_mode<synchronous>, transform_indices = @transform_3, window_bounds = array<i64: 64, 1>}, {transform_indices = @transform_4, window_bounds = array<i64: 1, 64, 64>}, {transform_indices = @transform_5, window_bounds = array<i64: 1, 1, 64>}, {transform_indices = @transform_6, window_bounds = array<i64: 1, 1, 64>}]} {
    %c0 = arith.constant 0 : index
    %c0_0 = arith.constant 0 : index
    %c0_1 = arith.constant 0 : index
    %0 = vector.load %arg1[%c0, %c0_0, %c0_1] : memref<1x64x64xbf16, #tpu.memory_space<vmem>>, vector<1x64x64xbf16>
    %1 = vector.shape_cast %0 : vector<1x64x64xbf16> to vector<64x64xbf16>
    %c0_2 = arith.constant 0 : index
    %c0_3 = arith.constant 0 : index
    %c0_4 = arith.constant 0 : index
    %2 = vector.load %arg2[%c0_2, %c0_3, %c0_4] : memref<1x64x64xbf16, #tpu.memory_space<vmem>>, vector<1x64x64xbf16>
    %3 = vector.shape_cast %2 : vector<1x64x64xbf16> to vector<64x64xbf16>
    %cst = arith.constant dense<0.000000e+00> : vector<64x64xf32>
    %4 = tpu.matmul %1, %3, %cst {dimension_numbers = #tpu.dot_dimension_numbers<[1], [0], [0], [1], [0, 0, 1, 1], [], []>} : vector<64x64xbf16>, vector<64x64xbf16>, vector<64x64xf32> -> vector<64x64xf32>
    %c0_5 = arith.constant 0 : index
    %c0_6 = arith.constant 0 : index
    %5 = vector.load %arg3[%c0_5, %c0_6] : memref<1x64xf32, #tpu.memory_space<vmem>>, vector<1x64xf32>
    %6 = vector.broadcast %5 : vector<1x64xf32> to vector<64x64xf32>
    %7 = arith.addf %4, %6 : vector<64x64xf32>
    %cst_7 = arith.constant 0.000000e+00 : f32
    %8 = vector.broadcast %cst_7 : f32 to vector<64x64xf32>
    %9 = arith.maximumf %7, %8 : vector<64x64xf32>
    %10 = arith.truncf %9 : vector<64x64xf32> to vector<64x64xbf16>
    %c0_8 = arith.constant 0 : index
    %c0_9 = arith.constant 0 : index
    %c0_10 = arith.constant 0 : index
    %11 = vector.load %arg5[%c0_8, %c0_9, %c0_10] : memref<1x64x64xbf16, #tpu.memory_space<vmem>>, vector<1x64x64xbf16>
    %12 = vector.shape_cast %11 : vector<1x64x64xbf16> to vector<64x64xbf16>
    %13 = vector.shape_cast %10 : vector<64x64xbf16> to vector<1x64x64xbf16>
    tpu.vector_store %arg5[%c0_8, %c0_9, %c0_10], %13 {strides = array<i32>} : memref<1x64x64xbf16, #tpu.memory_space<vmem>>, vector<1x64x64xbf16>,
    %c0_11 = arith.constant 0 : index
    %c0_12 = arith.constant 0 : index
    %14 = vector.load %arg4[%c0_11, %c0_12] : memref<64x1xf32, #tpu.memory_space<vmem>>, vector<64x1xf32>
    %15 = vector.broadcast %14 : vector<64x1xf32> to vector<64x64xf32>
    %16 = arith.mulf %9, %15 : vector<64x64xf32>
    %cst_13 = arith.constant dense<0.000000e+00> : vector<64xf32>
    %17 = vector.multi_reduction <add>, %16, %cst_13 [0] : vector<64x64xf32> to vector<64xf32>
    %18 = vector.shape_cast %17 : vector<64xf32> to vector<1x64xf32>
    %c0_14 = arith.constant 0 : index
    %c0_15 = arith.constant 0 : index
    %c0_16 = arith.constant 0 : index
    %19 = vector.load %arg6[%c0_14, %c0_15, %c0_16] : memref<1x1x64xf32, #tpu.memory_space<vmem>>, vector<1x1x64xf32>
    %20 = vector.shape_cast %19 : vector<1x1x64xf32> to vector<1x64xf32>
    %21 = vector.shape_cast %18 : vector<1x64xf32> to vector<1x1x64xf32>
    tpu.vector_store %arg6[%c0_14, %c0_15, %c0_16], %21 {strides = array<i32>} : memref<1x1x64xf32, #tpu.memory_space<vmem>>, vector<1x1x64xf32>,
    %22 = arith.mulf %16, %16 : vector<64x64xf32>
    %cst_17 = arith.constant dense<0.000000e+00> : vector<64xf32>
    %23 = vector.multi_reduction <add>, %22, %cst_17 [0] : vector<64x64xf32> to vector<64xf32>
    %24 = vector.shape_cast %23 : vector<64xf32> to vector<1x64xf32>
    %c0_18 = arith.constant 0 : index
    %c0_19 = arith.constant 0 : index
    %c0_20 = arith.constant 0 : index
    %25 = vector.load %arg7[%c0_18, %c0_19, %c0_20] : memref<1x1x64xf32, #tpu.memory_space<vmem>>, vector<1x1x64xf32>
    %26 = vector.shape_cast %25 : vector<1x1x64xf32> to vector<1x64xf32>
    %27 = vector.shape_cast %24 : vector<1x64xf32> to vector<1x1x64xf32>
    tpu.vector_store %arg7[%c0_18, %c0_19, %c0_20], %27 {strides = array<i32>} : memref<1x1x64xf32, #tpu.memory_space<vmem>>, vector<1x1x64xf32>,
    return
  }
  func.func @transform_0(%arg0: i32) -> (i32, i32, i32) {
    %c0_i32 = arith.constant 0 : i32
    %c0_i32_0 = arith.constant 0 : i32
    %c0_i32_1 = arith.constant 0 : i32
    return %arg0, %c0_i32, %c0_i32_0 : i32, i32, i32
  }
  func.func @transform_1(%arg0: i32) -> (i32, i32, i32) {
    %c0_i32 = arith.constant 0 : i32
    %c0_i32_0 = arith.constant 0 : i32
    %c0_i32_1 = arith.constant 0 : i32
    %c0_i32_2 = arith.constant 0 : i32
    return %c0_i32, %c0_i32_0, %c0_i32_1 : i32, i32, i32
  }
  func.func @transform_2(%arg0: i32) -> (i32, i32) {
    %c0_i32 = arith.constant 0 : i32
    %c0_i32_0 = arith.constant 0 : i32
    %c0_i32_1 = arith.constant 0 : i32
    return %c0_i32, %c0_i32_0 : i32, i32
  }
  func.func @transform_3(%arg0: i32) -> (i32, i32) {
    %c0_i32 = arith.constant 0 : i32
    %c0_i32_0 = arith.constant 0 : i32
    %c0_i32_1 = arith.constant 0 : i32
    return %c0_i32, %c0_i32_0 : i32, i32
  }
  func.func @transform_4(%arg0: i32) -> (i32, i32, i32) {
    %c0_i32 = arith.constant 0 : i32
    %c0_i32_0 = arith.constant 0 : i32
    %c0_i32_1 = arith.constant 0 : i32
    return %arg0, %c0_i32, %c0_i32_0 : i32, i32, i32
  }
  func.func @transform_5(%arg0: i32) -> (i32, i32, i32) {
    %c0_i32 = arith.constant 0 : i32
    %c0_i32_0 = arith.constant 0 : i32
    %c0_i32_1 = arith.constant 0 : i32
    return %arg0, %c0_i32, %c0_i32_0 : i32, i32, i32
  }
  func.func @transform_6(%arg0: i32) -> (i32, i32, i32) {
    %c0_i32 = arith.constant 0 : i32
    %c0_i32_0 = arith.constant 0 : i32
    %c0_i32_1 = arith.constant 0 : i32
    return %arg0, %c0_i32, %c0_i32_0 : i32, i32, i32
  }
}

module attributes {stable_mosaic.version = 11 : i64} {
  func.func @_affine_kernel(%arg0: i32, %arg1: memref<128x128xbf16, #tpu.memory_space<vmem>>, %arg2: memref<1x128xf32, #tpu.memory_space<vmem>>, %arg3: memref<1x128xf32, #tpu.memory_space<vmem>>, %arg4: memref<128x128xbf16, #tpu.memory_space<vmem>>) attributes {dimension_semantics = [#tpu.dimension_semantics<parallel>], iteration_bounds = array<i64: 1>, scalar_prefetch = 0 : i64, scratch_operands = 0 : i64, tpu.core_type = #tpu.core_type<tc>, window_params = [{transform_indices = @transform_0, window_bounds = array<i64: 128, 128>}, {pipeline_mode = #tpu.pipeline_mode<synchronous>, transform_indices = @transform_1, window_bounds = array<i64: 1, 128>}, {pipeline_mode = #tpu.pipeline_mode<synchronous>, transform_indices = @transform_2, window_bounds = array<i64: 1, 128>}, {transform_indices = @transform_3, window_bounds = array<i64: 128, 128>}]} {
    %c0 = arith.constant 0 : index
    %c0_0 = arith.constant 0 : index
    %0 = vector.load %arg1[%c0, %c0_0] : memref<128x128xbf16, #tpu.memory_space<vmem>>, vector<128x128xbf16>
    %1 = arith.extf %0 : vector<128x128xbf16> to vector<128x128xf32>
    %c0_1 = arith.constant 0 : index
    %c0_2 = arith.constant 0 : index
    %2 = vector.load %arg2[%c0_1, %c0_2] : memref<1x128xf32, #tpu.memory_space<vmem>>, vector<1x128xf32>
    %3 = vector.broadcast %2 : vector<1x128xf32> to vector<128x128xf32>
    %4 = arith.mulf %1, %3 : vector<128x128xf32>
    %c0_3 = arith.constant 0 : index
    %c0_4 = arith.constant 0 : index
    %5 = vector.load %arg3[%c0_3, %c0_4] : memref<1x128xf32, #tpu.memory_space<vmem>>, vector<1x128xf32>
    %6 = vector.broadcast %5 : vector<1x128xf32> to vector<128x128xf32>
    %7 = arith.addf %4, %6 : vector<128x128xf32>
    %8 = arith.truncf %7 : vector<128x128xf32> to vector<128x128xbf16>
    %c0_5 = arith.constant 0 : index
    %c0_6 = arith.constant 0 : index
    %9 = vector.load %arg4[%c0_5, %c0_6] : memref<128x128xbf16, #tpu.memory_space<vmem>>, vector<128x128xbf16>
    tpu.vector_store %arg4[%c0_5, %c0_6], %8 {strides = array<i32>} : memref<128x128xbf16, #tpu.memory_space<vmem>>, vector<128x128xbf16>,
    return
  }
  func.func @transform_0(%arg0: i32) -> (i32, i32) {
    %c0_i32 = arith.constant 0 : i32
    %c0_i32_0 = arith.constant 0 : i32
    return %arg0, %c0_i32 : i32, i32
  }
  func.func @transform_1(%arg0: i32) -> (i32, i32) {
    %c0_i32 = arith.constant 0 : i32
    %c0_i32_0 = arith.constant 0 : i32
    %c0_i32_1 = arith.constant 0 : i32
    return %c0_i32, %c0_i32_0 : i32, i32
  }
  func.func @transform_2(%arg0: i32) -> (i32, i32) {
    %c0_i32 = arith.constant 0 : i32
    %c0_i32_0 = arith.constant 0 : i32
    %c0_i32_1 = arith.constant 0 : i32
    return %c0_i32, %c0_i32_0 : i32, i32
  }
  func.func @transform_3(%arg0: i32) -> (i32, i32) {
    %c0_i32 = arith.constant 0 : i32
    %c0_i32_0 = arith.constant 0 : i32
    return %arg0, %c0_i32 : i32, i32
  }
}

module attributes {stable_mosaic.version = 11 : i64} {
  func.func @_conv_tap_kernel(%arg0: i32, %arg1: memref<1x256x128xbf16, #tpu.memory_space<vmem>>, %arg2: memref<1x128x2xbf16, #tpu.memory_space<vmem>>, %arg3: memref<1x2xf32, #tpu.memory_space<vmem>>, %arg4: memref<1x256x2xbf16, #tpu.memory_space<vmem>>) attributes {dimension_semantics = [#tpu.dimension_semantics<parallel>], iteration_bounds = array<i64: 2>, scalar_prefetch = 0 : i64, scratch_operands = 0 : i64, tpu.core_type = #tpu.core_type<tc>, window_params = [{transform_indices = @transform_0, window_bounds = array<i64: 1, 256, 128>}, {pipeline_mode = #tpu.pipeline_mode<synchronous>, transform_indices = @transform_1, window_bounds = array<i64: 1, 128, 2>}, {pipeline_mode = #tpu.pipeline_mode<synchronous>, transform_indices = @transform_2, window_bounds = array<i64: 1, 2>}, {transform_indices = @transform_3, window_bounds = array<i64: 1, 256, 2>}]} {
    %c0 = arith.constant 0 : index
    %c0_0 = arith.constant 0 : index
    %c0_1 = arith.constant 0 : index
    %0 = vector.load %arg1[%c0, %c0_0, %c0_1] : memref<1x256x128xbf16, #tpu.memory_space<vmem>>, vector<1x256x128xbf16>
    %1 = vector.shape_cast %0 : vector<1x256x128xbf16> to vector<256x128xbf16>
    %c0_2 = arith.constant 0 : index
    %c0_3 = arith.constant 0 : index
    %c0_4 = arith.constant 0 : index
    %2 = vector.load %arg2[%c0_2, %c0_3, %c0_4] : memref<1x128x2xbf16, #tpu.memory_space<vmem>>, vector<1x128x2xbf16>
    %3 = vector.shape_cast %2 : vector<1x128x2xbf16> to vector<128x2xbf16>
    %cst = arith.constant dense<0.000000e+00> : vector<256x2xf32>
    %4 = tpu.matmul %1, %3, %cst {dimension_numbers = #tpu.dot_dimension_numbers<[1], [0], [0], [1], [0, 0, 1, 1], [], []>} : vector<256x128xbf16>, vector<128x2xbf16>, vector<256x2xf32> -> vector<256x2xf32>
    %c0_5 = arith.constant 0 : index
    %c0_6 = arith.constant 0 : index
    %5 = vector.load %arg3[%c0_5, %c0_6] : memref<1x2xf32, #tpu.memory_space<vmem>>, vector<1x2xf32>
    %6 = vector.broadcast %5 : vector<1x2xf32> to vector<256x2xf32>
    %7 = arith.addf %4, %6 : vector<256x2xf32>
    %8 = arith.truncf %7 : vector<256x2xf32> to vector<256x2xbf16>
    %c0_7 = arith.constant 0 : index
    %c0_8 = arith.constant 0 : index
    %c0_9 = arith.constant 0 : index
    %9 = vector.load %arg4[%c0_7, %c0_8, %c0_9] : memref<1x256x2xbf16, #tpu.memory_space<vmem>>, vector<1x256x2xbf16>
    %10 = vector.shape_cast %9 : vector<1x256x2xbf16> to vector<256x2xbf16>
    %11 = vector.shape_cast %8 : vector<256x2xbf16> to vector<1x256x2xbf16>
    tpu.vector_store %arg4[%c0_7, %c0_8, %c0_9], %11 {strides = array<i32>} : memref<1x256x2xbf16, #tpu.memory_space<vmem>>, vector<1x256x2xbf16>,
    return
  }
  func.func @transform_0(%arg0: i32) -> (i32, i32, i32) {
    %c0_i32 = arith.constant 0 : i32
    %c0_i32_0 = arith.constant 0 : i32
    %c0_i32_1 = arith.constant 0 : i32
    return %arg0, %c0_i32, %c0_i32_0 : i32, i32, i32
  }
  func.func @transform_1(%arg0: i32) -> (i32, i32, i32) {
    %c0_i32 = arith.constant 0 : i32
    %c0_i32_0 = arith.constant 0 : i32
    %c0_i32_1 = arith.constant 0 : i32
    %c0_i32_2 = arith.constant 0 : i32
    return %c0_i32, %c0_i32_0, %c0_i32_1 : i32, i32, i32
  }
  func.func @transform_2(%arg0: i32) -> (i32, i32) {
    %c0_i32 = arith.constant 0 : i32
    %c0_i32_0 = arith.constant 0 : i32
    %c0_i32_1 = arith.constant 0 : i32
    return %c0_i32, %c0_i32_0 : i32, i32
  }
  func.func @transform_3(%arg0: i32) -> (i32, i32, i32) {
    %c0_i32 = arith.constant 0 : i32
    %c0_i32_0 = arith.constant 0 : i32
    %c0_i32_1 = arith.constant 0 : i32
    return %arg0, %c0_i32, %c0_i32_0 : i32, i32, i32
  }
}

</mosaic_0001>

<bundles_post_ra>
// kernel: _forward.39
= control target key start
LH: loop header
LB: loop body
LE: loop exit
PB: predicated region body
PF: predicated region fallthrough
CT: control target
= control target key end

     0   :  { %vm172_vm0 = vcmask 519168   ;;  %s416_s0 = inlined_call_operand.vmem [shape: bf16[128,64], index: 0, kind: input, shape index: {}]   ;;  %s417_s1 = inlined_call_operand.vmem [shape: f32[1,64], index: 1, kind: input, shape index: {}]   ;;  %s418_s2 = inlined_call_operand.vmem [shape: f32[1,64], index: 2, kind: input, shape index: {}]   ;;  %s419_s3 = inlined_call_operand.vmem [shape: bf16[128,64], index: 3, kind: output, shape index: {}]  }
   0x1   :  { %v228_v0 = vld [vmem:[%s416_s0] sm:$0xff]   ;;  %v259_v4 = vld [vmem:[%s416_s0 + $0x8] sm:$0xff]   ;;  %v260_v5 = vld [vmem:[%s416_s0 + $0x10] sm:$0xff]  }
   0x2   :  { %v292_v1 = vld [vmem:[%s417_s1] ss:$0 sm:$0xff]  ;;  %v229_v2 = vunpack.c.l.bf16 %v228_v0  ;;  %v230_v3 = vunpack.c.h.bf16 %v228_v0  ;;  %v261_v6 = vld [vmem:[%s416_s0 + $0x18] sm:$0xff]   ;;  %v233_v8 = vunpack.c.l.bf16 %v259_v4  ;;  %v234_v9 = vunpack.c.h.bf16 %v259_v4  ;;  %v263_v41 = vld [vmem:[%s416_s0 + $0x28] sm:$0xff]  }
   0x3   :  { %v306_v7 = vld [vmem:[%s418_s2] ss:$0 sm:$0xff]  ;;  %v237_v10 = vunpack.c.l.bf16 %v260_v5  ;;  %v238_v11 = vunpack.c.h.bf16 %v260_v5  ;;  %v241_v14 = vunpack.c.l.bf16 %v261_v6  ;;  %v242_v15 = vunpack.c.h.bf16 %v261_v6  ;;  %v264_v42 = vld [vmem:[%s416_s0 + $0x30] sm:$0xff]   ;;  %v265_v47 = vld [vmem:[%s416_s0 + $0x38] sm:$0xff]  }
   0x4   :  { %v53_v12 = vmul.f32 %v229_v2, %v292_v1  ;;  %v54_v13 = vmul.f32 %v230_v3, %v292_v1  ;;  %v55_v16 = vmul.f32 %v233_v8, %v292_v1  ;;  %v56_v17 = vmul.f32 %v234_v9, %v292_v1  ;;  %v262_v36 = vld [vmem:[%s416_s0 + $0x20] sm:$0xff]  }
   0x5   :  { %v57_v18 = vmul.f32 %v237_v10, %v292_v1  ;;  %v58_v19 = vmul.f32 %v238_v11, %v292_v1  ;;  %v59_v22 = vmul.f32 %v241_v14, %v292_v1  ;;  %v60_v23 = vmul.f32 %v242_v15, %v292_v1 }
   0x6   :  { %v76_v20 = vadd.f32 %v306_v7, %v53_v12  ;;  %v77_v21 = vadd.f32 %v306_v7, %v54_v13  ;;  %v78_v24 = vadd.f32 %v306_v7, %v55_v16  ;;  %v79_v25 = vadd.f32 %v306_v7, %v56_v17 }
   0x7   :  { %v80_v26 = vadd.f32 %v306_v7, %v57_v18  ;;  %v81_v27 = vadd.f32 %v306_v7, %v58_v19  ;;  %v82_v30 = vadd.f32 %v306_v7, %v59_v22  ;;  %v83_v31 = vadd.f32 %v306_v7, %v60_v23 }
   0x8   :  { %v92_v28 = vmax.f32 %v76_v20, 0.0  ;;  %v93_v29 = vmax.f32 %v77_v21, 0.0  ;;  %v94_v32 = vmax.f32 %v78_v24, 0.0  ;;  %v95_v33 = vmax.f32 %v79_v25, 0.0 }
   0x9   :  { %v96_v34 = vmax.f32 %v80_v26, 0.0  ;;  %v97_v35 = vmax.f32 %v81_v27, 0.0  ;;  %v98_v39 = vmax.f32 %v82_v30, 0.0  ;;  %v99_v40 = vmax.f32 %v83_v31, 0.0 }
   0xa   :  { %v211_v37 = vpack.c.bf16 %v92_v28, %v92_v28  ;;  %v212_v38 = vpack.c.bf16 %v93_v29, %v93_v29  ;;  %v213_v43 = vpack.c.bf16 %v94_v32, %v94_v32  ;;  %v214_v44 = vpack.c.bf16 %v95_v33, %v95_v33 }
   0xb   :  { %v215_v45 = vpack.c.bf16 %v96_v34, %v96_v34  ;;  %v216_v46 = vpack.c.bf16 %v97_v35, %v97_v35  ;;  %v217_v48 = vpack.c.bf16 %v98_v39, %v98_v39  ;;  %v218_v49 = vpack.c.bf16 %v99_v40, %v99_v40 }
   0xc   :  { %173 = vst.msk [vmem:[%s419_s3] sm:$0xf] %vm172_vm0, %v211_v37  ;;  %174 = vst.msk [vmem:[%s419_s3 + $0x4] sm:$0xf] %vm172_vm0, %v212_v38  ;;  %v245_v50 = vunpack.c.l.bf16 %v262_v36  ;;  %v246_v51 = vunpack.c.h.bf16 %v262_v36  ;;  %v249_v52 = vunpack.c.l.bf16 %v263_v41  ;;  %v250_v53 = vunpack.c.h.bf16 %v263_v41 }
   0xd   :  { %175 = vst.msk [vmem:[%s419_s3 + $0x8] sm:$0xf] %vm172_vm0, %v213_v43  ;;  %176 = vst.msk [vmem:[%s419_s3 + $0xc] sm:$0xf] %vm172_vm0, %v214_v44  ;;  %v253_v54 = vunpack.c.l.bf16 %v264_v42  ;;  %v254_v55 = vunpack.c.h.bf16 %v264_v42  ;;  %v257_v58 = vunpack.c.l.bf16 %v265_v47  ;;  %v258_v59 = vunpack.c.h.bf16 %v265_v47 }
   0xe   :  { %177 = vst.msk [vmem:[%s419_s3 + $0x10] sm:$0xf] %vm172_vm0, %v215_v45  ;;  %178 = vst.msk [vmem:[%s419_s3 + $0x14] sm:$0xf] %vm172_vm0, %v216_v46  ;;  %v61_v56 = vmul.f32 %v245_v50, %v292_v1  ;;  %v62_v57 = vmul.f32 %v246_v51, %v292_v1  ;;  %v63_v60 = vmul.f32 %v249_v52, %v292_v1 }
   0xf   :  { %179 = vst.msk [vmem:[%s419_s3 + $0x18] sm:$0xf] %vm172_vm0, %v217_v48  ;;  %180 = vst.msk [vmem:[%s419_s3 + $0x1c] sm:$0xf] %vm172_vm0, %v218_v49  ;;  %v64_v61 = vmul.f32 %v250_v53, %v292_v1  ;;  %v65_v62 = vmul.f32 %v253_v54, %v292_v1  ;;  %v66_v63 = vmul.f32 %v254_v55, %v292_v1 }
  0x10   :  { %v84_v0 = vadd.f32 %v306_v7, %v61_v56  ;;  %v85_v2 = vadd.f32 %v306_v7, %v62_v57  ;;  %v67_v3 = vmul.f32 %v257_v58, %v292_v1  ;;  %v68_v4 = vmul.f32 %v258_v59, %v292_v1 }
  0x11   :  { %v86_v5 = vadd.f32 %v306_v7, %v63_v60  ;;  %v87_v6 = vadd.f32 %v306_v7, %v64_v61  ;;  %v88_v8 = vadd.f32 %v306_v7, %v65_v62  ;;  %v89_v9 = vadd.f32 %v306_v7, %v66_v63 }
  0x12   :  { %v100_v10 = vmax.f32 %v84_v0, 0.0  ;;  %v101_v11 = vmax.f32 %v85_v2, 0.0  ;;  %v90_v12 = vadd.f32 %v306_v7, %v67_v3  ;;  %v91_v13 = vadd.f32 %v306_v7, %v68_v4 }
  0x13   :  { %v102_v14 = vmax.f32 %v86_v5, 0.0  ;;  %v103_v15 = vmax.f32 %v87_v6, 0.0  ;;  %v104_v16 = vmax.f32 %v88_v8, 0.0  ;;  %v105_v17 = vmax.f32 %v89_v9, 0.0 }
  0x14   :  { %v219_v18 = vpack.c.bf16 %v100_v10, %v100_v10  ;;  %v220_v1 = vpack.c.bf16 %v101_v11, %v101_v11  ;;  %v106_v19 = vmax.f32 %v90_v12, 0.0  ;;  %v107_v20 = vmax.f32 %v91_v13, 0.0 }
  0x15   :  { %v221_v21 = vpack.c.bf16 %v102_v14, %v102_v14  ;;  %v222_v22 = vpack.c.bf16 %v103_v15, %v103_v15  ;;  %v223_v23 = vpack.c.bf16 %v104_v16, %v104_v16  ;;  %v224_v24 = vpack.c.bf16 %v105_v17, %v105_v17 }
  0x16   :  { %181 = vst.msk [vmem:[%s419_s3 + $0x20] sm:$0xf] %vm172_vm0, %v219_v18  ;;  %182 = vst.msk [vmem:[%s419_s3 + $0x24] sm:$0xf] %vm172_vm0, %v220_v1  ;;  %v225_v7 = vpack.c.bf16 %v106_v19, %v106_v19  ;;  %v226_v25 = vpack.c.bf16 %v107_v20, %v107_v20 }
  0x17   :  { %183 = vst.msk [vmem:[%s419_s3 + $0x28] sm:$0xf] %vm172_vm0, %v221_v21  ;;  %184 = vst.msk [vmem:[%s419_s3 + $0x2c] sm:$0xf] %vm172_vm0, %v222_v22 }
  0x18   :  { %185 = vst.msk [vmem:[%s419_s3 + $0x30] sm:$0xf] %vm172_vm0, %v223_v23  ;;  %186 = vst.msk [vmem:[%s419_s3 + $0x34] sm:$0xf] %vm172_vm0, %v224_v24 }
  0x19   :  { %187 = vst.msk [vmem:[%s419_s3 + $0x38] sm:$0xf] %vm172_vm0, %v225_v7  ;;  %188 = vst.msk [vmem:[%s419_s3 + $0x3c] sm:$0xf] %vm172_vm0, %v226_v25 }

// kernel: _forward.43
= control target key start
LH: loop header
LB: loop body
LE: loop exit
PB: predicated region body
PF: predicated region fallthrough
CT: control target
= control target key end

     0   :  { %vm79_vm0 = vcmask 519168   ;;  %s171_s0 = inlined_call_operand.vmem [shape: bf16[32,64], index: 0, kind: input, shape index: {}]   ;;  %s172_s1 = inlined_call_operand.vmem [shape: f32[1,64], index: 1, kind: input, shape index: {}]   ;;  %s173_s2 = inlined_call_operand.vmem [shape: f32[1,64], index: 2, kind: input, shape index: {}]   ;;  %s174_s3 = inlined_call_operand.vmem [shape: bf16[32,64], index: 3, kind: input, shape index: {}]   ;;  %s175_s4 = inlined_call_operand.vmem [shape: bf16[32,64], index: 4, kind: output, shape index: {}]  }
   0x1   :  { %v99_v0 = vld [vmem:[%s171_s0] sm:$0xff]   ;;  %v114_v5 = vld [vmem:[%s171_s0 + $0x8] sm:$0xff]  }
   0x2   :  { %v88_v1 = vld [vmem:[%s172_s1] ss:$0 sm:$0xff]  ;;  %v100_v2 = vunpack.c.l.bf16 %v99_v0  ;;  %v101_v4 = vunpack.c.h.bf16 %v99_v0  ;;  %v115_v6 = vld [vmem:[%s174_s3 + $0x8] sm:$0xff]   ;;  %v104_v9 = vunpack.c.l.bf16 %v114_v5  ;;  %v105_v13 = vunpack.c.h.bf16 %v114_v5 }
   0x3   :  { %v107_v3 = vld [vmem:[%s174_s3] sm:$0xff]   ;;  %v112_v15 = vunpack.c.l.bf16 %v115_v6  ;;  %v113_v19 = vunpack.c.h.bf16 %v115_v6 }
   0x4   :  { %v89_v7 = vld [vmem:[%s173_s2] ss:$0 sm:$0xff]  ;;  %v108_v8 = vunpack.c.l.bf16 %v107_v3  ;;  %v32_v10 = vmul.f32 %v100_v2, %v88_v1  ;;  %v33_v11 = vmul.f32 %v101_v4, %v88_v1  ;;  %v109_v12 = vunpack.c.h.bf16 %v107_v3 }
   0x5   :  { %v34_v14 = vmul.f32 %v104_v9, %v88_v1  ;;  %v35_v18 = vmul.f32 %v105_v13, %v88_v1 }
   0x6   :  { %v43_v16 = vadd.f32 %v89_v7, %v32_v10  ;;  %v44_v17 = vadd.f32 %v89_v7, %v33_v11 }
   0x7   :  { %v45_v20 = vadd.f32 %v89_v7, %v34_v14  ;;  %v46_v23 = vadd.f32 %v89_v7, %v35_v18 }
   0x8   :  { %v55_v21 = vadd.f32 %v108_v8, %v43_v16  ;;  %v56_v22 = vadd.f32 %v109_v12, %v44_v17 }
   0x9   :  { %v57_v24 = vadd.f32 %v112_v15, %v45_v20  ;;  %v58_v27 = vadd.f32 %v113_v19, %v46_v23 }
   0xa   :  { %v59_v25 = vmax.f32 %v55_v21, 0.0  ;;  %v60_v26 = vmax.f32 %v56_v22, 0.0 }
   0xb   :  { %v61_v28 = vmax.f32 %v57_v24, 0.0  ;;  %v62_v31 = vmax.f32 %v58_v27, 0.0 }
   0xc   :  { %v94_v29 = vpack.c.bf16 %v59_v25, %v59_v25  ;;  %v95_v30 = vpack.c.bf16 %v60_v26, %v60_v26 }
   0xd   :  { %v96_v32 = vpack.c.bf16 %v61_v28, %v61_v28  ;;  %v97_v33 = vpack.c.bf16 %v62_v31, %v62_v31 }
   0xe   :  { %80 = vst.msk [vmem:[%s175_s4] sm:$0xf] %vm79_vm0, %v94_v29  ;;  %81 = vst.msk [vmem:[%s175_s4 + $0x4] sm:$0xf] %vm79_vm0, %v95_v30 }
   0xf   :  { %82 = vst.msk [vmem:[%s175_s4 + $0x8] sm:$0xf] %vm79_vm0, %v96_v32  ;;  %83 = vst.msk [vmem:[%s175_s4 + $0xc] sm:$0xf] %vm79_vm0, %v97_v33 }

// kernel: _forward.38
= control target key start
LH: loop header
LB: loop body
LE: loop exit
PB: predicated region body
PF: predicated region fallthrough
CT: control target
= control target key end

     0   :  { %s3981_s18 = smov 0   ;;  %s4865_s0 = inlined_call_operand.vmem [shape: bf16[2,132,12], index: 0, kind: input, shape index: {}]   ;;  %s4866_s1 = inlined_call_operand.vmem [shape: bf16[16,12,64], index: 1, kind: input, shape index: {}]   ;;  %s4867_s2 = inlined_call_operand.vmem [shape: f32[88,1], index: 2, kind: input, shape index: {}]   ;;  %s4868_s3 = inlined_call_operand.vmem [shape: bf16[2,88,64], index: 3, kind: output, shape index: {0}]   ;;  %s4869_s4 = inlined_call_operand.vmem [shape: f32[2,1,64], index: 4, kind: output, shape index: {1}]   ;;  %s4870_s5 = inlined_call_operand.vmem [shape: f32[2,1,64], index: 5, kind: output, shape index: {2}]  }
   0x1 LB: > { %s3117_s19 = sadd.s32 4294967295, %s3948_s18   ;;  %p3121_p0 = scmp.ge.s32.totalorder %s3948_s18, 1  ;;  %s3948_s18 = sphi %s3981_s18, %s16_s18  }
   0x2   : > { %p192_p1 = scmp.lt.s32.totalorder %s3948_s18, 3 }
   0x4   : > { %p193_p2 = pnand %p3121_p0, %p192_p1 }
   0x5   : > { %vm362_vm0 = vcmask (!%p193_p2), 1045504   ;;  %p226_p3 = scmp.lt.s32.totalorder (!%p193_p2), %s3117_s19, 1  ;;  %v3880_v0 = vld [vmem:[%s4866_s1 + $0x40] sm:$0x3f] (!%p193_p2)   ;;  %v3881_v1 = vld [vmem:[%s4866_s1 + $0x8] sm:$0x3f] (!%p193_p2)  }
   0x6   : > { %196 = sbr.rel (%p193_p2) target bundleno = 455 (0x1c7), region = 32  ;;  %3859 = vmatprep.subr.msk.bf16.mxu0 (!%p193_p2), %vm362_vm0, %v3880_v0  ;;  %v1567_v2 = vsel (!%p193_p2), %vm362_vm0, %v3880_v0, 0  ;;  %3851 = vmatprep.subr.msk.bf16.mxu1 (!%p193_p2), %vm362_vm0, %v3881_v1  ;;  %v364_v3 = vsel (!%p193_p2), %vm362_vm0, %v3881_v1, 0  ;;  %v3888_v4 = vld [vmem:[%s4866_s1] sm:$0x3f] (!%p193_p2)   ;;  %vm343_vm1 = vcmask (!%p193_p2), 97280  }
   0x7   : > { %3561 = vmatpush3.bf16.msra.mxu0 (!%p193_p2), %v1567_v2  ;;  %3449 = vmatpush3.bf16.msra.mxu1 (!%p193_p2), %v364_v3  ;;  %v3889_v5 = vld [vmem:[%s4866_s1 + $0x48] sm:$0x3f] (!%p193_p2)   ;;  %vm1358_vm2 = vcmask (!%p193_p2), 1044480   ;;  %vm290_vm3 = vsmask.f32 (!%p193_p2), 7424  ;;  %v466_v41 = vsel (!%p193_p2), %vm362_vm0, %v3888_v4, 0 }
   0x8   : > { %3852 = vmatprep.subr.msk.bf16.mxu1 (!%p193_p2), %vm362_vm0, %v3888_v4  ;;  %3860 = vmatprep.subr.msk.bf16.mxu0 (!%p193_p2), %vm362_vm0, %v3889_v5  ;;  %v1745_v23 = vsel (!%p193_p2), %vm362_vm0, %v3889_v5, 0  ;;  %v4137_v2 = vld [vmem:[%s4866_s1 + $0x10] sm:$0x3f] (!%p193_p2)   ;;  %vm1667_vm4 = vsmask.f32 (!%p193_p2), 4352  ;;  %vm555_vm6 = vcmask (!%p193_p2), 1046528  }
   0x9   : > { %vm691_vm5 = vsmask.f32 (!%p193_p2), 6400  ;;  %vm1200_vm7 = vsmask.f32 (!%p193_p2), 5376  ;;  %vm2854_vm8 = vcmask (!%p193_p2), 519168   ;;  %vm2943_vm9 = vcmask (!%p193_p2), 523264  }
   0xa   : > { %vm2971_vm10 = vcmask (!%p193_p2), 516096  }
   0xd   : > { %s4872_s19 = smov (!%p226_p3, %s3117_s19), 1 }
   0xe   : > { %s3867_s24 = smul.u32 68, %s4872_s19  ;;  %s238_s14 = scalar_lea.vmem %s4869_s4, %s4872_s19 }
   0xf   : > { %s3868_s8 = smul.u32 44, %s4872_s19  ;;  %s241_s17 = scalar_lea.vmem %s4870_s5, %s4872_s19 }
  0x10   : > { %s4011_s6 = scalar_lea.vmem %s4865_s0, %s3867_s24 }
  0x11   : > { %v1487_v6 = vld [vmem:[%s4011_s6 + $0x8] sm:$0x8]  ;;  %v4016_v7 = vld [vmem:[%s4011_s6 + $0xc] sm:$0xf]  ;;  %v4019_v8 = vld [vmem:[%s4011_s6 + $0x10] sm:$0xf]  ;;  %s4808_s11 = scalar_lea.vmem %s4868_s3, %s3868_s8 }
  0x12   : > { %v4023_v9 = vld [vmem:[%s4011_s6 + $0x14] sm:$0xf]  ;;  %v4026_v10 = vld [vmem:[%s4011_s6 + $0x18] sm:$0xf]  ;;  %v4029_v11 = vcombine.low %v1487_v6, %v4016_v7  ;;  %v4032_v12 = vld [vmem:[%s4011_s6 + $0x1c] sm:$0xf] }
  0x13   : > { %v4036_v13 = vcombine.low %v4019_v8, %v4023_v9  ;;  %v4040_v14 = vcombine.low %v4026_v10, %v4032_v12  ;;  %v243_v15 = vld [vmem:[%s4011_s6] sm:$0xf]  ;;  %v4044_v16 = vld [vmem:[%s4011_s6 + $0x4] sm:$0xf]  ;;  %v4051_v19 = vld [vmem:[%s4011_s6 + $0x8] sm:$0xff]  }
  0x14   : > { %v1532_v17 = vrot.slane %v4029_v11, 3  ;;  %v4048_v18 = vcombine.low %v243_v15, %v4044_v16  ;;  %v4056_v22 = vld [vmem:[%s4011_s6 + $0x10] sm:$0xff]   ;;  %v299_v26 = vshll.u32 %v4051_v19, 16  ;;  %v303_v27 = vshrl.u32 %v4051_v19, 16  ;;  %v4064_v28 = vld [vmem:[%s4011_s6 + $0x20] sm:$0xf] }
  0x15   : > { %v1533_v20 = vrot.slane %v4036_v13, 3  ;;  %v1535_v21 = vrot.slane %v4040_v14, 3  ;;  %v307_v31 = vshll.u32 %v4056_v22, 16  ;;  %v4070_v32 = vld [vmem:[%s4011_s6 + $0x24] sm:$0xf]  ;;  %v4076_v34 = vld [vmem:[%s4011_s6 + $0x18] sm:$0xff]  }
  0x16   : > { %v292_v24 = vshrl.u32 %v4048_v18, 16  ;;  %v294_v25 = vshll.u32 %v4048_v18, 16  ;;  %v4073_v33 = vld [vmem:[%s4011_s6 + $0x28] sm:$0xf]  ;;  %v301_v36 = vrot.slane %v299_v26, 1  ;;  %v4083_v37 = vcombine.low %v4064_v28, %v4070_v32  ;;  %v4089_v39 = vld [vmem:[%s4011_s6 + $0x20] sm:$0xff]  }
  0x17   : > { %v1534_v29 = vsel %vm1358_vm2, %v1532_v17, %v1533_v20  ;;  %v1536_v30 = vsel %vm1358_vm2, %v1533_v20, %v1535_v21  ;;  %v4086_v38 = vld [vmem:[%s4011_s6 + $0x2c] sm:$0xf]  ;;  %v309_v40 = vrot.slane %v307_v31, 1  ;;  %v311_v46 = vshrl.u32 %v4056_v22, 16  ;;  %v4108_v51 = vld [vmem:[%s4011_s6 + $0x30] sm:$0xf] }
  0x18   : > { %3562 = vmatprep.mubr.msk.bf16.mxu0 %vm343_vm1, %v1534_v29  ;;  %v296_v35 = vrot.slane %v294_v25, 1  ;;  %v4097_v42 = vcombine.low %v4073_v33, %v4086_v38  ;;  %v305_v44 = vor.u32 %v303_v27, %v301_v36  ;;  %v1537_v45 = vrot.slane %v4083_v37, 3  ;;  %v1498_v56 = vld [vmem:[%s4011_s6 + $0x34] sm:$0x7]  ;;  %v4117_v57 = vld [vmem:[%s4011_s6 + $0x28] sm:$0xf] }
  0x19   : > { %3563 = vmatmul.mubr.msk.bf16.vlgmr.msra.gmra.mrb[0].mxu0 %vm343_vm1, %v1536_v30  ;;  %v315_v48 = vshll.u32 %v4076_v34, 16  ;;  %v319_v49 = vshrl.u32 %v4076_v34, 16  ;;  %v323_v50 = vshll.u32 %v4089_v39, 16  ;;  %v313_v55 = vor.u32 %v311_v46, %v309_v40  ;;  %v256_v58 = vld [vmem:[%s4011_s6 + $0x2c] sm:$0x1] }
  0x1a   : > { %v297_v43 = vor.u32 %v296_v35, %v292_v24  ;;  %3575 = vmatpush3.bf16.msra.mxu0 %v1745_v23  ;;  %v1539_v47 = vrot.slane %v4097_v42, 3  ;;  %v310_v53 = vsel %vm290_vm3, %v305_v44, %v309_v40  ;;  %v1538_v54 = vsel %vm1358_vm2, %v1535_v21, %v1537_v45  ;;  %v3898_v15 = vld [vmem:[%s4866_s1 + $0x50] sm:$0x3f]  }
  0x1b   : > { %3566 = vmatprep.mubr.msk.bf16.mxu0 %vm343_vm1, %v1538_v54  ;;  %v317_v60 = vrot.slane %v315_v48, 1  ;;  %v325_v61 = vrot.slane %v323_v50, 1  ;;  %v3219_v62 = vcombine.low %v4108_v51, %v1498_v56  ;;  %v4130_v63 = vcombine.low %v4117_v57, %v256_v58  ;;  %3861 = vmatprep.subr.msk.bf16.mxu0 %vm362_vm0, %v3898_v15 }
  0x1c   : > { %v302_v52 = vsel %vm290_vm3, %v297_v43, %v301_v36  ;;  %v1540_v59 = vsel %vm1358_vm2, %v1537_v45, %v1539_v47  ;;  %v327_v0 = vshrl.u32 %v4089_v39, 16  ;;  %v1669_v1 = vshrl.u32 %v4029_v11, 16 }
  0x1d   : > { %3450 = vmatprep.mubr.msk.bf16.mxu1 %vm343_vm1, %v302_v52  ;;  %v318_v3 = vsel %vm290_vm3, %v313_v55, %v317_v60  ;;  %v321_v4 = vor.u32 %v319_v49, %v317_v60  ;;  %v1672_v5 = vshll.u32 %v4029_v11, 16  ;;  %v1677_v6 = vshrl.u32 %v4036_v13, 16 }
  0x1e   : > { %3451 = vmatmul.mubr.msk.bf16.vlgmr.msra.gmra.mrb[0].mxu1 %vm343_vm1, %v310_v53  ;;  %v1541_v17 = vrot.slane %v3219_v62, 3  ;;  %v329_v20 = vor.u32 %v327_v0, %v325_v61  ;;  %v331_v21 = vshll.u32 %v4130_v63, 16  ;;  %v1671_v11 = vrot.slane %v1669_v1, 3 }
  0x1f   : > { %3463 = vmatpush3.bf16.msra.mxu1 %v466_v41  ;;  %3454 = vmatprep.mubr.msk.bf16.mxu1 %vm343_vm1, %v318_v3  ;;  %v1674_v23 = vrot.slane %v1672_v5, 4  ;;  %v1679_v24 = vrot.slane %v1677_v6, 3  ;;  %v1680_v30 = vshll.u32 %v4036_v13, 16  ;;  %v1686_v35 = vshrl.u32 %v4040_v14, 16  ;;  %v4162_v41 = vld [vmem:[%s4011_s6 + $0x34] sm:$0xf] }
  0x20   : > { %3853 = vmatprep.subr.msk.bf16.mxu1 %vm362_vm0, %v4137_v2  ;;  %v1542_v25 = vsel %vm1358_vm2, %v1539_v47, %v1541_v17  ;;  %v333_v29 = vrot.slane %v331_v21, 1  ;;  %v326_v36 = vsel %vm290_vm3, %v321_v4, %v325_v61  ;;  %v1689_v40 = vshll.u32 %v4040_v14, 16  ;;  %v3910_v5 = vld [vmem:[%s4011_s6 + $0x14] sm:$0xff]   ;;  %v3911_v21 = vld [vmem:[%s4011_s6 + $0x1c] sm:$0xff]  }
  0x21   : > { %3567 = vmatmul.mubr.msk.bf16.gmra.mrb[4].mxu0 %vm343_vm1, %v1540_v59  ;;  %v1675_v44 = vor.u32 %v1674_v23, %v1671_v11  ;;  %v1682_v45 = vrot.slane %v1680_v30, 4  ;;  %v335_v47 = vshrl.u32 %v4130_v63, 16  ;;  %v1695_v52 = vshrl.u32 %v4083_v37, 16 }
  0x22   : > { %3570 = vmatprep.mubr.msk.bf16.mxu0 %vm343_vm1, %v1542_v25  ;;  %v334_v43 = vsel %vm290_vm3, %v329_v20, %v333_v29  ;;  %v1698_v13 = vshll.u32 %v4083_v37, 16  ;;  %v1688_v54 = vrot.slane %v1686_v35, 3  ;;  %v1691_v55 = vrot.slane %v1689_v40, 4 }
  0x23   : > { %v1683_v53 = vor.u32 %v1682_v45, %v1679_v24  ;;  %v3229_v14 = vcombine.low %v4108_v51, %v4162_v41  ;;  %v1697_v56 = vrot.slane %v1695_v52, 3  ;;  %v1704_v37 = vshrl.u32 %v4097_v42, 16  ;;  %v3915_v45 = vld [vmem:[%s4011_s6 + $0x2c] sm:$0xff]   ;;  %v4209_v52 = vld [vmem:[%s4866_s1 + $0x18] sm:$0x3f]  }
  0x24   : > { %v1700_v58 = vrot.slane %v1698_v13, 4  ;;  %v1707_v60 = vshll.u32 %v4097_v42, 16  ;;  %v337_v61 = vor.u32 %v335_v47, %v333_v29  ;;  %v1692_v62 = vor.u32 %v1691_v55, %v1688_v54  ;;  %v548_v54 = vld [vmem:[%s4011_s6] sm:$0xe] }
  0x25   : > { %v1684_v59 = vsel %vm1667_vm4, %v1675_v44, %v1683_v53  ;;  %v1713_v1 = vshrl.u32 %v3229_v14, 16  ;;  %v1716_v4 = vshll.u32 %v3229_v14, 16  ;;  %v701_v6 = vrot.slane %v299_v26, 2  ;;  %v4191_v26 = vld [vmem:[%s4866_s1 + $0x58] sm:$0x3f]  }
  0x26   : > { %3455 = vmatmul.mubr.msk.bf16.gmra.mrb[4].mxu1 %vm343_vm1, %v326_v36  ;;  %v1701_v3 = vor.u32 %v1700_v58, %v1697_v56  ;;  %v705_v20 = vrot.slane %v307_v31, 2  ;;  %v1706_v42 = vrot.slane %v1704_v37, 3  ;;  %v1709_v11 = vrot.slane %v1707_v60, 4  ;;  %v3914_v36 = vld [vmem:[%s4011_s6 + $0x24] sm:$0xff]   ;;  %v4220_v58 = vld [vmem:[%s4011_s6 + $0x34] sm:$0x1f]  }
  0x27   : > { %3458 = vmatprep.mubr.msk.bf16.mxu1 %vm343_vm1, %v334_v43  ;;  %v1693_v23 = vsel %vm1667_vm4, %v1683_v53, %v1692_v62  ;;  %v1871_v24 = vsel %vm362_vm0, %v3898_v15, 0  ;;  %v1715_v25 = vrot.slane %v1713_v1, 3  ;;  %v2017_v29 = vshll.u32 %v3910_v5, 16  ;;  %v4233_v1 = vld [vmem:[%s4011_s6 + $0x14] sm:$0xf] }
  0x28   : > { %v1702_v31 = vsel %vm1667_vm4, %v1692_v62, %v1701_v3  ;;  %v2021_v30 = vshrl.u32 %v3910_v5, 16  ;;  %v2025_v35 = vshll.u32 %v3911_v21, 16  ;;  %v1710_v15 = vor.u32 %v1709_v11, %v1706_v42  ;;  %v2173_v62 = vld [vmem:[%s4011_s6 + $0x10] sm:$0xf]  ;;  %v4250_v42 = vld [vmem:[%s4011_s6 + $0x18] sm:$0xff]  }
  0x29   : > { %3571 = vmatmul.mubr.msk.bf16.gmra.mrb[8].mxu0 %vm343_vm1, %v1541_v17  ;;  %v704_v17 = vrot.slane %v311_v46, 1  ;;  %v1718_v46 = vrot.slane %v1716_v4, 4  ;;  %v4198_v40 = vrot.slane %v2017_v29, 1  ;;  %v700_v43 = vrot.slane %v303_v27, 1 }
  0x2a   : > { %3576 = vmatprep.mubr.msk.bf16.mxu0 %vm343_vm1, %v1684_v59  ;;  %v591_v53 = vsel %vm362_vm0, %v4137_v2, 0  ;;  %v2029_v55 = vshrl.u32 %v3911_v21, 16  ;;  %v2033_v14 = vshll.u32 %v3914_v36, 16  ;;  %v2037_v56 = vshrl.u32 %v3914_v36, 16 }
  0x2b   : > { %v706_v44 = vor.u32 %v705_v20, %v704_v17  ;;  %v4204_v47 = vor.u32 %v1718_v46, %v1715_v25  ;;  %v2023_v27 = vor.u32 %v2021_v30, %v4198_v40  ;;  %v4214_v13 = vor.u32 %v701_v6, %v700_v43 }
  0x2c   : > { %v1711_v59 = vsel %vm1667_vm4, %v1701_v3, %v1710_v15  ;;  %v2035_v4 = vrot.slane %v2033_v14, 1  ;;  %v2041_v5 = vshll.u32 %v3915_v45, 16  ;;  %v708_v3 = vrot.slane %v319_v49, 1 }
  0x2d   : > { %v4228_v60 = vsel %vm691_vm5, %v4214_v13, %v706_v44  ;;  %v1720_v6 = vsel %vm1667_vm4, %v1710_v15, %v4204_v47  ;;  %v709_v20 = vrot.slane %v315_v48, 2  ;;  %v712_v17 = vrot.slane %v327_v0, 1 }
  0x2e   : > { %3459 = vmatmul.mubr.msk.bf16.gmra.mrb[8].mxu1 %vm343_vm1, %v337_v61  ;;  %v684_v61 = vld [vmem:[%s4011_s6 + $0x2c] sm:$0x3]  ;;  %v713_v21 = vrot.slane %v323_v50, 2  ;;  %v2039_v11 = vor.u32 %v2037_v56, %v2035_v4  ;;  %v4259_v48 = vcombine.low %v548_v54, %v4044_v16  ;;  %v2049_v50 = vshll.u32 %v4220_v58, 16 }
  0x2f   : > { %3464 = vmatprep.mubr.msk.bf16.mxu1 %vm343_vm1, %v4048_v18  ;;  %v2027_v18 = vrot.slane %v2025_v35, 1  ;;  %v710_v0 = vor.u32 %v709_v20, %v708_v3  ;;  %v3159_v30 = vcombine.low %v4117_v57, %v684_v61  ;;  %v3269_v35 = vcombine.low %v2173_v62, %v4233_v1  ;;  %v4308_v20 = vld [vmem:[%s4011_s6 + $0x30] sm:$0xff]  }
  0x30   : > { %v714_v25 = vor.u32 %v713_v21, %v712_v17  ;;  %v4277_v15 = vrot.slane %v2049_v50, 1  ;;  %v2226_v43 = vshll.u32 %v4250_v42, 16  ;;  %v3239_v54 = vcombine.low %v4016_v7, %v4019_v8 }
  0x31   : > { %3577 = vmatmul.mubr.msk.bf16.vlgmr.msra.gmra.mrb[0].mxu0 %vm343_vm1, %v1693_v23  ;;  %v4224_v37 = vsel %vm290_vm3, %v2023_v27, %v2027_v18  ;;  %v2031_v2 = vor.u32 %v2029_v55, %v2027_v18  ;;  %v2043_v23 = vrot.slane %v2041_v5, 1  ;;  %v4272_v36 = vsel %vm691_vm5, %v706_v44, %v710_v0 }
  0x32   : > { %3589 = vmatpush3.bf16.msra.mxu0 %v1871_v24  ;;  %3580 = vmatprep.mubr.msk.bf16.mxu0 %vm343_vm1, %v1702_v31  ;;  %v2045_v24 = vshrl.u32 %v3915_v45, 16  ;;  %v4263_v31 = vld [vmem:[%s4011_s6 + $0x20] sm:$0xff]   ;;  %v4275_v16 = vsel %vm691_vm5, %v710_v0, %v714_v25  ;;  %v717_v18 = vshrl.u32 %v3159_v30, 16  ;;  %v720_v45 = vshll.u32 %v3159_v30, 16 }
  0x33   : > { %3862 = vmatprep.subr.msk.bf16.mxu0 %vm362_vm0, %v4191_v26  ;;  %v4255_v49 = vsel %vm290_vm3, %v2031_v2, %v2035_v4  ;;  %v4267_v46 = vsel %vm290_vm3, %v2039_v11, %v2043_v23  ;;  %v2219_v27 = vshrl.u32 %v3269_v35, 16  ;;  %v2228_v44 = vrot.slane %v2226_v43, 1  ;;  %v4298_v2 = vld [vmem:[%s4011_s6 + $0x28] sm:$0xff]  }
  0x34   : > { %v2047_v29 = vor.u32 %v2045_v24, %v2043_v23  ;;  %v2230_v14 = vshrl.u32 %v4250_v42, 16  ;;  %v719_v56 = vrot.slane %v717_v18, 1  ;;  %v2234_v62 = vshll.u32 %v4263_v31, 16  ;;  %v2184_v18 = vld [vmem:[%s4011_s6 + $0x3c] sm:$0x1] }
  0x35   : > { %v557_v7 = vrot.slane %v4051_v19, 1  ;;  %v556_v4 = vrot.slane %v4259_v48, 1  ;;  %v2238_v23 = vshrl.u32 %v4263_v31, 16  ;;  %v3240_v24 = vcombine.low %v4023_v9, %v4026_v10 }
  0x36   : > { %3465 = vmatmul.mubr.msk.bf16.vlgmr.msra.gmra.mrb[0].mxu1 %vm343_vm1, %v4051_v19  ;;  %v4284_v55 = vsel %vm290_vm3, %v2047_v29, %v4277_v15  ;;  %v2232_v8 = vor.u32 %v2230_v14, %v2228_v44  ;;  %v3139_v19 = vcombine.low %v4117_v57, %v4117_v57  ;;  %v2242_v57 = vshll.u32 %v4298_v2, 16 }
  0x37   : > { %3477 = vmatpush3.bf16.msra.mxu1 %v591_v53  ;;  %3468 = vmatprep.mubr.msk.bf16.mxu1 %vm343_vm1, %v4056_v22  ;;  %v2221_v53 = vshll.u32 %v3269_v35, 16  ;;  %v2246_v0 = vshrl.u32 %v4298_v2, 16  ;;  %v3241_v50 = vcombine.low %v4032_v12, %v4064_v28  ;;  %v4338_v35 = vld [vmem:[%s4011_s6 + $0x38] sm:$0xf]  ;;  %v559_v9 = vrot.slane %v4056_v22, 1 }
  0x38   : > { %3854 = vmatprep.subr.msk.bf16.mxu1 %vm362_vm0, %v4209_v52  ;;  %v2244_v30 = vrot.slane %v2242_v57, 1  ;;  %v2080_v10 = vsel %vm362_vm0, %v4191_v26, 0  ;;  %v4349_v12 = vld [vmem:[%s4866_s1 + $0x60] sm:$0x3f]   ;;  %v4361_v26 = vcombine.low %v4338_v35, %v2184_v18  ;;  %v565_v18 = vrot.slane %v4130_v63, 1 }
  0x39   : > { %3581 = vmatmul.mubr.msk.bf16.gmra.mrb[4].mxu0 %vm343_vm1, %v1711_v59  ;;  %v722_v59 = vrot.slane %v720_v45, 2  ;;  %v2223_v61 = vrot.slane %v2221_v53, 1  ;;  %v3909_v45 = vld [vmem:[%s4011_s6 + $0xc] sm:$0xff]   ;;  %v2394_v63 = vrot.slane %v4298_v2, 1 }
  0x3a   : > { %3584 = vmatprep.mubr.msk.bf16.mxu0 %vm343_vm1, %v1720_v6  ;;  %v2236_v6 = vrot.slane %v2234_v62, 1  ;;  %v2248_v22 = vor.u32 %v2246_v0, %v2244_v30 }
  0x3b   : > { %v4301_v5 = vor.u32 %v722_v59, %v719_v56  ;;  %v2224_v3 = vor.u32 %v2223_v61, %v2219_v27  ;;  %v561_v27 = vrot.slane %v4076_v34, 1  ;;  %v560_v56 = vsel %vm555_vm6, %v557_v7, %v559_v9 }
  0x3c   : > { %v4321_v11 = vsel %vm290_vm3, %v2232_v8, %v2236_v6  ;;  %v2240_v29 = vor.u32 %v2238_v23, %v2236_v6  ;;  %v749_v59 = vsel %vm362_vm0, %v4209_v52, 0  ;;  %v2012_v61 = vshll.u32 %v3909_v45, 16 }
  0x3d   : > { %v4315_v17 = vsel %vm691_vm5, %v714_v25, %v4301_v5  ;;  %v4318_v21 = vsel %vm290_vm3, %v2224_v3, %v2228_v44  ;;  %v2250_v25 = vshll.u32 %v4308_v20, 16  ;;  %v2258_v8 = vshll.u32 %v4361_v26, 16  ;;  %v4379_v3 = vld [vmem:[%s4866_s1 + $0x20] sm:$0x3f]  }
  0x3e   : > { %3469 = vmatmul.mubr.msk.bf16.gmra.mrb[4].mxu1 %vm343_vm1, %v4076_v34  ;;  %v4355_v53 = vsel %vm290_vm3, %v2240_v29, %v2244_v30  ;;  %v2254_v34 = vshrl.u32 %v4308_v20, 16  ;;  %v3242_v52 = vcombine.low %v4070_v32, %v4073_v33  ;;  %v2392_v30 = vrot.slane %v4263_v31, 1 }
  0x3f   : > { %3472 = vmatprep.mubr.msk.bf16.mxu1 %vm343_vm1, %v4089_v39  ;;  %v2252_v28 = vrot.slane %v2250_v25, 1  ;;  %v2010_v32 = vshrl.u32 %v3909_v45, 16  ;;  %v2014_v33 = vrot.slane %v2012_v61, 1 }
  0x41   : > { %3585 = vmatmul.mubr.msk.bf16.gmra.mrb[8].mxu0 %vm343_vm1, %v4204_v47  ;;  %v558_v47 = vsel %vm555_vm6, %v556_v4, %v557_v7  ;;  %v4366_v44 = vsel %vm290_vm3, %v2248_v22, %v2252_v28  ;;  %v562_v4 = vsel %vm555_vm6, %v559_v9, %v561_v27  ;;  %v2256_v6 = vor.u32 %v2254_v34, %v2252_v28 }
  0x42   : > { %3590 = vmatprep.mubr.msk.bf16.mxu0 %vm343_vm1, %v3239_v54  ;;  %v2382_v54 = vld [vmem:[%s4011_s6 + $0x10] sm:$0xe]  ;;  %v2396_v28 = vrot.slane %v4308_v20, 1  ;;  %v2015_v22 = vor.u32 %v2014_v33, %v2010_v32 }
  0x43   : > { %v3284_v7 = vcombine.low %v2382_v54, %v4233_v1  ;;  %v4417_v54 = vsel %vm555_vm6, %v2392_v30, %v2394_v63 }
  0x45   : > { %v2389_v29 = vrot.slane %v3284_v7, 1 }
  0x46   : > { %3473 = vmatmul.mubr.msk.bf16.gmra.mrb[8].mxu1 %vm343_vm1, %v3139_v19  ;;  %v4386_v19 = vrot.slane %v2258_v8, 1  ;;  %v2536_v8 = vrot.slane %v2238_v23, 1  ;;  %v2533_v23 = vrot.slane %v2226_v43, 2 }
  0x47   : > { %3478 = vmatprep.mubr.msk.bf16.mxu1 %vm343_vm1, %v558_v47  ;;  %v2390_v47 = vrot.slane %v4250_v42, 1 }
  0x48   : > { %v4398_v9 = vsel %vm290_vm3, %v2256_v6, %v4386_v19 }
  0x49   : > { %3591 = vmatmul.mubr.msk.bf16.vlgmr.msra.gmra.mrb[0].mxu0 %vm343_vm1, %v3240_v24  ;;  %v563_v24 = vrot.slane %v4089_v39, 1  ;;  %v696_v39 = vshll.u32 %v4259_v48, 16 }
  0x4a   : > { %3603 = vmatpush3.bf16.msra.mxu0 %v2080_v10  ;;  %3594 = vmatprep.mubr.msk.bf16.mxu0 %vm343_vm1, %v3241_v50  ;;  %v3243_v50 = vcombine.low %v4086_v38, %v4108_v51  ;;  %v693_v10 = vshrl.u32 %v4259_v48, 16  ;;  %v4405_v38 = vsel %vm555_vm6, %v2389_v29, %v2390_v47  ;;  %v4408_v51 = vsel %vm555_vm6, %v2390_v47, %v2392_v30 }
  0x4b   : > { %3863 = vmatprep.subr.msk.bf16.mxu0 %vm362_vm0, %v4349_v12  ;;  %v564_v45 = vsel %vm555_vm6, %v561_v27, %v563_v24  ;;  %v566_v48 = vsel %vm555_vm6, %v563_v24, %v565_v18  ;;  %v698_v61 = vrot.slane %v696_v39, 2  ;;  %v3244_v27 = vcombine.low %v4162_v41, %v4162_v41  ;;  %v842_v39 = vld [vmem:[%s4011_s6 + $0x4] sm:$0xe] }
  0x4c   : > { %v2528_v47 = vshll.u32 %v3284_v7, 16  ;;  %v2532_v24 = vrot.slane %v2230_v14, 1  ;;  %v2020_v41 = vsel %vm290_vm3, %v2015_v22, %v4198_v40  ;;  %v2540_v40 = vrot.slane %v2246_v0, 1  ;;  %v4468_v0 = vld [vmem:[%s4011_s6 + $0xc] sm:$0xff]  }
  0x4d   : > { %v2545_v22 = vrot.slane %v2250_v25, 2 }
  0x4e   : > { %3479 = vmatmul.mubr.msk.bf16.vlgmr.msra.gmra.mrb[0].mxu1 %vm343_vm1, %v560_v56  ;;  %v2398_v56 = vrot.slane %v4361_v26, 1  ;;  %v2534_v32 = vor.u32 %v2533_v23, %v2532_v24  ;;  %v964_v23 = vsel %vm362_vm0, %v4379_v3, 0 }
  0x4f   : > { %3491 = vmatpush3.bf16.msra.mxu1 %v749_v59  ;;  %3482 = vmatprep.mubr.msk.bf16.mxu1 %vm343_vm1, %v562_v4  ;;  %v695_v59 = vrot.slane %v693_v10, 1  ;;  %v4423_v4 = vsel %vm555_vm6, %v2394_v63, %v2396_v28  ;;  %v2541_v63 = vrot.slane %v2242_v57, 2  ;;  %v2289_v57 = vsel %vm362_vm0, %v4349_v12, 0 }
  0x50   : > { %3855 = vmatprep.subr.msk.bf16.mxu1 %vm362_vm0, %v4379_v3  ;;  %v4430_v6 = vsel %vm555_vm6, %v2396_v28, %v2398_v56  ;;  %v2517_v28 = vld [vmem:[%s4011_s6 + $0x3c] sm:$0x3]  ;;  %v2682_v12 = vrot.slane %v4250_v42, 2  ;;  %v1193_v3 = vld [vmem:[%s4011_s6 + $0x30] sm:$0x7] }
  0x51   : > { %3595 = vmatmul.mubr.msk.bf16.gmra.mrb[4].mxu0 %vm343_vm1, %v3242_v52  ;;  %v2525_v52 = vshrl.u32 %v3284_v7, 16  ;;  %v2530_v7 = vrot.slane %v2528_v47, 2  ;;  %v699_v30 = vor.u32 %v698_v61, %v695_v59  ;;  %v2674_v59 = vld [vmem:[%s4011_s6 + $0x10] sm:$0xc] }
  0x52   : > { %3598 = vmatprep.mubr.msk.bf16.mxu0 %vm343_vm1, %v3243_v50  ;;  %v2537_v50 = vrot.slane %v2234_v62, 2 }
  0x53   : > { %v2527_v29 = vrot.slane %v2525_v52, 1  ;;  %v703_v10 = vsel %vm691_vm5, %v699_v30, %v4214_v13  ;;  %v2542_v13 = vor.u32 %v2541_v63, %v2540_v40  ;;  %v1351_v52 = vld [vmem:[%s4011_s6 + $0x4] sm:$0x8]  ;;  %v1360_v40 = vrot.slane %v4468_v0, 3 }
  0x54   : > { %v2538_v14 = vor.u32 %v2537_v50, %v2536_v8  ;;  %v4479_v8 = vcombine.low %v4338_v35, %v2517_v28  ;;  %v4506_v50 = vld [vmem:[%s4011_s6 + $0x14] sm:$0xff]  }
  0x55   : > { %v2531_v43 = vor.u32 %v2530_v7, %v2527_v29  ;;  %v2684_v7 = vrot.slane %v4263_v31, 2  ;;  %v4529_v31 = vld [vmem:[%s4011_s6 + $0x2c] sm:$0xf]  ;;  %v1362_v28 = vrot.slane %v4506_v50, 3 }
  0x56   : > { %3483 = vmatmul.mubr.msk.bf16.gmra.mrb[4].mxu1 %vm343_vm1, %v564_v45  ;;  %v4445_v62 = vsel %vm691_vm5, %v2534_v32, %v2538_v14  ;;  %v2544_v45 = vrot.slane %v2254_v34, 1  ;;  %v4476_v34 = vld [vmem:[%s4866_s1 + $0x68] sm:$0x3f]   ;;  %v2549_v35 = vshrl.u32 %v4479_v8, 16  ;;  %v2552_v24 = vshll.u32 %v4479_v8, 16 }
  0x57   : > { %3486 = vmatprep.mubr.msk.bf16.mxu1 %vm343_vm1, %v566_v48  ;;  %v4448_v33 = vsel %vm691_vm5, %v2531_v43, %v2534_v32  ;;  %v4461_v48 = vld [vmem:[%s4011_s6 + $0x8] sm:$0xf]  ;;  %v4534_v63 = vsel %vm362_vm0, %v2682_v12, %v2684_v7 }
  0x58   : > { %v2546_v61 = vor.u32 %v2545_v22, %v2544_v45  ;;  %v4482_v25 = vcombine.low %v842_v39, %v4461_v48  ;;  %v2554_v29 = vrot.slane %v2552_v24, 2  ;;  %v3204_v30 = vcombine.low %v1351_v52, %v4461_v48  ;;  %v4516_v32 = vld [vmem:[%s4866_s1 + $0x28] sm:$0x3f]  }
  0x59   : > { %3599 = vmatmul.mubr.msk.bf16.gmra.mrb[8].mxu0 %vm343_vm1, %v3244_v27  ;;  %v3304_v27 = vcombine.low %v2674_v59, %v4233_v1  ;;  %v2053_v1 = vshrl.u32 %v4220_v58, 16  ;;  %v899_v58 = vshll.u32 %v4468_v0, 16  ;;  %v4540_v22 = vcombine.low %v4529_v31, %v1193_v3 }
  0x5a   : > { %3604 = vmatprep.mubr.msk.bf16.mxu0 %vm343_vm1, %v2020_v41  ;;  %v4493_v47 = vsel %vm691_vm5, %v2542_v13, %v2546_v61  ;;  %v2551_v41 = vrot.slane %v2549_v35, 1  ;;  %v1359_v45 = vrot.slane %v3204_v30, 3  ;;  %v2686_v59 = vrot.slane %v4298_v2, 2  ;;  %v2866_v35 = vld [vmem:[%s4867_s2] sm:$0xff] }
  0x5b   : > { %v2681_v42 = vrot.slane %v3304_v27, 2  ;;  %v2690_v24 = vrot.slane %v4479_v8, 2 }
  0x5c   : > { %v4531_v39 = vor.u32 %v2554_v29, %v2551_v41  ;;  %v4562_v52 = vsel %vm362_vm0, %v2684_v7, %v2686_v59  ;;  %v3950_v41 = vmov 0  }
  0x5d   : > { %v4522_v43 = vsel %vm362_vm0, %v2681_v42, %v2682_v12  ;;  %v4552_v12 = vsel %vm1358_vm2, %v1359_v45, %v1360_v40  ;;  %v2868_v42 = vld [vmem:[%s4867_s2 + $0x10] sm:$0xff]  ;;  %3878 = vset.pattern.permute.xlu0 %v3950_v41  ;;  %3879 = vset.pattern.permute.xlu1 %v3950_v41  ;;  %v2055_v45 = vor.u32 %v2053_v1, %v4277_v15  ;;  %v2870_v1 = vld [vmem:[%s4867_s2 + $0x20] sm:$0xff] }
  0x5e   : > { %3487 = vmatmul.mubr.msk.bf16.gmra.mrb[8].mxu1 %vm343_vm1, %v565_v18  ;;  %v4485_v18 = vsel %vm691_vm5, %v2538_v14, %v2542_v13  ;;  %v4519_v14 = vld [vmem:[%s4011_s6 + $0x1c] sm:$0xff]   ;;  %v2688_v13 = vrot.slane %v4308_v20, 2  ;;  %v4549_v27 = vsel %vm691_vm5, %v2546_v61, %v4531_v39  ;;  %v891_v20 = vshll.u32 %v4482_v25, 16  ;;  %2879 = vperm.xlu0 %3878, %v2866_v35  }
  0x5f   : > { %3492 = vmatprep.mubr.msk.bf16.mxu1 %vm343_vm1, %v703_v10  ;;  %v4526_v10 = vld [vmem:[%s4011_s6 + $0x24] sm:$0xff]   ;;  %2889 = vperm.xlu1 %3879, %v2868_v42   ;;  %v917_v15 = vshll.u32 %v4519_v14, 16 }
  0x60   : > { %v1366_v2 = vrot.slane %v4526_v10, 3  ;;  %v893_v7 = vrot.slane %v891_v20, 2 }
  0x61   : > { %3605 = vmatmul.mubr.msk.bf16.vlgmr.msra.gmra.mrb[0].mxu0 %vm343_vm1, %v4224_v37  ;;  %v896_v37 = vshrl.u32 %v4468_v0, 16 }
  0x62   : > { %3617 = vmatpush3.bf16.msra.mxu0 %v2289_v57  ;;  %3608 = vmatprep.mubr.msk.bf16.mxu0 %vm343_vm1, %v4255_v49  ;;  %v888_v49 = vshrl.u32 %v4482_v25, 16  ;;  %v1364_v57 = vrot.slane %v4519_v14, 3 }
  0x63   : > { %3864 = vmatprep.subr.msk.bf16.mxu0 %vm362_vm0, %v4476_v34  ;;  %v898_v30 = vrot.slane %v896_v37, 1 }
  0x64   : > { %v4568_v61 = vsel %vm1358_vm2, %v1362_v28, %v1364_v57  ;;  %v4576_v25 = vsel %vm1358_vm2, %v1364_v57, %v1366_v2  ;;  %v890_v3 = vrot.slane %v888_v49, 1  ;;  %v905_v49 = vshrl.u32 %v4506_v50, 16 }
  0x66   : > { %3493 = vmatmul.mubr.msk.bf16.vlgmr.msra.gmra.mrb[0].mxu1 %vm343_vm1, %v4228_v60  ;;  %v4555_v60 = vsel %vm1358_vm2, %v1360_v40, %v1362_v28  ;;  %v2867_v40 = vld [vmem:[%s4867_s2 + $0x8] sm:$0xff]  ;;  %v2869_v28 = vld [vmem:[%s4867_s2 + $0x18] sm:$0xff]  ;;  %v907_v20 = vrot.slane %v905_v49, 1 }
  0x67   : > { %3505 = vmatpush3.bf16.msra.mxu1 %v964_v23  ;;  %3496 = vmatprep.mubr.msk.bf16.mxu1 %vm343_vm1, %v4272_v36  ;;  %v4565_v36 = vsel %vm362_vm0, %v2686_v59, %v2688_v13  ;;  %v1368_v23 = vrot.slane %v4540_v22, 3  ;;  %v908_v59 = vshll.u32 %v4506_v50, 16 }
  0x68   : > { %3856 = vmatprep.subr.msk.bf16.mxu1 %vm362_vm0, %v4516_v32  ;;  %2884 = vperm.xlu0 %3878, %v2867_v40   ;;  %v2424_v40 = vsel %vm362_vm0, %v4476_v34, 0  ;;  %v2875_v34 = vld [vmem:[%s4867_s2 + $0x48] sm:$0xff] }
  0x69   : > { %3609 = vmatmul.mubr.msk.bf16.gmra.mrb[4].mxu0 %vm343_vm1, %v4267_v46  ;;  %v4588_v46 = vsel %vm362_vm0, %v2688_v13, %v2690_v24  ;;  %v4593_v29 = vsel %vm1358_vm2, %v1366_v2, %v1368_v23  ;;  %v894_v13 = vor.u32 %v893_v7, %v890_v3  ;;  %v914_v2 = vshrl.u32 %v4519_v14, 16  ;;  %2894 = vperm.xlu1 %3879, %v2869_v28   ;;  %v3935_v28 = vld [vmem:[%s4866_s1 + $0x70] sm:$0x3f]  }
  0x6a   : > { %3612 = vmatprep.mubr.msk.bf16.mxu0 %vm343_vm1, %v4284_v55  ;;  %v901_v55 = vrot.slane %v899_v58, 2  ;;  %v910_v35 = vrot.slane %v908_v59, 2  ;;  %v919_v3 = vrot.slane %v917_v15, 2 }
  0x6b   : > { %v916_v41 = vrot.slane %v914_v2, 1 }
  0x6c   : > { %v902_v57 = vor.u32 %v901_v55, %v898_v30  ;;  %2899 = vperm.xlu0 %3878, %v2870_v1   ;;  %v2873_v30 = vld [vmem:[%s4867_s2 + $0x38] sm:$0xff]  ;;  %v911_v55 = vor.u32 %v910_v35, %v907_v20 }
  0x6e   : > { %3497 = vmatmul.mubr.msk.bf16.gmra.mrb[4].mxu1 %vm343_vm1, %v4275_v16  ;;  %v853_v16 = vld [vmem:[%s4011_s6 + $0x30] sm:$0x3]  ;;  %v903_v42 = vsel %vm691_vm5, %v894_v13, %v902_v57  ;;  %v920_v13 = vor.u32 %v919_v3, %v916_v41 }
  0x6f   : > { %3500 = vmatprep.mubr.msk.bf16.mxu1 %vm343_vm1, %v4315_v17  ;;  %v2871_v17 = vld [vmem:[%s4867_s2 + $0x28] sm:$0xff]  ;;  %v4634_v7 = vcombine.low %v4529_v31, %v853_v16  ;;  %v923_v31 = vshrl.u32 %v4526_v10, 16  ;;  %v2874_v16 = vld [vmem:[%s4867_s2 + $0x40] sm:$0xff] }
  0x70   : > { %2904 = vperm.xlu1 %3879, %v2871_v17   ;;  %v912_v17 = vsel %vm691_vm5, %v902_v57, %v911_v55  ;;  %v2876_v57 = vld [vmem:[%s4867_s2 + $0x50] sm:$0xff] }
  0x71   : > { %3613 = vmatmul.mubr.msk.bf16.gmra.mrb[8].mxu0 %vm343_vm1, %v2055_v45  ;;  %v926_v45 = vshll.u32 %v4526_v10, 16  ;;  %v932_v1 = vshrl.u32 %v4634_v7, 16  ;;  %v925_v20 = vrot.slane %v923_v31, 1 }
  0x72   : > { %3618 = vmatprep.mubr.msk.bf16.mxu0 %vm343_vm1, %v4318_v21  ;;  %v2872_v21 = vld [vmem:[%s4867_s2 + $0x30] sm:$0xff] }
  0x73   : > { %2909 = vperm.xlu0 %3878, %v2872_v21   ;;  %v928_v35 = vrot.slane %v926_v45, 2  ;;  %v934_v41 = vrot.slane %v932_v1, 1 }
  0x74   : > { %2914 = vperm.xlu1 %3879, %v2873_v30   ;;  %v2262_v30 = vshrl.u32 %v4361_v26, 16  ;;  %v1218_v26 = vrot.slane %v917_v15, 3 }
  0x76   : > { %3501 = vmatmul.mubr.msk.bf16.gmra.mrb[8].mxu1 %vm343_vm1, %v4301_v5  ;;  %v935_v5 = vshll.u32 %v4634_v7, 16 }
  0x77   : > { %3506 = vmatprep.mubr.msk.bf16.mxu1 %vm343_vm1, %v903_v42  ;;  %2919 = vperm.xlu0 %3878, %v2874_v16   ;;  %v921_v42 = vsel %vm691_vm5, %v911_v55, %v920_v13  ;;  %v1057_v55 = vld [vmem:[%s4011_s6 + $0x4] sm:$0xc]  ;;  %v2264_v16 = vor.u32 %v2262_v30, %v4386_v19  ;;  %v1068_v19 = vrot.slane %v4506_v50, 2  ;;  %v1229_v50 = vshll.u32 %v4540_v22, 16 }
  0x78   : > { %v937_v3 = vrot.slane %v935_v5, 2  ;;  %2924 = vperm.xlu1 %3879, %v2875_v34   ;;  %v3184_v5 = vcombine.low %v1057_v55, %v4461_v48  ;;  %v2581_v48 = vsel %vm362_vm0, %v3935_v28, 0 }
  0x79   : > { %3619 = vmatmul.mubr.msk.bf16.vlgmr.msra.gmra.mrb[0].mxu0 %vm343_vm1, %v4321_v11  ;;  %v1100_v11 = vsel %vm362_vm0, %v4516_v32, 0  ;;  %v929_v32 = vor.u32 %v928_v35, %v925_v20  ;;  %v3936_v35 = vld [vmem:[%s4866_s1 + $0x38] sm:$0x3f]  }
  0x7a   : > { %3631 = vmatpush3.bf16.msra.mxu0 %v2424_v40  ;;  %3622 = vmatprep.mubr.msk.bf16.mxu0 %vm343_vm1, %v4355_v53  ;;  %v3934_v53 = vld [vmem:[%s4866_s1 + $0x30] sm:$0x3f]   ;;  %v938_v21 = vor.u32 %v937_v3, %v934_v41  ;;  %v1065_v34 = vrot.slane %v3184_v5, 2  ;;  %v1394_v15 = vsel %vm362_vm0, %v3936_v35, 0 }
  0x7b   : > { %3865 = vmatprep.subr.msk.bf16.mxu0 %vm362_vm0, %v3935_v28  ;;  %2929 = vperm.xlu0 %3878, %v2876_v57   ;;  %v930_v40 = vsel %vm691_vm5, %v920_v13, %v929_v32  ;;  %v3937_v13 = vld [vmem:[%s4866_s1 + $0x78] sm:$0x3f]   ;;  %v1258_v20 = vsel %vm362_vm0, %v3934_v53, 0 }
  0x7c   : > { %v939_v1 = vsel %vm691_vm5, %v929_v32, %v938_v21  ;;  %v1209_v32 = vrot.slane %v896_v37, 2 }
  0x7e   : > { %3507 = vmatmul.mubr.msk.bf16.vlgmr.msra.gmra.mrb[0].mxu1 %vm343_vm1, %v912_v17  ;;  %v1070_v17 = vrot.slane %v4519_v14, 2 }
  0x7f   : > { %3519 = vmatpush3.bf16.msra.mxu1 %v1100_v11  ;;  %3510 = vmatprep.mubr.msk.bf16.mxu1 %vm343_vm1, %v921_v42  ;;  %v1202_v11 = vshrl.u32 %v3184_v5, 16  ;;  %v1205_v42 = vshll.u32 %v3184_v5, 16 }
  0x80   : > { %3857 = vmatprep.subr.msk.bf16.mxu1 %vm362_vm0, %v3934_v53  ;;  %v1071_v28 = vsel %vm362_vm0, %v1068_v19, %v1070_v17 }
  0x81   : > { %3623 = vmatmul.mubr.msk.bf16.gmra.mrb[4].mxu0 %vm343_vm1, %v4366_v44  ;;  %v1066_v44 = vrot.slane %v4468_v0, 2  ;;  %v1204_v53 = vrot.slane %v1202_v11, 2  ;;  %v1207_v57 = vrot.slane %v1205_v42, 3  ;;  %v1214_v0 = vrot.slane %v908_v59, 3 }
  0x82   : > { %3626 = vmatprep.mubr.msk.bf16.mxu0 %vm343_vm1, %v4398_v9  ;;  %v1221_v59 = vrot.slane %v923_v31, 2 }
  0x83   : > { %v1067_v9 = vsel %vm362_vm0, %v1065_v34, %v1066_v44 }
  0x86   : > { %3511 = vmatmul.mubr.msk.bf16.gmra.mrb[4].mxu1 %vm343_vm1, %v930_v40 }
  0x87   : > { %3514 = vmatprep.mubr.msk.bf16.mxu1 %vm343_vm1, %v939_v1  ;;  %v1231_v1 = vrot.slane %v1229_v50, 3 }
  0x89   : > { %3627 = vmatmul.mubr.msk.bf16.gmra.mrb[8].mxu0 %vm343_vm1, %v2264_v16 }
  0x8a   : > { %3632 = vmatprep.mubr.msk.bf16.mxu0 %vm343_vm1, %v4405_v38  ;;  %v1069_v38 = vsel %vm362_vm0, %v1066_v44, %v1068_v19 }
  0x8e   : > { %3515 = vmatmul.mubr.msk.bf16.gmra.mrb[8].mxu1 %vm343_vm1, %v938_v21 }
  0x8f   : > { %3520 = vmatprep.mubr.msk.bf16.mxu1 %vm343_vm1, %v1067_v9 }
  0x91   : > { %3633 = vmatmul.mubr.msk.bf16.vlgmr.msra.gmra.mrb[0].mxu0 %vm343_vm1, %v4408_v51  ;;  %v1072_v51 = vrot.slane %v4526_v10, 2 }
  0x92   : > { %3645 = vmatpush3.bf16.msra.mxu0 %v2581_v48  ;;  %3636 = vmatprep.mubr.msk.bf16.mxu0 %vm343_vm1, %v4417_v54  ;;  %v1074_v54 = vrot.slane %v4634_v7, 2  ;;  %v1210_v7 = vrot.slane %v899_v58, 3  ;;  %v1217_v58 = vrot.slane %v914_v2, 2  ;;  %v1222_v2 = vrot.slane %v926_v45, 3 }
  0x93   : > { %3866 = vmatprep.subr.msk.bf16.mxu0 %vm362_vm0, %v3937_v13  ;;  %v1073_v41 = vsel %vm362_vm0, %v1070_v17, %v1072_v51 }
  0x94   : > { %v1075_v3 = vsel %vm362_vm0, %v1072_v51, %v1074_v54  ;;  %v1211_v21 = vor.u32 %v1210_v7, %v1209_v32  ;;  %v1219_v30 = vor.u32 %v1218_v26, %v1217_v58 }
  0x96   : > { %3521 = vmatmul.mubr.msk.bf16.vlgmr.msra.gmra.mrb[0].mxu1 %vm343_vm1, %v1069_v38 }
  0x97   : > { %3533 = vmatpush3.bf16.msra.mxu1 %v1258_v20  ;;  %3524 = vmatprep.mubr.msk.bf16.mxu1 %vm343_vm1, %v1071_v28 }
  0x98   : > { %3858 = vmatprep.subr.msk.bf16.mxu1 %vm362_vm0, %v3936_v35 }
  0x99   : > { %3637 = vmatmul.mubr.msk.bf16.gmra.mrb[4].mxu0 %vm343_vm1, %v4423_v4  ;;  %v1208_v4 = vor.u32 %v1207_v57, %v1204_v53 }
  0x9a   : > { %3640 = vmatprep.mubr.msk.bf16.mxu0 %vm343_vm1, %v4430_v6  ;;  %v1213_v6 = vrot.slane %v905_v49, 2  ;;  %v1226_v49 = vshrl.u32 %v4540_v22, 16 }
  0x9b   : > { %v1212_v37 = vsel %vm1200_vm7, %v1208_v4, %v1211_v21 }
  0x9c   : > { %v1228_v40 = vrot.slane %v1226_v49, 2 }
  0x9e   : > { %3525 = vmatmul.mubr.msk.bf16.gmra.mrb[4].mxu1 %vm343_vm1, %v1073_v41 }
  0x9f   : > { %3528 = vmatprep.mubr.msk.bf16.mxu1 %vm343_vm1, %v1075_v3 }
  0xa1   : > { %3641 = vmatmul.mubr.msk.bf16.gmra.mrb[8].mxu0 %vm343_vm1, %v2398_v56  ;;  %v1215_v56 = vor.u32 %v1214_v0, %v1213_v6 }
  0xa2   : > { %3646 = vmatprep.mubr.msk.bf16.mxu0 %vm343_vm1, %v4448_v33  ;;  %v2716_v33 = vsel %vm362_vm0, %v3937_v13, 0 }
  0xa3   : > { %v1216_v14 = vsel %vm1200_vm7, %v1211_v21, %v1215_v56  ;;  %v1220_v55 = vsel %vm1200_vm7, %v1215_v56, %v1219_v30 }
  0xa6   : > { %3529 = vmatmul.mubr.msk.bf16.gmra.mrb[8].mxu1 %vm343_vm1, %v1074_v54 }
  0xa7   : > { %3534 = vmatprep.mubr.msk.bf16.mxu1 %vm343_vm1, %v1212_v37 }
  0xa9   : > { %3647 = vmatmul.mubr.msk.bf16.vlgmr.msra.gmra.mrb[0].mxu0 %vm343_vm1, %v4445_v62  ;;  %v1223_v62 = vor.u32 %v1222_v2, %v1221_v59 }
  0xaa   : > { %3659 = vmatpush3.bf16.msra.mxu0 %v2716_v33  ;;  %3650 = vmatprep.mubr.msk.bf16.mxu0 %vm343_vm1, %v4485_v18  ;;  %v1232_v18 = vor.u32 %v1231_v1, %v1228_v40 }
  0xab   : > { %v1224_v10 = vsel %vm1200_vm7, %v1219_v30, %v1223_v62 }
  0xac   : > { %v1233_v31 = vsel %vm1200_vm7, %v1223_v62, %v1232_v18 }
  0xae   : > { %3535 = vmatmul.mubr.msk.bf16.vlgmr.msra.gmra.mrb[0].mxu1 %vm343_vm1, %v1216_v14 }
  0xaf   : > { %3547 = vmatpush3.bf16.msra.mxu1 %v1394_v15  ;;  %3538 = vmatprep.mubr.msk.bf16.mxu1 %vm343_vm1, %v1220_v55 }
  0xb1   : > { %3651 = vmatmul.mubr.msk.bf16.gmra.mrb[4].mxu0 %vm343_vm1, %v4493_v47 }
  0xb2   : > { %3654 = vmatprep.mubr.msk.bf16.mxu0 %vm343_vm1, %v4549_v27 }
  0xb6   : > { %3539 = vmatmul.mubr.msk.bf16.gmra.mrb[4].mxu1 %vm343_vm1, %v1224_v10 }
  0xb7   : > { %3542 = vmatprep.mubr.msk.bf16.mxu1 %vm343_vm1, %v1233_v31 }
  0xb9   : > { %3655 = vmatmul.mubr.msk.bf16.gmra.mrb[8].mxu0 %vm343_vm1, %v4531_v39 }
  0xba   : > { %3660 = vmatprep.mubr.msk.bf16.mxu0 %vm343_vm1, %v4522_v43 }
  0xbe   : > { %3543 = vmatmul.mubr.msk.bf16.gmra.mrb[8].mxu1 %vm343_vm1, %v1232_v18 }
  0xbf   : > { %3548 = vmatprep.mubr.msk.bf16.mxu1 %vm343_vm1, %v4552_v12 }
  0xc1   : > { %3661 = vmatmul.mubr.msk.bf16.vlgmr.msra.gmra.mrb[0].mxu0 %vm343_vm1, %v4534_v63 }
  0xc2   : > { %3664 = vmatprep.mubr.msk.bf16.mxu0 %vm343_vm1, %v4562_v52 }
  0xc6   : > { %3549 = vmatmul.mubr.msk.bf16.vlgmr.msra.gmra.mrb[0].mxu1 %vm343_vm1, %v4555_v60 }
  0xc7   : > { %3552 = vmatprep.mubr.msk.bf16.mxu1 %vm343_vm1, %v4568_v61 }
  0xc9   : > { %3665 = vmatmul.mubr.msk.bf16.gmra.mrb[4].mxu0 %vm343_vm1, %v4565_v36 }
  0xca   : > { %3668 = vmatprep.mubr.msk.bf16.mxu0 %vm343_vm1, %v4588_v46 }
  0xce   : > { %3553 = vmatmul.mubr.msk.bf16.gmra.mrb[4].mxu1 %vm343_vm1, %v4576_v25 }
  0xcf   : > { %3556 = vmatprep.mubr.msk.bf16.mxu1 %vm343_vm1, %v4593_v29 }
  0xd1   : > { %3669 = vmatmul.mubr.msk.bf16.gmra.mrb[8].mxu0 %vm343_vm1, %v2690_v24 }
  0xd6   : > { %3557 = vmatmul.mubr.msk.bf16.gmra.mrb[8].mxu1 %vm343_vm1, %v1368_v23 }
  0xdd   : > { %v2880_v47 = vpop.permute.xlu0 %2879 }
  0xde   : > { %v2890_v63 = vpop.permute.xlu1 %2889 }
  0xe7   : > { %v2885_v43 = vpop.permute.xlu0 %2884 }
  0xe8   : > { %v2895_v46 = vpop.permute.xlu1 %2894 }
  0xeb   : > { %v2900_v36 = vpop.permute.xlu0 %2899 }
  0xef   : > { %v2905_v54 = vpop.permute.xlu1 %2904 }
  0xf2   : > { %v2910_v51 = vpop.permute.xlu0 %2909 }
  0xf6   : > { %v2920_v1 = vpop.permute.xlu0 %2919 }
 0x194   : > { %v3662_v39 = vpop.f32.mrb[0].mxu0 }
 0x195   : > { %v2752_v27 = vpop.f32.mrb[1].mxu0 }
 0x196   : > { %v3663_v12 = vpop.f32.mrb[2].mxu0 }
 0x197   : > { %v2755_v60 = vpop.f32.mrb[3].mxu0 }
 0x199   : > { %v3550_v52 = vpop.f32.mrb[0].mxu1 }
 0x19a   : > { %v3672_v61 = vadd.f32 %v3662_v39, %v3550_v52  ;;  %v1430_v25 = vpop.f32.mrb[1].mxu1 }
 0x19b   : > { %v3673_v8 = vadd.f32 %v2752_v27, %v1430_v25  ;;  %v3551_v22 = vpop.f32.mrb[2].mxu1 }
 0x19c   : > { %v3327_v24 = vpack.c.bf16 %v3672_v61, %v3672_v61  ;;  %v2934_v23 = vmul.f32 %v3672_v61, %v2890_v63  ;;  %v3674_v29 = vadd.f32 %v3663_v12, %v3551_v22  ;;  %v1433_v45 = vpop.f32.mrb[3].mxu1  ;;  %v3666_v5 = vpop.f32.mrb[4].mxu0 }
 0x19d   : > { %v3325_v16 = vpack.c.bf16 %v3673_v8, %v3673_v8  ;;  %v2932_v34 = vmul.f32 %v3673_v8, %v2880_v47  ;;  %v3675_v44 = vadd.f32 %v2755_v60, %v1433_v45  ;;  %v2768_v9 = vpop.f32.mrb[5].mxu0  ;;  %v2915_v47 = vpop.permute.xlu1 %2914 }
 0x19e   : > { %2857 = vst.msk [vmem:[%s4808_s11 + $0x8] sm:$0xf] %vm2854_vm8, %v3327_v24  ;;  %v2975_v19 = vmul.f32 %v2934_v23, %v2934_v23  ;;  %v3328_v48 = vpack.c.bf16 %v3674_v29, %v3674_v29  ;;  %v2935_v13 = vmul.f32 %v3674_v29, %v2895_v46  ;;  %v3667_v17 = vpop.f32.mrb[6].mxu0  ;;  %v2947_v11 = vsel %vm2943_vm9, %v2934_v23, 0.0 }
 0x19f   : > { %2855 = vst.msk [vmem:[%s4808_s11] sm:$0xf] %vm2854_vm8, %v3325_v16  ;;  %v2973_v38 = vmul.f32 %v2932_v34, %v2932_v34  ;;  %v3326_v20 = vpack.c.bf16 %v3675_v44, %v3675_v44  ;;  %v2933_v28 = vmul.f32 %v3675_v44, %v2885_v43  ;;  %v2771_v35 = vpop.f32.mrb[7].mxu0  ;;  %v2944_v42 = vsel %vm2943_vm9, %v2932_v34, 0.0 }
 0x1a0   : > { %2858 = vst.msk [vmem:[%s4808_s11 + $0xc] sm:$0xf] %vm2854_vm8, %v3328_v48  ;;  %v2987_v57 = vsel %vm2943_vm9, %v2975_v19, 0.0  ;;  %v2976_v32 = vmul.f32 %v2935_v13, %v2935_v13  ;;  %v2949_v0 = vsel %vm2943_vm9, %v2935_v13, 0.0 }
 0x1a1   : > { %2856 = vst.msk [vmem:[%s4808_s11 + $0x4] sm:$0xf] %vm2854_vm8, %v3326_v20  ;;  %v2945_v41 = vsel %vm2943_vm9, %v2933_v28, 0.0  ;;  %v2974_v3 = vmul.f32 %v2933_v28, %v2933_v28  ;;  %v3554_v53 = vpop.f32.mrb[4].mxu1  ;;  %v2984_v6 = vsel %vm2943_vm9, %v2973_v38, 0.0 }
 0x1a2   : > { %v2946_v7 = vadd.f32 %v2945_v41, %v2944_v42  ;;  %v3676_v4 = vadd.f32 %v3666_v5, %v3554_v53  ;;  %v1446_v21 = vpop.f32.mrb[5].mxu1  ;;  %v2989_v62 = vsel %vm2943_vm9, %v2976_v32, 0.0 }
 0x1a3   : > { %v2985_v37 = vsel %vm2943_vm9, %v2974_v3, 0.0  ;;  %v3677_v58 = vadd.f32 %v2768_v9, %v1446_v21  ;;  %v3555_v26 = vpop.f32.mrb[6].mxu1 }
 0x1a4   : > { %v2948_v56 = vadd.f32 %v2947_v11, %v2946_v7  ;;  %v2986_v33 = vadd.f32 %v2985_v37, %v2984_v6  ;;  %v3331_v30 = vpack.c.bf16 %v3676_v4, %v3676_v4  ;;  %v2938_v49 = vmul.f32 %v3676_v4, %v2910_v51  ;;  %v1449_v50 = vpop.f32.mrb[7].mxu1  ;;  %v3670_v14 = vpop.f32.mrb[8].mxu0 }
 0x1a5   : > { %v3329_v59 = vpack.c.bf16 %v3677_v58, %v3677_v58  ;;  %v2936_v2 = vmul.f32 %v3677_v58, %v2900_v36  ;;  %v3678_v15 = vadd.f32 %v3667_v17, %v3555_v26  ;;  %v3679_v55 = vadd.f32 %v2771_v35, %v1449_v50  ;;  %v2784_v40 = vpop.f32.mrb[9].mxu0  ;;  %v2930_v17 = vpop.permute.xlu0 %2929 }
 0x1a6   : > { %v2988_v18 = vadd.f32 %v2987_v57, %v2986_v33  ;;  %2861 = vst.msk [vmem:[%s4808_s11 + $0x18] sm:$0xf] %vm2854_vm8, %v3331_v30  ;;  %v2950_v10 = vadd.f32 %v2949_v0, %v2948_v56  ;;  %v3671_v31 = vpop.f32.mrb[10].mxu0  ;;  %v2979_v43 = vmul.f32 %v2938_v49, %v2938_v49  ;;  %v2955_v29 = vsel %vm2943_vm9, %v2938_v49, 0.0  ;;  %v2925_v51 = vpop.permute.xlu1 %2924 }
 0x1a7   : > { %2859 = vst.msk [vmem:[%s4808_s11 + $0x10] sm:$0xf] %vm2854_vm8, %v3329_v59  ;;  %v2951_v39 = vsel %vm2943_vm9, %v2936_v2, 0.0  ;;  %v2977_v63 = vmul.f32 %v2936_v2, %v2936_v2  ;;  %v3332_v27 = vpack.c.bf16 %v3678_v15, %v3678_v15  ;;  %v2787_v12 = vpop.f32.mrb[11].mxu0  ;;  %v2939_v36 = vmul.f32 %v3678_v15, %v2915_v47 }
 0x1a8   : > { %v2952_v60 = vadd.f32 %v2951_v39, %v2950_v10  ;;  %v2990_v52 = vadd.f32 %v2989_v62, %v2988_v18  ;;  %v3330_v61 = vpack.c.bf16 %v3679_v55, %v3679_v55  ;;  %v2937_v46 = vmul.f32 %v3679_v55, %v2905_v54 }
 0x1a9   : > { %v2991_v25 = vsel %vm2943_vm9, %v2977_v63, 0.0  ;;  %2862 = vst.msk [vmem:[%s4808_s11 + $0x1c] sm:$0xf] %vm2854_vm8, %v3332_v27  ;;  %v3558_v8 = vpop.f32.mrb[8].mxu1  ;;  %v2995_v44 = vsel %vm2943_vm9, %v2979_v43, 0.0  ;;  %v2980_v9 = vmul.f32 %v2939_v36, %v2939_v36  ;;  %v2957_v54 = vsel %vm2943_vm9, %v2939_v36, 0.0 }
 0x1aa   : > { %v2992_v22 = vadd.f32 %v2991_v25, %v2990_v52  ;;  %2860 = vst.msk [vmem:[%s4808_s11 + $0x14] sm:$0xf] %vm2854_vm8, %v3330_v61  ;;  %v3680_v24 = vadd.f32 %v3670_v14, %v3558_v8  ;;  %v1462_v23 = vpop.f32.mrb[9].mxu1  ;;  %v2953_v45 = vsel %vm2943_vm9, %v2937_v46, 0.0  ;;  %v2978_v5 = vmul.f32 %v2937_v46, %v2937_v46 }
 0x1ab   : > { %v3681_v16 = vadd.f32 %v2784_v40, %v1462_v23  ;;  %v3559_v34 = vpop.f32.mrb[10].mxu1  ;;  %v2954_v19 = vadd.f32 %v2953_v45, %v2952_v60  ;;  %v2997_v21 = vsel %vm2943_vm9, %v2980_v9, 0.0 }
 0x1ac   : > { %v3335_v48 = vpack.c.bf16 %v3680_v24, %v3680_v24  ;;  %v1465_v13 = vpop.f32.mrb[11].mxu1  ;;  %v2993_v38 = vsel %vm2943_vm9, %v2978_v5, 0.0  ;;  %v2942_v41 = vmul.f32 %v3680_v24, %v2930_v17 }
 0x1ad   : > { %v3333_v20 = vpack.c.bf16 %v3681_v16, %v3681_v16  ;;  %v2940_v28 = vmul.f32 %v3681_v16, %v2920_v1  ;;  %v3682_v35 = vadd.f32 %v2787_v12, %v1465_v13  ;;  %v2956_v11 = vadd.f32 %v2955_v29, %v2954_v19 }
 0x1ae   : > { %v2994_v42 = vadd.f32 %v2993_v38, %v2992_v22  ;;  %2865 = vst.msk [vmem:[%s4808_s11 + $0x28] sm:$0xf] %vm2854_vm8, %v3335_v48  ;;  %v2983_v56 = vmul.f32 %v2942_v41, %v2942_v41  ;;  %v2963_v50 = vsel %vm2943_vm9, %v2942_v41, 0.0 }
 0x1af   : > { %2863 = vst.msk [vmem:[%s4808_s11 + $0x20] sm:$0xf] %vm2854_vm8, %v3333_v20  ;;  %v2959_v3 = vsel %vm2943_vm9, %v2940_v28, 0.0  ;;  %v2981_v53 = vmul.f32 %v2940_v28, %v2940_v28  ;;  %v3334_v57 = vpack.c.bf16 %v3682_v35, %v3682_v35  ;;  %v2941_v32 = vmul.f32 %v3682_v35, %v2925_v51 }
 0x1b0   : > { %v2996_v7 = vadd.f32 %v2995_v44, %v2994_v42  ;;  %v2958_v4 = vadd.f32 %v2957_v54, %v2956_v11  ;;  %v3003_v2 = vsel %vm2943_vm9, %v2983_v56, 0.0 }
 0x1b1   : > { %v2999_v6 = vsel %vm2943_vm9, %v2981_v53, 0.0  ;;  %2864 = vst.msk [vmem:[%s4808_s11 + $0x24] sm:$0xf] %vm2854_vm8, %v3334_v57  ;;  %v2961_v0 = vsel %vm2943_vm9, %v2941_v32, 0.0  ;;  %v2982_v37 = vmul.f32 %v2941_v32, %v2941_v32 }
 0x1b2   : > { %v2960_v58 = vadd.f32 %v2959_v3, %v2958_v4  ;;  %v2998_v26 = vadd.f32 %v2997_v21, %v2996_v7 }
 0x1b3   : > { %v3001_v33 = vsel %vm2943_vm9, %v2982_v37, 0.0 }
 0x1b4   : > { %v3000_v30 = vadd.f32 %v2999_v6, %v2998_v26  ;;  %v2962_v49 = vadd.f32 %v2961_v0, %v2960_v58 }
 0x1b6   : > { %v2964_v14 = vadd.f32 %v2963_v50, %v2962_v49  ;;  %v3002_v59 = vadd.f32 %v3001_v33, %v3000_v30 }
 0x1b8   : > { %v2965_v15 = vrot.slane %v2964_v14, 4  ;;  %v3004_v55 = vadd.f32 %v3003_v2, %v3002_v59 }
 0x1ba   : > { %v2966_v40 = vadd.f32 %v2965_v15, %v2964_v14  ;;  %v3005_v1 = vrot.slane %v3004_v55, 4 }
 0x1bc   : > { %v2967_v62 = vrot.slane %v2966_v40, 2  ;;  %v3006_v18 = vadd.f32 %v3005_v1, %v3004_v55 }
 0x1be   : > { %v2968_v10 = vadd.f32 %v2967_v62, %v2966_v40  ;;  %v3007_v31 = vrot.slane %v3006_v18, 2 }
 0x1c0   : > { %v2969_v47 = vrot.slane %v2968_v10, 1  ;;  %v3008_v43 = vadd.f32 %v3007_v31, %v3006_v18 }
 0x1c2   : > { %v2970_v39 = vadd.f32 %v2969_v47, %v2968_v10  ;;  %v3009_v63 = vrot.slane %v3008_v43, 1 }
 0x1c4   : > { %2972 = vst.msk [vmem:[%s238_s14] sm:$0x1] %vm2971_vm10, %v2970_v39  ;;  %v3010_v27 = vadd.f32 %v3009_v63, %v3008_v43 }
 0x1c6   : > { %3011 = vst.msk [vmem:[%s241_s17] sm:$0x1] %vm2971_vm10, %v3010_v27 }
 0x1c7 PF: > { %s16_s18 = sadd.s32 1, %s3948_s18  }
 0x1c8   : > { %p13_p4 = scmp.ge.s32.totalorder %s16_s18, 4  }
 0x1ca   :  { %15 = sbr.rel (!%p13_p4) target bundleno = 1 (0x1), region = 101 }

// kernel: _forward.41
= control target key start
LH: loop header
LB: loop body
LE: loop exit
PB: predicated region body
PF: predicated region fallthrough
CT: control target
= control target key end

     0   :  { %vm64_vm0 = vcmask 519168   ;;  %s136_s0 = inlined_call_operand.vmem [shape: bf16[32,64], index: 0, kind: input, shape index: {}]   ;;  %s137_s1 = inlined_call_operand.vmem [shape: f32[1,64], index: 1, kind: input, shape index: {}]   ;;  %s138_s2 = inlined_call_operand.vmem [shape: f32[1,64], index: 2, kind: input, shape index: {}]   ;;  %s139_s3 = inlined_call_operand.vmem [shape: bf16[32,64], index: 3, kind: output, shape index: {}]  }
   0x1   :  { %v84_v0 = vld [vmem:[%s136_s0] sm:$0xff]   ;;  %v91_v4 = vld [vmem:[%s136_s0 + $0x8] sm:$0xff]  }
   0x2   :  { %v73_v1 = vld [vmem:[%s137_s1] ss:$0 sm:$0xff]  ;;  %v85_v2 = vunpack.c.l.bf16 %v84_v0  ;;  %v86_v3 = vunpack.c.h.bf16 %v84_v0  ;;  %v89_v6 = vunpack.c.l.bf16 %v91_v4  ;;  %v90_v7 = vunpack.c.h.bf16 %v91_v4 }
   0x3   :  { %v74_v5 = vld [vmem:[%s138_s2] ss:$0 sm:$0xff] }
   0x4   :  { %v29_v8 = vmul.f32 %v85_v2, %v73_v1  ;;  %v30_v9 = vmul.f32 %v86_v3, %v73_v1  ;;  %v31_v10 = vmul.f32 %v89_v6, %v73_v1  ;;  %v32_v11 = vmul.f32 %v90_v7, %v73_v1 }
   0x6   :  { %v40_v12 = vadd.f32 %v74_v5, %v29_v8  ;;  %v41_v13 = vadd.f32 %v74_v5, %v30_v9  ;;  %v42_v14 = vadd.f32 %v74_v5, %v31_v10  ;;  %v43_v15 = vadd.f32 %v74_v5, %v32_v11 }
   0x8   :  { %v44_v16 = vmax.f32 %v40_v12, 0.0  ;;  %v45_v17 = vmax.f32 %v41_v13, 0.0  ;;  %v46_v18 = vmax.f32 %v42_v14, 0.0  ;;  %v47_v19 = vmax.f32 %v43_v15, 0.0 }
   0xa   :  { %v79_v20 = vpack.c.bf16 %v44_v16, %v44_v16  ;;  %v80_v21 = vpack.c.bf16 %v45_v17, %v45_v17  ;;  %v81_v22 = vpack.c.bf16 %v46_v18, %v46_v18  ;;  %v82_v23 = vpack.c.bf16 %v47_v19, %v47_v19 }
   0xc   :  { %65 = vst.msk [vmem:[%s139_s3] sm:$0xf] %vm64_vm0, %v79_v20  ;;  %66 = vst.msk [vmem:[%s139_s3 + $0x4] sm:$0xf] %vm64_vm0, %v80_v21 }
   0xd   :  { %67 = vst.msk [vmem:[%s139_s3 + $0x8] sm:$0xf] %vm64_vm0, %v81_v22  ;;  %68 = vst.msk [vmem:[%s139_s3 + $0xc] sm:$0xf] %vm64_vm0, %v82_v23 }

// kernel: _forward.40
= control target key start
LH: loop header
LB: loop body
LE: loop exit
PB: predicated region body
PF: predicated region fallthrough
CT: control target
= control target key end

     0   :  { %s1779_s18 = smov 0   ;;  %s2020_s0 = inlined_call_operand.vmem [shape: bf16[2,42,64], index: 0, kind: input, shape index: {}]   ;;  %s2021_s1 = inlined_call_operand.vmem [shape: bf16[9,64,64], index: 1, kind: input, shape index: {}]   ;;  %s2022_s2 = inlined_call_operand.vmem [shape: f32[24,1], index: 2, kind: input, shape index: {}]   ;;  %s2023_s3 = inlined_call_operand.vmem [shape: bf16[2,24,64], index: 3, kind: output, shape index: {0}]   ;;  %s2024_s4 = inlined_call_operand.vmem [shape: f32[2,1,64], index: 4, kind: output, shape index: {1}]   ;;  %s2025_s5 = inlined_call_operand.vmem [shape: f32[2,1,64], index: 5, kind: output, shape index: {2}]  }
   0x1 LB: > { %s1339_s19 = sadd.s32 4294967295, %s1746_s18   ;;  %p1343_p0 = scmp.ge.s32.totalorder %s1746_s18, 1  ;;  %s1746_s18 = sphi %s1779_s18, %s16_s18  }
   0x2   : > { %p192_p1 = scmp.lt.s32.totalorder %s1746_s18, 3 }
   0x4   : > { %p193_p2 = pnand %p1343_p0, %p192_p1 }
   0x5   : > { %v1691_v0 = vld [vmem:[%s2021_s1 + $0x20] sm:$0xff] (!%p193_p2)   ;;  %p226_p3 = scmp.lt.s32.totalorder (!%p193_p2), %s1339_s19, 1  ;;  %v1693_v2 = vld [vmem:[%s2021_s1 + $0x28] sm:$0xff] (!%p193_p2)   ;;  %v1695_v4 = vld [vmem:[%s2021_s1 + $0x30] sm:$0xff] (!%p193_p2)   ;;  %vm274_vm0 = vsmask.f32 (!%p193_p2), 7424 }
   0x6   : > { %196 = sbr.rel (%p193_p2) target bundleno = 334 (0x14e), region = 32  ;;  %v1692_v1 = vld [vmem:[%s2021_s1 + $0x80] sm:$0xff] (!%p193_p2)   ;;  %1539 = vmatprep.subr.bf16.mxu1 (!%p193_p2), %v1691_v0  ;;  %v1694_v3 = vld [vmem:[%s2021_s1 + $0x88] sm:$0xff] (!%p193_p2)   ;;  %v1696_v5 = vld [vmem:[%s2021_s1 + $0x90] sm:$0xff] (!%p193_p2)   ;;  %v1748_v13 = vmov (!%p193_p2), 0   ;;  %vm314_vm2 = vcmask (!%p193_p2), 523264  }
   0x7   : > { %1587 = vmatprep.subr.bf16.mxu0 (!%p193_p2), %v1692_v1  ;;  %1540 = vmatpush3.bf16.msra.mxu1 (!%p193_p2), %v1691_v0  ;;  %v1697_v6 = vld [vmem:[%s2021_s1 + $0x38] sm:$0xff] (!%p193_p2)   ;;  %v1701_v15 = vld [vmem:[%s2021_s1] sm:$0xff] (!%p193_p2)   ;;  %vm660_vm1 = vsmask.f32 (!%p193_p2), 4352  ;;  %v1706_v37 = vld [vmem:[%s2021_s1 + $0x8] sm:$0xff] (!%p193_p2)   ;;  %vm460_vm3 = vcmask (!%p193_p2), 1046528  }
   0x8   : > { %1588 = vmatpush3.bf16.msra.mxu0 (!%p193_p2), %v1692_v1  ;;  %1541 = vmatprep.subr.bf16.mxu1 (!%p193_p2), %v1693_v2  ;;  %v1698_v7 = vld [vmem:[%s2021_s1 + $0x98] sm:$0xff] (!%p193_p2)   ;;  %v1705_v27 = vld [vmem:[%s2021_s1 + $0xa0] sm:$0xff] (!%p193_p2)   ;;  %v1707_v43 = vld [vmem:[%s2021_s1 + $0xa8] sm:$0xff] (!%p193_p2)   ;;  %vm874_vm4 = vcmask (!%p193_p2), 1045504   ;;  %vm562_vm5 = vcmask (!%p193_p2), 1044480   ;;  %vm1181_vm7 = vcmask (!%p193_p2), 519168  }
   0x9   : > { %1589 = vmatprep.subr.bf16.mxu0 (!%p193_p2), %v1694_v3  ;;  %1689 = vset.pattern.permute.xlu0 (!%p193_p2), %v1748_v13  ;;  %v1708_v44 = vld [vmem:[%s2021_s1 + $0x10] sm:$0xff] (!%p193_p2)   ;;  %v1710_v46 = vld [vmem:[%s2021_s1 + $0x18] sm:$0xff] (!%p193_p2)   ;;  %v1712_v49 = vld [vmem:[%s2021_s1 + $0x40] sm:$0xff] (!%p193_p2)   ;;  %vm972_vm6 = vsmask.f32 (!%p193_p2), 5376  ;;  %vm1217_vm8 = vcmask (!%p193_p2), 516096  }
   0xa   : > { %1690 = vset.pattern.permute.xlu1 (!%p193_p2), %v1748_v13  ;;  %v1709_v45 = vld [vmem:[%s2021_s1 + $0xb0] sm:$0xff] (!%p193_p2)   ;;  %v1711_v47 = vld [vmem:[%s2021_s1 + $0xb8] sm:$0xff] (!%p193_p2)   ;;  %v1714_v56 = vld [vmem:[%s2021_s1 + $0xc0] sm:$0xff] (!%p193_p2)  }
   0xb   : > { %1542 = vmatpush3.bf16.msra.mxu1 (!%p193_p2), %v1693_v2  ;;  %v1716_v58 = vld [vmem:[%s2021_s1 + $0x48] sm:$0xff] (!%p193_p2)  }
   0xc   : > { %1590 = vmatpush3.bf16.msra.mxu0 (!%p193_p2), %v1694_v3  ;;  %1543 = vmatprep.subr.bf16.mxu1 (!%p193_p2), %v1695_v4  ;;  %v1717_v3 = vld [vmem:[%s2021_s1 + $0xc8] sm:$0xff] (!%p193_p2)  }
   0xd   : > { %s2027_s19 = smov (!%p226_p3, %s1339_s19), 1  ;;  %1591 = vmatprep.subr.bf16.mxu0 %v1696_v5 }
   0xe   : > { %s1678_s30 = smul.u32 24, %s2027_s19  ;;  %s238_s16 = scalar_lea.vmem %s2024_s4, %s2027_s19 }
   0xf   : > { %1544 = vmatpush3.bf16.msra.mxu1 %v1695_v4  ;;  %s1679_s9 = smul.u32 12, %s2027_s19  ;;  %s241_s21 = scalar_lea.vmem %s2025_s5, %s2027_s19 }
  0x10   : > { %s1814_s12 = scalar_lea.vmem %s2020_s0, %s1678_s30  ;;  %1592 = vmatpush3.bf16.msra.mxu0 %v1696_v5  ;;  %1545 = vmatprep.subr.bf16.mxu1 %v1697_v6 }
  0x11   : > { %v243_v8 = vld [vmem:[%s1814_s12] sm:$0xf]  ;;  %v1821_v9 = vld [vmem:[%s1814_s12 + $0x4] sm:$0xf]  ;;  %v1824_v10 = vld [vmem:[%s1814_s12 + $0x8] sm:$0xf]  ;;  %1593 = vmatprep.subr.bf16.mxu0 %v1698_v7  ;;  %s235_s13 = scalar_lea.vmem %s2023_s3, %s1679_s9 }
  0x12   : > { %v254_v11 = vld [vmem:[%s1814_s12 + $0xc] sm:$0x1]  ;;  %v1354_v12 = vcombine.low %v243_v8, %v1821_v9  ;;  %v545_v16 = vld [vmem:[%s1814_s12] sm:$0x8]  ;;  %v1423_v41 = vcombine.low %v1821_v9, %v1824_v10  ;;  %v851_v52 = vld [vmem:[%s1814_s12 + $0x4] sm:$0xc]  ;;  %v1362_v57 = vcombine.low %v1824_v10, %v1824_v10 }
  0x13   : > { %v1829_v14 = vcombine.low %v1824_v10, %v254_v11  ;;  %v1836_v19 = vcombine.low %v545_v16, %v1821_v9  ;;  %v1839_v20 = vld [vmem:[%s1814_s12 + $0xc] sm:$0xf]  ;;  %1546 = vmatpush3.bf16.msra.mxu1 %v1697_v6  ;;  %v447_v48 = vld [vmem:[%s1814_s12] sm:$0xe]  ;;  %v1886_v53 = vld [vmem:[%s1814_s12 + $0x8] sm:$0xf] }
  0x14   : > { %v276_v17 = vshrl.u32 %v1354_v12, 16  ;;  %v278_v18 = vshll.u32 %v1354_v12, 16  ;;  %v1408_v23 = vcombine.low %v1824_v10, %v1839_v20  ;;  %1594 = vmatpush3.bf16.msra.mxu0 %v1698_v7  ;;  %1551 = vmatprep.subr.bf16.mxu1 %v1701_v15  ;;  %v1377_v50 = vcombine.low %v447_v48, %v1821_v9  ;;  %v853_v54 = vld [vmem:[%s1814_s12 + $0xc] sm:$0xf]  ;;  %v854_v55 = vld [vmem:[%s1814_s12 + $0x10] sm:$0x3] }
  0x15   : > { %v283_v21 = vshll.u32 %v1829_v14, 16  ;;  %v287_v22 = vshrl.u32 %v1829_v14, 16  ;;  %v662_v25 = vshrl.u32 %v1836_v19, 16  ;;  %v665_v26 = vshll.u32 %v1836_v19, 16  ;;  %1599 = vmatprep.subr.bf16.mxu0 %v1705_v27  ;;  %v959_v0 = vld [vmem:[%s1814_s12 + $0x10] sm:$0x7] }
  0x16   : > { %v280_v24 = vrot.slane %v278_v18, 1  ;;  %v670_v29 = vshrl.u32 %v1408_v23, 16  ;;  %v673_v30 = vshll.u32 %v1408_v23, 16  ;;  %v462_v51 = vrot.slane %v1829_v14, 1  ;;  %v1718_v6 = vld [vmem:[%s2021_s1 + $0x50] sm:$0xff]   ;;  %v1185_v23 = vld [vmem:[%s2022_s2] sm:$0xff] }
  0x17   : > { %v285_v28 = vrot.slane %v283_v21, 1  ;;  %v664_v32 = vrot.slane %v662_v25, 3  ;;  %v667_v33 = vrot.slane %v665_v26, 4  ;;  %v461_v59 = vrot.slane %v1377_v50, 1  ;;  %v1719_v7 = vld [vmem:[%s2021_s1 + $0xd0] sm:$0xff]   ;;  %1190 = vperm.xlu0 %1689, %v1185_v23  }
  0x18   : > { %v281_v31 = vor.u32 %v280_v24, %v276_v17  ;;  %v672_v35 = vrot.slane %v670_v29, 3  ;;  %v675_v36 = vrot.slane %v673_v30, 4  ;;  %v1439_v60 = vcombine.low %v851_v52, %v1886_v53  ;;  %v546_v11 = vld [vmem:[%s1814_s12 + $0xc] sm:$0x7]  ;;  %v1721_v17 = vld [vmem:[%s2021_s1 + $0xd8] sm:$0xff]   ;;  %v1187_v24 = vld [vmem:[%s2022_s2 + $0x10] sm:$0xff] }
  0x19   : > { %v289_v34 = vor.u32 %v287_v22, %v285_v28  ;;  %v668_v39 = vor.u32 %v667_v33, %v664_v32  ;;  %v1440_v61 = vcombine.low %v853_v54, %v854_v55  ;;  %v1424_v1 = vcombine.low %v1839_v20, %v1839_v20  ;;  %1200 = vperm.xlu1 %1690, %v1187_v24   ;;  %v1729_v32 = vld [vmem:[%s2021_s1 + $0xe8] sm:$0xff]   ;;  %v1731_v14 = vld [vmem:[%s2021_s1 + $0xf0] sm:$0xff]  }
  0x1a   : > { %v286_v38 = vsel %vm274_vm0, %v281_v31, %v285_v28  ;;  %v676_v40 = vor.u32 %v675_v36, %v672_v35  ;;  %v875_v62 = vrot.slane %v1439_v60, 2  ;;  %v463_v2 = vsel %vm460_vm3, %v461_v59, %v462_v51  ;;  %v1727_v28 = vld [vmem:[%s2021_s1 + $0xe0] sm:$0xff]   ;;  %v1732_v35 = vld [vmem:[%s2021_s1 + $0x78] sm:$0xff]  }
  0x1b   : > { %1547 = vmatprep.mubr.msk.bf16.mxu1 %vm314_vm2, %v286_v38  ;;  %v1899_v63 = vrot.slane %v1440_v61, 2  ;;  %v1913_v5 = vcombine.low %v853_v54, %v959_v0  ;;  %v974_v8 = vshrl.u32 %v1439_v60, 16  ;;  %v977_v9 = vshll.u32 %v1439_v60, 16  ;;  %v1071_v36 = vld [vmem:[%s1814_s12 + $0x4] sm:$0x8] }
  0x1c   : > { %1548 = vmatmul.mubr.msk.bf16.vlgmr.msra.gmra.mrb[0].mxu1 %vm314_vm2, %v289_v34  ;;  %v677_v42 = vsel %vm660_vm1, %v668_v39, %v676_v40  ;;  %v1393_v16 = vcombine.low %v1824_v10, %v546_v11  ;;  %v1723_v10 = vld [vmem:[%s2021_s1 + $0x60] sm:$0xff]   ;;  %v563_v25 = vrot.slane %v1836_v19, 3  ;;  %v1728_v19 = vld [vmem:[%s2021_s1 + $0x68] sm:$0xff]   ;;  %v1730_v34 = vld [vmem:[%s2021_s1 + $0x70] sm:$0xff]   ;;  %v1470_v38 = vcombine.low %v1071_v36, %v1886_v53 }
  0x1d   : > { %1552 = vmatpush3.bf16.msra.mxu1 %v1701_v15  ;;  %1559 = vmatprep.mubr.msk.bf16.mxu1 %vm314_vm2, %v1354_v12  ;;  %v877_v4 = vsel %vm874_vm4, %v875_v62, %v1899_v63  ;;  %v982_v12 = vshrl.u32 %v1913_v5, 16  ;;  %v985_v13 = vshll.u32 %v1913_v5, 16  ;;  %v1720_v15 = vld [vmem:[%s2021_s1 + $0x58] sm:$0xff]   ;;  %v976_v18 = vrot.slane %v974_v8, 2  ;;  %v1735_v39 = vld [vmem:[%s2021_s1 + $0x100] sm:$0xff]  }
  0x1e   : > { %1595 = vmatprep.mubr.msk.bf16.mxu0 %vm314_vm2, %v677_v42  ;;  %1553 = vmatprep.subr.bf16.mxu1 %v1706_v37  ;;  %v979_v20 = vrot.slane %v977_v9, 3  ;;  %v564_v26 = vrot.slane %v1393_v16, 3  ;;  %v1736_v42 = vld [vmem:[%s2021_s1 + $0x108] sm:$0xff]  }
  0x1f   : > { %1596 = vmatmul.mubr.msk.bf16.vlgmr.msra.gmra.mrb[0].mxu0 %vm314_vm2, %v676_v40  ;;  %v984_v21 = vrot.slane %v982_v12, 2  ;;  %v987_v22 = vrot.slane %v985_v13, 3  ;;  %v1084_v40 = vrot.slane %v1470_v38, 3 }
  0x20   : > { %1600 = vmatpush3.bf16.msra.mxu0 %v1705_v27  ;;  %1607 = vmatprep.mubr.msk.bf16.mxu0 %vm314_vm2, %v1423_v41  ;;  %v1186_v27 = vld [vmem:[%s2022_s2 + $0x8] sm:$0xff]  ;;  %v980_v29 = vor.u32 %v979_v20, %v976_v18  ;;  %v565_v31 = vsel %vm562_vm5, %v563_v25, %v564_v26  ;;  %v1085_v41 = vrot.slane %v1913_v5, 3 }
  0x21   : > { %1601 = vmatprep.subr.bf16.mxu0 %v1707_v43  ;;  %1554 = vmatpush3.bf16.msra.mxu1 %v1706_v37  ;;  %v988_v30 = vor.u32 %v987_v22, %v984_v21  ;;  %v1733_v37 = vld [vmem:[%s2021_s1 + $0xf8] sm:$0xff]  }
  0x22   : > { %1555 = vmatprep.subr.bf16.mxu1 %v1708_v44  ;;  %1195 = vperm.xlu0 %1689, %v1186_v27  }
  0x23   : > { %v989_v33 = vsel %vm972_vm6, %v980_v29, %v988_v30 }
  0x24   : > { %1602 = vmatpush3.bf16.msra.mxu0 %v1707_v43  ;;  %v1086_v43 = vsel %vm562_vm5, %v1084_v40, %v1085_v41 }
  0x25   : > { %1603 = vmatprep.subr.bf16.mxu0 %v1709_v45  ;;  %1556 = vmatpush3.bf16.msra.mxu1 %v1708_v44  ;;  %v1737_v44 = vld [vmem:[%s2021_s1 + $0x110] sm:$0xff]  }
  0x26   : > { %1557 = vmatprep.subr.bf16.mxu1 %v1710_v46 }
  0x28   : > { %1604 = vmatpush3.bf16.msra.mxu0 %v1709_v45  ;;  %v1738_v45 = vld [vmem:[%s2021_s1 + $0x118] sm:$0xff]  }
  0x29   : > { %1605 = vmatprep.subr.bf16.mxu0 %v1711_v47  ;;  %1558 = vmatpush3.bf16.msra.mxu1 %v1710_v46 }
  0x2a   : > { %1563 = vmatprep.subr.bf16.mxu1 %v1712_v49 }
  0x2c   : > { %1606 = vmatpush3.bf16.msra.mxu0 %v1711_v47  ;;  %1560 = vmatmul.mubr.msk.bf16.vlgmr.msra.gmra.mrb[0].mxu1 %vm314_vm2, %v1362_v57 }
  0x2d   : > { %1611 = vmatprep.subr.bf16.mxu0 %v1714_v56  ;;  %1564 = vmatpush3.bf16.msra.mxu1 %v1712_v49 }
  0x2e   : > { %1565 = vmatprep.subr.bf16.mxu1 %v1716_v58  ;;  %1571 = vmatprep.mubr.msk.bf16.mxu1 %vm314_vm2, %v463_v2 }
  0x2f   : > { %1608 = vmatmul.mubr.msk.bf16.vlgmr.msra.gmra.mrb[0].mxu0 %vm314_vm2, %v1424_v1 }
  0x30   : > { %1612 = vmatpush3.bf16.msra.mxu0 %v1714_v56  ;;  %1619 = vmatprep.mubr.msk.bf16.mxu0 %vm314_vm2, %v877_v4 }
  0x31   : > { %1613 = vmatprep.subr.bf16.mxu0 %v1717_v3  ;;  %1566 = vmatpush3.bf16.msra.mxu1 %v1716_v58 }
  0x32   : > { %1567 = vmatprep.subr.bf16.mxu1 %v1718_v6 }
  0x34   : > { %1614 = vmatpush3.bf16.msra.mxu0 %v1717_v3 }
  0x35   : > { %1615 = vmatprep.subr.bf16.mxu0 %v1719_v7  ;;  %1568 = vmatpush3.bf16.msra.mxu1 %v1718_v6 }
  0x36   : > { %1569 = vmatprep.subr.bf16.mxu1 %v1720_v15 }
  0x38   : > { %1616 = vmatpush3.bf16.msra.mxu0 %v1719_v7 }
  0x39   : > { %1617 = vmatprep.subr.bf16.mxu0 %v1721_v17  ;;  %1570 = vmatpush3.bf16.msra.mxu1 %v1720_v15 }
  0x3a   : > { %1575 = vmatprep.subr.bf16.mxu1 %v1723_v10 }
  0x3c   : > { %1618 = vmatpush3.bf16.msra.mxu0 %v1721_v17  ;;  %1572 = vmatmul.mubr.msk.bf16.vlgmr.msra.gmra.mrb[0].mxu1 %vm314_vm2, %v462_v51 }
  0x3d   : > { %1623 = vmatprep.subr.bf16.mxu0 %v1727_v28  ;;  %1576 = vmatpush3.bf16.msra.mxu1 %v1723_v10 }
  0x3e   : > { %1577 = vmatprep.subr.bf16.mxu1 %v1728_v19  ;;  %1583 = vmatprep.mubr.msk.bf16.mxu1 %vm314_vm2, %v565_v31 }
  0x3f   : > { %1620 = vmatmul.mubr.msk.bf16.vlgmr.msra.gmra.mrb[0].mxu0 %vm314_vm2, %v1899_v63 }
  0x40   : > { %1624 = vmatpush3.bf16.msra.mxu0 %v1727_v28  ;;  %1631 = vmatprep.mubr.msk.bf16.mxu0 %vm314_vm2, %v989_v33 }
  0x41   : > { %1625 = vmatprep.subr.bf16.mxu0 %v1729_v32  ;;  %1578 = vmatpush3.bf16.msra.mxu1 %v1728_v19 }
  0x42   : > { %1579 = vmatprep.subr.bf16.mxu1 %v1730_v34 }
  0x44   : > { %1626 = vmatpush3.bf16.msra.mxu0 %v1729_v32 }
  0x45   : > { %1627 = vmatprep.subr.bf16.mxu0 %v1731_v14  ;;  %1580 = vmatpush3.bf16.msra.mxu1 %v1730_v34 }
  0x46   : > { %1581 = vmatprep.subr.bf16.mxu1 %v1732_v35 }
  0x48   : > { %1628 = vmatpush3.bf16.msra.mxu0 %v1731_v14 }
  0x49   : > { %1629 = vmatprep.subr.bf16.mxu0 %v1733_v37  ;;  %1582 = vmatpush3.bf16.msra.mxu1 %v1732_v35 }
  0x4c   : > { %1630 = vmatpush3.bf16.msra.mxu0 %v1733_v37  ;;  %1584 = vmatmul.mubr.msk.bf16.vlgmr.msra.gmra.mrb[0].mxu1 %vm314_vm2, %v564_v26 }
  0x4d   : > { %1635 = vmatprep.subr.bf16.mxu0 %v1735_v39 }
  0x4f   : > { %1632 = vmatmul.mubr.msk.bf16.vlgmr.msra.gmra.mrb[0].mxu0 %vm314_vm2, %v988_v30 }
  0x50   : > { %1636 = vmatpush3.bf16.msra.mxu0 %v1735_v39  ;;  %1643 = vmatprep.mubr.msk.bf16.mxu0 %vm314_vm2, %v1086_v43 }
  0x51   : > { %1637 = vmatprep.subr.bf16.mxu0 %v1736_v42 }
  0x54   : > { %1638 = vmatpush3.bf16.msra.mxu0 %v1736_v42 }
  0x55   : > { %1639 = vmatprep.subr.bf16.mxu0 %v1737_v44 }
  0x58   : > { %1640 = vmatpush3.bf16.msra.mxu0 %v1737_v44 }
  0x59   : > { %1641 = vmatprep.subr.bf16.mxu0 %v1738_v45 }
  0x5c   : > { %1642 = vmatpush3.bf16.msra.mxu0 %v1738_v45 }
  0x5f   : > { %1644 = vmatmul.mubr.msk.bf16.vlgmr.msra.gmra.mrb[0].mxu0 %vm314_vm2, %v1085_v41 }
  0x96   : > { %v1191_v50 = vpop.permute.xlu0 %1190 }
  0x98   : > { %v1201_v54 = vpop.permute.xlu1 %1200 }
  0xa1   : > { %v1196_v63 = vpop.permute.xlu0 %1195 }
 0x11f   : > { %v1585_v46 = vpop.f32.mrb[0].mxu1 }
 0x120   : > { %v630_v47 = vpop.f32.mrb[1].mxu1 }
 0x121   : > { %v1586_v48 = vpop.f32.mrb[2].mxu1 }
 0x122   : > { %v633_v49 = vpop.f32.mrb[3].mxu1 }
 0x132   : > { %v1645_v51 = vpop.f32.mrb[0].mxu0 }
 0x133   : > { %v1647_v52 = vadd.f32 %v1645_v51, %v1585_v46  ;;  %v1151_v53 = vpop.f32.mrb[1].mxu0 }
 0x134   : > { %v1648_v55 = vadd.f32 %v1151_v53, %v630_v47  ;;  %v1646_v56 = vpop.f32.mrb[2].mxu0 }
 0x135   : > { %v1484_v57 = vpack.c.bf16 %v1647_v52, %v1647_v52  ;;  %v1154_v58 = vpop.f32.mrb[3].mxu0  ;;  %v1205_v61 = vmul.f32 %v1647_v52, %v1201_v54 }
 0x136   : > { %v1482_v59 = vpack.c.bf16 %v1648_v55, %v1648_v55  ;;  %v1203_v60 = vmul.f32 %v1648_v55, %v1191_v50  ;;  %v1649_v62 = vadd.f32 %v1154_v58, %v633_v49 }
 0x137   : > { %1184 = vst.msk [vmem:[%s235_s13 + $0x8] sm:$0xf] %vm1181_vm7, %v1484_v57  ;;  %v1221_v4 = vmul.f32 %v1205_v61, %v1205_v61  ;;  %v1209_v9 = vsel %vm314_vm2, %v1205_v61, 0.0 }
 0x138   : > { %1182 = vst.msk [vmem:[%s235_s13] sm:$0xf] %vm1181_vm7, %v1482_v59  ;;  %v1219_v0 = vmul.f32 %v1203_v60, %v1203_v60  ;;  %v1483_v1 = vpack.c.bf16 %v1649_v62, %v1649_v62  ;;  %v1204_v2 = vmul.f32 %v1649_v62, %v1196_v63  ;;  %v1206_v3 = vsel %vm314_vm2, %v1203_v60, 0.0 }
 0x139   : > { %v1225_v15 = vsel %vm314_vm2, %v1221_v4, 0.0 }
 0x13a   : > { %1183 = vst.msk [vmem:[%s235_s13 + $0x4] sm:$0xf] %vm1181_vm7, %v1483_v1  ;;  %v1207_v5 = vsel %vm314_vm2, %v1204_v2, 0.0  ;;  %v1220_v6 = vmul.f32 %v1204_v2, %v1204_v2  ;;  %v1222_v8 = vsel %vm314_vm2, %v1219_v0, 0.0 }
 0x13b   : > { %v1208_v7 = vadd.f32 %v1207_v5, %v1206_v3 }
 0x13c   : > { %v1223_v11 = vsel %vm314_vm2, %v1220_v6, 0.0 }
 0x13d   : > { %v1210_v12 = vadd.f32 %v1209_v9, %v1208_v7  ;;  %v1224_v13 = vadd.f32 %v1223_v11, %v1222_v8 }
 0x13f   : > { %v1211_v16 = vrot.slane %v1210_v12, 4  ;;  %v1226_v17 = vadd.f32 %v1225_v15, %v1224_v13 }
 0x141   : > { %v1212_v18 = vadd.f32 %v1211_v16, %v1210_v12  ;;  %v1227_v20 = vrot.slane %v1226_v17, 4 }
 0x143   : > { %v1213_v21 = vrot.slane %v1212_v18, 2  ;;  %v1228_v22 = vadd.f32 %v1227_v20, %v1226_v17 }
 0x145   : > { %v1214_v23 = vadd.f32 %v1213_v21, %v1212_v18  ;;  %v1229_v24 = vrot.slane %v1228_v22, 2 }
 0x147   : > { %v1215_v10 = vrot.slane %v1214_v23, 1  ;;  %v1230_v25 = vadd.f32 %v1229_v24, %v1228_v22 }
 0x149   : > { %v1216_v26 = vadd.f32 %v1215_v10, %v1214_v23  ;;  %v1231_v27 = vrot.slane %v1230_v25, 1 }
 0x14b   : > { %1218 = vst.msk [vmem:[%s238_s16] sm:$0x1] %vm1217_vm8, %v1216_v26  ;;  %v1232_v28 = vadd.f32 %v1231_v27, %v1230_v25 }
 0x14d   : > { %1233 = vst.msk [vmem:[%s241_s21] sm:$0x1] %vm1217_vm8, %v1232_v28 }
 0x14e PF: > { %s16_s18 = sadd.s32 1, %s1746_s18  }
 0x14f   : > { %p13_p4 = scmp.ge.s32.totalorder %s16_s18, 4  }
 0x151   :  { %15 = sbr.rel (!%p13_p4) target bundleno = 1 (0x1), region = 94 }

// kernel: _forward.52
= control target key start
LH: loop header
LB: loop body
LE: loop exit
PB: predicated region body
PF: predicated region fallthrough
CT: control target
= control target key end

     0   :  { %s1504_s18 = smov 0   ;;  %s1739_s0 = inlined_call_operand.vmem [shape: bf16[2,12,256], index: 0, kind: input, shape index: {}]   ;;  %s1740_s1 = inlined_call_operand.vmem [shape: bf16[4,256,128], index: 1, kind: input, shape index: {}]   ;;  %s1741_s2 = inlined_call_operand.vmem [shape: f32[6,1], index: 2, kind: input, shape index: {}]   ;;  %s1742_s3 = inlined_call_operand.vmem [shape: bf16[2,6,128], index: 3, kind: output, shape index: {0}]   ;;  %s1743_s4 = inlined_call_operand.vmem [shape: f32[2,1,128], index: 4, kind: output, shape index: {1}]   ;;  %s1744_s5 = inlined_call_operand.vmem [shape: f32[2,1,128], index: 5, kind: output, shape index: {2}]  }
   0x1 LB: > { %s1116_s19 = sadd.s32 4294967295, %s1471_s18   ;;  %p1120_p0 = scmp.ge.s32.totalorder %s1471_s18, 1  ;;  %s1471_s18 = sphi %s1504_s18, %s16_s18  }
   0x2   : > { %p192_p1 = scmp.lt.s32.totalorder %s1471_s18, 3 }
   0x4   : > { %p193_p2 = pnand %p1120_p0, %p192_p1 }
   0x5   : > { %v1393_v0 = vld [vmem:[%s1740_s1 + $0xc0] sm:$0xff] (!%p193_p2)   ;;  %v1473_v3 = vmov (!%p193_p2), 0   ;;  %v1397_v5 = vld [vmem:[%s1740_s1 + $0xc8] sm:$0xff] (!%p193_p2)   ;;  %v1401_v9 = vld [vmem:[%s1740_s1 + $0xd0] sm:$0xff] (!%p193_p2)   ;;  %p225_p3 = scmp.lt.s32.totalorder (!%p193_p2), %s1116_s19, 1  ;;  %vm995_vm0 = vcmask (!%p193_p2), 1045504  }
   0x6   : > { %196 = sbr.rel (%p193_p2) target bundleno = 308 (0x134), region = 32  ;;  %v1394_v1 = vld [vmem:[%s1740_s1 + $0x40] sm:$0xff] (!%p193_p2)   ;;  %1295 = vmatprep.subr.bf16.mxu0 (!%p193_p2), %v1393_v0  ;;  %1392 = vset.pattern.permute.xlu0 (!%p193_p2), %v1473_v3  ;;  %v1398_v6 = vld [vmem:[%s1740_s1 + $0x48] sm:$0xff] (!%p193_p2)   ;;  %v1402_v10 = vld [vmem:[%s1740_s1 + $0x50] sm:$0xff] (!%p193_p2)  }
   0x7   : > { %v1395_v2 = vld [vmem:[%s1740_s1 + $0x80] sm:$0xff] (!%p193_p2)   ;;  %1317 = vmatprep.subr.bf16.mxu1 (!%p193_p2), %v1394_v1  ;;  %v1399_v7 = vld [vmem:[%s1740_s1 + $0x88] sm:$0xff] (!%p193_p2)   ;;  %v1403_v11 = vld [vmem:[%s1740_s1 + $0x90] sm:$0xff] (!%p193_p2)  }
   0x8   : > { %v1396_v4 = vld [vmem:[%s1740_s1] sm:$0xff] (!%p193_p2)   ;;  %1296 = vmatpush3.bf16.msra.mxu0 (!%p193_p2), %v1395_v2  ;;  %v1400_v8 = vld [vmem:[%s1740_s1 + $0x8] sm:$0xff] (!%p193_p2)   ;;  %v1404_v12 = vld [vmem:[%s1740_s1 + $0x10] sm:$0xff] (!%p193_p2)  }
   0x9   : > { %1318 = vmatpush3.bf16.msra.mxu1 (!%p193_p2), %v1396_v4  ;;  %1297 = vmatprep.subr.bf16.mxu0 (!%p193_p2), %v1397_v5  ;;  %v1405_v13 = vld [vmem:[%s1740_s1 + $0xd8] sm:$0xff] (!%p193_p2)   ;;  %v1409_v17 = vld [vmem:[%s1740_s1 + $0xe0] sm:$0xff] (!%p193_p2)   ;;  %v1413_v21 = vld [vmem:[%s1740_s1 + $0xe8] sm:$0xff] (!%p193_p2)  }
   0xa   : > { %1319 = vmatprep.subr.bf16.mxu1 (!%p193_p2), %v1398_v6  ;;  %v1406_v14 = vld [vmem:[%s1740_s1 + $0x58] sm:$0xff] (!%p193_p2)   ;;  %v1410_v18 = vld [vmem:[%s1740_s1 + $0x60] sm:$0xff] (!%p193_p2)   ;;  %v1414_v22 = vld [vmem:[%s1740_s1 + $0x68] sm:$0xff] (!%p193_p2)  }
   0xb   : > { %v1407_v15 = vld [vmem:[%s1740_s1 + $0x98] sm:$0xff] (!%p193_p2)   ;;  %v1411_v19 = vld [vmem:[%s1740_s1 + $0xa0] sm:$0xff] (!%p193_p2)   ;;  %v1415_v23 = vld [vmem:[%s1740_s1 + $0xa8] sm:$0xff] (!%p193_p2)  }
   0xc   : > { %1298 = vmatpush3.bf16.msra.mxu0 (!%p193_p2), %v1399_v7  ;;  %v1408_v16 = vld [vmem:[%s1740_s1 + $0x18] sm:$0xff] (!%p193_p2)   ;;  %v1412_v20 = vld [vmem:[%s1740_s1 + $0x20] sm:$0xff] (!%p193_p2)   ;;  %v1416_v24 = vld [vmem:[%s1740_s1 + $0x28] sm:$0xff] (!%p193_p2)  }
   0xd   : > { %1320 = vmatpush3.bf16.msra.mxu1 %v1400_v8  ;;  %1299 = vmatprep.subr.bf16.mxu0 %v1401_v9  ;;  %s1746_s19 = smov (!%p225_p3, %s1116_s19), 1  ;;  %v1417_v25 = vld [vmem:[%s1740_s1 + $0xf0] sm:$0xff]   ;;  %v1421_v29 = vld [vmem:[%s1740_s1 + $0xf8] sm:$0xff]   ;;  %v1429_v39 = vld [vmem:[%s1740_s1 + $0x140] sm:$0xff]  }
   0xe   : > { %1321 = vmatprep.subr.bf16.mxu1 %v1402_v10  ;;  %v1418_v26 = vld [vmem:[%s1740_s1 + $0x70] sm:$0xff]   ;;  %s1294_s28 = sshll.u32 %s1746_s19, 4  ;;  %v1422_v30 = vld [vmem:[%s1740_s1 + $0x78] sm:$0xff]   ;;  %v1430_v40 = vld [vmem:[%s1740_s1 + $0x1c0] sm:$0xff]   ;;  %s236_s24 = scalar_lea.vmem %s1743_s4, %s1746_s19 }
   0xf   : > { %v1419_v27 = vld [vmem:[%s1740_s1 + $0xb0] sm:$0xff]   ;;  %s1612_s12 = scalar_lea.vmem %s1739_s0, %s1294_s28  ;;  %v1423_v31 = vld [vmem:[%s1740_s1 + $0xb8] sm:$0xff]   ;;  %v1431_v47 = vld [vmem:[%s1740_s1 + $0x100] sm:$0xff]   ;;  %s239_s27 = scalar_lea.vmem %s1744_s5, %s1746_s19 }
  0x10   : > { %1300 = vmatpush3.bf16.msra.mxu0 %v1403_v11  ;;  %v1420_v28 = vld [vmem:[%s1740_s1 + $0x30] sm:$0xff]   ;;  %v1424_v32 = vld [vmem:[%s1740_s1 + $0x38] sm:$0xff]   ;;  %v274_v33 = vld [vmem:[%s1612_s12] sm:$0xff] }
  0x11   : > { %1322 = vmatpush3.bf16.msra.mxu1 %v1404_v12  ;;  %1301 = vmatprep.subr.bf16.mxu0 %v1405_v13  ;;  %v241_v34 = vld [vmem:[%s1612_s12] sm:$0x77]  ;;  %v1156_v35 = vcombine.low %v274_v33, %v274_v33  ;;  %v1157_v36 = vcombine.high %v274_v33, %v274_v33  ;;  %v1434_v51 = vld [vmem:[%s1740_s1 + $0x1c8] sm:$0xff]   ;;  %v1438_v55 = vld [vmem:[%s1740_s1 + $0x1d0] sm:$0xff]  }
  0x12   : > { %1323 = vmatprep.subr.bf16.mxu1 %v1406_v14  ;;  %v1174_v37 = vcombine.low %v241_v34, %v241_v34  ;;  %v1175_v38 = vcombine.high %v241_v34, %v241_v34  ;;  %v1432_v48 = vld [vmem:[%s1740_s1 + $0x180] sm:$0xff]   ;;  %v1433_v52 = vld [vmem:[%s1740_s1 + $0x148] sm:$0xff]   ;;  %v1437_v56 = vld [vmem:[%s1740_s1 + $0x150] sm:$0xff]  }
  0x13   : > { %v321_v41 = vshrl.u32 %v1157_v36, 16  ;;  %v323_v42 = vshll.u32 %v1157_v36, 16  ;;  %v314_v43 = vshrl.u32 %v1156_v35, 16  ;;  %v316_v44 = vshll.u32 %v1156_v35, 16  ;;  %v1436_v53 = vld [vmem:[%s1740_s1 + $0x188] sm:$0xff]   ;;  %v1440_v57 = vld [vmem:[%s1740_s1 + $0x190] sm:$0xff]  }
  0x14   : > { %1302 = vmatpush3.bf16.msra.mxu0 %v1407_v15  ;;  %600 = vmatprep.mubr.bf16.mxu1 %v1175_v38  ;;  %v1435_v54 = vld [vmem:[%s1740_s1 + $0x108] sm:$0xff]   ;;  %v1439_v58 = vld [vmem:[%s1740_s1 + $0x110] sm:$0xff]   ;;  %v1442_v59 = vld [vmem:[%s1740_s1 + $0x1d8] sm:$0xff]  }
  0x15   : > { %1324 = vmatpush3.bf16.msra.mxu1 %v1408_v16  ;;  %1303 = vmatprep.subr.bf16.mxu0 %v1409_v17  ;;  %v325_v45 = vrot.slane %v323_v42, 1  ;;  %v318_v46 = vrot.slane %v316_v44, 1  ;;  %v1441_v60 = vld [vmem:[%s1740_s1 + $0x158] sm:$0xff]   ;;  %v1446_v63 = vld [vmem:[%s1740_s1 + $0x1e0] sm:$0xff]   ;;  %v1450_v3 = vld [vmem:[%s1740_s1 + $0x1e8] sm:$0xff]  }
  0x16   : > { %1325 = vmatprep.subr.bf16.mxu1 %v1410_v18  ;;  %v1444_v61 = vld [vmem:[%s1740_s1 + $0x198] sm:$0xff]   ;;  %v1445_v0 = vld [vmem:[%s1740_s1 + $0x160] sm:$0xff]   ;;  %v1449_v4 = vld [vmem:[%s1740_s1 + $0x168] sm:$0xff]  }
  0x17   : > { %v326_v49 = vor.u32 %v325_v45, %v321_v41  ;;  %v319_v50 = vor.u32 %v318_v46, %v314_v43  ;;  %v1443_v62 = vld [vmem:[%s1740_s1 + $0x118] sm:$0xff]   ;;  %v1448_v1 = vld [vmem:[%s1740_s1 + $0x1a0] sm:$0xff]   ;;  %v1452_v5 = vld [vmem:[%s1740_s1 + $0x1a8] sm:$0xff]  }
  0x18   : > { %1304 = vmatpush3.bf16.msra.mxu0 %v1411_v19  ;;  %v1447_v2 = vld [vmem:[%s1740_s1 + $0x120] sm:$0xff]   ;;  %v1451_v6 = vld [vmem:[%s1740_s1 + $0x128] sm:$0xff]   ;;  %v1454_v7 = vld [vmem:[%s1740_s1 + $0x1f0] sm:$0xff]  }
  0x19   : > { %1326 = vmatpush3.bf16.msra.mxu1 %v1412_v20  ;;  %1305 = vmatprep.subr.bf16.mxu0 %v1413_v21  ;;  %v1453_v8 = vld [vmem:[%s1740_s1 + $0x170] sm:$0xff]   ;;  %v1458_v11 = vld [vmem:[%s1740_s1 + $0x1f8] sm:$0xff]   ;;  %v608_v14 = vld [vmem:[%s1612_s12] sm:$0xee] }
  0x1a   : > { %1327 = vmatprep.subr.bf16.mxu1 %v1414_v22  ;;  %457 = vmatprep.mubr.bf16.mxu0 %v326_v49  ;;  %v1456_v9 = vld [vmem:[%s1740_s1 + $0x1b0] sm:$0xff]   ;;  %v1457_v12 = vld [vmem:[%s1740_s1 + $0x178] sm:$0xff]   ;;  %v609_v15 = vld [vmem:[%s1612_s12 + $0x8] sm:$0x11] }
  0x1b   : > { %v1455_v10 = vld [vmem:[%s1740_s1 + $0x130] sm:$0xff]   ;;  %v1460_v13 = vld [vmem:[%s1740_s1 + $0x1b8] sm:$0xff]   ;;  %v1224_v16 = vcombine.low %v608_v14, %v609_v15  ;;  %v1225_v17 = vcombine.high %v608_v14, %v609_v15  ;;  %v806_v18 = vld [vmem:[%s1612_s12] sm:$0xcc]  ;;  %s1123_s12 = sshll.u32 %s1746_s19, 2 }
  0x1c   : > { %1306 = vmatpush3.bf16.msra.mxu0 %v1415_v23  ;;  %v988_v19 = vld [vmem:[%s1741_s2] sm:$0x3f]  ;;  %v1459_v20 = vld [vmem:[%s1740_s1 + $0x138] sm:$0xff]   ;;  %v1274_v21 = vcombine.low %v806_v18, %v609_v15  ;;  %v1275_v22 = vcombine.high %v806_v18, %v609_v15  ;;  %s233_s21 = scalar_lea.vmem %s1742_s3, %s1123_s12 }
  0x1d   : > { %1328 = vmatpush3.bf16.msra.mxu1 %v1416_v24  ;;  %1307 = vmatprep.subr.bf16.mxu0 %v1417_v25  ;;  %v660_v23 = vshrl.u32 %v1225_v17, 16  ;;  %v663_v24 = vshll.u32 %v1225_v17, 16  ;;  %v652_v25 = vshrl.u32 %v1224_v16, 16 }
  0x1e   : > { %1329 = vmatprep.subr.bf16.mxu1 %v1418_v26  ;;  %v655_v26 = vshll.u32 %v1224_v16, 16  ;;  %991 = vperm.xlu0 %1392, %v988_v19  }
  0x20   : > { %1308 = vmatpush3.bf16.msra.mxu0 %v1419_v27  ;;  %v845_v27 = vrot.slane %v1274_v21, 2 }
  0x21   : > { %1330 = vmatpush3.bf16.msra.mxu1 %v1420_v28  ;;  %1309 = vmatprep.subr.bf16.mxu0 %v1421_v29  ;;  %v846_v28 = vrot.slane %v1275_v22, 2  ;;  %v662_v29 = vrot.slane %v660_v23, 1 }
  0x22   : > { %1331 = vmatprep.subr.bf16.mxu1 %v1422_v30  ;;  %v665_v30 = vrot.slane %v663_v24, 2 }
  0x24   : > { %1310 = vmatpush3.bf16.msra.mxu0 %v1423_v31  ;;  %v654_v31 = vrot.slane %v652_v25, 1  ;;  %v666_v33 = vor.u32 %v665_v30, %v662_v29 }
  0x25   : > { %1332 = vmatpush3.bf16.msra.mxu1 %v1424_v32  ;;  %1339 = vmatprep.subr.bf16.mxu0 %v1429_v39  ;;  %v657_v32 = vrot.slane %v655_v26, 2 }
  0x26   : > { %1361 = vmatprep.subr.bf16.mxu1 %v1430_v40 }
  0x27   : > { %458 = vmatmul.mubr.bf16.vlgmr.msra.gmra.mrb[0].mxu0 %v319_v50  ;;  %v658_v34 = vor.u32 %v657_v32, %v654_v31 }
  0x28   : > { %601 = vmatmul.mubr.bf16.vlgmr.msra.gmra.mrb[0].mxu1 %v1174_v37  ;;  %1340 = vmatpush3.bf16.msra.mxu0 %v1431_v47 }
  0x29   : > { %1362 = vmatpush3.bf16.msra.mxu1 %v1432_v48  ;;  %1341 = vmatprep.subr.bf16.mxu0 %v1433_v52 }
  0x2a   : > { %1363 = vmatprep.subr.bf16.mxu1 %v1434_v51  ;;  %977 = vmatprep.mubr.bf16.mxu1 %v846_v28 }
  0x2b   : > { %797 = vmatprep.mubr.bf16.mxu0 %v666_v33 }
  0x2c   : > { %1342 = vmatpush3.bf16.msra.mxu0 %v1435_v54 }
  0x2d   : > { %1364 = vmatpush3.bf16.msra.mxu1 %v1436_v53  ;;  %1343 = vmatprep.subr.bf16.mxu0 %v1437_v56 }
  0x2e   : > { %1365 = vmatprep.subr.bf16.mxu1 %v1438_v55 }
  0x30   : > { %1344 = vmatpush3.bf16.msra.mxu0 %v1439_v58 }
  0x31   : > { %1366 = vmatpush3.bf16.msra.mxu1 %v1440_v57  ;;  %1345 = vmatprep.subr.bf16.mxu0 %v1441_v60 }
  0x32   : > { %1367 = vmatprep.subr.bf16.mxu1 %v1442_v59 }
  0x34   : > { %1346 = vmatpush3.bf16.msra.mxu0 %v1443_v62 }
  0x35   : > { %1368 = vmatpush3.bf16.msra.mxu1 %v1444_v61  ;;  %1347 = vmatprep.subr.bf16.mxu0 %v1445_v0 }
  0x36   : > { %1369 = vmatprep.subr.bf16.mxu1 %v1446_v63 }
  0x38   : > { %1348 = vmatpush3.bf16.msra.mxu0 %v1447_v2 }
  0x39   : > { %1370 = vmatpush3.bf16.msra.mxu1 %v1448_v1  ;;  %1349 = vmatprep.subr.bf16.mxu0 %v1449_v4 }
  0x3a   : > { %1371 = vmatprep.subr.bf16.mxu1 %v1450_v3 }
  0x3c   : > { %1350 = vmatpush3.bf16.msra.mxu0 %v1451_v6 }
  0x3d   : > { %1372 = vmatpush3.bf16.msra.mxu1 %v1452_v5  ;;  %1351 = vmatprep.subr.bf16.mxu0 %v1453_v8 }
  0x3e   : > { %1373 = vmatprep.subr.bf16.mxu1 %v1454_v7 }
  0x40   : > { %1352 = vmatpush3.bf16.msra.mxu0 %v1455_v10 }
  0x41   : > { %1374 = vmatpush3.bf16.msra.mxu1 %v1456_v9  ;;  %1353 = vmatprep.subr.bf16.mxu0 %v1457_v12 }
  0x42   : > { %1375 = vmatprep.subr.bf16.mxu1 %v1458_v11 }
  0x44   : > { %1354 = vmatpush3.bf16.msra.mxu0 %v1459_v20 }
  0x45   : > { %1376 = vmatpush3.bf16.msra.mxu1 %v1460_v13 }
  0x47   : > { %798 = vmatmul.mubr.bf16.vlgmr.msra.gmra.mrb[4].mxu0 %v658_v34 }
  0x48   : > { %978 = vmatmul.mubr.bf16.vlgmr.msra.gmra.mrb[4].mxu1 %v845_v27 }
  0x9d   : > { %v992_v57 = vpop.permute.xlu0 %991 }
  0xfa   : > { %v1311_v40 = vpop.f32.mrb[0].mxu0 }
  0xfb   : > { %v1333_v35 = vpop.f32.mrb[0].mxu1  ;;  %v1312_v41 = vpop.f32.mrb[1].mxu0 }
  0xfc   : > { %v1334_v36 = vpop.f32.mrb[1].mxu1  ;;  %v1313_v42 = vadd.f32 %v1312_v41, %v1311_v40  ;;  %v1314_v43 = vpop.f32.mrb[2].mxu0 }
  0xfd   : > { %v1335_v37 = vadd.f32 %v1334_v36, %v1333_v35  ;;  %v1336_v38 = vpop.f32.mrb[2].mxu1  ;;  %v1315_v44 = vpop.f32.mrb[3].mxu0 }
  0xfe   : > { %v1337_v39 = vpop.f32.mrb[3].mxu1 }
  0xff   : > { %v603_v45 = vadd.f32 %v1335_v37, %v1313_v42 }
 0x11a   : > { %v1355_v50 = vpop.f32.mrb[4].mxu0 }
 0x11b   : > { %v1377_v46 = vpop.f32.mrb[4].mxu1  ;;  %v1356_v52 = vpop.f32.mrb[5].mxu0 }
 0x11c   : > { %v1378_v47 = vpop.f32.mrb[5].mxu1  ;;  %v1357_v53 = vadd.f32 %v1356_v52, %v1355_v50  ;;  %v1358_v54 = vpop.f32.mrb[6].mxu0 }
 0x11d   : > { %v1379_v48 = vadd.f32 %v1378_v47, %v1377_v46  ;;  %v1380_v49 = vpop.f32.mrb[6].mxu1  ;;  %v1359_v55 = vpop.f32.mrb[7].mxu0 }
 0x11e   : > { %v1381_v51 = vpop.f32.mrb[7].mxu1  ;;  %v805_v56 = vadd.f32 %v1357_v53, %v603_v45 }
 0x120   : > { %v985_v58 = vadd.f32 %v1379_v48, %v805_v56 }
 0x122   : > { %v986_v59 = vpack.c.bf16 %v985_v58, %v985_v58  ;;  %v994_v60 = vmul.f32 %v992_v57, %v985_v58 }
 0x124   : > { %987 = vst [vmem:[%s233_s21] sm:$0x7] %v986_v59  ;;  %v996_v61 = vsel %vm995_vm0, %v994_v60, 0.0  ;;  %v1004_v62 = vmul.f32 %v994_v60, %v994_v60 }
 0x125   : > { %v997_v63 = vrot.slane %v996_v61, 4 }
 0x126   : > { %v1005_v0 = vsel %vm995_vm0, %v1004_v62, 0.0 }
 0x127   : > { %v998_v1 = vadd.f32 %v997_v63, %v996_v61  ;;  %v1006_v2 = vrot.slane %v1005_v0, 4 }
 0x129   : > { %v999_v3 = vrot.slane %v998_v1, 2  ;;  %v1007_v4 = vadd.f32 %v1006_v2, %v1005_v0 }
 0x12b   : > { %v1000_v5 = vadd.f32 %v999_v3, %v998_v1  ;;  %v1008_v6 = vrot.slane %v1007_v4, 2 }
 0x12d   : > { %v1001_v7 = vrot.slane %v1000_v5, 1  ;;  %v1009_v8 = vadd.f32 %v1008_v6, %v1007_v4 }
 0x12f   : > { %v1002_v9 = vadd.f32 %v1001_v7, %v1000_v5  ;;  %v1010_v10 = vrot.slane %v1009_v8, 1 }
 0x131   : > { %1003 = vst [vmem:[%s236_s24] sm:$0x1] %v1002_v9  ;;  %v1011_v11 = vadd.f32 %v1010_v10, %v1009_v8 }
 0x133   : > { %1012 = vst [vmem:[%s239_s27] sm:$0x1] %v1011_v11 }
 0x134 PF: > { %s16_s18 = sadd.s32 1, %s1471_s18  }
 0x135   : > { %p13_p4 = scmp.ge.s32.totalorder %s16_s18, 4  }
 0x137   :  { %15 = sbr.rel (!%p13_p4) target bundleno = 1 (0x1), region = 89 }

// kernel: _forward.53
= control target key start
LH: loop header
LB: loop body
LE: loop exit
PB: predicated region body
PF: predicated region fallthrough
CT: control target
= control target key end

     0   :  { %s73_s0 = inlined_call_operand.vmem [shape: bf16[8,128], index: 0, kind: input, shape index: {}]   ;;  %s74_s1 = inlined_call_operand.vmem [shape: f32[1,128], index: 1, kind: input, shape index: {}]   ;;  %s75_s2 = inlined_call_operand.vmem [shape: f32[1,128], index: 2, kind: input, shape index: {}]   ;;  %s76_s3 = inlined_call_operand.vmem [shape: bf16[8,128], index: 3, kind: output, shape index: {}]  }
   0x1   :  { %v14_v0 = vld [vmem:[%s73_s0] sm:$0xf] }
   0x2   :  { %v39_v1 = vld [vmem:[%s74_s1] ss:$0 sm:$0xff]  ;;  %v15_v2 = vunpack.c.l.bf16 %v14_v0 }
   0x3   :  { %v40_v3 = vld [vmem:[%s75_s2] ss:$0 sm:$0xff] }
   0x4   :  { %v23_v4 = vmul.f32 %v39_v1, %v15_v2 }
   0x6   :  { %v31_v5 = vadd.f32 %v40_v3, %v23_v4 }
   0x8   :  { %v32_v6 = vmax.f32 %v31_v5, 0.0 }
   0xa   :  { %v33_v7 = vpack.c.bf16 %v32_v6, %v32_v6 }
   0xc   :  { %34 = vst [vmem:[%s76_s3] sm:$0xf] %v33_v7 }

// kernel: _forward.54
= control target key start
LH: loop header
LB: loop body
LE: loop exit
PB: predicated region body
PF: predicated region fallthrough
CT: control target
= control target key end

     0   :  { %s2029_s18 = smov 0   ;;  %s2408_s0 = inlined_call_operand.vmem [shape: bf16[2,20,128], index: 0, kind: input, shape index: {}]   ;;  %s2409_s1 = inlined_call_operand.vmem [shape: bf16[9,128,128], index: 1, kind: input, shape index: {}]   ;;  %s2410_s2 = inlined_call_operand.vmem [shape: f32[8,1], index: 2, kind: input, shape index: {}]   ;;  %s2411_s3 = inlined_call_operand.vmem [shape: bf16[2,8,128], index: 3, kind: output, shape index: {0}]   ;;  %s2412_s4 = inlined_call_operand.vmem [shape: f32[2,1,128], index: 4, kind: output, shape index: {1}]   ;;  %s2413_s5 = inlined_call_operand.vmem [shape: f32[2,1,128], index: 5, kind: output, shape index: {2}]  }
   0x1 LB: > { %s1390_s19 = sadd.s32 4294967295, %s1994_s18   ;;  %p1394_p0 = scmp.ge.s32.totalorder %s1994_s18, 1  ;;  %s1994_s18 = sphi %s2029_s18, %s16_s18  }
   0x2   : > { %p192_p1 = scmp.lt.s32.totalorder %s1994_s18, 3 }
   0x4   : > { %p193_p2 = pnand %p1394_p0, %p192_p1 }
   0x5   : > { %v1909_v0 = vld [vmem:[%s2409_s1 + $0x40] sm:$0xff] (!%p193_p2)   ;;  %v1996_v1 = vmov (!%p193_p2), 0.0   ;;  %v1911_v3 = vld [vmem:[%s2409_s1 + $0x48] sm:$0xff] (!%p193_p2)   ;;  %vm1997_vm0 = vmmov (!%p193_p2), 0   ;;  %p225_p3 = scmp.lt.s32.totalorder (!%p193_p2), %s1390_s19, 1  ;;  %v1913_v5 = vld [vmem:[%s2409_s1 + $0x50] sm:$0xff] (!%p193_p2)  }
   0x6   : > { %196 = sbr.rel (%p193_p2) target bundleno = 398 (0x18e), region = 32  ;;  %1687 = vmatprep.subr.bf16.mxu1 (!%p193_p2), %v1996_v1  ;;  %1767 = vmatprep.subr.bf16.mxu0 (!%p193_p2), %v1996_v1  ;;  %v1910_v2 = vld [vmem:[%s2409_s1 + $0x100] sm:$0xff] (!%p193_p2)   ;;  %v1912_v4 = vld [vmem:[%s2409_s1 + $0x108] sm:$0xff] (!%p193_p2)   ;;  %v1914_v6 = vld [vmem:[%s2409_s1 + $0x110] sm:$0xff] (!%p193_p2)   ;;  %v1998_v36 = vmov (!%p193_p2), 0  }
   0x7   : > { %1688 = vmatpush3.bf16.msra.mxu1 (!%p193_p2), %v1909_v0  ;;  %1703 = vmatprep.mubr.msk.bf16.mxu1 (!%p193_p2), %vm1997_vm0, %v1996_v1  ;;  %v1915_v7 = vld [vmem:[%s2409_s1 + $0x58] sm:$0xff] (!%p193_p2)   ;;  %v1917_v9 = vld [vmem:[%s2409_s1 + $0x60] sm:$0xff] (!%p193_p2)   ;;  %v1919_v13 = vld [vmem:[%s2409_s1 + $0x68] sm:$0xff] (!%p193_p2)  }
   0x8   : > { %1768 = vmatpush3.bf16.msra.mxu0 (!%p193_p2), %v1910_v2  ;;  %1689 = vmatprep.subr.bf16.mxu1 (!%p193_p2), %v1996_v1  ;;  %v1916_v8 = vld [vmem:[%s2409_s1 + $0x118] sm:$0xff] (!%p193_p2)   ;;  %v1918_v10 = vld [vmem:[%s2409_s1 + $0x120] sm:$0xff] (!%p193_p2)   ;;  %v1920_v17 = vld [vmem:[%s2409_s1 + $0x128] sm:$0xff] (!%p193_p2)  }
   0x9   : > { %1769 = vmatprep.subr.bf16.mxu0 (!%p193_p2), %v1996_v1  ;;  %1783 = vmatprep.mubr.msk.bf16.mxu0 (!%p193_p2), %vm1997_vm0, %v1996_v1  ;;  %v1921_v19 = vld [vmem:[%s2409_s1 + $0x70] sm:$0xff] (!%p193_p2)   ;;  %v1923_v24 = vld [vmem:[%s2409_s1 + $0x78] sm:$0xff] (!%p193_p2)   ;;  %v1926_v31 = vld [vmem:[%s2409_s1] sm:$0xff] (!%p193_p2)  }
   0xa   : > { %v1922_v23 = vld [vmem:[%s2409_s1 + $0x130] sm:$0xff] (!%p193_p2)   ;;  %v1924_v29 = vld [vmem:[%s2409_s1 + $0x138] sm:$0xff] (!%p193_p2)   ;;  %v1928_v33 = vld [vmem:[%s2409_s1 + $0x140] sm:$0xff] (!%p193_p2)   ;;  %1908 = vset.pattern.permute.xlu0 (!%p193_p2), %v1998_v36 }
   0xb   : > { %1690 = vmatpush3.bf16.msra.mxu1 (!%p193_p2), %v1911_v3  ;;  %v1929_v34 = vld [vmem:[%s2409_s1 + $0x8] sm:$0xff] (!%p193_p2)   ;;  %v1931_v37 = vld [vmem:[%s2409_s1 + $0x10] sm:$0xff] (!%p193_p2)   ;;  %v1933_v39 = vld [vmem:[%s2409_s1 + $0x18] sm:$0xff] (!%p193_p2)  }
   0xc   : > { %1770 = vmatpush3.bf16.msra.mxu0 (!%p193_p2), %v1912_v4  ;;  %1691 = vmatprep.subr.bf16.mxu1 (!%p193_p2), %v1996_v1  ;;  %v1930_v35 = vld [vmem:[%s2409_s1 + $0x148] sm:$0xff] (!%p193_p2)   ;;  %v1932_v38 = vld [vmem:[%s2409_s1 + $0x150] sm:$0xff] (!%p193_p2)   ;;  %v1934_v40 = vld [vmem:[%s2409_s1 + $0x158] sm:$0xff] (!%p193_p2)  }
   0xd   : > { %s2415_s19 = smov (!%p225_p3, %s1390_s19), 1  ;;  %1771 = vmatprep.subr.bf16.mxu0 %v1996_v1  ;;  %v1935_v41 = vld [vmem:[%s2409_s1 + $0x20] sm:$0xff]   ;;  %v1937_v43 = vld [vmem:[%s2409_s1 + $0x28] sm:$0xff]   ;;  %v1939_v47 = vld [vmem:[%s2409_s1 + $0x30] sm:$0xff]  }
   0xe   : > { %s1896_s7 = smul.u32 12, %s2415_s19  ;;  %v1936_v42 = vld [vmem:[%s2409_s1 + $0x160] sm:$0xff]   ;;  %v1938_v45 = vld [vmem:[%s2409_s1 + $0x168] sm:$0xff]   ;;  %v1940_v48 = vld [vmem:[%s2409_s1 + $0x170] sm:$0xff]   ;;  %s1396_s12 = sshll.u32 %s2415_s19, 2 }
   0xf   : > { %1692 = vmatpush3.bf16.msra.mxu1 %v1913_v5  ;;  %v1941_v50 = vld [vmem:[%s2409_s1 + $0x38] sm:$0xff]   ;;  %v1943_v53 = vld [vmem:[%s2409_s1 + $0x80] sm:$0xff]   ;;  %v1946_v56 = vld [vmem:[%s2409_s1 + $0x88] sm:$0xff]   ;;  %s233_s15 = scalar_lea.vmem %s2411_s3, %s1396_s12  ;;  %s236_s20 = scalar_lea.vmem %s2412_s4, %s2415_s19 }
  0x10   : > { %1772 = vmatpush3.bf16.msra.mxu0 %v1914_v6  ;;  %1693 = vmatprep.subr.bf16.mxu1 %v1996_v1  ;;  %s2079_s14 = scalar_lea.vmem %s2408_s0, %s1896_s7  ;;  %v1942_v52 = vld [vmem:[%s2409_s1 + $0x178] sm:$0xff]   ;;  %v1945_v55 = vld [vmem:[%s2409_s1 + $0x180] sm:$0xff]   ;;  %v1947_v58 = vld [vmem:[%s2409_s1 + $0x188] sm:$0xff]   ;;  %s239_s23 = scalar_lea.vmem %s2413_s5, %s2415_s19 }
  0x11   : > { %1773 = vmatprep.subr.bf16.mxu0 %v1996_v1  ;;  %v2090_v11 = vld [vmem:[%s2079_s14] sm:$0xf]  ;;  %v2093_v12 = vld [vmem:[%s2079_s14 + $0x4] sm:$0x1]  ;;  %v1948_v60 = vld [vmem:[%s2409_s1 + $0x90] sm:$0xff]  }
  0x12   : > { %v1413_v14 = vcombine.low %v2090_v11, %v2093_v12  ;;  %v2101_v15 = vld [vmem:[%s2079_s14] sm:$0xc]  ;;  %v2104_v16 = vld [vmem:[%s2079_s14 + $0x4] sm:$0x7]  ;;  %v1949_v61 = vld [vmem:[%s2409_s1 + $0x190] sm:$0xff]  }
  0x13   : > { %1694 = vmatpush3.bf16.msra.mxu1 %v1915_v7  ;;  %v1496_v18 = vcombine.low %v2101_v15, %v2104_v16  ;;  %v2177_v44 = vld [vmem:[%s2079_s14] sm:$0xe]  ;;  %v2217_v57 = vld [vmem:[%s2079_s14 + $0x4] sm:$0x3]  ;;  %v1950_v62 = vld [vmem:[%s2409_s1 + $0x98] sm:$0xff]  }
  0x14   : > { %1774 = vmatpush3.bf16.msra.mxu0 %v1916_v8  ;;  %1695 = vmatprep.subr.bf16.mxu1 %v1996_v1  ;;  %v284_v20 = vshll.u32 %v1413_v14, 16  ;;  %v282_v25 = vshrl.u32 %v1413_v14, 16  ;;  %v1446_v46 = vcombine.low %v2177_v44, %v2093_v12  ;;  %v811_v49 = vld [vmem:[%s2079_s14] sm:$0x8]  ;;  %v1471_v59 = vcombine.low %v2101_v15, %v2217_v57  ;;  %v1951_v63 = vld [vmem:[%s2409_s1 + $0x198] sm:$0xff]   ;;  %v1954_v4 = vld [vmem:[%s2409_s1 + $0xa8] sm:$0xff]  }
  0x15   : > { %1775 = vmatprep.subr.bf16.mxu0 %v1996_v1  ;;  %v714_v21 = vshrl.u32 %v1496_v18, 16  ;;  %v717_v22 = vshll.u32 %v1496_v18, 16  ;;  %v1521_v51 = vcombine.low %v811_v49, %v2104_v16  ;;  %v1265_v0 = vld [vmem:[%s2410_s2] sm:$0xff]  ;;  %v1955_v5 = vld [vmem:[%s2409_s1 + $0x1a8] sm:$0xff]   ;;  %v1956_v6 = vld [vmem:[%s2409_s1 + $0xb0] sm:$0xff]  }
  0x16   : > { %v286_v26 = vrot.slane %v284_v20, 1  ;;  %1268 = vperm.xlu0 %1908, %v1265_v0   ;;  %v1952_v2 = vld [vmem:[%s2409_s1 + $0xa0] sm:$0xff]   ;;  %v1957_v7 = vld [vmem:[%s2409_s1 + $0x1b0] sm:$0xff]   ;;  %v1958_v8 = vld [vmem:[%s2409_s1 + $0xb8] sm:$0xff]  }
  0x17   : > { %1696 = vmatpush3.bf16.msra.mxu1 %v1917_v9  ;;  %v716_v27 = vrot.slane %v714_v21, 2  ;;  %v719_v28 = vrot.slane %v717_v22, 3  ;;  %v832_v54 = vrot.slane %v1521_v51, 3  ;;  %v1953_v3 = vld [vmem:[%s2409_s1 + $0x1a0] sm:$0xff]   ;;  %v1959_v9 = vld [vmem:[%s2409_s1 + $0x1b8] sm:$0xff]   ;;  %v1963_v12 = vld [vmem:[%s2409_s1 + $0xc8] sm:$0xff]  }
  0x18   : > { %1776 = vmatpush3.bf16.msra.mxu0 %v1918_v10  ;;  %1697 = vmatprep.subr.bf16.mxu1 %v1996_v1  ;;  %v287_v30 = vor.u32 %v286_v26, %v282_v25  ;;  %v486_v10 = vrot.slane %v1446_v46, 1  ;;  %v1962_v14 = vld [vmem:[%s2409_s1 + $0x1c0] sm:$0xff]   ;;  %v1964_v16 = vld [vmem:[%s2409_s1 + $0x1c8] sm:$0xff]   ;;  %v1966_v18 = vld [vmem:[%s2409_s1 + $0x1d0] sm:$0xff]  }
  0x19   : > { %1777 = vmatprep.subr.bf16.mxu0 %v1996_v1  ;;  %v720_v32 = vor.u32 %v719_v28, %v716_v27  ;;  %v1968_v20 = vld [vmem:[%s2409_s1 + $0x1d8] sm:$0xff]   ;;  %v1969_v21 = vld [vmem:[%s2409_s1 + $0xe0] sm:$0xff]   ;;  %v1971_v25 = vld [vmem:[%s2409_s1 + $0xe8] sm:$0xff]  }
  0x1a   : > { %v1970_v22 = vld [vmem:[%s2409_s1 + $0x1e0] sm:$0xff]   ;;  %v1972_v27 = vld [vmem:[%s2409_s1 + $0x1e8] sm:$0xff]   ;;  %v1973_v28 = vld [vmem:[%s2409_s1 + $0xf0] sm:$0xff]  }
  0x1b   : > { %1698 = vmatpush3.bf16.msra.mxu1 %v1919_v13  ;;  %v923_v13 = vld [vmem:[%s2079_s14 + $0x4] sm:$0xf]  ;;  %v1981_v15 = vld [vmem:[%s2409_s1 + $0x210] sm:$0xff]  }
  0x1c   : > { %1778 = vmatpush3.bf16.msra.mxu0 %v1920_v17  ;;  %1699 = vmatprep.subr.bf16.mxu1 %v1996_v1  ;;  %v1965_v17 = vld [vmem:[%s2409_s1 + $0xd0] sm:$0xff]  }
  0x1d   : > { %1779 = vmatprep.subr.bf16.mxu0 %v1996_v1 }
  0x1f   : > { %1700 = vmatpush3.bf16.msra.mxu1 %v1921_v19  ;;  %v1967_v19 = vld [vmem:[%s2409_s1 + $0xd8] sm:$0xff]  }
  0x20   : > { %1780 = vmatpush3.bf16.msra.mxu0 %v1922_v23  ;;  %1701 = vmatprep.subr.bf16.mxu1 %v1996_v1  ;;  %v1030_v23 = vld [vmem:[%s2079_s14 + $0x4] sm:$0xf] }
  0x21   : > { %1781 = vmatprep.subr.bf16.mxu0 %v1996_v1 }
  0x23   : > { %1702 = vmatpush3.bf16.msra.mxu1 %v1923_v24  ;;  %v1031_v24 = vld [vmem:[%s2079_s14 + $0x8] sm:$0x1] }
  0x24   : > { %1782 = vmatpush3.bf16.msra.mxu0 %v1924_v29  ;;  %1707 = vmatprep.subr.bf16.mxu1 %v1996_v1  ;;  %v1570_v26 = vcombine.low %v1030_v23, %v1031_v24 }
  0x25   : > { %1787 = vmatprep.subr.bf16.mxu0 %v1996_v1 }
  0x26   : > { %1704 = vmatmul.mubr.bf16.vlgmr.msra.gmra.mrb[0].mxu1 %v287_v30  ;;  %v1057_v29 = vshll.u32 %v1570_v26, 16  ;;  %v1974_v30 = vld [vmem:[%s2409_s1 + $0x1f0] sm:$0xff]  }
  0x27   : > { %1708 = vmatpush3.bf16.msra.mxu1 %v1926_v31  ;;  %1784 = vmatmul.mubr.bf16.vlgmr.msra.gmra.mrb[0].mxu0 %v720_v32  ;;  %v1975_v31 = vld [vmem:[%s2409_s1 + $0xf8] sm:$0xff]   ;;  %v1055_v32 = vshrl.u32 %v1570_v26, 16 }
  0x28   : > { %1788 = vmatpush3.bf16.msra.mxu0 %v1928_v33  ;;  %1709 = vmatprep.subr.bf16.mxu1 %v1996_v1  ;;  %v1059_v33 = vrot.slane %v1057_v29, 1 }
  0x29   : > { %1789 = vmatprep.subr.bf16.mxu0 %v1996_v1  ;;  %1723 = vmatprep.mubr.msk.bf16.mxu1 %vm1997_vm0, %v1996_v1 }
  0x2a   : > { %1803 = vmatprep.mubr.msk.bf16.mxu0 %vm1997_vm0, %v1996_v1  ;;  %v1060_v36 = vor.u32 %v1059_v33, %v1055_v32 }
  0x2b   : > { %1710 = vmatpush3.bf16.msra.mxu1 %v1929_v34  ;;  %v1976_v34 = vld [vmem:[%s2409_s1 + $0x1f8] sm:$0xff]  }
  0x2c   : > { %1790 = vmatpush3.bf16.msra.mxu0 %v1930_v35  ;;  %1711 = vmatprep.subr.bf16.mxu1 %v1996_v1  ;;  %v601_v35 = vrot.slane %v1471_v59, 2 }
  0x2d   : > { %1791 = vmatprep.subr.bf16.mxu0 %v1996_v1 }
  0x2f   : > { %1712 = vmatpush3.bf16.msra.mxu1 %v1931_v37  ;;  %v1979_v37 = vld [vmem:[%s2409_s1 + $0x200] sm:$0xff]  }
  0x30   : > { %1792 = vmatpush3.bf16.msra.mxu0 %v1932_v38  ;;  %1713 = vmatprep.subr.bf16.mxu1 %v1996_v1  ;;  %v1980_v38 = vld [vmem:[%s2409_s1 + $0x208] sm:$0xff]  }
  0x31   : > { %1793 = vmatprep.subr.bf16.mxu0 %v1996_v1 }
  0x33   : > { %1714 = vmatpush3.bf16.msra.mxu1 %v1933_v39  ;;  %v1982_v39 = vld [vmem:[%s2409_s1 + $0x218] sm:$0xff]  }
  0x34   : > { %1794 = vmatpush3.bf16.msra.mxu0 %v1934_v40  ;;  %1715 = vmatprep.subr.bf16.mxu1 %v1996_v1  ;;  %v1983_v40 = vld [vmem:[%s2409_s1 + $0x220] sm:$0xff]  }
  0x35   : > { %1795 = vmatprep.subr.bf16.mxu0 %v1996_v1 }
  0x37   : > { %1716 = vmatpush3.bf16.msra.mxu1 %v1935_v41  ;;  %v1984_v41 = vld [vmem:[%s2409_s1 + $0x228] sm:$0xff]  }
  0x38   : > { %1796 = vmatpush3.bf16.msra.mxu0 %v1936_v42  ;;  %1717 = vmatprep.subr.bf16.mxu1 %v1996_v1  ;;  %v1985_v42 = vld [vmem:[%s2409_s1 + $0x230] sm:$0xff]  }
  0x39   : > { %1797 = vmatprep.subr.bf16.mxu0 %v1996_v1 }
  0x3b   : > { %1718 = vmatpush3.bf16.msra.mxu1 %v1937_v43  ;;  %v1151_v43 = vld [vmem:[%s2079_s14 + $0x4] sm:$0xe] }
  0x3c   : > { %1798 = vmatpush3.bf16.msra.mxu0 %v1938_v45  ;;  %1719 = vmatprep.subr.bf16.mxu1 %v1996_v1  ;;  %v1595_v44 = vcombine.low %v1151_v43, %v1031_v24  ;;  %v1986_v45 = vld [vmem:[%s2409_s1 + $0x238] sm:$0xff]  }
  0x3d   : > { %1799 = vmatprep.subr.bf16.mxu0 %v1996_v1 }
  0x3e   : > { %v1172_v46 = vrot.slane %v1595_v44, 1 }
  0x3f   : > { %1720 = vmatpush3.bf16.msra.mxu1 %v1939_v47 }
  0x40   : > { %1800 = vmatpush3.bf16.msra.mxu0 %v1940_v48  ;;  %1721 = vmatprep.subr.bf16.mxu1 %v1996_v1 }
  0x41   : > { %1801 = vmatprep.subr.bf16.mxu0 %v1996_v1 }
  0x43   : > { %1722 = vmatpush3.bf16.msra.mxu1 %v1941_v50 }
  0x44   : > { %1802 = vmatpush3.bf16.msra.mxu0 %v1942_v52  ;;  %1727 = vmatprep.subr.bf16.mxu1 %v1996_v1 }
  0x45   : > { %1807 = vmatprep.subr.bf16.mxu0 %v1996_v1 }
  0x46   : > { %1724 = vmatmul.mubr.bf16.vlgmr.msra.gmra.mrb[0].mxu1 %v2090_v11  ;;  %v1961_v11 = vld [vmem:[%s2409_s1 + $0xc0] sm:$0xff]  }
  0x47   : > { %1728 = vmatpush3.bf16.msra.mxu1 %v1943_v53  ;;  %1804 = vmatmul.mubr.bf16.vlgmr.msra.gmra.mrb[0].mxu0 %v832_v54 }
  0x48   : > { %1808 = vmatpush3.bf16.msra.mxu0 %v1945_v55  ;;  %1729 = vmatprep.subr.bf16.mxu1 %v1996_v1 }
  0x49   : > { %1809 = vmatprep.subr.bf16.mxu0 %v1996_v1  ;;  %1743 = vmatprep.mubr.msk.bf16.mxu1 %vm1997_vm0, %v1996_v1 }
  0x4a   : > { %1823 = vmatprep.mubr.msk.bf16.mxu0 %vm1997_vm0, %v1996_v1 }
  0x4b   : > { %1730 = vmatpush3.bf16.msra.mxu1 %v1946_v56 }
  0x4c   : > { %1810 = vmatpush3.bf16.msra.mxu0 %v1947_v58  ;;  %1731 = vmatprep.subr.bf16.mxu1 %v1996_v1 }
  0x4d   : > { %1811 = vmatprep.subr.bf16.mxu0 %v1996_v1 }
  0x4f   : > { %1732 = vmatpush3.bf16.msra.mxu1 %v1948_v60 }
  0x50   : > { %1812 = vmatpush3.bf16.msra.mxu0 %v1949_v61  ;;  %1733 = vmatprep.subr.bf16.mxu1 %v1996_v1 }
  0x51   : > { %1813 = vmatprep.subr.bf16.mxu0 %v1996_v1 }
  0x53   : > { %1734 = vmatpush3.bf16.msra.mxu1 %v1950_v62 }
  0x54   : > { %1814 = vmatpush3.bf16.msra.mxu0 %v1951_v63  ;;  %1735 = vmatprep.subr.bf16.mxu1 %v1996_v1 }
  0x55   : > { %1815 = vmatprep.subr.bf16.mxu0 %v1996_v1 }
  0x57   : > { %1736 = vmatpush3.bf16.msra.mxu1 %v1952_v2 }
  0x58   : > { %1816 = vmatpush3.bf16.msra.mxu0 %v1953_v3  ;;  %1737 = vmatprep.subr.bf16.mxu1 %v1996_v1 }
  0x59   : > { %1817 = vmatprep.subr.bf16.mxu0 %v1996_v1 }
  0x5b   : > { %1738 = vmatpush3.bf16.msra.mxu1 %v1954_v4 }
  0x5c   : > { %1818 = vmatpush3.bf16.msra.mxu0 %v1955_v5  ;;  %1739 = vmatprep.subr.bf16.mxu1 %v1996_v1 }
  0x5d   : > { %1819 = vmatprep.subr.bf16.mxu0 %v1996_v1 }
  0x5f   : > { %1740 = vmatpush3.bf16.msra.mxu1 %v1956_v6 }
  0x60   : > { %1820 = vmatpush3.bf16.msra.mxu0 %v1957_v7  ;;  %1741 = vmatprep.subr.bf16.mxu1 %v1996_v1 }
  0x61   : > { %1821 = vmatprep.subr.bf16.mxu0 %v1996_v1 }
  0x63   : > { %1742 = vmatpush3.bf16.msra.mxu1 %v1958_v8 }
  0x64   : > { %1822 = vmatpush3.bf16.msra.mxu0 %v1959_v9  ;;  %1747 = vmatprep.subr.bf16.mxu1 %v1996_v1 }
  0x65   : > { %1827 = vmatprep.subr.bf16.mxu0 %v1996_v1 }
  0x66   : > { %1744 = vmatmul.mubr.bf16.vlgmr.msra.gmra.mrb[0].mxu1 %v486_v10 }
  0x67   : > { %1748 = vmatpush3.bf16.msra.mxu1 %v1961_v11  ;;  %1824 = vmatmul.mubr.bf16.vlgmr.msra.gmra.mrb[0].mxu0 %v923_v13 }
  0x68   : > { %1828 = vmatpush3.bf16.msra.mxu0 %v1962_v14  ;;  %1749 = vmatprep.subr.bf16.mxu1 %v1996_v1 }
  0x69   : > { %1829 = vmatprep.subr.bf16.mxu0 %v1996_v1  ;;  %1763 = vmatprep.mubr.msk.bf16.mxu1 %vm1997_vm0, %v1996_v1 }
  0x6a   : > { %1843 = vmatprep.mubr.msk.bf16.mxu0 %vm1997_vm0, %v1996_v1 }
  0x6b   : > { %1750 = vmatpush3.bf16.msra.mxu1 %v1963_v12 }
  0x6c   : > { %1830 = vmatpush3.bf16.msra.mxu0 %v1964_v16  ;;  %1751 = vmatprep.subr.bf16.mxu1 %v1996_v1 }
  0x6d   : > { %1831 = vmatprep.subr.bf16.mxu0 %v1996_v1 }
  0x6f   : > { %1752 = vmatpush3.bf16.msra.mxu1 %v1965_v17 }
  0x70   : > { %1832 = vmatpush3.bf16.msra.mxu0 %v1966_v18  ;;  %1753 = vmatprep.subr.bf16.mxu1 %v1996_v1 }
  0x71   : > { %1833 = vmatprep.subr.bf16.mxu0 %v1996_v1 }
  0x73   : > { %1754 = vmatpush3.bf16.msra.mxu1 %v1967_v19 }
  0x74   : > { %1834 = vmatpush3.bf16.msra.mxu0 %v1968_v20  ;;  %1755 = vmatprep.subr.bf16.mxu1 %v1996_v1 }
  0x75   : > { %1835 = vmatprep.subr.bf16.mxu0 %v1996_v1 }
  0x77   : > { %1756 = vmatpush3.bf16.msra.mxu1 %v1969_v21 }
  0x78   : > { %1836 = vmatpush3.bf16.msra.mxu0 %v1970_v22  ;;  %1757 = vmatprep.subr.bf16.mxu1 %v1996_v1 }
  0x79   : > { %1837 = vmatprep.subr.bf16.mxu0 %v1996_v1 }
  0x7b   : > { %1758 = vmatpush3.bf16.msra.mxu1 %v1971_v25 }
  0x7c   : > { %1838 = vmatpush3.bf16.msra.mxu0 %v1972_v27  ;;  %1759 = vmatprep.subr.bf16.mxu1 %v1996_v1 }
  0x7d   : > { %1839 = vmatprep.subr.bf16.mxu0 %v1996_v1 }
  0x7f   : > { %1760 = vmatpush3.bf16.msra.mxu1 %v1973_v28 }
  0x80   : > { %1840 = vmatpush3.bf16.msra.mxu0 %v1974_v30  ;;  %1761 = vmatprep.subr.bf16.mxu1 %v1996_v1 }
  0x81   : > { %1841 = vmatprep.subr.bf16.mxu0 %v1996_v1 }
  0x83   : > { %1762 = vmatpush3.bf16.msra.mxu1 %v1975_v31 }
  0x84   : > { %1842 = vmatpush3.bf16.msra.mxu0 %v1976_v34 }
  0x85   : > { %1847 = vmatprep.subr.bf16.mxu0 %v1996_v1 }
  0x86   : > { %1764 = vmatmul.mubr.bf16.vlgmr.msra.gmra.mrb[0].mxu1 %v601_v35 }
  0x87   : > { %1844 = vmatmul.mubr.bf16.vlgmr.msra.gmra.mrb[0].mxu0 %v1060_v36 }
  0x88   : > { %1848 = vmatpush3.bf16.msra.mxu0 %v1979_v37  ;;  %1863 = vmatprep.mubr.msk.bf16.mxu0 %vm1997_vm0, %v1996_v1 }
  0x89   : > { %1849 = vmatprep.subr.bf16.mxu0 %v1996_v1 }
  0x8c   : > { %1850 = vmatpush3.bf16.msra.mxu0 %v1980_v38 }
  0x8d   : > { %1851 = vmatprep.subr.bf16.mxu0 %v1996_v1 }
  0x90   : > { %1852 = vmatpush3.bf16.msra.mxu0 %v1981_v15 }
  0x91   : > { %1853 = vmatprep.subr.bf16.mxu0 %v1996_v1 }
  0x94   : > { %1854 = vmatpush3.bf16.msra.mxu0 %v1982_v39 }
  0x95   : > { %1855 = vmatprep.subr.bf16.mxu0 %v1996_v1  ;;  %v1269_v52 = vpop.permute.xlu0 %1268 }
  0x98   : > { %1856 = vmatpush3.bf16.msra.mxu0 %v1983_v40 }
  0x99   : > { %1857 = vmatprep.subr.bf16.mxu0 %v1996_v1 }
  0x9c   : > { %1858 = vmatpush3.bf16.msra.mxu0 %v1984_v41 }
  0x9d   : > { %1859 = vmatprep.subr.bf16.mxu0 %v1996_v1 }
  0xa0   : > { %1860 = vmatpush3.bf16.msra.mxu0 %v1985_v42 }
  0xa1   : > { %1861 = vmatprep.subr.bf16.mxu0 %v1996_v1 }
  0xa4   : > { %1862 = vmatpush3.bf16.msra.mxu0 %v1986_v45 }
  0xa7   : > { %1864 = vmatmul.mubr.bf16.vlgmr.msra.gmra.mrb[0].mxu0 %v1172_v46 }
 0x159   : > { %v685_v47 = vpop.f32.mrb[0].mxu1 }
 0x15a   : > { %v1765_v48 = vpop.f32.mrb[1].mxu1 }
 0x15b   : > { %v688_v49 = vpop.f32.mrb[2].mxu1 }
 0x15c   : > { %v1766_v50 = vpop.f32.mrb[3].mxu1 }
 0x17a   : > { %v1256_v51 = vpop.f32.mrb[0].mxu0 }
 0x17b   : > { %v1867_v53 = vadd.f32 %v1256_v51, %v685_v47  ;;  %v1865_v54 = vpop.f32.mrb[1].mxu0 }
 0x17c   : > { %v1259_v55 = vpop.f32.mrb[2].mxu0 }
 0x17d   : > { %v1263_v56 = vpack.c.bf16 %v1867_v53, %v1867_v53  ;;  %v1271_v1 = vmul.f32 %v1867_v53, %v1269_v52  ;;  %v1866_v57 = vpop.f32.mrb[3].mxu0 }
 0x17f   : > { %1264 = vst [vmem:[%s233_s15] sm:$0xf] %v1263_v56  ;;  %v1272_v58 = vrot.slane %v1271_v1, 4  ;;  %v1279_v59 = vmul.f32 %v1271_v1, %v1271_v1 }
 0x181   : > { %v1273_v60 = vadd.f32 %v1272_v58, %v1271_v1  ;;  %v1280_v61 = vrot.slane %v1279_v59, 4 }
 0x183   : > { %v1274_v62 = vrot.slane %v1273_v60, 2  ;;  %v1281_v63 = vadd.f32 %v1280_v61, %v1279_v59 }
 0x185   : > { %v1275_v0 = vadd.f32 %v1274_v62, %v1273_v60  ;;  %v1282_v2 = vrot.slane %v1281_v63, 2 }
 0x187   : > { %v1276_v3 = vrot.slane %v1275_v0, 1  ;;  %v1283_v4 = vadd.f32 %v1282_v2, %v1281_v63 }
 0x189   : > { %v1277_v5 = vadd.f32 %v1276_v3, %v1275_v0  ;;  %v1284_v6 = vrot.slane %v1283_v4, 1 }
 0x18b   : > { %1278 = vst [vmem:[%s236_s20] sm:$0x1] %v1277_v5  ;;  %v1285_v7 = vadd.f32 %v1284_v6, %v1283_v4 }
 0x18d   : > { %1286 = vst [vmem:[%s239_s23] sm:$0x1] %v1285_v7 }
 0x18e PF: > { %s16_s18 = sadd.s32 1, %s1994_s18  }
 0x18f   : > { %p13_p4 = scmp.ge.s32.totalorder %s16_s18, 4  }
 0x191   :  { %15 = sbr.rel (!%p13_p4) target bundleno = 1 (0x1), region = 94 }

// kernel: _forward.55
= control target key start
LH: loop header
LB: loop body
LE: loop exit
PB: predicated region body
PF: predicated region fallthrough
CT: control target
= control target key end

     0   :  { %s533_s18 = smov 0   ;;  %s576_s0 = inlined_call_operand.vmem [shape: bf16[2,4,64], index: 0, kind: input, shape index: {}]   ;;  %s577_s1 = inlined_call_operand.vmem [shape: bf16[1,64,128], index: 1, kind: input, shape index: {}]   ;;  %s578_s2 = inlined_call_operand.vmem [shape: f32[4,1], index: 2, kind: input, shape index: {}]   ;;  %s579_s3 = inlined_call_operand.vmem [shape: bf16[2,4,128], index: 3, kind: output, shape index: {0}]   ;;  %s580_s4 = inlined_call_operand.vmem [shape: f32[2,1,128], index: 4, kind: output, shape index: {1}]   ;;  %s581_s5 = inlined_call_operand.vmem [shape: f32[2,1,128], index: 5, kind: output, shape index: {2}]  }
   0x1 LB: > { %s445_s19 = sadd.s32 4294967295, %s498_s18   ;;  %p449_p0 = scmp.ge.s32.totalorder %s498_s18, 1  ;;  %s498_s18 = sphi %s533_s18, %s16_s18  }
   0x2   : > { %p191_p1 = scmp.lt.s32.totalorder %s498_s18, 3 }
   0x4   : > { %p192_p2 = pnand %p449_p0, %p191_p1 }
   0x5   : > { %v488_v0 = vld [vmem:[%s577_s1] sm:$0xff] (!%p192_p2)   ;;  %v500_v1 = vmov (!%p192_p2), 0.0   ;;  %v489_v2 = vld [vmem:[%s577_s1 + $0x8] sm:$0xff] (!%p192_p2)   ;;  %vm501_vm0 = vmmov (!%p192_p2), 0   ;;  %p223_p3 = scmp.lt.s32.totalorder (!%p192_p2), %s445_s19, 1  ;;  %v502_v4 = vmov (!%p192_p2), 0  }
   0x6   : > { %195 = sbr.rel (%p192_p2) target bundleno = 252 (0xfc), region = 32  ;;  %464 = vmatprep.subr.bf16.mxu0 (!%p192_p2), %v500_v1  ;;  %472 = vmatprep.mubr.msk.bf16.mxu0 (!%p192_p2), %vm501_vm0, %v500_v1  ;;  %v317_v3 = vld [vmem:[%s578_s2] sm:$0xf] (!%p192_p2)  ;;  %v490_v5 = vld [vmem:[%s577_s1 + $0x10] sm:$0xff] (!%p192_p2)   ;;  %v491_v6 = vld [vmem:[%s577_s1 + $0x18] sm:$0xff] (!%p192_p2)   ;;  %vm271_vm1 = vcmask (!%p192_p2), 523264  }
   0x7   : > { %465 = vmatpush3.bf16.msra.mxu0 (!%p192_p2), %v488_v0  ;;  %487 = vset.pattern.permute.xlu0 (!%p192_p2), %v502_v4  ;;  %vm324_vm2 = vcmask (!%p192_p2), 1043456  }
   0x8   : > { %466 = vmatprep.subr.bf16.mxu0 (!%p192_p2), %v500_v1  ;;  %320 = vperm.xlu0 (!%p192_p2), %487, %v317_v3  }
   0xb   : > { %467 = vmatpush3.bf16.msra.mxu0 (!%p192_p2), %v489_v2 }
   0xc   : > { %468 = vmatprep.subr.bf16.mxu0 (!%p192_p2), %v500_v1 }
   0xd   : > { %s583_s19 = smov (!%p223_p3, %s445_s19), 1 }
   0xe   : > { %s450_s28 = sshll.u32 %s583_s19, 1  ;;  %s233_s14 = scalar_lea.vmem %s580_s4, %s583_s19 }
   0xf   : > { %469 = vmatpush3.bf16.msra.mxu0 %v490_v5  ;;  %s226_s8 = scalar_lea.vmem %s576_s0, %s450_s28  ;;  %s230_s11 = scalar_lea.vmem %s579_s3, %s450_s28 }
  0x10   : > { %470 = vmatprep.subr.bf16.mxu0 %v500_v1  ;;  %v238_v7 = vld [vmem:[%s226_s8] sm:$0x3]  ;;  %s236_s17 = scalar_lea.vmem %s581_s5, %s583_s19 }
  0x13   : > { %471 = vmatpush3.bf16.msra.mxu0 %v491_v6 }
  0x16   : > { %473 = vmatmul.mubr.msk.bf16.vlgmr.msra.gmra.mrb[0].mxu0 %vm271_vm1, %v238_v7 }
  0x87   : > { %v321_v8 = vpop.permute.xlu0 %320 }
  0xe9   : > { %v309_v9 = vpop.f32.mrb[0].mxu0 }
  0xea   : > { %v315_v10 = vpack.c.bf16 %v309_v9, %v309_v9  ;;  %v323_v11 = vmul.f32 %v321_v8, %v309_v9  ;;  %v474_v12 = vpop.f32.mrb[1].mxu0 }
  0xeb   : > { %v312_v13 = vpop.f32.mrb[2].mxu0 }
  0xec   : > { %316 = vst [vmem:[%s230_s11] sm:$0x3] %v315_v10  ;;  %v325_v14 = vsel %vm324_vm2, %v323_v11, 0.0  ;;  %v333_v15 = vmul.f32 %v323_v11, %v323_v11  ;;  %v475_v16 = vpop.f32.mrb[3].mxu0 }
  0xed   : > { %v326_v17 = vrot.slane %v325_v14, 4 }
  0xee   : > { %v334_v18 = vsel %vm324_vm2, %v333_v15, 0.0 }
  0xef   : > { %v327_v19 = vadd.f32 %v326_v17, %v325_v14  ;;  %v335_v20 = vrot.slane %v334_v18, 4 }
  0xf1   : > { %v328_v21 = vrot.slane %v327_v19, 2  ;;  %v336_v22 = vadd.f32 %v335_v20, %v334_v18 }
  0xf3   : > { %v329_v23 = vadd.f32 %v328_v21, %v327_v19  ;;  %v337_v24 = vrot.slane %v336_v22, 2 }
  0xf5   : > { %v330_v25 = vrot.slane %v329_v23, 1  ;;  %v338_v26 = vadd.f32 %v337_v24, %v336_v22 }
  0xf7   : > { %v331_v27 = vadd.f32 %v330_v25, %v329_v23  ;;  %v339_v28 = vrot.slane %v338_v26, 1 }
  0xf9   : > { %332 = vst [vmem:[%s233_s14] sm:$0x1] %v331_v27  ;;  %v340_v29 = vadd.f32 %v339_v28, %v338_v26 }
  0xfb   : > { %341 = vst [vmem:[%s236_s17] sm:$0x1] %v340_v29 }
  0xfc PF: > { %s16_s18 = sadd.s32 1, %s498_s18  }
  0xfd   : > { %p13_p4 = scmp.ge.s32.totalorder %s16_s18, 4  }
  0xff   :  { %15 = sbr.rel (!%p13_p4) target bundleno = 1 (0x1), region = 86 }

// kernel: _forward.60
= control target key start
LH: loop header
LB: loop body
LE: loop exit
PB: predicated region body
PF: predicated region fallthrough
CT: control target
= control target key end

     0   :  { %s87_s0 = inlined_call_operand.vmem [shape: bf16[8,128], index: 0, kind: input, shape index: {}]   ;;  %s88_s1 = inlined_call_operand.vmem [shape: f32[1,128], index: 1, kind: input, shape index: {}]   ;;  %s89_s2 = inlined_call_operand.vmem [shape: f32[1,128], index: 2, kind: input, shape index: {}]   ;;  %s90_s3 = inlined_call_operand.vmem [shape: bf16[8,128], index: 3, kind: input, shape index: {}]   ;;  %s91_s4 = inlined_call_operand.vmem [shape: bf16[8,128], index: 4, kind: output, shape index: {}]  }
   0x1   :  { %v17_v0 = vld [vmem:[%s87_s0] sm:$0xf] }
   0x2   :  { %v45_v1 = vld [vmem:[%s88_s1] ss:$0 sm:$0xff]  ;;  %v18_v2 = vunpack.c.l.bf16 %v17_v0 }
   0x3   :  { %v35_v3 = vld [vmem:[%s90_s3] sm:$0xf] }
   0x4   :  { %v46_v4 = vld [vmem:[%s89_s2] ss:$0 sm:$0xff]  ;;  %v26_v5 = vmul.f32 %v45_v1, %v18_v2  ;;  %v36_v6 = vunpack.c.l.bf16 %v35_v3 }
   0x6   :  { %v34_v7 = vadd.f32 %v46_v4, %v26_v5 }
   0x8   :  { %v37_v8 = vadd.f32 %v36_v6, %v34_v7 }
   0xa   :  { %v38_v9 = vmax.f32 %v37_v8, 0.0 }
   0xc   :  { %v39_v10 = vpack.c.bf16 %v38_v9, %v38_v9 }
   0xe   :  { %40 = vst [vmem:[%s91_s4] sm:$0xf] %v39_v10 }

// kernel: tile.13
= control target key start
LH: loop header
LB: loop body
LE: loop exit
PB: predicated region body
PF: predicated region fallthrough
CT: control target
= control target key end

     0   :  { %s22_s0 = inlined_call_operand.vmem [shape: f32[128], index: 0, kind: input, shape index: {}]   ;;  %s23_s1 = inlined_call_operand.vmem [shape: f32[4,128], index: 1, kind: output, shape index: {}]  }
   0x1   :  { %v4_v0 = vld [vmem:[%s22_s0] ss:$0 sm:$0xff] }
   0x2   :  { %5 = vst [vmem:[%s23_s1] sm:$0xf] %v4_v0 }

// kernel: _forward.56
= control target key start
LH: loop header
LB: loop body
LE: loop exit
PB: predicated region body
PF: predicated region fallthrough
CT: control target
= control target key end

     0   :  { %s127_s0 = inlined_call_operand.vmem [shape: bf16[8,128], index: 0, kind: input, shape index: {}]   ;;  %s128_s1 = inlined_call_operand.vmem [shape: f32[1,128], index: 1, kind: input, shape index: {}]   ;;  %s129_s2 = inlined_call_operand.vmem [shape: f32[1,128], index: 2, kind: input, shape index: {}]   ;;  %s130_s3 = inlined_call_operand.vmem [shape: bf16[8,128], index: 3, kind: input, shape index: {}]   ;;  %s131_s4 = inlined_call_operand.vmem [shape: f32[1,128], index: 4, kind: input, shape index: {}]   ;;  %s132_s5 = inlined_call_operand.vmem [shape: f32[1,128], index: 5, kind: input, shape index: {}]   ;;  %s133_s6 = inlined_call_operand.vmem [shape: bf16[8,128], index: 6, kind: output, shape index: {}]  }
   0x1   :  { %v23_v0 = vld [vmem:[%s127_s0] sm:$0xf] }
   0x2   :  { %v67_v1 = vld [vmem:[%s128_s1] ss:$0 sm:$0xff]  ;;  %v24_v2 = vunpack.c.l.bf16 %v23_v0 }
   0x3   :  { %v41_v3 = vld [vmem:[%s130_s3] sm:$0xf] }
   0x4   :  { %v69_v4 = vld [vmem:[%s131_s4] ss:$0 sm:$0xff]  ;;  %v42_v6 = vunpack.c.l.bf16 %v41_v3  ;;  %v32_v7 = vmul.f32 %v67_v1, %v24_v2 }
   0x5   :  { %v68_v5 = vld [vmem:[%s129_s2] ss:$0 sm:$0xff] }
   0x6   :  { %v70_v8 = vld [vmem:[%s132_s5] ss:$0 sm:$0xff]  ;;  %v50_v9 = vmul.f32 %v69_v4, %v42_v6  ;;  %v40_v10 = vadd.f32 %v68_v5, %v32_v7 }
   0x8   :  { %v58_v11 = vadd.f32 %v70_v8, %v50_v9 }
   0xa   :  { %v59_v12 = vadd.f32 %v58_v11, %v40_v10 }
   0xc   :  { %v60_v13 = vmax.f32 %v59_v12, 0.0 }
   0xe   :  { %v61_v14 = vpack.c.bf16 %v60_v13, %v60_v13 }
  0x10   :  { %62 = vst [vmem:[%s133_s6] sm:$0xf] %v61_v14 }

// kernel: _forward.69
= control target key start
LH: loop header
LB: loop body
LE: loop exit
PB: predicated region body
PF: predicated region fallthrough
CT: control target
= control target key end

     0   :  { %s1004_s21 = smov 0   ;;  %s1156_s0 = inlined_call_operand.vmem [shape: bf16[2,4,128], index: 0, kind: input, shape index: {}]   ;;  %s1157_s1 = inlined_call_operand.vmem [shape: bf16[1,128,512], index: 1, kind: input, shape index: {}]   ;;  %s1158_s2 = inlined_call_operand.vmem [shape: f32[1,512], index: 2, kind: input, shape index: {}]   ;;  %s1159_s3 = inlined_call_operand.vmem [shape: f32[4,1], index: 3, kind: input, shape index: {}]   ;;  %s1160_s4 = inlined_call_operand.vmem [shape: bf16[2,4,512], index: 4, kind: output, shape index: {0}]   ;;  %s1161_s5 = inlined_call_operand.vmem [shape: f32[2,1,512], index: 5, kind: output, shape index: {1}]   ;;  %s1162_s6 = inlined_call_operand.vmem [shape: f32[2,1,512], index: 6, kind: output, shape index: {2}]  }
   0x1 LB: > { %s851_s22 = sadd.s32 4294967295, %s964_s21   ;;  %p855_p0 = scmp.ge.s32.totalorder %s964_s21, 1  ;;  %s964_s21 = sphi %s1004_s21, %s17_s21  }
   0x2   : > { %p216_p1 = scmp.lt.s32.totalorder %s964_s21, 3 }
   0x4   : > { %p217_p2 = pnand %p855_p0, %p216_p1 }
   0x5   : > { %v910_v0 = vld [vmem:[%s1157_s1 + $0x4] ss:$16 sps:$4 sm:$0xff] (!%p217_p2)   ;;  %v912_v1 = vld [vmem:[%s1157_s1 + $0xc] ss:$16 sps:$4 sm:$0xff] (!%p217_p2)   ;;  %v966_v2 = vmov (!%p217_p2), 0   ;;  %p253_p3 = scmp.lt.s32.totalorder (!%p217_p2), %s851_s22, 1  ;;  %v306_v35 = vlaneseq (!%p217_p2) }
   0x6   : > { %220 = sbr.rel (%p217_p2) target bundleno = 287 (0x11f), region = 36  ;;  %518 = vmatprep.mubr.bf16.mxu0 (!%p217_p2), %v966_v2  ;;  %559 = vmatprep.mubr.bf16.mxu1 (!%p217_p2), %v966_v2  ;;  %v914_v3 = vld [vmem:[%s1157_s1] ss:$16 sps:$4 sm:$0xff] (!%p217_p2)   ;;  %v915_v4 = vld [vmem:[%s1157_s1 + $0x8] ss:$16 sps:$4 sm:$0xff] (!%p217_p2)   ;;  %vm609_vm0 = vcmask (!%p217_p2), 1043456  }
   0x7   : > { %486 = vmatprep.subr.bf16.mxu0 (!%p217_p2), %v910_v0  ;;  %909 = vset.pattern.permute.xlu0 (!%p217_p2), %v966_v2  ;;  %v916_v5 = vld [vmem:[%s1157_s1 + $0x24] ss:$16 sps:$4 sm:$0xff] (!%p217_p2)   ;;  %v918_v6 = vld [vmem:[%s1157_s1 + $0x2c] ss:$16 sps:$4 sm:$0xff] (!%p217_p2)   ;;  %v920_v7 = vld [vmem:[%s1157_s1 + $0x20] ss:$16 sps:$4 sm:$0xff] (!%p217_p2)  }
   0x8   : > { %527 = vmatprep.subr.bf16.mxu1 (!%p217_p2), %v912_v1  ;;  %487 = vmatpush1.bf16.msra.mxu0 (!%p217_p2), %v914_v3  ;;  %v921_v8 = vld [vmem:[%s1157_s1 + $0x28] ss:$16 sps:$4 sm:$0xff] (!%p217_p2)   ;;  %v922_v9 = vld [vmem:[%s1157_s1 + $0x44] ss:$16 sps:$4 sm:$0xff] (!%p217_p2)   ;;  %v924_v10 = vld [vmem:[%s1157_s1 + $0x4c] ss:$16 sps:$4 sm:$0xff] (!%p217_p2)  }
   0x9   : > { %528 = vmatpush1.bf16.msra.mxu1 (!%p217_p2), %v915_v4  ;;  %488 = vmatprep.subr.bf16.mxu0 (!%p217_p2), %v916_v5  ;;  %v926_v11 = vld [vmem:[%s1157_s1 + $0x40] ss:$16 sps:$4 sm:$0xff] (!%p217_p2)   ;;  %v927_v12 = vld [vmem:[%s1157_s1 + $0x48] ss:$16 sps:$4 sm:$0xff] (!%p217_p2)   ;;  %v928_v13 = vld [vmem:[%s1157_s1 + $0x64] ss:$16 sps:$4 sm:$0xff] (!%p217_p2)  }
   0xa   : > { %529 = vmatprep.subr.bf16.mxu1 (!%p217_p2), %v918_v6  ;;  %v930_v14 = vld [vmem:[%s1157_s1 + $0x6c] ss:$16 sps:$4 sm:$0xff] (!%p217_p2)   ;;  %v932_v15 = vld [vmem:[%s1157_s1 + $0x60] ss:$16 sps:$4 sm:$0xff] (!%p217_p2)   ;;  %v933_v16 = vld [vmem:[%s1157_s1 + $0x68] ss:$16 sps:$4 sm:$0xff] (!%p217_p2)  }
   0xb   : > { %v934_v17 = vld [vmem:[%s1157_s1 + $0x84] ss:$16 sps:$4 sm:$0xff] (!%p217_p2)   ;;  %v936_v18 = vld [vmem:[%s1157_s1 + $0x8c] ss:$16 sps:$4 sm:$0xff] (!%p217_p2)   ;;  %v938_v19 = vld [vmem:[%s1157_s1 + $0x80] ss:$16 sps:$4 sm:$0xff] (!%p217_p2)  }
   0xc   : > { %489 = vmatpush1.bf16.msra.mxu0 (!%p217_p2), %v920_v7  ;;  %v939_v20 = vld [vmem:[%s1157_s1 + $0x88] ss:$16 sps:$4 sm:$0xff] (!%p217_p2)   ;;  %v940_v21 = vld [vmem:[%s1157_s1 + $0xa4] ss:$16 sps:$4 sm:$0xff] (!%p217_p2)   ;;  %v942_v22 = vld [vmem:[%s1157_s1 + $0xac] ss:$16 sps:$4 sm:$0xff] (!%p217_p2)  }
   0xd   : > { %530 = vmatpush1.bf16.msra.mxu1 %v921_v8  ;;  %490 = vmatprep.subr.bf16.mxu0 %v922_v9  ;;  %v944_v23 = vld [vmem:[%s1157_s1 + $0xa0] ss:$16 sps:$4 sm:$0xff]   ;;  %v945_v24 = vld [vmem:[%s1157_s1 + $0xa8] ss:$16 sps:$4 sm:$0xff]   ;;  %v946_v25 = vld [vmem:[%s1157_s1 + $0xc4] ss:$16 sps:$4 sm:$0xff]  }
   0xe   : > { %531 = vmatprep.subr.bf16.mxu1 %v924_v10  ;;  %v948_v26 = vld [vmem:[%s1157_s1 + $0xcc] ss:$16 sps:$4 sm:$0xff]   ;;  %v599_v27 = vld [vmem:[%s1159_s3] sm:$0xf]  ;;  %s1164_s22 = smov (!%p253_p3, %s851_s22), 1  ;;  %v307_v36 = vshrl.u32 %v306_v35, 7 }
   0xf   : > { %602 = vperm.xlu0 %909, %v599_v27   ;;  %v950_v28 = vld [vmem:[%s1157_s1 + $0xc0] ss:$16 sps:$4 sm:$0xff]   ;;  %v951_v29 = vld [vmem:[%s1157_s1 + $0xc8] ss:$16 sps:$4 sm:$0xff]   ;;  %v952_v30 = vld [vmem:[%s1157_s1 + $0xe4] ss:$16 sps:$4 sm:$0xff]  }
  0x10   : > { %491 = vmatpush1.bf16.msra.mxu0 %v926_v11  ;;  %v954_v31 = vld [vmem:[%s1157_s1 + $0xec] ss:$16 sps:$4 sm:$0xff]   ;;  %s856_s17 = sshll.u32 %s1164_s22, 1  ;;  %v956_v32 = vld [vmem:[%s1157_s1 + $0xe0] ss:$16 sps:$4 sm:$0xff]   ;;  %v308_v37 = vsub.s32 0, %v307_v36 }
  0x11   : > { %532 = vmatpush1.bf16.msra.mxu1 %v927_v12  ;;  %492 = vmatprep.subr.bf16.mxu0 %v928_v13  ;;  %v957_v33 = vld [vmem:[%s1157_s1 + $0xe8] ss:$16 sps:$4 sm:$0xff]   ;;  %s256_s26 = scalar_lea.vmem %s1156_s0, %s856_s17  ;;  %v316_v38 = vsub.s32 2, %v307_v36  ;;  %v304_v39 = vld [vmem:[%s1158_s2] sm:$0xf]  ;;  %v312_v40 = vsub.s32 1, %v307_v36 }
  0x12   : > { %533 = vmatprep.subr.bf16.mxu1 %v930_v14  ;;  %v271_v34 = vld [vmem:[%s256_s26] sm:$0x3]  ;;  %v320_v41 = vsub.s32 3, %v307_v36  ;;  %v967_v42 = vmov 1983009808   ;;  %v309_v44 = vrot.slane %v304_v39, %v308_v37  ;;  %s897_s29 = sshll.u32 %s1164_s22, 3 }
  0x13   : > { %v583_v43 = vunpack.c.l.s4 %v967_v42  ;;  %v317_v45 = vrot.slane %v304_v39, %v316_v38  ;;  %v968_v46 = vmov 1966171168   ;;  %v313_v48 = vrot.slane %v304_v39, %v312_v40  ;;  %s261_s8 = scalar_lea.vmem %s1160_s4, %s897_s29  ;;  %s859_s9 = sshll.u32 %s1164_s22, 2 }
  0x14   : > { %493 = vmatpush1.bf16.msra.mxu0 %v932_v15  ;;  %v645_v47 = vunpack.c.l.s4 %v968_v46  ;;  %v321_v49 = vrot.slane %v304_v39, %v320_v41  ;;  %s265_s12 = scalar_lea.vmem %s1161_s5, %s859_s9  ;;  %vm669_vm1 = vcmp.lt.s32.totalorder %v306_v35, 512  ;;  %s269_s14 = scalar_lea.vmem %s1162_s6, %s859_s9 }
  0x15   : > { %534 = vmatpush1.bf16.msra.mxu1 %v933_v16  ;;  %494 = vmatprep.subr.bf16.mxu0 %v934_v17  ;;  %v584_v53 = vunpack.c.0.s8 %v583_v43 }
  0x16   : > { %535 = vmatprep.subr.bf16.mxu1 %v936_v18  ;;  %v646_v58 = vunpack.c.0.s8 %v645_v47 }
  0x17   : > { %v587_v4 = vsub.s32 %v584_v53, %v307_v36 }
  0x18   : > { %495 = vmatpush1.bf16.msra.mxu0 %v938_v19  ;;  %v1125_v8 = vsub.s32 %v646_v58, %v307_v36 }
  0x19   : > { %536 = vmatpush1.bf16.msra.mxu1 %v939_v20  ;;  %496 = vmatprep.subr.bf16.mxu0 %v940_v21 }
  0x1a   : > { %537 = vmatprep.subr.bf16.mxu1 %v942_v22 }
  0x1c   : > { %497 = vmatpush1.bf16.msra.mxu0 %v944_v23 }
  0x1d   : > { %538 = vmatpush1.bf16.msra.mxu1 %v945_v24  ;;  %498 = vmatprep.subr.bf16.mxu0 %v946_v25 }
  0x1e   : > { %539 = vmatprep.subr.bf16.mxu1 %v948_v26 }
  0x20   : > { %499 = vmatpush1.bf16.msra.mxu0 %v950_v28 }
  0x21   : > { %540 = vmatpush1.bf16.msra.mxu1 %v951_v29  ;;  %500 = vmatprep.subr.bf16.mxu0 %v952_v30 }
  0x22   : > { %541 = vmatprep.subr.bf16.mxu1 %v954_v31 }
  0x24   : > { %501 = vmatpush1.bf16.msra.mxu0 %v956_v32 }
  0x25   : > { %542 = vmatpush1.bf16.msra.mxu1 %v957_v33 }
  0x27   : > { %519 = vmatmul.mubr.bf16.vlgmr.msra.gmra.mrb[0].mxu0 %v271_v34 }
  0x28   : > { %560 = vmatmul.mubr.bf16.vlgmr.msra.gmra.mrb[0].mxu1 %v271_v34 }
  0x8e   : > { %v603_v50 = vpop.permute.xlu0 %602 }
  0xfa   : > { %v520_v51 = vpop.f32.mrb[0].mxu0 }
  0xfb   : > { %v561_v52 = vpop.f32.mrb[0].mxu1  ;;  %v521_v54 = vadd.f32 %v520_v51, %v309_v44  ;;  %v522_v56 = vpop.f32.mrb[1].mxu0 }
  0xfc   : > { %v562_v55 = vadd.f32 %v561_v52, %v317_v45  ;;  %v563_v57 = vpop.f32.mrb[1].mxu1  ;;  %v523_v59 = vadd.f32 %v522_v56, %v313_v48  ;;  %v524_v61 = vpop.f32.mrb[2].mxu0 }
  0xfd   : > { %v564_v60 = vadd.f32 %v563_v57, %v321_v49  ;;  %v565_v62 = vpop.f32.mrb[2].mxu1  ;;  %v568_v63 = vmax.f32 %v521_v54, 0.0  ;;  %v525_v1 = vpop.f32.mrb[3].mxu0 }
  0xfe   : > { %v570_v0 = vmax.f32 %v562_v55, 0.0  ;;  %v566_v2 = vpop.f32.mrb[3].mxu1  ;;  %v569_v3 = vmax.f32 %v523_v59, 0.0 }
  0xff   : > { %v571_v5 = vmax.f32 %v564_v60, 0.0  ;;  %v605_v6 = vmul.f32 %v603_v50, %v568_v63 }
 0x100   : > { %v607_v7 = vmul.f32 %v603_v50, %v570_v0  ;;  %v893_v9 = vpack.c.bf16 %v569_v3, %v568_v63  ;;  %v606_v11 = vmul.f32 %v603_v50, %v569_v3 }
 0x101   : > { %v894_v10 = vpack.c.bf16 %v571_v5, %v570_v0  ;;  %v608_v12 = vmul.f32 %v603_v50, %v571_v5  ;;  %v610_v13 = vsel %vm609_vm0, %v605_v6, 0.0  ;;  %v672_v15 = vmul.f32 %v605_v6, %v605_v6 }
 0x102   : > { %v624_v14 = vsel %vm609_vm0, %v607_v7, 0.0  ;;  %v674_v16 = vmul.f32 %v607_v7, %v607_v7  ;;  %v588_v17 = vrot.slane %v893_v9, %v587_v4  ;;  %v611_v19 = vrot.slane %v610_v13, 4 }
 0x103   : > { %v595_v18 = vrot.slane %v894_v10, %v587_v4  ;;  %v617_v20 = vsel %vm609_vm0, %v606_v11, 0.0  ;;  %v625_v22 = vrot.slane %v624_v14, 4  ;;  %v631_v23 = vsel %vm609_vm0, %v608_v12, 0.0 }
 0x104   : > { %v618_v21 = vrot.slane %v617_v20, 4  ;;  %v673_v24 = vmul.f32 %v606_v11, %v606_v11  ;;  %v612_v26 = vadd.f32 %v611_v19, %v610_v13  ;;  %v632_v27 = vrot.slane %v631_v23, 4 }
 0x105   : > { %v596_v25 = vcombine.low %v588_v17, %v595_v18  ;;  %v675_v28 = vmul.f32 %v608_v12, %v608_v12  ;;  %v626_v30 = vadd.f32 %v625_v22, %v624_v14  ;;  %v676_v31 = vsel %vm609_vm0, %v672_v15, 0.0 }
 0x106   : > { %v619_v29 = vadd.f32 %v618_v21, %v617_v20  ;;  %v683_v32 = vsel %vm609_vm0, %v673_v24, 0.0  ;;  %v613_v33 = vrot.slane %v612_v26, 2  ;;  %v633_v34 = vadd.f32 %v632_v27, %v631_v23 }
 0x107   : > { %598 = vst [vmem:[%s261_s8] sm:$0xff] %v596_v25  ;;  %v677_v36 = vrot.slane %v676_v31, 4  ;;  %v684_v37 = vrot.slane %v683_v32, 4  ;;  %v627_v39 = vrot.slane %v626_v30, 2  ;;  %v690_v40 = vsel %vm609_vm0, %v674_v16, 0.0 }
 0x108   : > { %v620_v38 = vrot.slane %v619_v29, 2  ;;  %v697_v41 = vsel %vm609_vm0, %v675_v28, 0.0  ;;  %v614_v42 = vadd.f32 %v613_v33, %v612_v26  ;;  %v634_v43 = vrot.slane %v633_v34, 2 }
 0x109   : > { %v678_v44 = vadd.f32 %v677_v36, %v676_v31  ;;  %v685_v45 = vadd.f32 %v684_v37, %v683_v32  ;;  %v628_v47 = vadd.f32 %v627_v39, %v626_v30  ;;  %v691_v48 = vrot.slane %v690_v40, 4 }
 0x10a   : > { %v621_v46 = vadd.f32 %v620_v38, %v619_v29  ;;  %v698_v49 = vrot.slane %v697_v41, 4  ;;  %v615_v50 = vrot.slane %v614_v42, 1  ;;  %v635_v51 = vadd.f32 %v634_v43, %v633_v34 }
 0x10b   : > { %v679_v52 = vrot.slane %v678_v44, 2  ;;  %v686_v53 = vrot.slane %v685_v45, 2  ;;  %v629_v55 = vrot.slane %v628_v47, 1  ;;  %v692_v56 = vadd.f32 %v691_v48, %v690_v40 }
 0x10c   : > { %v622_v54 = vrot.slane %v621_v46, 1  ;;  %v699_v57 = vadd.f32 %v698_v49, %v697_v41  ;;  %v616_v58 = vadd.f32 %v615_v50, %v614_v42  ;;  %v636_v59 = vrot.slane %v635_v51, 1 }
 0x10d   : > { %v680_v60 = vadd.f32 %v679_v52, %v678_v44  ;;  %v687_v61 = vadd.f32 %v686_v53, %v685_v45  ;;  %v630_v63 = vadd.f32 %v629_v55, %v628_v47  ;;  %v693_v0 = vrot.slane %v692_v56, 2 }
 0x10e   : > { %v623_v62 = vadd.f32 %v622_v54, %v621_v46  ;;  %v700_v1 = vrot.slane %v699_v57, 2  ;;  %v637_v2 = vadd.f32 %v636_v59, %v635_v51 }
 0x10f   : > { %v681_v3 = vrot.slane %v680_v60, 1  ;;  %v688_v4 = vrot.slane %v687_v61, 1  ;;  %v694_v6 = vadd.f32 %v693_v0, %v692_v56 }
 0x110   : > { %v642_v5 = vcombine.low %v616_v58, %v623_v62  ;;  %v701_v7 = vadd.f32 %v700_v1, %v699_v57  ;;  %v643_v9 = vcombine.low %v630_v63, %v637_v2 }
 0x111   : > { %v682_v10 = vadd.f32 %v681_v3, %v680_v60  ;;  %v689_v11 = vadd.f32 %v688_v4, %v687_v61  ;;  %v695_v13 = vrot.slane %v694_v6, 1 }
 0x112   : > { %v650_v12 = vrot.slane %v642_v5, %v1125_v8  ;;  %v702_v14 = vrot.slane %v701_v7, 1  ;;  %v657_v15 = vrot.slane %v643_v9, %v1125_v8 }
 0x113   : > { %v708_v16 = vcombine.low %v682_v10, %v689_v11  ;;  %v696_v17 = vadd.f32 %v695_v13, %v694_v6 }
 0x114   : > { %v703_v18 = vadd.f32 %v702_v14, %v701_v7  ;;  %v658_v19 = vcombine.low %v650_v12, %v657_v15 }
 0x115   : > { %v716_v21 = vrot.slane %v708_v16, %v1125_v8 }
 0x116   : > { %v709_v20 = vcombine.low %v696_v17, %v703_v18  ;;  %v665_v22 = vrot.slane %v658_v19, %v1125_v8 }
 0x118   : > { %v723_v23 = vrot.slane %v709_v20, %v1125_v8  ;;  %671 = vst.msk [vmem:[%s265_s12] sm:$0xf] %vm669_vm1, %v665_v22 }
 0x11a   : > { %v724_v24 = vcombine.low %v716_v21, %v723_v23 }
 0x11c   : > { %v731_v25 = vrot.slane %v724_v24, %v1125_v8 }
 0x11e   : > { %733 = vst.msk [vmem:[%s269_s14] sm:$0xf] %vm669_vm1, %v731_v25 }
 0x11f PF: > { %s17_s21 = sadd.s32 1, %s964_s21  }
 0x120   : > { %p14_p4 = scmp.ge.s32.totalorder %s17_s21, 4  }
 0x122   :  { %16 = sbr.rel (!%p14_p4) target bundleno = 1 (0x1), region = 90 }

// kernel: _forward.70
= control target key start
LH: loop header
LB: loop body
LE: loop exit
PB: predicated region body
PF: predicated region fallthrough
CT: control target
= control target key end

     0   :  { %s619_s21 = smov 0   ;;  %s668_s0 = inlined_call_operand.vmem [shape: bf16[2,16,64], index: 0, kind: input, shape index: {}]   ;;  %s669_s1 = inlined_call_operand.vmem [shape: bf16[1,64,128], index: 1, kind: input, shape index: {}]   ;;  %s670_s2 = inlined_call_operand.vmem [shape: f32[1,128], index: 2, kind: input, shape index: {}]   ;;  %s671_s3 = inlined_call_operand.vmem [shape: f32[16,1], index: 3, kind: input, shape index: {}]   ;;  %s672_s4 = inlined_call_operand.vmem [shape: bf16[2,16,128], index: 4, kind: output, shape index: {0}]   ;;  %s673_s5 = inlined_call_operand.vmem [shape: f32[2,1,128], index: 5, kind: output, shape index: {1}]   ;;  %s674_s6 = inlined_call_operand.vmem [shape: f32[2,1,128], index: 6, kind: output, shape index: {2}]  }
   0x1 LB: > { %s510_s22 = sadd.s32 4294967295, %s579_s21   ;;  %p514_p0 = scmp.ge.s32.totalorder %s579_s21, 1  ;;  %s579_s21 = sphi %s619_s21, %s17_s21  }
   0x2   : > { %p217_p1 = scmp.lt.s32.totalorder %s579_s21, 3 }
   0x4   : > { %p218_p2 = pnand %p514_p0, %p217_p1 }
   0x5   : > { %v568_v0 = vld [vmem:[%s669_s1] sm:$0xff] (!%p218_p2)   ;;  %v581_v1 = vmov (!%p218_p2), 0.0   ;;  %v569_v2 = vld [vmem:[%s669_s1 + $0x8] sm:$0xff] (!%p218_p2)   ;;  %vm582_vm0 = vmmov (!%p218_p2), 0   ;;  %p253_p3 = scmp.lt.s32.totalorder (!%p218_p2), %s510_s22, 1  ;;  %v583_v4 = vmov (!%p218_p2), 0  }
   0x6   : > { %221 = sbr.rel (%p218_p2) target bundleno = 259 (0x103), region = 36  ;;  %544 = vmatprep.subr.bf16.mxu0 (!%p218_p2), %v581_v1  ;;  %552 = vmatprep.mubr.msk.bf16.mxu0 (!%p218_p2), %vm582_vm0, %v581_v1  ;;  %v373_v3 = vld [vmem:[%s671_s3] sm:$0xff] (!%p218_p2)  ;;  %v570_v5 = vld [vmem:[%s669_s1 + $0x10] sm:$0xff] (!%p218_p2)   ;;  %v374_v6 = vld [vmem:[%s671_s3 + $0x8] sm:$0xff] (!%p218_p2)  ;;  %vm316_vm1 = vcmask (!%p218_p2), 523264  }
   0x7   : > { %545 = vmatpush3.bf16.msra.mxu0 (!%p218_p2), %v568_v0  ;;  %567 = vset.pattern.permute.xlu0 (!%p218_p2), %v583_v4  ;;  %v571_v7 = vld [vmem:[%s669_s1 + $0x18] sm:$0xff] (!%p218_p2)   ;;  %v519_v9 = vld [vmem:[%s670_s2] ss:$0 sm:$0xff] (!%p218_p2) }
   0x8   : > { %546 = vmatprep.subr.bf16.mxu0 (!%p218_p2), %v581_v1  ;;  %377 = vperm.xlu0 (!%p218_p2), %567, %v373_v3  }
   0xb   : > { %547 = vmatpush3.bf16.msra.mxu0 (!%p218_p2), %v569_v2 }
   0xc   : > { %548 = vmatprep.subr.bf16.mxu0 (!%p218_p2), %v581_v1  ;;  %382 = vperm.xlu0 (!%p218_p2), %567, %v374_v6  }
   0xd   : > { %s676_s22 = smov (!%p253_p3, %s510_s22), 1 }
   0xe   : > { %s530_s7 = sshll.u32 %s676_s22, 3  ;;  %s265_s24 = scalar_lea.vmem %s673_s5, %s676_s22 }
   0xf   : > { %s257_s10 = scalar_lea.vmem %s668_s0, %s530_s7  ;;  %549 = vmatpush3.bf16.msra.mxu0 %v570_v5  ;;  %s262_s19 = scalar_lea.vmem %s672_s4, %s530_s7 }
  0x10   : > { %550 = vmatprep.subr.bf16.mxu0 %v581_v1  ;;  %v572_v8 = vld [vmem:[%s257_s10] sm:$0xff]   ;;  %s268_s27 = scalar_lea.vmem %s674_s6, %s676_s22 }
  0x13   : > { %551 = vmatpush3.bf16.msra.mxu0 %v571_v7 }
  0x16   : > { %553 = vmatmul.mubr.msk.bf16.vlgmr.msra.gmra.mrb[0].mxu0 %vm316_vm1, %v572_v8 }
  0x87   : > { %v378_v10 = vpop.permute.xlu0 %377 }
  0x8b   : > { %v383_v20 = vpop.permute.xlu0 %382 }
  0xe9   : > { %v354_v11 = vpop.f32.mrb[0].mxu0 }
  0xea   : > { %v355_v12 = vadd.f32 %v519_v9, %v354_v11  ;;  %v554_v13 = vpop.f32.mrb[1].mxu0 }
  0xeb   : > { %v357_v14 = vpop.f32.mrb[2].mxu0 }
  0xec   : > { %v361_v15 = vmax.f32 %v355_v12, 0.0  ;;  %v358_v16 = vadd.f32 %v519_v9, %v357_v14  ;;  %v555_v17 = vpop.f32.mrb[3].mxu0 }
  0xee   : > { %v385_v18 = vmul.f32 %v378_v10, %v361_v15  ;;  %v362_v19 = vmax.f32 %v358_v16, 0.0 }
  0xf0   : > { %v537_v21 = vpack.c.bf16 %v362_v19, %v361_v15  ;;  %v386_v22 = vmul.f32 %v383_v20, %v362_v19  ;;  %v395_v23 = vmul.f32 %v385_v18, %v385_v18 }
  0xf2   : > { %538 = vst [vmem:[%s262_s19] sm:$0xff] %v537_v21   ;;  %v387_v24 = vadd.f32 %v386_v22, %v385_v18  ;;  %v396_v25 = vmul.f32 %v386_v22, %v386_v22 }
  0xf4   : > { %v388_v26 = vrot.slane %v387_v24, 4  ;;  %v397_v27 = vadd.f32 %v396_v25, %v395_v23 }
  0xf6   : > { %v389_v28 = vadd.f32 %v388_v26, %v387_v24  ;;  %v398_v29 = vrot.slane %v397_v27, 4 }
  0xf8   : > { %v390_v30 = vrot.slane %v389_v28, 2  ;;  %v399_v31 = vadd.f32 %v398_v29, %v397_v27 }
  0xfa   : > { %v391_v32 = vadd.f32 %v390_v30, %v389_v28  ;;  %v400_v33 = vrot.slane %v399_v31, 2 }
  0xfc   : > { %v392_v34 = vrot.slane %v391_v32, 1  ;;  %v401_v35 = vadd.f32 %v400_v33, %v399_v31 }
  0xfe   : > { %v393_v36 = vadd.f32 %v392_v34, %v391_v32  ;;  %v402_v37 = vrot.slane %v401_v35, 1 }
 0x100   : > { %394 = vst [vmem:[%s265_s24] sm:$0x1] %v393_v36  ;;  %v403_v38 = vadd.f32 %v402_v37, %v401_v35 }
 0x102   : > { %404 = vst [vmem:[%s268_s27] sm:$0x1] %v403_v38 }
 0x103 PF: > { %s17_s21 = sadd.s32 1, %s579_s21  }
 0x104   : > { %p14_p4 = scmp.ge.s32.totalorder %s17_s21, 4  }
 0x106   :  { %16 = sbr.rel (!%p14_p4) target bundleno = 1 (0x1), region = 90 }

// kernel: tile.18
= control target key start
LH: loop header
LB: loop body
LE: loop exit
PB: predicated region body
PF: predicated region fallthrough
CT: control target
= control target key end

     0   :  { %s22_s0 = inlined_call_operand.vmem [shape: f32[64], index: 0, kind: input, shape index: {}]   ;;  %s23_s1 = inlined_call_operand.vmem [shape: f32[4,64], index: 1, kind: output, shape index: {}]  }
   0x1   :  { %v4_v0 = vld [vmem:[%s22_s0] ss:$0 sm:$0xff] }
   0x2   :  { %5 = vst [vmem:[%s23_s1] sm:$0xf] %v4_v0 }

// kernel: tile.19
= control target key start
LH: loop header
LB: loop body
LE: loop exit
PB: predicated region body
PF: predicated region fallthrough
CT: control target
= control target key end

     0   :  { %s6_s8 = smov 3  ;;  %vm8_vm0 = vcmask 523264   ;;  %s30_s9 = smov 64   ;;  %vm15_vm1 = vcmask 1048064   ;;  %s50_s0 = inlined_call_operand.vmem [shape: f32[4,64], index: 0, kind: input, shape index: {}]   ;;  %s51_s1 = inlined_call_operand.vmem [shape: f32[1,256], index: 1, kind: output, shape index: {}]  }
   0x1   :  { %v4_v0 = vld [vmem:[%s50_s0] sm:$0xf]  ;;  %s11_s0 = smov 3 }
   0x2   :  { %5 = vst [vmem:[#allocation1] sm:$0xf] %v4_v0 }
   0x9   :  { %v12_v1 = vld [vmem:[#allocation1 + $0x1] ss:$2 sm:%s11_s0]   ;;  %v7_v2 = vld [vmem:[#allocation1] ss:$2 sm:%s6_s8]  }
   0xa   :  { %13 = vrot.lane.b32.xlu0 %v12_v1, %s30_s9  ;;  %9 = vst.msk [vmem:[#allocation0] ss:$8 sm:$0x3] %vm8_vm0, %v7_v2  }
  0x7c   :  { %v14_v3 = vpop.permute.xlu0 %13  }
  0x7d   :  { %16 = vst.msk [vmem:[#allocation0] ss:$8 sm:$0x3] %vm15_vm1, %v14_v3  }
  0x84   :  { %v20_v4 = vld [vmem:[#allocation0] sm:$0x1]  ;;  %v24_v5 = vld [vmem:[#allocation0 + $0x8] sm:$0x1] }
  0x85   :  { %22 = vst [vmem:[%s51_s1] sm:$0x1] %v20_v4  ;;  %28 = vst [vmem:[%s51_s1 + $0x1] sm:$0x1] %v24_v5 }

// kernel: _forward.71
= control target key start
LH: loop header
LB: loop body
LE: loop exit
PB: predicated region body
PF: predicated region fallthrough
CT: control target
= control target key end

     0   :  { %v28_v0 = vlaneseq  ;;  %s156_s0 = inlined_call_operand.vmem [shape: bf16[32,256], index: 0, kind: input, shape index: {}]   ;;  %s157_s1 = inlined_call_operand.vmem [shape: f32[1,256], index: 1, kind: input, shape index: {}]   ;;  %s158_s2 = inlined_call_operand.vmem [shape: f32[1,256], index: 2, kind: input, shape index: {}]   ;;  %s159_s3 = inlined_call_operand.vmem [shape: bf16[32,256], index: 3, kind: output, shape index: {}]  }
   0x1   :  { %v14_v1 = vld [vmem:[%s156_s0] sm:$0xff]  ;;  %v15_v3 = vld [vmem:[%s156_s0 + $0x8] sm:$0xff]  ;;  %v16_v4 = vld [vmem:[%s156_s0 + $0x10] sm:$0xff] }
   0x2   :  { %v29_v2 = vshrl.u32 %v28_v0, 7  ;;  %v17_v5 = vld [vmem:[%s156_s0 + $0x18] sm:$0xff]  ;;  %v18_v6 = vunpack.c.l.bf16 %v14_v1  ;;  %v19_v7 = vunpack.c.h.bf16 %v14_v1  ;;  %v26_v8 = vld [vmem:[%s157_s1] sm:$0x3]  ;;  %v20_v12 = vunpack.c.l.bf16 %v15_v3 }
   0x3   :  { %v46_v9 = vld [vmem:[%s158_s2] sm:$0x3]  ;;  %v21_v13 = vunpack.c.h.bf16 %v15_v3  ;;  %v22_v14 = vunpack.c.l.bf16 %v16_v4  ;;  %v23_v15 = vunpack.c.h.bf16 %v16_v4  ;;  %v24_v16 = vunpack.c.l.bf16 %v17_v5 }
   0x4   :  { %v30_v10 = vsub.s32 0, %v29_v2  ;;  %v34_v11 = vsub.s32 1, %v29_v2  ;;  %v25_v17 = vunpack.c.h.bf16 %v17_v5 }
   0x6   :  { %v31_v18 = vrot.slane %v26_v8, %v30_v10  ;;  %v35_v19 = vrot.slane %v26_v8, %v34_v11  ;;  %v51_v20 = vrot.slane %v46_v9, %v30_v10  ;;  %v55_v21 = vrot.slane %v46_v9, %v34_v11 }
   0x8   :  { %v38_v22 = vmul.f32 %v31_v18, %v18_v6  ;;  %v39_v23 = vmul.f32 %v35_v19, %v19_v7  ;;  %v40_v24 = vmul.f32 %v31_v18, %v20_v12  ;;  %v41_v25 = vmul.f32 %v35_v19, %v21_v13 }
   0x9   :  { %v42_v26 = vmul.f32 %v31_v18, %v22_v14  ;;  %v43_v27 = vmul.f32 %v35_v19, %v23_v15  ;;  %v44_v28 = vmul.f32 %v31_v18, %v24_v16  ;;  %v45_v29 = vmul.f32 %v35_v19, %v25_v17 }
   0xa   :  { %v58_v30 = vadd.f32 %v51_v20, %v38_v22  ;;  %v59_v31 = vadd.f32 %v55_v21, %v39_v23  ;;  %v60_v32 = vadd.f32 %v51_v20, %v40_v24  ;;  %v61_v33 = vadd.f32 %v55_v21, %v41_v25 }
   0xb   :  { %v62_v34 = vadd.f32 %v51_v20, %v42_v26  ;;  %v63_v35 = vadd.f32 %v55_v21, %v43_v27  ;;  %v64_v36 = vadd.f32 %v51_v20, %v44_v28  ;;  %v65_v37 = vadd.f32 %v55_v21, %v45_v29 }
   0xc   :  { %v102_v38 = vpack.c.bf16 %v59_v31, %v58_v30  ;;  %v103_v39 = vpack.c.bf16 %v61_v33, %v60_v32 }
   0xd   :  { %v104_v40 = vpack.c.bf16 %v63_v35, %v62_v34  ;;  %v105_v41 = vpack.c.bf16 %v65_v37, %v64_v36 }
   0xe   :  { %90 = vst [vmem:[%s159_s3] sm:$0xff] %v102_v38  ;;  %91 = vst [vmem:[%s159_s3 + $0x8] sm:$0xff] %v103_v39 }
   0xf   :  { %92 = vst [vmem:[%s159_s3 + $0x10] sm:$0xff] %v104_v40  ;;  %93 = vst [vmem:[%s159_s3 + $0x18] sm:$0xff] %v105_v41 }

// kernel: _forward.72
= control target key start
LH: loop header
LB: loop body
LE: loop exit
PB: predicated region body
PF: predicated region fallthrough
CT: control target
= control target key end

     0   :  { %s917_s21 = smov 0   ;;  %s1059_s0 = inlined_call_operand.vmem [shape: bf16[2,16,256], index: 0, kind: input, shape index: {}]   ;;  %s1060_s1 = inlined_call_operand.vmem [shape: bf16[1,256,256], index: 1, kind: input, shape index: {}]   ;;  %s1061_s2 = inlined_call_operand.vmem [shape: f32[1,256], index: 2, kind: input, shape index: {}]   ;;  %s1062_s3 = inlined_call_operand.vmem [shape: f32[16,1], index: 3, kind: input, shape index: {}]   ;;  %s1063_s4 = inlined_call_operand.vmem [shape: bf16[2,16,256], index: 4, kind: output, shape index: {0}]   ;;  %s1064_s5 = inlined_call_operand.vmem [shape: f32[2,1,256], index: 5, kind: output, shape index: {1}]   ;;  %s1065_s6 = inlined_call_operand.vmem [shape: f32[2,1,256], index: 6, kind: output, shape index: {2}]  }
   0x1 LB: > { %s757_s22 = sadd.s32 4294967295, %s878_s21   ;;  %p761_p0 = scmp.ge.s32.totalorder %s878_s21, 1  ;;  %s878_s21 = sphi %s917_s21, %s17_s21  }
   0x2   : > { %p217_p1 = scmp.lt.s32.totalorder %s878_s21, 3 }
   0x4   : > { %p218_p2 = pnand %p761_p0, %p217_p1 }
   0x5   : > { %v821_v0 = vld [vmem:[%s1060_s1 + $0x4] ss:$8 sps:$4 sm:$0xff] (!%p218_p2)   ;;  %v823_v1 = vld [vmem:[%s1060_s1] ss:$8 sps:$4 sm:$0xff] (!%p218_p2)   ;;  %v880_v2 = vmov (!%p218_p2), 0   ;;  %p255_p3 = scmp.lt.s32.totalorder (!%p218_p2), %s757_s22, 1  ;;  %v309_v37 = vlaneseq (!%p218_p2) }
   0x6   : > { %221 = sbr.rel (%p218_p2) target bundleno = 314 (0x13a), region = 36  ;;  %820 = vset.pattern.permute.xlu0 (!%p218_p2), %v880_v2  ;;  %489 = vmatprep.subr.bf16.mxu0 (!%p218_p2), %v821_v0  ;;  %v824_v3 = vld [vmem:[%s1060_s1 + $0x14] ss:$8 sps:$4 sm:$0xff] (!%p218_p2)   ;;  %v826_v4 = vld [vmem:[%s1060_s1 + $0x10] ss:$8 sps:$4 sm:$0xff] (!%p218_p2)   ;;  %v550_v15 = vld [vmem:[%s1062_s3] sm:$0xff] (!%p218_p2) }
   0x7   : > { %490 = vmatpush1.bf16.msra.mxu0 (!%p218_p2), %v823_v1  ;;  %v827_v5 = vld [vmem:[%s1060_s1 + $0x24] ss:$8 sps:$4 sm:$0xff] (!%p218_p2)   ;;  %v829_v6 = vld [vmem:[%s1060_s1 + $0x20] ss:$8 sps:$4 sm:$0xff] (!%p218_p2)   ;;  %v830_v7 = vld [vmem:[%s1060_s1 + $0x34] ss:$8 sps:$4 sm:$0xff] (!%p218_p2)   ;;  %554 = vperm.xlu0 (!%p218_p2), %820, %v550_v15  }
   0x8   : > { %491 = vmatprep.subr.bf16.mxu0 (!%p218_p2), %v824_v3  ;;  %v832_v8 = vld [vmem:[%s1060_s1 + $0x30] ss:$8 sps:$4 sm:$0xff] (!%p218_p2)   ;;  %v833_v9 = vld [vmem:[%s1060_s1 + $0x44] ss:$8 sps:$4 sm:$0xff] (!%p218_p2)   ;;  %v835_v10 = vld [vmem:[%s1060_s1 + $0x40] ss:$8 sps:$4 sm:$0xff] (!%p218_p2)  }
   0x9   : > { %v836_v11 = vld [vmem:[%s1060_s1 + $0x54] ss:$8 sps:$4 sm:$0xff] (!%p218_p2)   ;;  %v838_v12 = vld [vmem:[%s1060_s1 + $0x50] ss:$8 sps:$4 sm:$0xff] (!%p218_p2)   ;;  %v839_v13 = vld [vmem:[%s1060_s1 + $0x64] ss:$8 sps:$4 sm:$0xff] (!%p218_p2)  }
   0xa   : > { %v841_v16 = vld [vmem:[%s1060_s1 + $0x60] ss:$8 sps:$4 sm:$0xff] (!%p218_p2)   ;;  %v842_v17 = vld [vmem:[%s1060_s1 + $0x74] ss:$8 sps:$4 sm:$0xff] (!%p218_p2)   ;;  %v844_v19 = vld [vmem:[%s1060_s1 + $0x70] ss:$8 sps:$4 sm:$0xff] (!%p218_p2)  }
   0xb   : > { %492 = vmatpush1.bf16.msra.mxu0 (!%p218_p2), %v826_v4  ;;  %v551_v18 = vld [vmem:[%s1062_s3 + $0x8] sm:$0xff] (!%p218_p2)  ;;  %v848_v22 = vld [vmem:[%s1060_s1 + $0x94] ss:$8 sps:$4 sm:$0xff] (!%p218_p2)   ;;  %v850_v23 = vld [vmem:[%s1060_s1 + $0x90] ss:$8 sps:$4 sm:$0xff] (!%p218_p2)   ;;  %v310_v38 = vshrl.u32 (!%p218_p2), %v309_v37, 7 }
   0xc   : > { %493 = vmatprep.subr.bf16.mxu0 (!%p218_p2), %v827_v5  ;;  %559 = vperm.xlu0 (!%p218_p2), %820, %v551_v18   ;;  %v845_v20 = vld [vmem:[%s1060_s1 + $0x84] ss:$8 sps:$4 sm:$0xff] (!%p218_p2)   ;;  %v847_v21 = vld [vmem:[%s1060_s1 + $0x80] ss:$8 sps:$4 sm:$0xff] (!%p218_p2)   ;;  %v854_v26 = vld [vmem:[%s1060_s1 + $0xb4] ss:$8 sps:$4 sm:$0xff] (!%p218_p2)  }
   0xd   : > { %s1067_s22 = smov (!%p255_p3, %s757_s22), 1  ;;  %v851_v24 = vld [vmem:[%s1060_s1 + $0xa4] ss:$8 sps:$4 sm:$0xff]   ;;  %v853_v25 = vld [vmem:[%s1060_s1 + $0xa0] ss:$8 sps:$4 sm:$0xff]   ;;  %v311_v39 = vsub.s32 0, %v310_v38 }
   0xe   : > { %s806_s23 = sshll.u32 %s1067_s22, 4  ;;  %v856_v27 = vld [vmem:[%s1060_s1 + $0xb0] ss:$8 sps:$4 sm:$0xff]   ;;  %v857_v28 = vld [vmem:[%s1060_s1 + $0xc4] ss:$8 sps:$4 sm:$0xff]   ;;  %v315_v41 = vsub.s32 1, %v310_v38 }
   0xf   : > { %494 = vmatpush1.bf16.msra.mxu0 %v829_v6  ;;  %s969_s28 = scalar_lea.vmem %s1059_s0, %s806_s23  ;;  %v859_v29 = vld [vmem:[%s1060_s1 + $0xc0] ss:$8 sps:$4 sm:$0xff]   ;;  %v860_v30 = vld [vmem:[%s1060_s1 + $0xd4] ss:$8 sps:$4 sm:$0xff]   ;;  %v862_v31 = vld [vmem:[%s1060_s1 + $0xd0] ss:$8 sps:$4 sm:$0xff]   ;;  %s264_s12 = scalar_lea.vmem %s1063_s4, %s806_s23 }
  0x10   : > { %495 = vmatprep.subr.bf16.mxu0 %v830_v7  ;;  %v871_v14 = vld [vmem:[%s969_s28 + $0x4] ss:$8 sps:$4 sm:$0xff]   ;;  %v865_v33 = vld [vmem:[%s1060_s1 + $0xe0] ss:$8 sps:$4 sm:$0xff]   ;;  %v866_v34 = vld [vmem:[%s1060_s1 + $0xf4] ss:$8 sps:$4 sm:$0xff]  }
  0x11   : > { %521 = vmatprep.mubr.bf16.mxu0 %v871_v14  ;;  %v863_v32 = vld [vmem:[%s1060_s1 + $0xe4] ss:$8 sps:$4 sm:$0xff]   ;;  %v868_v35 = vld [vmem:[%s1060_s1 + $0xf0] ss:$8 sps:$4 sm:$0xff]   ;;  %v869_v36 = vld [vmem:[%s969_s28] ss:$8 sps:$4 sm:$0xff]  }
  0x12   : > { %v307_v40 = vld [vmem:[%s1061_s2] sm:$0x3]  ;;  %s766_s23 = sshll.u32 %s1067_s22, 1  ;;  %vm600_vm0 = vcmp.lt.s32.totalorder %v309_v37, 256 }
  0x13   : > { %496 = vmatpush1.bf16.msra.mxu0 %v832_v8  ;;  %v312_v42 = vrot.slane %v307_v40, %v311_v39  ;;  %v316_v43 = vrot.slane %v307_v40, %v315_v41  ;;  %s268_s15 = scalar_lea.vmem %s1064_s5, %s766_s23  ;;  %s272_s18 = scalar_lea.vmem %s1065_s6, %s766_s23 }
  0x14   : > { %497 = vmatprep.subr.bf16.mxu0 %v833_v9 }
  0x17   : > { %498 = vmatpush1.bf16.msra.mxu0 %v835_v10 }
  0x18   : > { %499 = vmatprep.subr.bf16.mxu0 %v836_v11 }
  0x1b   : > { %500 = vmatpush1.bf16.msra.mxu0 %v838_v12  ;;  %v881_v12 = vmov 1966171168  }
  0x1c   : > { %501 = vmatprep.subr.bf16.mxu0 %v839_v13  ;;  %v584_v13 = vunpack.c.l.s4 %v881_v12 }
  0x1f   : > { %502 = vmatpush1.bf16.msra.mxu0 %v841_v16 }
  0x20   : > { %503 = vmatprep.subr.bf16.mxu0 %v842_v17 }
  0x23   : > { %504 = vmatpush1.bf16.msra.mxu0 %v844_v19 }
  0x24   : > { %505 = vmatprep.subr.bf16.mxu0 %v845_v20 }
  0x27   : > { %506 = vmatpush1.bf16.msra.mxu0 %v847_v21 }
  0x28   : > { %507 = vmatprep.subr.bf16.mxu0 %v848_v22  ;;  %v585_v22 = vunpack.c.0.s8 %v584_v13 }
  0x2b   : > { %508 = vmatpush1.bf16.msra.mxu0 %v850_v23 }
  0x2c   : > { %509 = vmatprep.subr.bf16.mxu0 %v851_v24 }
  0x2f   : > { %510 = vmatpush1.bf16.msra.mxu0 %v853_v25 }
  0x30   : > { %511 = vmatprep.subr.bf16.mxu0 %v854_v26 }
  0x33   : > { %512 = vmatpush1.bf16.msra.mxu0 %v856_v27 }
  0x34   : > { %513 = vmatprep.subr.bf16.mxu0 %v857_v28 }
  0x37   : > { %514 = vmatpush1.bf16.msra.mxu0 %v859_v29 }
  0x38   : > { %515 = vmatprep.subr.bf16.mxu0 %v860_v30 }
  0x3b   : > { %516 = vmatpush1.bf16.msra.mxu0 %v862_v31  ;;  %v588_v31 = vsub.s32 %v585_v22, %v310_v38 }
  0x3c   : > { %517 = vmatprep.subr.bf16.mxu0 %v863_v32 }
  0x3f   : > { %518 = vmatpush1.bf16.msra.mxu0 %v865_v33 }
  0x40   : > { %519 = vmatprep.subr.bf16.mxu0 %v866_v34 }
  0x43   : > { %520 = vmatpush1.bf16.msra.mxu0 %v868_v35 }
  0x46   : > { %522 = vmatmul.mubr.bf16.vlgmr.msra.gmra.mrb[0].mxu0 %v869_v36 }
  0x86   : > { %v555_v44 = vpop.permute.xlu0 %554 }
  0x8b   : > { %v560_v59 = vpop.permute.xlu0 %559 }
 0x119   : > { %v523_v45 = vpop.f32.mrb[0].mxu0 }
 0x11a   : > { %v524_v46 = vadd.f32 %v523_v45, %v312_v42  ;;  %v525_v47 = vpop.f32.mrb[1].mxu0 }
 0x11b   : > { %v526_v48 = vadd.f32 %v525_v47, %v316_v43  ;;  %v527_v49 = vpop.f32.mrb[2].mxu0 }
 0x11c   : > { %v532_v50 = vmax.f32 %v524_v46, 0.0  ;;  %v528_v51 = vadd.f32 %v527_v49, %v312_v42  ;;  %v529_v52 = vpop.f32.mrb[3].mxu0 }
 0x11d   : > { %v533_v53 = vmax.f32 %v526_v48, 0.0  ;;  %v530_v54 = vadd.f32 %v529_v52, %v316_v43 }
 0x11e   : > { %v562_v55 = vmul.f32 %v555_v44, %v532_v50  ;;  %v534_v56 = vmax.f32 %v528_v51, 0.0 }
 0x11f   : > { %v808_v57 = vpack.c.bf16 %v533_v53, %v532_v50  ;;  %v563_v58 = vmul.f32 %v555_v44, %v533_v53  ;;  %v535_v60 = vmax.f32 %v530_v54, 0.0 }
 0x120   : > { %v564_v61 = vmul.f32 %v560_v59, %v534_v56  ;;  %v603_v0 = vmul.f32 %v562_v55, %v562_v55 }
 0x121   : > { %548 = vst [vmem:[%s264_s12] sm:$0xff] %v808_v57  ;;  %v809_v62 = vpack.c.bf16 %v535_v60, %v534_v56  ;;  %v565_v63 = vmul.f32 %v560_v59, %v535_v60  ;;  %v604_v3 = vmul.f32 %v563_v58, %v563_v58 }
 0x122   : > { %v566_v1 = vadd.f32 %v564_v61, %v562_v55  ;;  %v605_v2 = vmul.f32 %v564_v61, %v564_v61 }
 0x123   : > { %549 = vst [vmem:[%s264_s12 + $0x8] sm:$0xff] %v809_v62  ;;  %v573_v4 = vadd.f32 %v565_v63, %v563_v58  ;;  %v606_v5 = vmul.f32 %v565_v63, %v565_v63 }
 0x124   : > { %v567_v6 = vrot.slane %v566_v1, 4  ;;  %v607_v7 = vadd.f32 %v605_v2, %v603_v0 }
 0x125   : > { %v574_v8 = vrot.slane %v573_v4, 4  ;;  %v614_v9 = vadd.f32 %v606_v5, %v604_v3 }
 0x126   : > { %v568_v10 = vadd.f32 %v567_v6, %v566_v1  ;;  %v608_v11 = vrot.slane %v607_v7, 4 }
 0x127   : > { %v575_v14 = vadd.f32 %v574_v8, %v573_v4  ;;  %v615_v15 = vrot.slane %v614_v9, 4 }
 0x128   : > { %v569_v16 = vrot.slane %v568_v10, 2  ;;  %v609_v17 = vadd.f32 %v608_v11, %v607_v7 }
 0x129   : > { %v576_v18 = vrot.slane %v575_v14, 2  ;;  %v616_v19 = vadd.f32 %v615_v15, %v614_v9 }
 0x12a   : > { %v570_v20 = vadd.f32 %v569_v16, %v568_v10  ;;  %v610_v21 = vrot.slane %v609_v17, 2 }
 0x12b   : > { %v577_v23 = vadd.f32 %v576_v18, %v575_v14  ;;  %v617_v24 = vrot.slane %v616_v19, 2 }
 0x12c   : > { %v571_v25 = vrot.slane %v570_v20, 1  ;;  %v611_v26 = vadd.f32 %v610_v21, %v609_v17 }
 0x12d   : > { %v578_v27 = vrot.slane %v577_v23, 1  ;;  %v618_v28 = vadd.f32 %v617_v24, %v616_v19 }
 0x12e   : > { %v572_v29 = vadd.f32 %v571_v25, %v570_v20  ;;  %v612_v30 = vrot.slane %v611_v26, 1 }
 0x12f   : > { %v579_v32 = vadd.f32 %v578_v27, %v577_v23  ;;  %v619_v33 = vrot.slane %v618_v28, 1 }
 0x130   : > { %v613_v34 = vadd.f32 %v612_v30, %v611_v26 }
 0x131   : > { %v582_v35 = vcombine.low %v572_v29, %v579_v32  ;;  %v620_v36 = vadd.f32 %v619_v33, %v618_v28 }
 0x133   : > { %v589_v39 = vrot.slane %v582_v35, %v588_v31  ;;  %v623_v40 = vcombine.low %v613_v34, %v620_v36 }
 0x135   : > { %v596_v41 = vrot.slane %v589_v39, %v588_v31  ;;  %v630_v42 = vrot.slane %v623_v40, %v588_v31 }
 0x137   : > { %602 = vst.msk [vmem:[%s268_s15] sm:$0x3] %vm600_vm0, %v596_v41  ;;  %v637_v38 = vrot.slane %v630_v42, %v588_v31 }
 0x139   : > { %639 = vst.msk [vmem:[%s272_s18] sm:$0x3] %vm600_vm0, %v637_v38 }
 0x13a PF: > { %s17_s21 = sadd.s32 1, %s878_s21  }
 0x13b   : > { %p14_p4 = scmp.ge.s32.totalorder %s17_s21, 4  }
 0x13d   :  { %16 = sbr.rel (!%p14_p4) target bundleno = 1 (0x1), region = 90 }

// kernel: _forward.73
= control target key start
LH: loop header
LB: loop body
LE: loop exit
PB: predicated region body
PF: predicated region fallthrough
CT: control target
= control target key end

     0   :  { %s815_s21 = smov 0   ;;  %s924_s0 = inlined_call_operand.vmem [shape: bf16[2,64,64], index: 0, kind: input, shape index: {}]   ;;  %s925_s1 = inlined_call_operand.vmem [shape: bf16[1,64,64], index: 1, kind: input, shape index: {}]   ;;  %s926_s2 = inlined_call_operand.vmem [shape: f32[1,64], index: 2, kind: input, shape index: {}]   ;;  %s927_s3 = inlined_call_operand.vmem [shape: f32[64,1], index: 3, kind: input, shape index: {}]   ;;  %s928_s4 = inlined_call_operand.vmem [shape: bf16[2,64,64], index: 4, kind: output, shape index: {0}]   ;;  %s929_s5 = inlined_call_operand.vmem [shape: f32[2,1,64], index: 5, kind: output, shape index: {1}]   ;;  %s930_s6 = inlined_call_operand.vmem [shape: f32[2,1,64], index: 6, kind: output, shape index: {2}]  }
   0x1 LB: > { %s678_s22 = sadd.s32 4294967295, %s777_s21   ;;  %p682_p0 = scmp.ge.s32.totalorder %s777_s21, 1  ;;  %s777_s21 = sphi %s815_s21, %s17_s21  }
   0x2   : > { %p217_p1 = scmp.lt.s32.totalorder %s777_s21, 3 }
   0x4   : > { %p218_p2 = pnand %p682_p0, %p217_p1 }
   0x5   : > { %v763_v0 = vld [vmem:[%s925_s1] sm:$0xff] (!%p218_p2)   ;;  %p253_p3 = scmp.lt.s32.totalorder (!%p218_p2), %s678_s22, 1  ;;  %v764_v1 = vld [vmem:[%s925_s1 + $0x8] sm:$0xff] (!%p218_p2)   ;;  %v765_v2 = vld [vmem:[%s925_s1 + $0x10] sm:$0xff] (!%p218_p2)   ;;  %v779_v5 = vmov (!%p218_p2), 0   ;;  %vm337_vm0 = vcmask (!%p218_p2), 523264  }
   0x6   : > { %221 = sbr.rel (%p218_p2) target bundleno = 274 (0x112), region = 36  ;;  %728 = vmatprep.subr.bf16.mxu0 (!%p218_p2), %v763_v0  ;;  %744 = vmatprep.subr.bf16.mxu1 (!%p218_p2), %v763_v0  ;;  %v464_v3 = vld [vmem:[%s927_s3] sm:$0xff] (!%p218_p2)  ;;  %v466_v4 = vld [vmem:[%s927_s3 + $0x10] sm:$0xff] (!%p218_p2)  ;;  %v465_v6 = vld [vmem:[%s927_s3 + $0x8] sm:$0xff] (!%p218_p2)  ;;  %vm455_vm1 = vcmask (!%p218_p2), 519168   ;;  %vm541_vm2 = vcmask (!%p218_p2), 516096  }
   0x7   : > { %729 = vmatpush3.bf16.msra.mxu0 (!%p218_p2), %v763_v0  ;;  %748 = vmatpush3.bf16.msra.mxu1 (!%p218_p2), %v763_v0  ;;  %v467_v7 = vld [vmem:[%s927_s3 + $0x18] sm:$0xff] (!%p218_p2)  ;;  %v468_v11 = vld [vmem:[%s927_s3 + $0x20] sm:$0xff] (!%p218_p2)  ;;  %v469_v12 = vld [vmem:[%s927_s3 + $0x28] sm:$0xff] (!%p218_p2) }
   0x8   : > { %730 = vmatprep.subr.bf16.mxu0 (!%p218_p2), %v764_v1  ;;  %745 = vmatprep.subr.bf16.mxu1 (!%p218_p2), %v764_v1  ;;  %v766_v10 = vld [vmem:[%s925_s1 + $0x18] sm:$0xff] (!%p218_p2)   ;;  %v470_v15 = vld [vmem:[%s927_s3 + $0x30] sm:$0xff] (!%p218_p2)  ;;  %v687_v18 = vld [vmem:[%s926_s2] ss:$0 sm:$0xff] (!%p218_p2) }
   0x9   : > { %761 = vset.pattern.permute.xlu0 (!%p218_p2), %v779_v5  ;;  %762 = vset.pattern.permute.xlu1 (!%p218_p2), %v779_v5  ;;  %v471_v16 = vld [vmem:[%s927_s3 + $0x38] sm:$0xff] (!%p218_p2) }
   0xa   : > { %474 = vperm.xlu0 (!%p218_p2), %761, %v464_v3   ;;  %484 = vperm.xlu1 (!%p218_p2), %762, %v466_v4  }
   0xb   : > { %731 = vmatpush3.bf16.msra.mxu0 (!%p218_p2), %v764_v1  ;;  %749 = vmatpush3.bf16.msra.mxu1 (!%p218_p2), %v764_v1 }
   0xc   : > { %732 = vmatprep.subr.bf16.mxu0 (!%p218_p2), %v765_v2  ;;  %746 = vmatprep.subr.bf16.mxu1 (!%p218_p2), %v765_v2 }
   0xd   : > { %s932_s22 = smov (!%p253_p3, %s678_s22), 1 }
   0xe   : > { %s710_s29 = sshll.u32 %s932_s22, 5  ;;  %479 = vperm.xlu0 %761, %v465_v6   ;;  %489 = vperm.xlu1 %762, %v467_v7   ;;  %s268_s15 = scalar_lea.vmem %s930_s6, %s932_s22 }
   0xf   : > { %s257_s12 = scalar_lea.vmem %s924_s0, %s710_s29  ;;  %733 = vmatpush3.bf16.msra.mxu0 %v765_v2  ;;  %750 = vmatpush3.bf16.msra.mxu1 %v765_v2  ;;  %s879_s10 = scalar_lea.vmem %s928_s4, %s710_s29 }
  0x10   : > { %v767_v8 = vld [vmem:[%s257_s12] sm:$0xff]   ;;  %v768_v9 = vld [vmem:[%s257_s12 + $0x10] sm:$0xff]   ;;  %734 = vmatprep.subr.bf16.mxu0 %v766_v10  ;;  %747 = vmatprep.subr.bf16.mxu1 %v766_v10  ;;  %v769_v13 = vld [vmem:[%s257_s12 + $0x8] sm:$0xff]  }
  0x11   : > { %736 = vmatprep.mubr.msk.bf16.mxu0 %vm337_vm0, %v767_v8  ;;  %740 = vmatprep.mubr.msk.bf16.mxu1 %vm337_vm0, %v768_v9  ;;  %v770_v14 = vld [vmem:[%s257_s12 + $0x18] sm:$0xff]   ;;  %s265_s12 = scalar_lea.vmem %s929_s5, %s932_s22 }
  0x12   : > { %494 = vperm.xlu0 %761, %v468_v11   ;;  %499 = vperm.xlu1 %762, %v469_v12  }
  0x13   : > { %735 = vmatpush3.bf16.msra.mxu0 %v766_v10  ;;  %751 = vmatpush3.bf16.msra.mxu1 %v766_v10 }
  0x16   : > { %737 = vmatmul.mubr.msk.bf16.vlgmr.msra.gmra.mrb[0].mxu0 %vm337_vm0, %v769_v13  ;;  %741 = vmatmul.mubr.msk.bf16.vlgmr.msra.gmra.mrb[0].mxu1 %vm337_vm0, %v770_v14 }
  0x17   : > { %504 = vperm.xlu0 %761, %v470_v15   ;;  %509 = vperm.xlu1 %762, %v471_v16  }
  0x89   : > { %v475_v17 = vpop.permute.xlu0 %474  ;;  %v485_v19 = vpop.permute.xlu1 %484 }
  0x8d   : > { %v480_v20 = vpop.permute.xlu0 %479  ;;  %v490_v38 = vpop.permute.xlu1 %489 }
  0x91   : > { %v495_v49 = vpop.permute.xlu0 %494  ;;  %v500_v54 = vpop.permute.xlu1 %499 }
  0x96   : > { %v505_v3 = vpop.permute.xlu0 %504  ;;  %v510_v11 = vpop.permute.xlu1 %509 }
  0xe9   : > { %v738_v21 = vpop.f32.mrb[0].mxu0  ;;  %v742_v22 = vpop.f32.mrb[0].mxu1 }
  0xea   : > { %v393_v23 = vadd.f32 %v738_v21, %v687_v18  ;;  %v409_v24 = vadd.f32 %v742_v22, %v687_v18  ;;  %v384_v25 = vpop.f32.mrb[1].mxu0  ;;  %v400_v26 = vpop.f32.mrb[1].mxu1 }
  0xeb   : > { %v385_v27 = vadd.f32 %v687_v18, %v384_v25  ;;  %v401_v28 = vadd.f32 %v687_v18, %v400_v26  ;;  %v739_v29 = vpop.f32.mrb[2].mxu0  ;;  %v743_v30 = vpop.f32.mrb[2].mxu1 }
  0xec   : > { %v417_v31 = vmax.f32 %v393_v23, 0.0  ;;  %v421_v32 = vmax.f32 %v409_v24, 0.0  ;;  %v396_v33 = vadd.f32 %v739_v29, %v687_v18  ;;  %v387_v34 = vpop.f32.mrb[3].mxu0  ;;  %v403_v35 = vpop.f32.mrb[3].mxu1  ;;  %v412_v42 = vadd.f32 %v743_v30, %v687_v18 }
  0xed   : > { %v415_v36 = vmax.f32 %v385_v27, 0.0  ;;  %v419_v37 = vmax.f32 %v401_v28, 0.0  ;;  %v388_v45 = vadd.f32 %v687_v18, %v387_v34  ;;  %v404_v47 = vadd.f32 %v687_v18, %v403_v35 }
  0xee   : > { %v714_v39 = vpack.c.bf16 %v417_v31, %v417_v31  ;;  %v718_v40 = vpack.c.bf16 %v421_v32, %v421_v32  ;;  %v418_v41 = vmax.f32 %v396_v33, 0.0  ;;  %v422_v50 = vmax.f32 %v412_v42, 0.0 }
  0xef   : > { %v712_v43 = vpack.c.bf16 %v415_v36, %v415_v36  ;;  %v716_v44 = vpack.c.bf16 %v419_v37, %v419_v37  ;;  %v512_v48 = vmul.f32 %v475_v17, %v415_v36  ;;  %v514_v51 = vmul.f32 %v485_v19, %v417_v31 }
  0xf0   : > { %458 = vst.msk [vmem:[%s879_s10 + $0x8] sm:$0xf] %vm455_vm1, %v714_v39  ;;  %462 = vst.msk [vmem:[%s879_s10 + $0x18] sm:$0xf] %vm455_vm1, %v718_v40  ;;  %v715_v46 = vpack.c.bf16 %v418_v41, %v418_v41  ;;  %v416_v52 = vmax.f32 %v388_v45, 0.0  ;;  %v719_v53 = vpack.c.bf16 %v422_v50, %v422_v50  ;;  %v420_v55 = vmax.f32 %v404_v47, 0.0 }
  0xf1   : > { %456 = vst.msk [vmem:[%s879_s10] sm:$0xf] %vm455_vm1, %v712_v43  ;;  %460 = vst.msk [vmem:[%s879_s10 + $0x10] sm:$0xf] %vm455_vm1, %v716_v44  ;;  %v543_v56 = vmul.f32 %v512_v48, %v512_v48  ;;  %v515_v57 = vmul.f32 %v490_v38, %v418_v41  ;;  %v516_v60 = vmul.f32 %v495_v49, %v419_v37  ;;  %v520_v63 = vsel %vm337_vm0, %v512_v48, 0.0 }
  0xf2   : > { %459 = vst.msk [vmem:[%s879_s10 + $0xc] sm:$0xf] %vm455_vm1, %v715_v46  ;;  %v713_v58 = vpack.c.bf16 %v416_v52, %v416_v52  ;;  %v513_v59 = vmul.f32 %v480_v20, %v416_v52  ;;  %463 = vst.msk [vmem:[%s879_s10 + $0x1c] sm:$0xf] %vm455_vm1, %v719_v53  ;;  %v717_v61 = vpack.c.bf16 %v420_v55, %v420_v55  ;;  %v523_v2 = vsel %vm337_vm0, %v514_v51, 0.0 }
  0xf3   : > { %v545_v62 = vmul.f32 %v514_v51, %v514_v51  ;;  %v551_v5 = vsel %vm337_vm0, %v543_v56, 0.0  ;;  %v546_v6 = vmul.f32 %v515_v57, %v515_v57  ;;  %v517_v8 = vmul.f32 %v500_v54, %v420_v55 }
  0xf4   : > { %457 = vst.msk [vmem:[%s879_s10 + $0x4] sm:$0xf] %vm455_vm1, %v713_v58  ;;  %v521_v0 = vsel %vm337_vm0, %v513_v59, 0.0  ;;  %v544_v1 = vmul.f32 %v513_v59, %v513_v59  ;;  %461 = vst.msk [vmem:[%s879_s10 + $0x14] sm:$0xf] %vm455_vm1, %v717_v61  ;;  %v547_v13 = vmul.f32 %v516_v60, %v516_v60  ;;  %v525_v14 = vsel %vm337_vm0, %v515_v57, 0.0 }
  0xf5   : > { %v522_v4 = vadd.f32 %v521_v0, %v520_v63  ;;  %v554_v12 = vsel %vm337_vm0, %v545_v62, 0.0  ;;  %v518_v15 = vmul.f32 %v505_v3, %v421_v32  ;;  %v527_v18 = vsel %vm337_vm0, %v516_v60, 0.0 }
  0xf6   : > { %v552_v7 = vsel %vm337_vm0, %v544_v1, 0.0  ;;  %v556_v19 = vsel %vm337_vm0, %v546_v6, 0.0  ;;  %v548_v20 = vmul.f32 %v517_v8, %v517_v8  ;;  %v519_v21 = vmul.f32 %v510_v11, %v422_v50 }
  0xf7   : > { %v524_v9 = vadd.f32 %v523_v2, %v522_v4  ;;  %v553_v10 = vadd.f32 %v552_v7, %v551_v5  ;;  %v558_v24 = vsel %vm337_vm0, %v547_v13, 0.0  ;;  %v549_v25 = vmul.f32 %v518_v15, %v518_v15 }
  0xf8   : > { %v529_v26 = vsel %vm337_vm0, %v517_v8, 0.0  ;;  %v531_v29 = vsel %vm337_vm0, %v518_v15, 0.0  ;;  %v560_v30 = vsel %vm337_vm0, %v548_v20, 0.0  ;;  %v550_v31 = vmul.f32 %v519_v21, %v519_v21 }
  0xf9   : > { %v555_v16 = vadd.f32 %v554_v12, %v553_v10  ;;  %v526_v17 = vadd.f32 %v525_v14, %v524_v9  ;;  %v562_v34 = vsel %vm337_vm0, %v549_v25, 0.0  ;;  %v533_v35 = vsel %vm337_vm0, %v519_v21, 0.0 }
  0xfa   : > { %v564_v38 = vsel %vm337_vm0, %v550_v31, 0.0 }
  0xfb   : > { %v528_v22 = vadd.f32 %v527_v18, %v526_v17  ;;  %v557_v23 = vadd.f32 %v556_v19, %v555_v16 }
  0xfd   : > { %v530_v27 = vadd.f32 %v529_v26, %v528_v22  ;;  %v559_v28 = vadd.f32 %v558_v24, %v557_v23 }
  0xff   : > { %v561_v32 = vadd.f32 %v560_v30, %v559_v28  ;;  %v532_v33 = vadd.f32 %v531_v29, %v530_v27 }
 0x101   : > { %v534_v36 = vadd.f32 %v533_v35, %v532_v33  ;;  %v563_v37 = vadd.f32 %v562_v34, %v561_v32 }
 0x103   : > { %v535_v39 = vrot.slane %v534_v36, 4  ;;  %v565_v40 = vadd.f32 %v564_v38, %v563_v37 }
 0x105   : > { %v536_v41 = vadd.f32 %v535_v39, %v534_v36  ;;  %v566_v42 = vrot.slane %v565_v40, 4 }
 0x107   : > { %v537_v43 = vrot.slane %v536_v41, 2  ;;  %v567_v44 = vadd.f32 %v566_v42, %v565_v40 }
 0x109   : > { %v538_v45 = vadd.f32 %v537_v43, %v536_v41  ;;  %v568_v46 = vrot.slane %v567_v44, 2 }
 0x10b   : > { %v539_v47 = vrot.slane %v538_v45, 1  ;;  %v569_v48 = vadd.f32 %v568_v46, %v567_v44 }
 0x10d   : > { %v540_v49 = vadd.f32 %v539_v47, %v538_v45  ;;  %v570_v50 = vrot.slane %v569_v48, 1 }
 0x10f   : > { %542 = vst.msk [vmem:[%s265_s12] sm:$0x1] %vm541_vm2, %v540_v49  ;;  %v571_v51 = vadd.f32 %v570_v50, %v569_v48 }
 0x111   : > { %572 = vst.msk [vmem:[%s268_s15] sm:$0x1] %vm541_vm2, %v571_v51 }
 0x112 PF: > { %s17_s21 = sadd.s32 1, %s777_s21  }
 0x113   : > { %p14_p4 = scmp.ge.s32.totalorder %s17_s21, 4  }
 0x115   :  { %16 = sbr.rel (!%p14_p4) target bundleno = 1 (0x1), region = 90 }

// kernel: _forward.74
= control target key start
LH: loop header
LB: loop body
LE: loop exit
PB: predicated region body
PF: predicated region fallthrough
CT: control target
= control target key end

     0   :  { %s370_s0 = inlined_call_operand.vmem [shape: bf16[128,128], index: 0, kind: input, shape index: {}]   ;;  %s371_s1 = inlined_call_operand.vmem [shape: f32[1,128], index: 1, kind: input, shape index: {}]   ;;  %s372_s2 = inlined_call_operand.vmem [shape: f32[1,128], index: 2, kind: input, shape index: {}]   ;;  %s373_s3 = inlined_call_operand.vmem [shape: bf16[128,128], index: 3, kind: output, shape index: {}]  }
   0x1   :  { %v211_v0 = vld [vmem:[%s370_s0] sm:$0xff]   ;;  %v282_v4 = vld [vmem:[%s370_s0 + $0x8] sm:$0xff]   ;;  %v283_v5 = vld [vmem:[%s370_s0 + $0x10] sm:$0xff]  }
   0x2   :  { %v176_v1 = vld [vmem:[%s371_s1] ss:$0 sm:$0xff]  ;;  %v212_v2 = vunpack.c.l.bf16 %v211_v0  ;;  %v213_v3 = vunpack.c.h.bf16 %v211_v0  ;;  %v284_v6 = vld [vmem:[%s370_s0 + $0x18] sm:$0xff]   ;;  %v216_v8 = vunpack.c.l.bf16 %v282_v4  ;;  %v217_v9 = vunpack.c.h.bf16 %v282_v4  ;;  %v286_v25 = vld [vmem:[%s370_s0 + $0x28] sm:$0xff]  }
   0x3   :  { %v177_v7 = vld [vmem:[%s372_s2] ss:$0 sm:$0xff]  ;;  %v220_v10 = vunpack.c.l.bf16 %v283_v5  ;;  %v221_v11 = vunpack.c.h.bf16 %v283_v5  ;;  %v224_v14 = vunpack.c.l.bf16 %v284_v6  ;;  %v225_v15 = vunpack.c.h.bf16 %v284_v6  ;;  %v287_v30 = vld [vmem:[%s370_s0 + $0x30] sm:$0xff]   ;;  %v288_v35 = vld [vmem:[%s370_s0 + $0x38] sm:$0xff]  }
   0x4   :  { %v53_v12 = vmul.f32 %v212_v2, %v176_v1  ;;  %v54_v13 = vmul.f32 %v213_v3, %v176_v1  ;;  %v55_v16 = vmul.f32 %v216_v8, %v176_v1  ;;  %v56_v17 = vmul.f32 %v217_v9, %v176_v1  ;;  %v285_v20 = vld [vmem:[%s370_s0 + $0x20] sm:$0xff]  }
   0x5   :  { %v57_v18 = vmul.f32 %v220_v10, %v176_v1  ;;  %v58_v19 = vmul.f32 %v221_v11, %v176_v1  ;;  %v59_v23 = vmul.f32 %v224_v14, %v176_v1  ;;  %v60_v24 = vmul.f32 %v225_v15, %v176_v1 }
   0x6   :  { %v76_v21 = vadd.f32 %v177_v7, %v53_v12  ;;  %v77_v22 = vadd.f32 %v177_v7, %v54_v13  ;;  %v78_v26 = vadd.f32 %v177_v7, %v55_v16  ;;  %v79_v27 = vadd.f32 %v177_v7, %v56_v17 }
   0x7   :  { %v80_v28 = vadd.f32 %v177_v7, %v57_v18  ;;  %v81_v29 = vadd.f32 %v177_v7, %v58_v19  ;;  %v82_v32 = vadd.f32 %v177_v7, %v59_v23  ;;  %v83_v33 = vadd.f32 %v177_v7, %v60_v24 }
   0x8   :  { %v245_v31 = vpack.c.bf16 %v77_v22, %v76_v21  ;;  %v228_v34 = vunpack.c.l.bf16 %v285_v20  ;;  %v250_v36 = vpack.c.bf16 %v79_v27, %v78_v26  ;;  %v229_v38 = vunpack.c.h.bf16 %v285_v20 }
   0x9   :  { %v255_v37 = vpack.c.bf16 %v81_v29, %v80_v28  ;;  %v232_v39 = vunpack.c.l.bf16 %v286_v25  ;;  %v260_v40 = vpack.c.bf16 %v83_v33, %v82_v32  ;;  %v233_v42 = vunpack.c.h.bf16 %v286_v25 }
   0xa   :  { %246 = vst [vmem:[%s373_s3] sm:$0xff] %v245_v31   ;;  %v61_v41 = vmul.f32 %v228_v34, %v176_v1  ;;  %v236_v43 = vunpack.c.l.bf16 %v287_v30  ;;  %289 = vst [vmem:[%s373_s3 + $0x8] sm:$0xff] %v250_v36   ;;  %v62_v44 = vmul.f32 %v229_v38, %v176_v1  ;;  %v237_v46 = vunpack.c.h.bf16 %v287_v30 }
   0xb   :  { %290 = vst [vmem:[%s373_s3 + $0x10] sm:$0xff] %v255_v37   ;;  %v63_v45 = vmul.f32 %v232_v39, %v176_v1  ;;  %v240_v47 = vunpack.c.l.bf16 %v288_v35  ;;  %291 = vst [vmem:[%s373_s3 + $0x18] sm:$0xff] %v260_v40   ;;  %v64_v49 = vmul.f32 %v233_v42, %v176_v1  ;;  %v241_v51 = vunpack.c.h.bf16 %v288_v35 }
   0xc   :  { %v84_v48 = vadd.f32 %v177_v7, %v61_v41  ;;  %v65_v50 = vmul.f32 %v236_v43, %v176_v1  ;;  %v85_v52 = vadd.f32 %v177_v7, %v62_v44  ;;  %v66_v54 = vmul.f32 %v237_v46, %v176_v1 }
   0xd   :  { %v86_v53 = vadd.f32 %v177_v7, %v63_v45  ;;  %v67_v55 = vmul.f32 %v240_v47, %v176_v1  ;;  %v87_v56 = vadd.f32 %v177_v7, %v64_v49  ;;  %v68_v58 = vmul.f32 %v241_v51, %v176_v1 }
   0xe   :  { %v88_v57 = vadd.f32 %v177_v7, %v65_v50  ;;  %v265_v59 = vpack.c.bf16 %v85_v52, %v84_v48  ;;  %v89_v60 = vadd.f32 %v177_v7, %v66_v54 }
   0xf   :  { %v90_v61 = vadd.f32 %v177_v7, %v67_v55  ;;  %v270_v62 = vpack.c.bf16 %v87_v56, %v86_v53  ;;  %v91_v63 = vadd.f32 %v177_v7, %v68_v58 }
  0x10   :  { %292 = vst [vmem:[%s373_s3 + $0x20] sm:$0xff] %v265_v59   ;;  %v275_v0 = vpack.c.bf16 %v89_v60, %v88_v57 }
  0x11   :  { %293 = vst [vmem:[%s373_s3 + $0x28] sm:$0xff] %v270_v62   ;;  %v280_v2 = vpack.c.bf16 %v91_v63, %v90_v61 }
  0x12   :  { %294 = vst [vmem:[%s373_s3 + $0x30] sm:$0xff] %v275_v0  }
  0x13   :  { %295 = vst [vmem:[%s373_s3 + $0x38] sm:$0xff] %v280_v2  }

// kernel: _forward.75
= control target key start
LH: loop header
LB: loop body
LE: loop exit
PB: predicated region body
PF: predicated region fallthrough
CT: control target
= control target key end

     0   :  { %s998_s12 = smov 0   ;;  %s1167_s0 = inlined_call_operand.vmem [shape: bf16[2,256,128], index: 0, kind: input, shape index: {}]   ;;  %s1168_s1 = inlined_call_operand.vmem [shape: bf16[1,128,2], index: 1, kind: input, shape index: {}]   ;;  %s1169_s2 = inlined_call_operand.vmem [shape: f32[1,2], index: 2, kind: input, shape index: {}]   ;;  %s1170_s3 = inlined_call_operand.vmem [shape: bf16[2,256,2], index: 3, kind: output, shape index: {}]  }
   0x1 LB: > { %s748_s13 = sadd.s32 4294967295, %s976_s12   ;;  %p752_p0 = scmp.ge.s32.totalorder %s976_s12, 1  ;;  %s976_s12 = sphi %s998_s12, %s13_s12  }
   0x2   : > { %p137_p1 = scmp.lt.s32.totalorder %s976_s12, 3 }
   0x4   : > { %p138_p2 = pnand %p752_p0, %p137_p1 }
   0x5   : > { %v946_v0 = vld [vmem:[%s1168_s1] sm:$0xff] (!%p138_p2)   ;;  %p161_p3 = scmp.lt.s32.totalorder (!%p138_p2), %s748_s13, 1  ;;  %v947_v1 = vld [vmem:[%s1168_s1 + $0x8] sm:$0xff] (!%p138_p2)   ;;  %v948_v2 = vld [vmem:[%s1168_s1 + $0x10] sm:$0xff] (!%p138_p2)   ;;  %vm660_vm0 = vcmask (!%p138_p2), 11264  }
   0x6   : > { %141 = sbr.rel (%p138_p2) target bundleno = 282 (0x11a), region = 32  ;;  %874 = vmatprep.subr.bf16.mxu0 (!%p138_p2), %v946_v0  ;;  %922 = vmatprep.subr.bf16.mxu1 (!%p138_p2), %v946_v0  ;;  %v949_v3 = vld [vmem:[%s1168_s1 + $0x18] sm:$0xff] (!%p138_p2)   ;;  %v950_v6 = vld [vmem:[%s1168_s1 + $0x20] sm:$0xff] (!%p138_p2)   ;;  %v951_v7 = vld [vmem:[%s1168_s1 + $0x28] sm:$0xff] (!%p138_p2)  }
   0x7   : > { %875 = vmatpush3.bf16.msra.mxu0 (!%p138_p2), %v946_v0  ;;  %930 = vmatpush3.bf16.msra.mxu1 (!%p138_p2), %v946_v0  ;;  %v952_v8 = vld [vmem:[%s1168_s1 + $0x30] sm:$0xff] (!%p138_p2)   ;;  %v953_v9 = vld [vmem:[%s1168_s1 + $0x38] sm:$0xff] (!%p138_p2)   ;;  %v1059_v24 = vld [vmem:[%s1169_s2] ss:$0 sm:$0xff] (!%p138_p2) }
   0x8   : > { %876 = vmatprep.subr.bf16.mxu0 (!%p138_p2), %v947_v1  ;;  %923 = vmatprep.subr.bf16.mxu1 (!%p138_p2), %v947_v1 }
   0xb   : > { %877 = vmatpush3.bf16.msra.mxu0 (!%p138_p2), %v947_v1  ;;  %931 = vmatpush3.bf16.msra.mxu1 (!%p138_p2), %v947_v1 }
   0xc   : > { %878 = vmatprep.subr.bf16.mxu0 (!%p138_p2), %v948_v2  ;;  %924 = vmatprep.subr.bf16.mxu1 (!%p138_p2), %v948_v2 }
   0xd   : > { %s1172_s13 = smov (!%p161_p3, %s748_s13), 1 }
   0xe   : > { %s816_s20 = sshll.u32 %s1172_s13, 7 }
   0xf   : > { %s1023_s23 = scalar_lea.vmem %s1167_s0, %s816_s20  ;;  %879 = vmatpush3.bf16.msra.mxu0 %v948_v2  ;;  %932 = vmatpush3.bf16.msra.mxu1 %v948_v2  ;;  %s1068_s11 = scalar_lea.vmem %s1170_s3, %s816_s20 }
  0x10   : > { %v954_v4 = vld [vmem:[%s1023_s23] sm:$0xff]   ;;  %880 = vmatprep.subr.bf16.mxu0 %v949_v3  ;;  %925 = vmatprep.subr.bf16.mxu1 %v949_v3  ;;  %v956_v10 = vld [vmem:[%s1023_s23 + $0x8] sm:$0xff]   ;;  %v958_v12 = vld [vmem:[%s1023_s23 + $0x10] sm:$0xff]  }
  0x11   : > { %v955_v5 = vld [vmem:[%s1023_s23 + $0x40] sm:$0xff]   ;;  %890 = vmatprep.mubr.bf16.mxu0 %v954_v4  ;;  %v957_v11 = vld [vmem:[%s1023_s23 + $0x48] sm:$0xff]   ;;  %v959_v13 = vld [vmem:[%s1023_s23 + $0x50] sm:$0xff]  }
  0x12   : > { %906 = vmatprep.mubr.bf16.mxu1 %v955_v5  ;;  %v960_v14 = vld [vmem:[%s1023_s23 + $0x18] sm:$0xff]   ;;  %v962_v16 = vld [vmem:[%s1023_s23 + $0x20] sm:$0xff]   ;;  %v964_v18 = vld [vmem:[%s1023_s23 + $0x28] sm:$0xff]  }
  0x13   : > { %881 = vmatpush3.bf16.msra.mxu0 %v949_v3  ;;  %933 = vmatpush3.bf16.msra.mxu1 %v949_v3  ;;  %v961_v15 = vld [vmem:[%s1023_s23 + $0x58] sm:$0xff]   ;;  %v963_v17 = vld [vmem:[%s1023_s23 + $0x60] sm:$0xff]   ;;  %v965_v19 = vld [vmem:[%s1023_s23 + $0x68] sm:$0xff]  }
  0x14   : > { %882 = vmatprep.subr.bf16.mxu0 %v950_v6  ;;  %926 = vmatprep.subr.bf16.mxu1 %v950_v6  ;;  %v966_v20 = vld [vmem:[%s1023_s23 + $0x30] sm:$0xff]   ;;  %v968_v22 = vld [vmem:[%s1023_s23 + $0x38] sm:$0xff]  }
  0x15   : > { %v967_v21 = vld [vmem:[%s1023_s23 + $0x70] sm:$0xff]   ;;  %v969_v23 = vld [vmem:[%s1023_s23 + $0x78] sm:$0xff]  }
  0x17   : > { %883 = vmatpush3.bf16.msra.mxu0 %v950_v6  ;;  %934 = vmatpush3.bf16.msra.mxu1 %v950_v6 }
  0x18   : > { %884 = vmatprep.subr.bf16.mxu0 %v951_v7  ;;  %927 = vmatprep.subr.bf16.mxu1 %v951_v7 }
  0x1b   : > { %885 = vmatpush3.bf16.msra.mxu0 %v951_v7  ;;  %935 = vmatpush3.bf16.msra.mxu1 %v951_v7 }
  0x1c   : > { %886 = vmatprep.subr.bf16.mxu0 %v952_v8  ;;  %928 = vmatprep.subr.bf16.mxu1 %v952_v8 }
  0x1f   : > { %887 = vmatpush3.bf16.msra.mxu0 %v952_v8  ;;  %936 = vmatpush3.bf16.msra.mxu1 %v952_v8 }
  0x20   : > { %888 = vmatprep.subr.bf16.mxu0 %v953_v9  ;;  %929 = vmatprep.subr.bf16.mxu1 %v953_v9 }
  0x23   : > { %889 = vmatpush3.bf16.msra.mxu0 %v953_v9  ;;  %937 = vmatpush3.bf16.msra.mxu1 %v953_v9 }
  0x26   : > { %891 = vmatmul.mubr.bf16.vlgmr.msra.gmra.mrb[0].mxu0 %v956_v10  ;;  %907 = vmatmul.mubr.bf16.vlgmr.msra.gmra.mrb[0].mxu1 %v957_v11 }
  0x27   : > { %894 = vmatprep.mubr.bf16.mxu0 %v958_v12  ;;  %910 = vmatprep.mubr.bf16.mxu1 %v959_v13 }
  0x2e   : > { %895 = vmatmul.mubr.bf16.gmra.mrb[4].mxu0 %v960_v14  ;;  %911 = vmatmul.mubr.bf16.gmra.mrb[4].mxu1 %v961_v15 }
  0x2f   : > { %898 = vmatprep.mubr.bf16.mxu0 %v962_v16  ;;  %914 = vmatprep.mubr.bf16.mxu1 %v963_v17 }
  0x36   : > { %899 = vmatmul.mubr.bf16.gmra.mrb[8].mxu0 %v964_v18  ;;  %915 = vmatmul.mubr.bf16.gmra.mrb[8].mxu1 %v965_v19 }
  0x37   : > { %902 = vmatprep.mubr.bf16.mxu0 %v966_v20  ;;  %918 = vmatprep.mubr.bf16.mxu1 %v967_v21 }
  0x3e   : > { %903 = vmatmul.mubr.bf16.gmra.mrb[12].mxu0 %v968_v22  ;;  %919 = vmatmul.mubr.bf16.gmra.mrb[12].mxu1 %v969_v23 }
  0xf9   : > { %v892_v25 = vpop.f32.mrb[0].mxu0  ;;  %v908_v26 = vpop.f32.mrb[0].mxu1 }
  0xfa   : > { %v414_v27 = vadd.f32 %v892_v25, %v1059_v24  ;;  %v478_v28 = vadd.f32 %v908_v26, %v1059_v24  ;;  %v405_v29 = vpop.f32.mrb[1].mxu0  ;;  %v469_v30 = vpop.f32.mrb[1].mxu1 }
  0xfb   : > { %v406_v31 = vadd.f32 %v1059_v24, %v405_v29  ;;  %v470_v32 = vadd.f32 %v1059_v24, %v469_v30  ;;  %v893_v33 = vpop.f32.mrb[2].mxu0  ;;  %v909_v34 = vpop.f32.mrb[2].mxu1 }
  0xfc   : > { %v820_v35 = vpack.c.bf16 %v414_v27, %v414_v27  ;;  %v836_v36 = vpack.c.bf16 %v478_v28, %v478_v28  ;;  %v417_v37 = vadd.f32 %v893_v33, %v1059_v24  ;;  %v481_v38 = vadd.f32 %v909_v34, %v1059_v24  ;;  %v408_v39 = vpop.f32.mrb[3].mxu0  ;;  %v472_v40 = vpop.f32.mrb[3].mxu1 }
  0xfd   : > { %v818_v41 = vpack.c.bf16 %v406_v31, %v406_v31  ;;  %v834_v42 = vpack.c.bf16 %v470_v32, %v470_v32  ;;  %v409_v43 = vadd.f32 %v1059_v24, %v408_v39  ;;  %v473_v44 = vadd.f32 %v1059_v24, %v472_v40 }
  0xfe   : > { %663 = vst.msk [vmem:[%s1068_s11 + $0x8] sm:$0xf] %vm660_vm0, %v820_v35  ;;  %679 = vst.msk [vmem:[%s1068_s11 + $0x48] sm:$0xf] %vm660_vm0, %v836_v36  ;;  %v821_v45 = vpack.c.bf16 %v417_v37, %v417_v37  ;;  %v837_v46 = vpack.c.bf16 %v481_v38, %v481_v38 }
  0xff   : > { %661 = vst.msk [vmem:[%s1068_s11] sm:$0xf] %vm660_vm0, %v818_v41  ;;  %677 = vst.msk [vmem:[%s1068_s11 + $0x40] sm:$0xf] %vm660_vm0, %v834_v42  ;;  %v819_v47 = vpack.c.bf16 %v409_v43, %v409_v43  ;;  %v835_v48 = vpack.c.bf16 %v473_v44, %v473_v44 }
 0x100   : > { %664 = vst.msk [vmem:[%s1068_s11 + $0xc] sm:$0xf] %vm660_vm0, %v821_v45  ;;  %680 = vst.msk [vmem:[%s1068_s11 + $0x4c] sm:$0xf] %vm660_vm0, %v837_v46 }
 0x101   : > { %662 = vst.msk [vmem:[%s1068_s11 + $0x4] sm:$0xf] %vm660_vm0, %v819_v47  ;;  %678 = vst.msk [vmem:[%s1068_s11 + $0x44] sm:$0xf] %vm660_vm0, %v835_v48  ;;  %v896_v49 = vpop.f32.mrb[4].mxu0  ;;  %v912_v50 = vpop.f32.mrb[4].mxu1 }
 0x102   : > { %v430_v51 = vadd.f32 %v896_v49, %v1059_v24  ;;  %v494_v52 = vadd.f32 %v912_v50, %v1059_v24  ;;  %v421_v53 = vpop.f32.mrb[5].mxu0  ;;  %v485_v54 = vpop.f32.mrb[5].mxu1 }
 0x103   : > { %v422_v55 = vadd.f32 %v1059_v24, %v421_v53  ;;  %v486_v56 = vadd.f32 %v1059_v24, %v485_v54  ;;  %v897_v57 = vpop.f32.mrb[6].mxu0  ;;  %v913_v58 = vpop.f32.mrb[6].mxu1 }
 0x104   : > { %v824_v59 = vpack.c.bf16 %v430_v51, %v430_v51  ;;  %v840_v60 = vpack.c.bf16 %v494_v52, %v494_v52  ;;  %v433_v61 = vadd.f32 %v897_v57, %v1059_v24  ;;  %v497_v62 = vadd.f32 %v913_v58, %v1059_v24  ;;  %v424_v63 = vpop.f32.mrb[7].mxu0  ;;  %v488_v0 = vpop.f32.mrb[7].mxu1 }
 0x105   : > { %v822_v1 = vpack.c.bf16 %v422_v55, %v422_v55  ;;  %v838_v2 = vpack.c.bf16 %v486_v56, %v486_v56  ;;  %v425_v3 = vadd.f32 %v1059_v24, %v424_v63  ;;  %v489_v4 = vadd.f32 %v1059_v24, %v488_v0 }
 0x106   : > { %667 = vst.msk [vmem:[%s1068_s11 + $0x18] sm:$0xf] %vm660_vm0, %v824_v59  ;;  %683 = vst.msk [vmem:[%s1068_s11 + $0x58] sm:$0xf] %vm660_vm0, %v840_v60  ;;  %v825_v5 = vpack.c.bf16 %v433_v61, %v433_v61  ;;  %v841_v6 = vpack.c.bf16 %v497_v62, %v497_v62 }
 0x107   : > { %665 = vst.msk [vmem:[%s1068_s11 + $0x10] sm:$0xf] %vm660_vm0, %v822_v1  ;;  %681 = vst.msk [vmem:[%s1068_s11 + $0x50] sm:$0xf] %vm660_vm0, %v838_v2  ;;  %v823_v7 = vpack.c.bf16 %v425_v3, %v425_v3  ;;  %v839_v8 = vpack.c.bf16 %v489_v4, %v489_v4 }
 0x108   : > { %668 = vst.msk [vmem:[%s1068_s11 + $0x1c] sm:$0xf] %vm660_vm0, %v825_v5  ;;  %684 = vst.msk [vmem:[%s1068_s11 + $0x5c] sm:$0xf] %vm660_vm0, %v841_v6 }
 0x109   : > { %666 = vst.msk [vmem:[%s1068_s11 + $0x14] sm:$0xf] %vm660_vm0, %v823_v7  ;;  %682 = vst.msk [vmem:[%s1068_s11 + $0x54] sm:$0xf] %vm660_vm0, %v839_v8  ;;  %v900_v9 = vpop.f32.mrb[8].mxu0  ;;  %v916_v10 = vpop.f32.mrb[8].mxu1 }
 0x10a   : > { %v446_v11 = vadd.f32 %v900_v9, %v1059_v24  ;;  %v510_v12 = vadd.f32 %v916_v10, %v1059_v24  ;;  %v437_v13 = vpop.f32.mrb[9].mxu0  ;;  %v501_v14 = vpop.f32.mrb[9].mxu1 }
 0x10b   : > { %v438_v15 = vadd.f32 %v1059_v24, %v437_v13  ;;  %v502_v16 = vadd.f32 %v1059_v24, %v501_v14  ;;  %v901_v17 = vpop.f32.mrb[10].mxu0  ;;  %v917_v18 = vpop.f32.mrb[10].mxu1 }
 0x10c   : > { %v828_v19 = vpack.c.bf16 %v446_v11, %v446_v11  ;;  %v844_v20 = vpack.c.bf16 %v510_v12, %v510_v12  ;;  %v449_v21 = vadd.f32 %v901_v17, %v1059_v24  ;;  %v513_v22 = vadd.f32 %v917_v18, %v1059_v24  ;;  %v440_v23 = vpop.f32.mrb[11].mxu0  ;;  %v504_v25 = vpop.f32.mrb[11].mxu1 }
 0x10d   : > { %v826_v26 = vpack.c.bf16 %v438_v15, %v438_v15  ;;  %v842_v27 = vpack.c.bf16 %v502_v16, %v502_v16  ;;  %v441_v28 = vadd.f32 %v1059_v24, %v440_v23  ;;  %v505_v29 = vadd.f32 %v1059_v24, %v504_v25 }
 0x10e   : > { %671 = vst.msk [vmem:[%s1068_s11 + $0x28] sm:$0xf] %vm660_vm0, %v828_v19  ;;  %687 = vst.msk [vmem:[%s1068_s11 + $0x68] sm:$0xf] %vm660_vm0, %v844_v20  ;;  %v829_v30 = vpack.c.bf16 %v449_v21, %v449_v21  ;;  %v845_v31 = vpack.c.bf16 %v513_v22, %v513_v22 }
 0x10f   : > { %669 = vst.msk [vmem:[%s1068_s11 + $0x20] sm:$0xf] %vm660_vm0, %v826_v26  ;;  %685 = vst.msk [vmem:[%s1068_s11 + $0x60] sm:$0xf] %vm660_vm0, %v842_v27  ;;  %v827_v32 = vpack.c.bf16 %v441_v28, %v441_v28  ;;  %v843_v33 = vpack.c.bf16 %v505_v29, %v505_v29 }
 0x110   : > { %672 = vst.msk [vmem:[%s1068_s11 + $0x2c] sm:$0xf] %vm660_vm0, %v829_v30  ;;  %688 = vst.msk [vmem:[%s1068_s11 + $0x6c] sm:$0xf] %vm660_vm0, %v845_v31 }
 0x111   : > { %670 = vst.msk [vmem:[%s1068_s11 + $0x24] sm:$0xf] %vm660_vm0, %v827_v32  ;;  %686 = vst.msk [vmem:[%s1068_s11 + $0x64] sm:$0xf] %vm660_vm0, %v843_v33  ;;  %v904_v34 = vpop.f32.mrb[12].mxu0  ;;  %v920_v35 = vpop.f32.mrb[12].mxu1 }
 0x112   : > { %v462_v36 = vadd.f32 %v904_v34, %v1059_v24  ;;  %v526_v37 = vadd.f32 %v920_v35, %v1059_v24  ;;  %v453_v38 = vpop.f32.mrb[13].mxu0  ;;  %v517_v39 = vpop.f32.mrb[13].mxu1 }
 0x113   : > { %v454_v40 = vadd.f32 %v1059_v24, %v453_v38  ;;  %v518_v41 = vadd.f32 %v1059_v24, %v517_v39  ;;  %v905_v42 = vpop.f32.mrb[14].mxu0  ;;  %v921_v43 = vpop.f32.mrb[14].mxu1 }
 0x114   : > { %v832_v44 = vpack.c.bf16 %v462_v36, %v462_v36  ;;  %v848_v45 = vpack.c.bf16 %v526_v37, %v526_v37  ;;  %v465_v46 = vadd.f32 %v905_v42, %v1059_v24  ;;  %v529_v47 = vadd.f32 %v921_v43, %v1059_v24  ;;  %v456_v48 = vpop.f32.mrb[15].mxu0  ;;  %v520_v49 = vpop.f32.mrb[15].mxu1 }
 0x115   : > { %v830_v50 = vpack.c.bf16 %v454_v40, %v454_v40  ;;  %v846_v51 = vpack.c.bf16 %v518_v41, %v518_v41  ;;  %v457_v52 = vadd.f32 %v1059_v24, %v456_v48  ;;  %v521_v53 = vadd.f32 %v1059_v24, %v520_v49 }
 0x116   : > { %675 = vst.msk [vmem:[%s1068_s11 + $0x38] sm:$0xf] %vm660_vm0, %v832_v44  ;;  %691 = vst.msk [vmem:[%s1068_s11 + $0x78] sm:$0xf] %vm660_vm0, %v848_v45  ;;  %v833_v54 = vpack.c.bf16 %v465_v46, %v465_v46  ;;  %v849_v55 = vpack.c.bf16 %v529_v47, %v529_v47 }
 0x117   : > { %673 = vst.msk [vmem:[%s1068_s11 + $0x30] sm:$0xf] %vm660_vm0, %v830_v50  ;;  %689 = vst.msk [vmem:[%s1068_s11 + $0x70] sm:$0xf] %vm660_vm0, %v846_v51  ;;  %v831_v56 = vpack.c.bf16 %v457_v52, %v457_v52  ;;  %v847_v57 = vpack.c.bf16 %v521_v53, %v521_v53 }
 0x118   : > { %676 = vst.msk [vmem:[%s1068_s11 + $0x3c] sm:$0xf] %vm660_vm0, %v833_v54  ;;  %692 = vst.msk [vmem:[%s1068_s11 + $0x7c] sm:$0xf] %vm660_vm0, %v849_v55 }
 0x119   : > { %674 = vst.msk [vmem:[%s1068_s11 + $0x34] sm:$0xf] %vm660_vm0, %v831_v56  ;;  %690 = vst.msk [vmem:[%s1068_s11 + $0x74] sm:$0xf] %vm660_vm0, %v847_v57 }
 0x11a PF: > { %s13_s12 = sadd.s32 1, %s976_s12  }
 0x11b   : > { %p10_p4 = scmp.ge.s32.totalorder %s13_s12, 4  }
 0x11d   :  { %12 = sbr.rel (!%p10_p4) target bundleno = 1 (0x1), region = 62 }

</bundles_post_ra>
